<compile_context>
chip_gen: v6e
topology: v6e:2x2x1
jax: 0.10.0
libtpu: 0.0.40
codegen_flags: <defaults>
</compile_context>

<pallas_src>
import math
import functools

import jax
import jax.numpy as jnp
from jax import lax
from jax.experimental import pallas as pl
from jax.experimental.pallas import tpu as pltpu

HIDDEN = 16      # hidden_dim[0]
IN_CH = 3        # input_dim
KSIZE = 3        # kernel_size
POOL = 3         # adaptive pool output size
FC1 = 128        # first Linear width


def _adaptive_windows(in_size, out_size):
    """PyTorch AdaptiveAvgPool2d window boundaries."""
    return [(int(math.floor(i * in_size / out_size)),
             int(math.ceil((i + 1) * in_size / out_size)))
            for i in range(out_size)]


# ---------------------------------------------------------------------------
# Fused kernel: x-conv precompute + serial ConvLSTM recurrence + head.
# Grid is (B,): one program per batch element ("parallel" for v7x megacore).
# All per-step tensors are (channels, HW) so the 256-wide axis is lane-dense.
# ---------------------------------------------------------------------------
def convlstm_kernel(xpatch_ref, wx_ref, bx_ref, wh_ref, cm_ref, pw_ref,
                    w1t_ref, b1t_ref, w2t_ref, b2t_ref,
                    out_ref, xconv_sc, *, H, W, T):
    HW = H * W
    G = 4 * HIDDEN
    PADL = W + 1                      # flat-pad so every tap slice start >= 0

    # ---- Hoisted x-side conv (+ conv bias) for all T timesteps.
    # One K=27 matmul per timestep (N=HW lanes), off the serial chain,
    # stored lane-dense (G sublanes x T*HW lanes) in VMEM scratch.
    for t in range(T):
        xconv_sc[:, t * HW:(t + 1) * HW] = (
            jnp.dot(wx_ref[...], xpatch_ref[0, :, t * HW:(t + 1) * HW],
                    preferred_element_type=jnp.float32) + bx_ref[...])

    mask_l = cm_ref[0:1, :]           # (1, HW): valid lanes for dx = -1 taps
    mask_r = cm_ref[1:2, :]           # (1, HW): valid lanes for dx = +1 taps
    zpad = jnp.zeros((HIDDEN, PADL), jnp.float32)

    def step(t, h, c):
        # Prefetched x-conv block for this timestep (already includes bias).
        xc = xconv_sc[:, t * HW:(t + 1) * HW]                    # (G, HW)

        # h-side im2col: 9 lane-shifted views of the flat h, zero padded for
        # row overflow, column-masked for x overflow, stacked on sublanes.
        hp = jnp.concatenate([zpad, h, zpad], axis=1)            # (HID, HW+2W+2)
        taps = []
        for ky in range(KSIZE):
            for kx in range(KSIZE):
                s0 = PADL + (ky - 1) * W + (kx - 1)
                tap = hp[:, s0:s0 + HW]                          # (HID, HW)
                if kx == 0:
                    tap = tap * mask_l
                elif kx == KSIZE - 1:
                    tap = tap * mask_r
                taps.append(tap)
        patch = jnp.concatenate(taps, axis=0)                    # (144, HW)

        # Single K=144 matmul for the h-side conv, added to the x-side part.
        gates = xc + jnp.dot(wh_ref[...], patch,
                             preferred_element_type=jnp.float32)  # (G, HW)

        # Gate order matches torch.split: i, f, o, g.  One 48-wide sigmoid,
        # one 16-wide tanh, all on dense 256-lane vregs.
        sig = jax.nn.sigmoid(gates[0:3 * HIDDEN, :])
        g_g = jnp.tanh(gates[3 * HIDDEN:4 * HIDDEN, :])
        i_g = sig[0:HIDDEN, :]
        f_g = sig[HIDDEN:2 * HIDDEN, :]
        o_g = sig[2 * HIDDEN:3 * HIDDEN, :]

        c_n = f_g * c + i_g * g_g
        h_n = o_g * jnp.tanh(c_n)
        return h_n, c_n

    h = jnp.zeros((HIDDEN, HW), jnp.float32)
    c = jnp.zeros((HIDDEN, HW), jnp.float32)
    for t in range(T):       # T is small & static -> trace-time unroll
        h, c = step(t, h, c)

    # ---- Fused head: AdaptiveAvgPool2d folded into per-window 1/n lane
    # weights (pw_ref), then Linear -> ReLU -> Linear in transposed form.
    # nn.Dropout is identity in eval mode.
    # TODO(synk): training-mode dropout (random masking) is not implemented.
    cols = []
    for win in range(POOL * POOL):
        cols.append(jnp.sum(h * pw_ref[win:win + 1, :], axis=1,
                            keepdims=True))                      # (HIDDEN, 1)
    featT = jnp.concatenate(cols, axis=0)                        # (144, 1)

    z = jnp.dot(w1t_ref[...], featT,
                preferred_element_type=jnp.float32) + b1t_ref[...]   # (FC1, 1)
    z = jnp.maximum(z, 0.0)
    logitsT = jnp.dot(w2t_ref[...], z,
                      preferred_element_type=jnp.float32) + b2t_ref[...]
    out_ref[0] = logitsT.astype(out_ref.dtype)                   # (nc, 1)


# ---------------------------------------------------------------------------
# Wrapper (glue): layout transposes, im2col of x, weight re-packing, pallas_call.
# ---------------------------------------------------------------------------
def conv_lstm_net_forward(x, params):
    """x: (B, T, 3, H, W) float32, PyTorch batch_first NCHW layout."""
    B, T, C, H, W = x.shape
    assert C == IN_CH
    G = 4 * HIDDEN
    HW = H * W

    w_conv = params["w_conv"]   # (3, 3, IN_CH + HIDDEN, G)  HWIO
    b_conv = params["b_conv"]   # (1, G)
    w1 = params["w1"]           # (HIDDEN*9, FC1), rows in torch order (c, ph, pw)
    b1 = params["b1"]           # (1, FC1)
    w2 = params["w2"]           # (FC1, num_classes)
    b2 = params["b2"]           # (1, num_classes)
    num_classes = w2.shape[1]

    # Conv weights, transposed so the output-channel axis G is the matmul M.
    wx = w_conv[:, :, :IN_CH, :]                    # (3,3,3,G)
    wh = w_conv[:, :, IN_CH:, :]                    # (3,3,16,G)
    wx_t = wx.reshape(KSIZE * KSIZE * IN_CH, G).T   # (G, 27)   rows (ky,kx,c)
    wh_t = wh.reshape(KSIZE * KSIZE * HIDDEN, G).T  # (G, 144)  rows (ky,kx,c)
    bx = b_conv.reshape(G, 1)

    # x-side im2col in glue: (B, 27, T*HW); row = (tap, channel), lane = (t,y,x).
    x_nhwc = jnp.transpose(x, (0, 1, 3, 4, 2))                       # (B,T,H,W,C)
    x_pad = jnp.pad(x_nhwc, ((0, 0), (0, 0), (1, 1), (1, 1), (0, 0)))
    taps = [x_pad[:, :, ky:ky + H, kx:kx + W, :]
            for ky in range(KSIZE) for kx in range(KSIZE)]
    xp = jnp.stack(taps, axis=2)                                      # (B,T,9,H,W,C)
    xpatch = jnp.transpose(xp, (0, 2, 5, 1, 3, 4)).reshape(
        B, KSIZE * KSIZE * IN_CH, T * HW)

    # Column-validity masks for the dx = -1 / dx = +1 taps of the h-side conv.
    xcoord = jnp.arange(HW, dtype=jnp.int32) % W
    colmask = jnp.stack([(xcoord > 0).astype(jnp.float32),
                         (xcoord < W - 1).astype(jnp.float32)], axis=0)  # (2, HW)

    # AdaptiveAvgPool2d folded into per-window lane weights (1/n inside window).
    hwins = _adaptive_windows(H, POOL)
    wwins = _adaptive_windows(W, POOL)
    rows = []
    for (ys, ye) in hwins:
        for (xs_, xe_) in wwins:
            m = jnp.zeros((H, W), jnp.float32).at[ys:ye, xs_:xe_].set(
                1.0 / ((ye - ys) * (xe_ - xs_)))
            rows.append(m.reshape(HW))
    pw = jnp.stack(rows, axis=0)                                      # (9, HW)

    # Classifier weights, transposed; first Linear columns reordered so that
    # the in-kernel (window, channel) feature order matches torch's (c, ph, pw)
    # flatten order.
    w1_wc = jnp.transpose(w1.reshape(HIDDEN, POOL * POOL, FC1),
                          (1, 0, 2)).reshape(POOL * POOL * HIDDEN, FC1)
    w1t = w1_wc.T                                                     # (FC1, 144)
    b1t = b1.reshape(FC1, 1)
    w2t = w2.T                                                        # (nc, FC1)
    b2t = b2.reshape(num_classes, 1)

    out = pl.pallas_call(
        functools.partial(convlstm_kernel, H=H, W=W, T=T),
        out_shape=jax.ShapeDtypeStruct((B, num_classes, 1), jnp.float32),
        grid_spec=pltpu.PrefetchScalarGridSpec(
            num_scalar_prefetch=0,
            grid=(B,),
            in_specs=[
                pl.BlockSpec((1, KSIZE * KSIZE * IN_CH, T * HW),
                             lambda b: (b, 0, 0)),
                pl.BlockSpec((G, KSIZE * KSIZE * IN_CH), lambda b: (0, 0)),
                pl.BlockSpec((G, 1), lambda b: (0, 0)),
                pl.BlockSpec((G, KSIZE * KSIZE * HIDDEN), lambda b: (0, 0)),
                pl.BlockSpec((2, HW), lambda b: (0, 0)),
                pl.BlockSpec((POOL * POOL, HW), lambda b: (0, 0)),
                pl.BlockSpec((FC1, POOL * POOL * HIDDEN), lambda b: (0, 0)),
                pl.BlockSpec((FC1, 1), lambda b: (0, 0)),
                pl.BlockSpec((num_classes, FC1), lambda b: (0, 0)),
                pl.BlockSpec((num_classes, 1), lambda b: (0, 0)),
            ],
            out_specs=pl.BlockSpec((1, num_classes, 1), lambda b: (b, 0, 0)),
            scratch_shapes=[
                pltpu.VMEM((G, T * HW), jnp.float32),   # hoisted x-conv results
            ],
        ),
        compiler_params=pltpu.CompilerParams(
            dimension_semantics=("parallel",)),
    )(xpatch, wx_t, bx, wh_t, colmask, pw, w1t, b1t, w2t, b2t)

    return out[:, :, 0]


# ---------------------------------------------------------------------------
# Deterministic parameter init (torch-layout tensors, then converted).
# ---------------------------------------------------------------------------
def init_params(key, num_classes):
    CC = IN_CH + HIDDEN
    G = 4 * HIDDEN
    ks = jax.random.split(key, 6)
    w_conv_t = 0.1 * jax.random.normal(ks[0], (G, CC, KSIZE, KSIZE), jnp.float32)   # OIHW
    b_conv_t = 0.1 * jax.random.normal(ks[1], (G,), jnp.float32)
    w1_t = 0.1 * jax.random.normal(ks[2], (FC1, HIDDEN * POOL * POOL), jnp.float32) # (out, in=(c,ph,pw))
    b1_t = 0.1 * jax.random.normal(ks[3], (FC1,), jnp.float32)
    w2_t = 0.1 * jax.random.normal(ks[4], (num_classes, FC1), jnp.float32)
    b2_t = 0.1 * jax.random.normal(ks[5], (num_classes,), jnp.float32)

    w_conv = jnp.transpose(w_conv_t, (2, 3, 1, 0))        # OIHW -> HWIO
    b_conv = b_conv_t.reshape(1, G)
    w1 = w1_t.T                                           # (144, FC1), rows = (c, ph, pw)
    b1 = b1_t.reshape(1, FC1)
    w2 = w2_t.T
    b2 = b2_t.reshape(1, num_classes)
    return dict(w_conv=w_conv, b_conv=b_conv, w1=w1, b1=b1, w2=w2, b2=b2)


# ---------------------------------------------------------------------------
# Pure-JAX reference (lax.conv + torch flatten order) for numerical validation.
# ---------------------------------------------------------------------------
def reference_forward(x, params):
    B, T, C, H, W = x.shape
    w_conv = params["w_conv"]
    b_conv = params["b_conv"][0]
    h = jnp.zeros((B, H, W, HIDDEN), jnp.float32)
    c = jnp.zeros((B, H, W, HIDDEN), jnp.float32)
    xs = jnp.transpose(x, (1, 0, 3, 4, 2))       # (T, B, H, W, C)
    for t in range(T):
        comb = jnp.concatenate([xs[t], h], axis=-1)
        cc = lax.conv_general_dilated(
            comb, w_conv, window_strides=(1, 1), padding=((1, 1), (1, 1)),
            dimension_numbers=("NHWC", "HWIO", "NHWC")) + b_conv
        i_g = jax.nn.sigmoid(cc[..., 0:HIDDEN])
        f_g = jax.nn.sigmoid(cc[..., HIDDEN:2 * HIDDEN])
        o_g = jax.nn.sigmoid(cc[..., 2 * HIDDEN:3 * HIDDEN])
        g_g = jnp.tanh(cc[..., 3 * HIDDEN:4 * HIDDEN])
        c = f_g * c + i_g * g_g
        h = o_g * jnp.tanh(c)
    pieces = []
    for (ys, ye) in _adaptive_windows(H, POOL):
        for (xs_, xe) in _adaptive_windows(W, POOL):
            pieces.append(jnp.mean(h[:, ys:ye, xs_:xe, :], axis=(1, 2)))
    pooled = jnp.stack(pieces, axis=1)                          # (B, 9, C)
    feat = jnp.transpose(pooled, (0, 2, 1)).reshape(B, HIDDEN * POOL * POOL)  # torch (c, ph, pw)
    z = jnp.maximum(feat @ params["w1"] + params["b1"], 0.0)
    return z @ params["w2"] + params["b2"]


if __name__ == "__main__":
    key = jax.random.PRNGKey(0)
    num_classes = 10
    B, T, H, W = 2, 8, 16, 16

    kx, kp = jax.random.split(key)
    x = jax.random.normal(kx, (B, T, IN_CH, H, W), jnp.float32)
    params = init_params(kp, num_classes)

    out = jax.block_until_ready(conv_lstm_net_forward(x, params))
    ref = reference_forward(x, params)

    assert out.shape == (B, num_classes)
    assert bool(jnp.all(jnp.isfinite(out)))
    assert bool(jnp.allclose(out, ref, rtol=2e-4, atol=2e-4))
    print("KERNEL_OK")
</pallas_src>

<mosaic_0001>
module attributes {stable_mosaic.version = 11 : i64} {
  func.func @convlstm_kernel(%arg0: i32, %arg1: memref<1x27x2048xf32, #tpu.memory_space<vmem>>, %arg2: memref<64x27xf32, #tpu.memory_space<vmem>>, %arg3: memref<64x1xf32, #tpu.memory_space<vmem>>, %arg4: memref<64x144xf32, #tpu.memory_space<vmem>>, %arg5: memref<2x256xf32, #tpu.memory_space<vmem>>, %arg6: memref<9x256xf32, #tpu.memory_space<vmem>>, %arg7: memref<128x144xf32, #tpu.memory_space<vmem>>, %arg8: memref<128x1xf32, #tpu.memory_space<vmem>>, %arg9: memref<10x128xf32, #tpu.memory_space<vmem>>, %arg10: memref<10x1xf32, #tpu.memory_space<vmem>>, %arg11: memref<1x10x1xf32, #tpu.memory_space<vmem>>, %arg12: memref<64x2048xf32, #tpu.memory_space<vmem>>) attributes {dimension_semantics = [#tpu.dimension_semantics<parallel>], iteration_bounds = array<i64: 2>, scalar_prefetch = 0 : i64, scratch_operands = 1 : i64, tpu.core_type = #tpu.core_type<tc>, window_params = [{transform_indices = @transform_0, window_bounds = array<i64: 1, 27, 2048>}, {pipeline_mode = #tpu.pipeline_mode<synchronous>, transform_indices = @transform_1, window_bounds = array<i64: 64, 27>}, {pipeline_mode = #tpu.pipeline_mode<synchronous>, transform_indices = @transform_2, window_bounds = array<i64: 64, 1>}, {pipeline_mode = #tpu.pipeline_mode<synchronous>, transform_indices = @transform_3, window_bounds = array<i64: 64, 144>}, {pipeline_mode = #tpu.pipeline_mode<synchronous>, transform_indices = @transform_4, window_bounds = array<i64: 2, 256>}, {pipeline_mode = #tpu.pipeline_mode<synchronous>, transform_indices = @transform_5, window_bounds = array<i64: 9, 256>}, {pipeline_mode = #tpu.pipeline_mode<synchronous>, transform_indices = @transform_6, window_bounds = array<i64: 128, 144>}, {pipeline_mode = #tpu.pipeline_mode<synchronous>, transform_indices = @transform_7, window_bounds = array<i64: 128, 1>}, {pipeline_mode = #tpu.pipeline_mode<synchronous>, transform_indices = @transform_8, window_bounds = array<i64: 10, 128>}, {pipeline_mode = #tpu.pipeline_mode<synchronous>, transform_indices = @transform_9, window_bounds = array<i64: 10, 1>}, {transform_indices = @transform_10, window_bounds = array<i64: 1, 10, 1>}]} {
    %c0 = arith.constant 0 : index
    %c0_0 = arith.constant 0 : index
    %0 = vector.load %arg2[%c0, %c0_0] : memref<64x27xf32, #tpu.memory_space<vmem>>, vector<64x27xf32>
    %c0_1 = arith.constant 0 : index
    %c0_2 = arith.constant 0 : index
    %c0_3 = arith.constant 0 : index
    %1 = vector.load %arg1[%c0_1, %c0_2, %c0_3] : memref<1x27x2048xf32, #tpu.memory_space<vmem>>, vector<1x27x256xf32>
    %2 = vector.shape_cast %1 : vector<1x27x256xf32> to vector<27x256xf32>
    %cst = arith.constant dense<0.000000e+00> : vector<64x256xf32>
    %3 = tpu.matmul %0, %2, %cst {dimension_numbers = #tpu.dot_dimension_numbers<[1], [0], [0], [1], [0, 0, 1, 1], [], []>} : vector<64x27xf32>, vector<27x256xf32>, vector<64x256xf32> -> vector<64x256xf32>
    %c0_4 = arith.constant 0 : index
    %c0_5 = arith.constant 0 : index
    %4 = vector.load %arg3[%c0_4, %c0_5] : memref<64x1xf32, #tpu.memory_space<vmem>>, vector<64x1xf32>
    %5 = vector.broadcast %4 : vector<64x1xf32> to vector<64x256xf32>
    %6 = arith.addf %3, %5 : vector<64x256xf32>
    %c0_6 = arith.constant 0 : index
    %c0_7 = arith.constant 0 : index
    %7 = vector.load %arg12[%c0_6, %c0_7] : memref<64x2048xf32, #tpu.memory_space<vmem>>, vector<64x256xf32>
    tpu.vector_store %arg12[%c0_6, %c0_7], %6 {strides = array<i32>} : memref<64x2048xf32, #tpu.memory_space<vmem>>, vector<64x256xf32>,
    %c0_8 = arith.constant 0 : index
    %c0_9 = arith.constant 0 : index
    %8 = vector.load %arg2[%c0_8, %c0_9] : memref<64x27xf32, #tpu.memory_space<vmem>>, vector<64x27xf32>
    %c0_10 = arith.constant 0 : index
    %c0_11 = arith.constant 0 : index
    %c256 = arith.constant 256 : index
    %9 = vector.load %arg1[%c0_10, %c0_11, %c256] : memref<1x27x2048xf32, #tpu.memory_space<vmem>>, vector<1x27x256xf32>
    %10 = vector.shape_cast %9 : vector<1x27x256xf32> to vector<27x256xf32>
    %cst_12 = arith.constant dense<0.000000e+00> : vector<64x256xf32>
    %11 = tpu.matmul %8, %10, %cst_12 {dimension_numbers = #tpu.dot_dimension_numbers<[1], [0], [0], [1], [0, 0, 1, 1], [], []>} : vector<64x27xf32>, vector<27x256xf32>, vector<64x256xf32> -> vector<64x256xf32>
    %c0_13 = arith.constant 0 : index
    %c0_14 = arith.constant 0 : index
    %12 = vector.load %arg3[%c0_13, %c0_14] : memref<64x1xf32, #tpu.memory_space<vmem>>, vector<64x1xf32>
    %13 = vector.broadcast %12 : vector<64x1xf32> to vector<64x256xf32>
    %14 = arith.addf %11, %13 : vector<64x256xf32>
    %c0_15 = arith.constant 0 : index
    %c256_16 = arith.constant 256 : index
    %15 = vector.load %arg12[%c0_15, %c256_16] : memref<64x2048xf32, #tpu.memory_space<vmem>>, vector<64x256xf32>
    tpu.vector_store %arg12[%c0_15, %c256_16], %14 {strides = array<i32>} : memref<64x2048xf32, #tpu.memory_space<vmem>>, vector<64x256xf32>,
    %c0_17 = arith.constant 0 : index
    %c0_18 = arith.constant 0 : index
    %16 = vector.load %arg2[%c0_17, %c0_18] : memref<64x27xf32, #tpu.memory_space<vmem>>, vector<64x27xf32>
    %c0_19 = arith.constant 0 : index
    %c0_20 = arith.constant 0 : index
    %c512 = arith.constant 512 : index
    %17 = vector.load %arg1[%c0_19, %c0_20, %c512] : memref<1x27x2048xf32, #tpu.memory_space<vmem>>, vector<1x27x256xf32>
    %18 = vector.shape_cast %17 : vector<1x27x256xf32> to vector<27x256xf32>
    %cst_21 = arith.constant dense<0.000000e+00> : vector<64x256xf32>
    %19 = tpu.matmul %16, %18, %cst_21 {dimension_numbers = #tpu.dot_dimension_numbers<[1], [0], [0], [1], [0, 0, 1, 1], [], []>} : vector<64x27xf32>, vector<27x256xf32>, vector<64x256xf32> -> vector<64x256xf32>
    %c0_22 = arith.constant 0 : index
    %c0_23 = arith.constant 0 : index
    %20 = vector.load %arg3[%c0_22, %c0_23] : memref<64x1xf32, #tpu.memory_space<vmem>>, vector<64x1xf32>
    %21 = vector.broadcast %20 : vector<64x1xf32> to vector<64x256xf32>
    %22 = arith.addf %19, %21 : vector<64x256xf32>
    %c0_24 = arith.constant 0 : index
    %c512_25 = arith.constant 512 : index
    %23 = vector.load %arg12[%c0_24, %c512_25] : memref<64x2048xf32, #tpu.memory_space<vmem>>, vector<64x256xf32>
    tpu.vector_store %arg12[%c0_24, %c512_25], %22 {strides = array<i32>} : memref<64x2048xf32, #tpu.memory_space<vmem>>, vector<64x256xf32>,
    %c0_26 = arith.constant 0 : index
    %c0_27 = arith.constant 0 : index
    %24 = vector.load %arg2[%c0_26, %c0_27] : memref<64x27xf32, #tpu.memory_space<vmem>>, vector<64x27xf32>
    %c0_28 = arith.constant 0 : index
    %c0_29 = arith.constant 0 : index
    %c768 = arith.constant 768 : index
    %25 = vector.load %arg1[%c0_28, %c0_29, %c768] : memref<1x27x2048xf32, #tpu.memory_space<vmem>>, vector<1x27x256xf32>
    %26 = vector.shape_cast %25 : vector<1x27x256xf32> to vector<27x256xf32>
    %cst_30 = arith.constant dense<0.000000e+00> : vector<64x256xf32>
    %27 = tpu.matmul %24, %26, %cst_30 {dimension_numbers = #tpu.dot_dimension_numbers<[1], [0], [0], [1], [0, 0, 1, 1], [], []>} : vector<64x27xf32>, vector<27x256xf32>, vector<64x256xf32> -> vector<64x256xf32>
    %c0_31 = arith.constant 0 : index
    %c0_32 = arith.constant 0 : index
    %28 = vector.load %arg3[%c0_31, %c0_32] : memref<64x1xf32, #tpu.memory_space<vmem>>, vector<64x1xf32>
    %29 = vector.broadcast %28 : vector<64x1xf32> to vector<64x256xf32>
    %30 = arith.addf %27, %29 : vector<64x256xf32>
    %c0_33 = arith.constant 0 : index
    %c768_34 = arith.constant 768 : index
    %31 = vector.load %arg12[%c0_33, %c768_34] : memref<64x2048xf32, #tpu.memory_space<vmem>>, vector<64x256xf32>
    tpu.vector_store %arg12[%c0_33, %c768_34], %30 {strides = array<i32>} : memref<64x2048xf32, #tpu.memory_space<vmem>>, vector<64x256xf32>,
    %c0_35 = arith.constant 0 : index
    %c0_36 = arith.constant 0 : index
    %32 = vector.load %arg2[%c0_35, %c0_36] : memref<64x27xf32, #tpu.memory_space<vmem>>, vector<64x27xf32>
    %c0_37 = arith.constant 0 : index
    %c0_38 = arith.constant 0 : index
    %c1024 = arith.constant 1024 : index
    %33 = vector.load %arg1[%c0_37, %c0_38, %c1024] : memref<1x27x2048xf32, #tpu.memory_space<vmem>>, vector<1x27x256xf32>
    %34 = vector.shape_cast %33 : vector<1x27x256xf32> to vector<27x256xf32>
    %cst_39 = arith.constant dense<0.000000e+00> : vector<64x256xf32>
    %35 = tpu.matmul %32, %34, %cst_39 {dimension_numbers = #tpu.dot_dimension_numbers<[1], [0], [0], [1], [0, 0, 1, 1], [], []>} : vector<64x27xf32>, vector<27x256xf32>, vector<64x256xf32> -> vector<64x256xf32>
    %c0_40 = arith.constant 0 : index
    %c0_41 = arith.constant 0 : index
    %36 = vector.load %arg3[%c0_40, %c0_41] : memref<64x1xf32, #tpu.memory_space<vmem>>, vector<64x1xf32>
    %37 = vector.broadcast %36 : vector<64x1xf32> to vector<64x256xf32>
    %38 = arith.addf %35, %37 : vector<64x256xf32>
    %c0_42 = arith.constant 0 : index
    %c1024_43 = arith.constant 1024 : index
    %39 = vector.load %arg12[%c0_42, %c1024_43] : memref<64x2048xf32, #tpu.memory_space<vmem>>, vector<64x256xf32>
    tpu.vector_store %arg12[%c0_42, %c1024_43], %38 {strides = array<i32>} : memref<64x2048xf32, #tpu.memory_space<vmem>>, vector<64x256xf32>,
    %c0_44 = arith.constant 0 : index
    %c0_45 = arith.constant 0 : index
    %40 = vector.load %arg2[%c0_44, %c0_45] : memref<64x27xf32, #tpu.memory_space<vmem>>, vector<64x27xf32>
    %c0_46 = arith.constant 0 : index
    %c0_47 = arith.constant 0 : index
    %c1280 = arith.constant 1280 : index
    %41 = vector.load %arg1[%c0_46, %c0_47, %c1280] : memref<1x27x2048xf32, #tpu.memory_space<vmem>>, vector<1x27x256xf32>
    %42 = vector.shape_cast %41 : vector<1x27x256xf32> to vector<27x256xf32>
    %cst_48 = arith.constant dense<0.000000e+00> : vector<64x256xf32>
    %43 = tpu.matmul %40, %42, %cst_48 {dimension_numbers = #tpu.dot_dimension_numbers<[1], [0], [0], [1], [0, 0, 1, 1], [], []>} : vector<64x27xf32>, vector<27x256xf32>, vector<64x256xf32> -> vector<64x256xf32>
    %c0_49 = arith.constant 0 : index
    %c0_50 = arith.constant 0 : index
    %44 = vector.load %arg3[%c0_49, %c0_50] : memref<64x1xf32, #tpu.memory_space<vmem>>, vector<64x1xf32>
    %45 = vector.broadcast %44 : vector<64x1xf32> to vector<64x256xf32>
    %46 = arith.addf %43, %45 : vector<64x256xf32>
    %c0_51 = arith.constant 0 : index
    %c1280_52 = arith.constant 1280 : index
    %47 = vector.load %arg12[%c0_51, %c1280_52] : memref<64x2048xf32, #tpu.memory_space<vmem>>, vector<64x256xf32>
    tpu.vector_store %arg12[%c0_51, %c1280_52], %46 {strides = array<i32>} : memref<64x2048xf32, #tpu.memory_space<vmem>>, vector<64x256xf32>,
    %c0_53 = arith.constant 0 : index
    %c0_54 = arith.constant 0 : index
    %48 = vector.load %arg2[%c0_53, %c0_54] : memref<64x27xf32, #tpu.memory_space<vmem>>, vector<64x27xf32>
    %c0_55 = arith.constant 0 : index
    %c0_56 = arith.constant 0 : index
    %c1536 = arith.constant 1536 : index
    %49 = vector.load %arg1[%c0_55, %c0_56, %c1536] : memref<1x27x2048xf32, #tpu.memory_space<vmem>>, vector<1x27x256xf32>
    %50 = vector.shape_cast %49 : vector<1x27x256xf32> to vector<27x256xf32>
    %cst_57 = arith.constant dense<0.000000e+00> : vector<64x256xf32>
    %51 = tpu.matmul %48, %50, %cst_57 {dimension_numbers = #tpu.dot_dimension_numbers<[1], [0], [0], [1], [0, 0, 1, 1], [], []>} : vector<64x27xf32>, vector<27x256xf32>, vector<64x256xf32> -> vector<64x256xf32>
    %c0_58 = arith.constant 0 : index
    %c0_59 = arith.constant 0 : index
    %52 = vector.load %arg3[%c0_58, %c0_59] : memref<64x1xf32, #tpu.memory_space<vmem>>, vector<64x1xf32>
    %53 = vector.broadcast %52 : vector<64x1xf32> to vector<64x256xf32>
    %54 = arith.addf %51, %53 : vector<64x256xf32>
    %c0_60 = arith.constant 0 : index
    %c1536_61 = arith.constant 1536 : index
    %55 = vector.load %arg12[%c0_60, %c1536_61] : memref<64x2048xf32, #tpu.memory_space<vmem>>, vector<64x256xf32>
    tpu.vector_store %arg12[%c0_60, %c1536_61], %54 {strides = array<i32>} : memref<64x2048xf32, #tpu.memory_space<vmem>>, vector<64x256xf32>,
    %c0_62 = arith.constant 0 : index
    %c0_63 = arith.constant 0 : index
    %56 = vector.load %arg2[%c0_62, %c0_63] : memref<64x27xf32, #tpu.memory_space<vmem>>, vector<64x27xf32>
    %c0_64 = arith.constant 0 : index
    %c0_65 = arith.constant 0 : index
    %c1792 = arith.constant 1792 : index
    %57 = vector.load %arg1[%c0_64, %c0_65, %c1792] : memref<1x27x2048xf32, #tpu.memory_space<vmem>>, vector<1x27x256xf32>
    %58 = vector.shape_cast %57 : vector<1x27x256xf32> to vector<27x256xf32>
    %cst_66 = arith.constant dense<0.000000e+00> : vector<64x256xf32>
    %59 = tpu.matmul %56, %58, %cst_66 {dimension_numbers = #tpu.dot_dimension_numbers<[1], [0], [0], [1], [0, 0, 1, 1], [], []>} : vector<64x27xf32>, vector<27x256xf32>, vector<64x256xf32> -> vector<64x256xf32>
    %c0_67 = arith.constant 0 : index
    %c0_68 = arith.constant 0 : index
    %60 = vector.load %arg3[%c0_67, %c0_68] : memref<64x1xf32, #tpu.memory_space<vmem>>, vector<64x1xf32>
    %61 = vector.broadcast %60 : vector<64x1xf32> to vector<64x256xf32>
    %62 = arith.addf %59, %61 : vector<64x256xf32>
    %c0_69 = arith.constant 0 : index
    %c1792_70 = arith.constant 1792 : index
    %63 = vector.load %arg12[%c0_69, %c1792_70] : memref<64x2048xf32, #tpu.memory_space<vmem>>, vector<64x256xf32>
    tpu.vector_store %arg12[%c0_69, %c1792_70], %62 {strides = array<i32>} : memref<64x2048xf32, #tpu.memory_space<vmem>>, vector<64x256xf32>,
    %c0_71 = arith.constant 0 : index
    %c0_72 = arith.constant 0 : index
    %64 = vector.load %arg5[%c0_71, %c0_72] : memref<2x256xf32, #tpu.memory_space<vmem>>, vector<1x256xf32>
    %c1 = arith.constant 1 : index
    %c0_73 = arith.constant 0 : index
    %65 = vector.load %arg5[%c1, %c0_73] : memref<2x256xf32, #tpu.memory_space<vmem>>, vector<1x256xf32>
    %cst_74 = arith.constant 0.000000e+00 : f32
    %66 = vector.broadcast %cst_74 : f32 to vector<16x17xf32>
    %cst_75 = arith.constant 0.000000e+00 : f32
    %67 = vector.broadcast %cst_75 : f32 to vector<16x256xf32>
    %cst_76 = arith.constant 0.000000e+00 : f32
    %68 = vector.broadcast %cst_76 : f32 to vector<16x256xf32>
    %c0_77 = arith.constant 0 : index
    %c0_78 = arith.constant 0 : index
    %69 = vector.load %arg12[%c0_77, %c0_78] : memref<64x2048xf32, #tpu.memory_space<vmem>>, vector<64x256xf32>
    %70 = tpu.concatenate %66, %67, %66 in 1 : vector<16x17xf32>, vector<16x256xf32>, vector<16x17xf32> -> vector<16x290xf32>
    %71 = vector.extract_strided_slice %70 {offsets = [0, 0], sizes = [16, 256], strides = [1, 1]} : vector<16x290xf32> to vector<16x256xf32>
    %72 = vector.broadcast %64 : vector<1x256xf32> to vector<16x256xf32>
    %73 = arith.mulf %71, %72 : vector<16x256xf32>
    %74 = vector.extract_strided_slice %70 {offsets = [0, 1], sizes = [16, 256], strides = [1, 1]} : vector<16x290xf32> to vector<16x256xf32>
    %75 = vector.extract_strided_slice %70 {offsets = [0, 2], sizes = [16, 256], strides = [1, 1]} : vector<16x290xf32> to vector<16x256xf32>
    %76 = vector.broadcast %65 : vector<1x256xf32> to vector<16x256xf32>
    %77 = arith.mulf %75, %76 : vector<16x256xf32>
    %78 = vector.extract_strided_slice %70 {offsets = [0, 16], sizes = [16, 256], strides = [1, 1]} : vector<16x290xf32> to vector<16x256xf32>
    %79 = vector.broadcast %64 : vector<1x256xf32> to vector<16x256xf32>
    %80 = arith.mulf %78, %79 : vector<16x256xf32>
    %81 = vector.extract_strided_slice %70 {offsets = [0, 17], sizes = [16, 256], strides = [1, 1]} : vector<16x290xf32> to vector<16x256xf32>
    %82 = vector.extract_strided_slice %70 {offsets = [0, 18], sizes = [16, 256], strides = [1, 1]} : vector<16x290xf32> to vector<16x256xf32>
    %83 = vector.broadcast %65 : vector<1x256xf32> to vector<16x256xf32>
    %84 = arith.mulf %82, %83 : vector<16x256xf32>
    %85 = vector.extract_strided_slice %70 {offsets = [0, 32], sizes = [16, 256], strides = [1, 1]} : vector<16x290xf32> to vector<16x256xf32>
    %86 = vector.broadcast %64 : vector<1x256xf32> to vector<16x256xf32>
    %87 = arith.mulf %85, %86 : vector<16x256xf32>
    %88 = vector.extract_strided_slice %70 {offsets = [0, 33], sizes = [16, 256], strides = [1, 1]} : vector<16x290xf32> to vector<16x256xf32>
    %89 = vector.extract_strided_slice %70 {offsets = [0, 34], sizes = [16, 256], strides = [1, 1]} : vector<16x290xf32> to vector<16x256xf32>
    %90 = vector.broadcast %65 : vector<1x256xf32> to vector<16x256xf32>
    %91 = arith.mulf %89, %90 : vector<16x256xf32>
    %92 = tpu.concatenate %73, %74, %77, %80, %81, %84, %87, %88, %91 in 0 : vector<16x256xf32>, vector<16x256xf32>, vector<16x256xf32>, vector<16x256xf32>, vector<16x256xf32>, vector<16x256xf32>, vector<16x256xf32>, vector<16x256xf32>, vector<16x256xf32> -> vector<144x256xf32>
    %c0_79 = arith.constant 0 : index
    %c0_80 = arith.constant 0 : index
    %93 = vector.load %arg4[%c0_79, %c0_80] : memref<64x144xf32, #tpu.memory_space<vmem>>, vector<64x144xf32>
    %cst_81 = arith.constant dense<0.000000e+00> : vector<64x256xf32>
    %94 = tpu.matmul %93, %92, %cst_81 {dimension_numbers = #tpu.dot_dimension_numbers<[1], [0], [0], [1], [0, 0, 1, 1], [], []>} : vector<64x144xf32>, vector<144x256xf32>, vector<64x256xf32> -> vector<64x256xf32>
    %95 = arith.addf %69, %94 : vector<64x256xf32>
    %96 = vector.extract_strided_slice %95 {offsets = [0, 0], sizes = [48, 256], strides = [1, 1]} : vector<64x256xf32> to vector<48x256xf32>
    %97 = arith.negf %96 : vector<48x256xf32>
    %98 = math.exp %97 : vector<48x256xf32>
    %cst_82 = arith.constant 1.000000e+00 : f32
    %99 = vector.broadcast %cst_82 : f32 to vector<48x256xf32>
    %100 = arith.addf %99, %98 : vector<48x256xf32>
    %101 = arith.divf %99, %100 : vector<48x256xf32>
    %102 = vector.extract_strided_slice %95 {offsets = [48, 0], sizes = [16, 256], strides = [1, 1]} : vector<64x256xf32> to vector<16x256xf32>
    %103 = math.tanh %102 : vector<16x256xf32>
    %104 = vector.extract_strided_slice %101 {offsets = [0, 0], sizes = [16, 256], strides = [1, 1]} : vector<48x256xf32> to vector<16x256xf32>
    %105 = vector.extract_strided_slice %101 {offsets = [16, 0], sizes = [16, 256], strides = [1, 1]} : vector<48x256xf32> to vector<16x256xf32>
    %106 = vector.extract_strided_slice %101 {offsets = [32, 0], sizes = [16, 256], strides = [1, 1]} : vector<48x256xf32> to vector<16x256xf32>
    %107 = arith.mulf %105, %68 : vector<16x256xf32>
    %108 = arith.mulf %104, %103 : vector<16x256xf32>
    %109 = arith.addf %107, %108 : vector<16x256xf32>
    %110 = math.tanh %109 : vector<16x256xf32>
    %111 = arith.mulf %106, %110 : vector<16x256xf32>
    %c0_83 = arith.constant 0 : index
    %c256_84 = arith.constant 256 : index
    %112 = vector.load %arg12[%c0_83, %c256_84] : memref<64x2048xf32, #tpu.memory_space<vmem>>, vector<64x256xf32>
    %113 = tpu.concatenate %66, %111, %66 in 1 : vector<16x17xf32>, vector<16x256xf32>, vector<16x17xf32> -> vector<16x290xf32>
    %114 = vector.extract_strided_slice %113 {offsets = [0, 0], sizes = [16, 256], strides = [1, 1]} : vector<16x290xf32> to vector<16x256xf32>
    %115 = vector.broadcast %64 : vector<1x256xf32> to vector<16x256xf32>
    %116 = arith.mulf %114, %115 : vector<16x256xf32>
    %117 = vector.extract_strided_slice %113 {offsets = [0, 1], sizes = [16, 256], strides = [1, 1]} : vector<16x290xf32> to vector<16x256xf32>
    %118 = vector.extract_strided_slice %113 {offsets = [0, 2], sizes = [16, 256], strides = [1, 1]} : vector<16x290xf32> to vector<16x256xf32>
    %119 = vector.broadcast %65 : vector<1x256xf32> to vector<16x256xf32>
    %120 = arith.mulf %118, %119 : vector<16x256xf32>
    %121 = vector.extract_strided_slice %113 {offsets = [0, 16], sizes = [16, 256], strides = [1, 1]} : vector<16x290xf32> to vector<16x256xf32>
    %122 = vector.broadcast %64 : vector<1x256xf32> to vector<16x256xf32>
    %123 = arith.mulf %121, %122 : vector<16x256xf32>
    %124 = vector.extract_strided_slice %113 {offsets = [0, 17], sizes = [16, 256], strides = [1, 1]} : vector<16x290xf32> to vector<16x256xf32>
    %125 = vector.extract_strided_slice %113 {offsets = [0, 18], sizes = [16, 256], strides = [1, 1]} : vector<16x290xf32> to vector<16x256xf32>
    %126 = vector.broadcast %65 : vector<1x256xf32> to vector<16x256xf32>
    %127 = arith.mulf %125, %126 : vector<16x256xf32>
    %128 = vector.extract_strided_slice %113 {offsets = [0, 32], sizes = [16, 256], strides = [1, 1]} : vector<16x290xf32> to vector<16x256xf32>
    %129 = vector.broadcast %64 : vector<1x256xf32> to vector<16x256xf32>
    %130 = arith.mulf %128, %129 : vector<16x256xf32>
    %131 = vector.extract_strided_slice %113 {offsets = [0, 33], sizes = [16, 256], strides = [1, 1]} : vector<16x290xf32> to vector<16x256xf32>
    %132 = vector.extract_strided_slice %113 {offsets = [0, 34], sizes = [16, 256], strides = [1, 1]} : vector<16x290xf32> to vector<16x256xf32>
    %133 = vector.broadcast %65 : vector<1x256xf32> to vector<16x256xf32>
    %134 = arith.mulf %132, %133 : vector<16x256xf32>
    %135 = tpu.concatenate %116, %117, %120, %123, %124, %127, %130, %131, %134 in 0 : vector<16x256xf32>, vector<16x256xf32>, vector<16x256xf32>, vector<16x256xf32>, vector<16x256xf32>, vector<16x256xf32>, vector<16x256xf32>, vector<16x256xf32>, vector<16x256xf32> -> vector<144x256xf32>
    %c0_85 = arith.constant 0 : index
    %c0_86 = arith.constant 0 : index
    %136 = vector.load %arg4[%c0_85, %c0_86] : memref<64x144xf32, #tpu.memory_space<vmem>>, vector<64x144xf32>
    %cst_87 = arith.constant dense<0.000000e+00> : vector<64x256xf32>
    %137 = tpu.matmul %136, %135, %cst_87 {dimension_numbers = #tpu.dot_dimension_numbers<[1], [0], [0], [1], [0, 0, 1, 1], [], []>} : vector<64x144xf32>, vector<144x256xf32>, vector<64x256xf32> -> vector<64x256xf32>
    %138 = arith.addf %112, %137 : vector<64x256xf32>
    %139 = vector.extract_strided_slice %138 {offsets = [0, 0], sizes = [48, 256], strides = [1, 1]} : vector<64x256xf32> to vector<48x256xf32>
    %140 = arith.negf %139 : vector<48x256xf32>
    %141 = math.exp %140 : vector<48x256xf32>
    %cst_88 = arith.constant 1.000000e+00 : f32
    %142 = vector.broadcast %cst_88 : f32 to vector<48x256xf32>
    %143 = arith.addf %142, %141 : vector<48x256xf32>
    %144 = arith.divf %142, %143 : vector<48x256xf32>
    %145 = vector.extract_strided_slice %138 {offsets = [48, 0], sizes = [16, 256], strides = [1, 1]} : vector<64x256xf32> to vector<16x256xf32>
    %146 = math.tanh %145 : vector<16x256xf32>
    %147 = vector.extract_strided_slice %144 {offsets = [0, 0], sizes = [16, 256], strides = [1, 1]} : vector<48x256xf32> to vector<16x256xf32>
    %148 = vector.extract_strided_slice %144 {offsets = [16, 0], sizes = [16, 256], strides = [1, 1]} : vector<48x256xf32> to vector<16x256xf32>
    %149 = vector.extract_strided_slice %144 {offsets = [32, 0], sizes = [16, 256], strides = [1, 1]} : vector<48x256xf32> to vector<16x256xf32>
    %150 = arith.mulf %148, %109 : vector<16x256xf32>
    %151 = arith.mulf %147, %146 : vector<16x256xf32>
    %152 = arith.addf %150, %151 : vector<16x256xf32>
    %153 = math.tanh %152 : vector<16x256xf32>
    %154 = arith.mulf %149, %153 : vector<16x256xf32>
    %c0_89 = arith.constant 0 : index
    %c512_90 = arith.constant 512 : index
    %155 = vector.load %arg12[%c0_89, %c512_90] : memref<64x2048xf32, #tpu.memory_space<vmem>>, vector<64x256xf32>
    %156 = tpu.concatenate %66, %154, %66 in 1 : vector<16x17xf32>, vector<16x256xf32>, vector<16x17xf32> -> vector<16x290xf32>
    %157 = vector.extract_strided_slice %156 {offsets = [0, 0], sizes = [16, 256], strides = [1, 1]} : vector<16x290xf32> to vector<16x256xf32>
    %158 = vector.broadcast %64 : vector<1x256xf32> to vector<16x256xf32>
    %159 = arith.mulf %157, %158 : vector<16x256xf32>
    %160 = vector.extract_strided_slice %156 {offsets = [0, 1], sizes = [16, 256], strides = [1, 1]} : vector<16x290xf32> to vector<16x256xf32>
    %161 = vector.extract_strided_slice %156 {offsets = [0, 2], sizes = [16, 256], strides = [1, 1]} : vector<16x290xf32> to vector<16x256xf32>
    %162 = vector.broadcast %65 : vector<1x256xf32> to vector<16x256xf32>
    %163 = arith.mulf %161, %162 : vector<16x256xf32>
    %164 = vector.extract_strided_slice %156 {offsets = [0, 16], sizes = [16, 256], strides = [1, 1]} : vector<16x290xf32> to vector<16x256xf32>
    %165 = vector.broadcast %64 : vector<1x256xf32> to vector<16x256xf32>
    %166 = arith.mulf %164, %165 : vector<16x256xf32>
    %167 = vector.extract_strided_slice %156 {offsets = [0, 17], sizes = [16, 256], strides = [1, 1]} : vector<16x290xf32> to vector<16x256xf32>
    %168 = vector.extract_strided_slice %156 {offsets = [0, 18], sizes = [16, 256], strides = [1, 1]} : vector<16x290xf32> to vector<16x256xf32>
    %169 = vector.broadcast %65 : vector<1x256xf32> to vector<16x256xf32>
    %170 = arith.mulf %168, %169 : vector<16x256xf32>
    %171 = vector.extract_strided_slice %156 {offsets = [0, 32], sizes = [16, 256], strides = [1, 1]} : vector<16x290xf32> to vector<16x256xf32>
    %172 = vector.broadcast %64 : vector<1x256xf32> to vector<16x256xf32>
    %173 = arith.mulf %171, %172 : vector<16x256xf32>
    %174 = vector.extract_strided_slice %156 {offsets = [0, 33], sizes = [16, 256], strides = [1, 1]} : vector<16x290xf32> to vector<16x256xf32>
    %175 = vector.extract_strided_slice %156 {offsets = [0, 34], sizes = [16, 256], strides = [1, 1]} : vector<16x290xf32> to vector<16x256xf32>
    %176 = vector.broadcast %65 : vector<1x256xf32> to vector<16x256xf32>
    %177 = arith.mulf %175, %176 : vector<16x256xf32>
    %178 = tpu.concatenate %159, %160, %163, %166, %167, %170, %173, %174, %177 in 0 : vector<16x256xf32>, vector<16x256xf32>, vector<16x256xf32>, vector<16x256xf32>, vector<16x256xf32>, vector<16x256xf32>, vector<16x256xf32>, vector<16x256xf32>, vector<16x256xf32> -> vector<144x256xf32>
    %c0_91 = arith.constant 0 : index
    %c0_92 = arith.constant 0 : index
    %179 = vector.load %arg4[%c0_91, %c0_92] : memref<64x144xf32, #tpu.memory_space<vmem>>, vector<64x144xf32>
    %cst_93 = arith.constant dense<0.000000e+00> : vector<64x256xf32>
    %180 = tpu.matmul %179, %178, %cst_93 {dimension_numbers = #tpu.dot_dimension_numbers<[1], [0], [0], [1], [0, 0, 1, 1], [], []>} : vector<64x144xf32>, vector<144x256xf32>, vector<64x256xf32> -> vector<64x256xf32>
    %181 = arith.addf %155, %180 : vector<64x256xf32>
    %182 = vector.extract_strided_slice %181 {offsets = [0, 0], sizes = [48, 256], strides = [1, 1]} : vector<64x256xf32> to vector<48x256xf32>
    %183 = arith.negf %182 : vector<48x256xf32>
    %184 = math.exp %183 : vector<48x256xf32>
    %cst_94 = arith.constant 1.000000e+00 : f32
    %185 = vector.broadcast %cst_94 : f32 to vector<48x256xf32>
    %186 = arith.addf %185, %184 : vector<48x256xf32>
    %187 = arith.divf %185, %186 : vector<48x256xf32>
    %188 = vector.extract_strided_slice %181 {offsets = [48, 0], sizes = [16, 256], strides = [1, 1]} : vector<64x256xf32> to vector<16x256xf32>
    %189 = math.tanh %188 : vector<16x256xf32>
    %190 = vector.extract_strided_slice %187 {offsets = [0, 0], sizes = [16, 256], strides = [1, 1]} : vector<48x256xf32> to vector<16x256xf32>
    %191 = vector.extract_strided_slice %187 {offsets = [16, 0], sizes = [16, 256], strides = [1, 1]} : vector<48x256xf32> to vector<16x256xf32>
    %192 = vector.extract_strided_slice %187 {offsets = [32, 0], sizes = [16, 256], strides = [1, 1]} : vector<48x256xf32> to vector<16x256xf32>
    %193 = arith.mulf %191, %152 : vector<16x256xf32>
    %194 = arith.mulf %190, %189 : vector<16x256xf32>
    %195 = arith.addf %193, %194 : vector<16x256xf32>
    %196 = math.tanh %195 : vector<16x256xf32>
    %197 = arith.mulf %192, %196 : vector<16x256xf32>
    %c0_95 = arith.constant 0 : index
    %c768_96 = arith.constant 768 : index
    %198 = vector.load %arg12[%c0_95, %c768_96] : memref<64x2048xf32, #tpu.memory_space<vmem>>, vector<64x256xf32>
    %199 = tpu.concatenate %66, %197, %66 in 1 : vector<16x17xf32>, vector<16x256xf32>, vector<16x17xf32> -> vector<16x290xf32>
    %200 = vector.extract_strided_slice %199 {offsets = [0, 0], sizes = [16, 256], strides = [1, 1]} : vector<16x290xf32> to vector<16x256xf32>
    %201 = vector.broadcast %64 : vector<1x256xf32> to vector<16x256xf32>
    %202 = arith.mulf %200, %201 : vector<16x256xf32>
    %203 = vector.extract_strided_slice %199 {offsets = [0, 1], sizes = [16, 256], strides = [1, 1]} : vector<16x290xf32> to vector<16x256xf32>
    %204 = vector.extract_strided_slice %199 {offsets = [0, 2], sizes = [16, 256], strides = [1, 1]} : vector<16x290xf32> to vector<16x256xf32>
    %205 = vector.broadcast %65 : vector<1x256xf32> to vector<16x256xf32>
    %206 = arith.mulf %204, %205 : vector<16x256xf32>
    %207 = vector.extract_strided_slice %199 {offsets = [0, 16], sizes = [16, 256], strides = [1, 1]} : vector<16x290xf32> to vector<16x256xf32>
    %208 = vector.broadcast %64 : vector<1x256xf32> to vector<16x256xf32>
    %209 = arith.mulf %207, %208 : vector<16x256xf32>
    %210 = vector.extract_strided_slice %199 {offsets = [0, 17], sizes = [16, 256], strides = [1, 1]} : vector<16x290xf32> to vector<16x256xf32>
    %211 = vector.extract_strided_slice %199 {offsets = [0, 18], sizes = [16, 256], strides = [1, 1]} : vector<16x290xf32> to vector<16x256xf32>
    %212 = vector.broadcast %65 : vector<1x256xf32> to vector<16x256xf32>
    %213 = arith.mulf %211, %212 : vector<16x256xf32>
    %214 = vector.extract_strided_slice %199 {offsets = [0, 32], sizes = [16, 256], strides = [1, 1]} : vector<16x290xf32> to vector<16x256xf32>
    %215 = vector.broadcast %64 : vector<1x256xf32> to vector<16x256xf32>
    %216 = arith.mulf %214, %215 : vector<16x256xf32>
    %217 = vector.extract_strided_slice %199 {offsets = [0, 33], sizes = [16, 256], strides = [1, 1]} : vector<16x290xf32> to vector<16x256xf32>
    %218 = vector.extract_strided_slice %199 {offsets = [0, 34], sizes = [16, 256], strides = [1, 1]} : vector<16x290xf32> to vector<16x256xf32>
    %219 = vector.broadcast %65 : vector<1x256xf32> to vector<16x256xf32>
    %220 = arith.mulf %218, %219 : vector<16x256xf32>
    %221 = tpu.concatenate %202, %203, %206, %209, %210, %213, %216, %217, %220 in 0 : vector<16x256xf32>, vector<16x256xf32>, vector<16x256xf32>, vector<16x256xf32>, vector<16x256xf32>, vector<16x256xf32>, vector<16x256xf32>, vector<16x256xf32>, vector<16x256xf32> -> vector<144x256xf32>
    %c0_97 = arith.constant 0 : index
    %c0_98 = arith.constant 0 : index
    %222 = vector.load %arg4[%c0_97, %c0_98] : memref<64x144xf32, #tpu.memory_space<vmem>>, vector<64x144xf32>
    %cst_99 = arith.constant dense<0.000000e+00> : vector<64x256xf32>
    %223 = tpu.matmul %222, %221, %cst_99 {dimension_numbers = #tpu.dot_dimension_numbers<[1], [0], [0], [1], [0, 0, 1, 1], [], []>} : vector<64x144xf32>, vector<144x256xf32>, vector<64x256xf32> -> vector<64x256xf32>
    %224 = arith.addf %198, %223 : vector<64x256xf32>
    %225 = vector.extract_strided_slice %224 {offsets = [0, 0], sizes = [48, 256], strides = [1, 1]} : vector<64x256xf32> to vector<48x256xf32>
    %226 = arith.negf %225 : vector<48x256xf32>
    %227 = math.exp %226 : vector<48x256xf32>
    %cst_100 = arith.constant 1.000000e+00 : f32
    %228 = vector.broadcast %cst_100 : f32 to vector<48x256xf32>
    %229 = arith.addf %228, %227 : vector<48x256xf32>
    %230 = arith.divf %228, %229 : vector<48x256xf32>
    %231 = vector.extract_strided_slice %224 {offsets = [48, 0], sizes = [16, 256], strides = [1, 1]} : vector<64x256xf32> to vector<16x256xf32>
    %232 = math.tanh %231 : vector<16x256xf32>
    %233 = vector.extract_strided_slice %230 {offsets = [0, 0], sizes = [16, 256], strides = [1, 1]} : vector<48x256xf32> to vector<16x256xf32>
    %234 = vector.extract_strided_slice %230 {offsets = [16, 0], sizes = [16, 256], strides = [1, 1]} : vector<48x256xf32> to vector<16x256xf32>
    %235 = vector.extract_strided_slice %230 {offsets = [32, 0], sizes = [16, 256], strides = [1, 1]} : vector<48x256xf32> to vector<16x256xf32>
    %236 = arith.mulf %234, %195 : vector<16x256xf32>
    %237 = arith.mulf %233, %232 : vector<16x256xf32>
    %238 = arith.addf %236, %237 : vector<16x256xf32>
    %239 = math.tanh %238 : vector<16x256xf32>
    %240 = arith.mulf %235, %239 : vector<16x256xf32>
    %c0_101 = arith.constant 0 : index
    %c1024_102 = arith.constant 1024 : index
    %241 = vector.load %arg12[%c0_101, %c1024_102] : memref<64x2048xf32, #tpu.memory_space<vmem>>, vector<64x256xf32>
    %242 = tpu.concatenate %66, %240, %66 in 1 : vector<16x17xf32>, vector<16x256xf32>, vector<16x17xf32> -> vector<16x290xf32>
    %243 = vector.extract_strided_slice %242 {offsets = [0, 0], sizes = [16, 256], strides = [1, 1]} : vector<16x290xf32> to vector<16x256xf32>
    %244 = vector.broadcast %64 : vector<1x256xf32> to vector<16x256xf32>
    %245 = arith.mulf %243, %244 : vector<16x256xf32>
    %246 = vector.extract_strided_slice %242 {offsets = [0, 1], sizes = [16, 256], strides = [1, 1]} : vector<16x290xf32> to vector<16x256xf32>
    %247 = vector.extract_strided_slice %242 {offsets = [0, 2], sizes = [16, 256], strides = [1, 1]} : vector<16x290xf32> to vector<16x256xf32>
    %248 = vector.broadcast %65 : vector<1x256xf32> to vector<16x256xf32>
    %249 = arith.mulf %247, %248 : vector<16x256xf32>
    %250 = vector.extract_strided_slice %242 {offsets = [0, 16], sizes = [16, 256], strides = [1, 1]} : vector<16x290xf32> to vector<16x256xf32>
    %251 = vector.broadcast %64 : vector<1x256xf32> to vector<16x256xf32>
    %252 = arith.mulf %250, %251 : vector<16x256xf32>
    %253 = vector.extract_strided_slice %242 {offsets = [0, 17], sizes = [16, 256], strides = [1, 1]} : vector<16x290xf32> to vector<16x256xf32>
    %254 = vector.extract_strided_slice %242 {offsets = [0, 18], sizes = [16, 256], strides = [1, 1]} : vector<16x290xf32> to vector<16x256xf32>
    %255 = vector.broadcast %65 : vector<1x256xf32> to vector<16x256xf32>
    %256 = arith.mulf %254, %255 : vector<16x256xf32>
    %257 = vector.extract_strided_slice %242 {offsets = [0, 32], sizes = [16, 256], strides = [1, 1]} : vector<16x290xf32> to vector<16x256xf32>
    %258 = vector.broadcast %64 : vector<1x256xf32> to vector<16x256xf32>
    %259 = arith.mulf %257, %258 : vector<16x256xf32>
    %260 = vector.extract_strided_slice %242 {offsets = [0, 33], sizes = [16, 256], strides = [1, 1]} : vector<16x290xf32> to vector<16x256xf32>
    %261 = vector.extract_strided_slice %242 {offsets = [0, 34], sizes = [16, 256], strides = [1, 1]} : vector<16x290xf32> to vector<16x256xf32>
    %262 = vector.broadcast %65 : vector<1x256xf32> to vector<16x256xf32>
    %263 = arith.mulf %261, %262 : vector<16x256xf32>
    %264 = tpu.concatenate %245, %246, %249, %252, %253, %256, %259, %260, %263 in 0 : vector<16x256xf32>, vector<16x256xf32>, vector<16x256xf32>, vector<16x256xf32>, vector<16x256xf32>, vector<16x256xf32>, vector<16x256xf32>, vector<16x256xf32>, vector<16x256xf32> -> vector<144x256xf32>
    %c0_103 = arith.constant 0 : index
    %c0_104 = arith.constant 0 : index
    %265 = vector.load %arg4[%c0_103, %c0_104] : memref<64x144xf32, #tpu.memory_space<vmem>>, vector<64x144xf32>
    %cst_105 = arith.constant dense<0.000000e+00> : vector<64x256xf32>
    %266 = tpu.matmul %265, %264, %cst_105 {dimension_numbers = #tpu.dot_dimension_numbers<[1], [0], [0], [1], [0, 0, 1, 1], [], []>} : vector<64x144xf32>, vector<144x256xf32>, vector<64x256xf32> -> vector<64x256xf32>
    %267 = arith.addf %241, %266 : vector<64x256xf32>
    %268 = vector.extract_strided_slice %267 {offsets = [0, 0], sizes = [48, 256], strides = [1, 1]} : vector<64x256xf32> to vector<48x256xf32>
    %269 = arith.negf %268 : vector<48x256xf32>
    %270 = math.exp %269 : vector<48x256xf32>
    %cst_106 = arith.constant 1.000000e+00 : f32
    %271 = vector.broadcast %cst_106 : f32 to vector<48x256xf32>
    %272 = arith.addf %271, %270 : vector<48x256xf32>
    %273 = arith.divf %271, %272 : vector<48x256xf32>
    %274 = vector.extract_strided_slice %267 {offsets = [48, 0], sizes = [16, 256], strides = [1, 1]} : vector<64x256xf32> to vector<16x256xf32>
    %275 = math.tanh %274 : vector<16x256xf32>
    %276 = vector.extract_strided_slice %273 {offsets = [0, 0], sizes = [16, 256], strides = [1, 1]} : vector<48x256xf32> to vector<16x256xf32>
    %277 = vector.extract_strided_slice %273 {offsets = [16, 0], sizes = [16, 256], strides = [1, 1]} : vector<48x256xf32> to vector<16x256xf32>
    %278 = vector.extract_strided_slice %273 {offsets = [32, 0], sizes = [16, 256], strides = [1, 1]} : vector<48x256xf32> to vector<16x256xf32>
    %279 = arith.mulf %277, %238 : vector<16x256xf32>
    %280 = arith.mulf %276, %275 : vector<16x256xf32>
    %281 = arith.addf %279, %280 : vector<16x256xf32>
    %282 = math.tanh %281 : vector<16x256xf32>
    %283 = arith.mulf %278, %282 : vector<16x256xf32>
    %c0_107 = arith.constant 0 : index
    %c1280_108 = arith.constant 1280 : index
    %284 = vector.load %arg12[%c0_107, %c1280_108] : memref<64x2048xf32, #tpu.memory_space<vmem>>, vector<64x256xf32>
    %285 = tpu.concatenate %66, %283, %66 in 1 : vector<16x17xf32>, vector<16x256xf32>, vector<16x17xf32> -> vector<16x290xf32>
    %286 = vector.extract_strided_slice %285 {offsets = [0, 0], sizes = [16, 256], strides = [1, 1]} : vector<16x290xf32> to vector<16x256xf32>
    %287 = vector.broadcast %64 : vector<1x256xf32> to vector<16x256xf32>
    %288 = arith.mulf %286, %287 : vector<16x256xf32>
    %289 = vector.extract_strided_slice %285 {offsets = [0, 1], sizes = [16, 256], strides = [1, 1]} : vector<16x290xf32> to vector<16x256xf32>
    %290 = vector.extract_strided_slice %285 {offsets = [0, 2], sizes = [16, 256], strides = [1, 1]} : vector<16x290xf32> to vector<16x256xf32>
    %291 = vector.broadcast %65 : vector<1x256xf32> to vector<16x256xf32>
    %292 = arith.mulf %290, %291 : vector<16x256xf32>
    %293 = vector.extract_strided_slice %285 {offsets = [0, 16], sizes = [16, 256], strides = [1, 1]} : vector<16x290xf32> to vector<16x256xf32>
    %294 = vector.broadcast %64 : vector<1x256xf32> to vector<16x256xf32>
    %295 = arith.mulf %293, %294 : vector<16x256xf32>
    %296 = vector.extract_strided_slice %285 {offsets = [0, 17], sizes = [16, 256], strides = [1, 1]} : vector<16x290xf32> to vector<16x256xf32>
    %297 = vector.extract_strided_slice %285 {offsets = [0, 18], sizes = [16, 256], strides = [1, 1]} : vector<16x290xf32> to vector<16x256xf32>
    %298 = vector.broadcast %65 : vector<1x256xf32> to vector<16x256xf32>
    %299 = arith.mulf %297, %298 : vector<16x256xf32>
    %300 = vector.extract_strided_slice %285 {offsets = [0, 32], sizes = [16, 256], strides = [1, 1]} : vector<16x290xf32> to vector<16x256xf32>
    %301 = vector.broadcast %64 : vector<1x256xf32> to vector<16x256xf32>
    %302 = arith.mulf %300, %301 : vector<16x256xf32>
    %303 = vector.extract_strided_slice %285 {offsets = [0, 33], sizes = [16, 256], strides = [1, 1]} : vector<16x290xf32> to vector<16x256xf32>
    %304 = vector.extract_strided_slice %285 {offsets = [0, 34], sizes = [16, 256], strides = [1, 1]} : vector<16x290xf32> to vector<16x256xf32>
    %305 = vector.broadcast %65 : vector<1x256xf32> to vector<16x256xf32>
    %306 = arith.mulf %304, %305 : vector<16x256xf32>
    %307 = tpu.concatenate %288, %289, %292, %295, %296, %299, %302, %303, %306 in 0 : vector<16x256xf32>, vector<16x256xf32>, vector<16x256xf32>, vector<16x256xf32>, vector<16x256xf32>, vector<16x256xf32>, vector<16x256xf32>, vector<16x256xf32>, vector<16x256xf32> -> vector<144x256xf32>
    %c0_109 = arith.constant 0 : index
    %c0_110 = arith.constant 0 : index
    %308 = vector.load %arg4[%c0_109, %c0_110] : memref<64x144xf32, #tpu.memory_space<vmem>>, vector<64x144xf32>
    %cst_111 = arith.constant dense<0.000000e+00> : vector<64x256xf32>
    %309 = tpu.matmul %308, %307, %cst_111 {dimension_numbers = #tpu.dot_dimension_numbers<[1], [0], [0], [1], [0, 0, 1, 1], [], []>} : vector<64x144xf32>, vector<144x256xf32>, vector<64x256xf32> -> vector<64x256xf32>
    %310 = arith.addf %284, %309 : vector<64x256xf32>
    %311 = vector.extract_strided_slice %310 {offsets = [0, 0], sizes = [48, 256], strides = [1, 1]} : vector<64x256xf32> to vector<48x256xf32>
    %312 = arith.negf %311 : vector<48x256xf32>
    %313 = math.exp %312 : vector<48x256xf32>
    %cst_112 = arith.constant 1.000000e+00 : f32
    %314 = vector.broadcast %cst_112 : f32 to vector<48x256xf32>
    %315 = arith.addf %314, %313 : vector<48x256xf32>
    %316 = arith.divf %314, %315 : vector<48x256xf32>
    %317 = vector.extract_strided_slice %310 {offsets = [48, 0], sizes = [16, 256], strides = [1, 1]} : vector<64x256xf32> to vector<16x256xf32>
    %318 = math.tanh %317 : vector<16x256xf32>
    %319 = vector.extract_strided_slice %316 {offsets = [0, 0], sizes = [16, 256], strides = [1, 1]} : vector<48x256xf32> to vector<16x256xf32>
    %320 = vector.extract_strided_slice %316 {offsets = [16, 0], sizes = [16, 256], strides = [1, 1]} : vector<48x256xf32> to vector<16x256xf32>
    %321 = vector.extract_strided_slice %316 {offsets = [32, 0], sizes = [16, 256], strides = [1, 1]} : vector<48x256xf32> to vector<16x256xf32>
    %322 = arith.mulf %320, %281 : vector<16x256xf32>
    %323 = arith.mulf %319, %318 : vector<16x256xf32>
    %324 = arith.addf %322, %323 : vector<16x256xf32>
    %325 = math.tanh %324 : vector<16x256xf32>
    %326 = arith.mulf %321, %325 : vector<16x256xf32>
    %c0_113 = arith.constant 0 : index
    %c1536_114 = arith.constant 1536 : index
    %327 = vector.load %arg12[%c0_113, %c1536_114] : memref<64x2048xf32, #tpu.memory_space<vmem>>, vector<64x256xf32>
    %328 = tpu.concatenate %66, %326, %66 in 1 : vector<16x17xf32>, vector<16x256xf32>, vector<16x17xf32> -> vector<16x290xf32>
    %329 = vector.extract_strided_slice %328 {offsets = [0, 0], sizes = [16, 256], strides = [1, 1]} : vector<16x290xf32> to vector<16x256xf32>
    %330 = vector.broadcast %64 : vector<1x256xf32> to vector<16x256xf32>
    %331 = arith.mulf %329, %330 : vector<16x256xf32>
    %332 = vector.extract_strided_slice %328 {offsets = [0, 1], sizes = [16, 256], strides = [1, 1]} : vector<16x290xf32> to vector<16x256xf32>
    %333 = vector.extract_strided_slice %328 {offsets = [0, 2], sizes = [16, 256], strides = [1, 1]} : vector<16x290xf32> to vector<16x256xf32>
    %334 = vector.broadcast %65 : vector<1x256xf32> to vector<16x256xf32>
    %335 = arith.mulf %333, %334 : vector<16x256xf32>
    %336 = vector.extract_strided_slice %328 {offsets = [0, 16], sizes = [16, 256], strides = [1, 1]} : vector<16x290xf32> to vector<16x256xf32>
    %337 = vector.broadcast %64 : vector<1x256xf32> to vector<16x256xf32>
    %338 = arith.mulf %336, %337 : vector<16x256xf32>
    %339 = vector.extract_strided_slice %328 {offsets = [0, 17], sizes = [16, 256], strides = [1, 1]} : vector<16x290xf32> to vector<16x256xf32>
    %340 = vector.extract_strided_slice %328 {offsets = [0, 18], sizes = [16, 256], strides = [1, 1]} : vector<16x290xf32> to vector<16x256xf32>
    %341 = vector.broadcast %65 : vector<1x256xf32> to vector<16x256xf32>
    %342 = arith.mulf %340, %341 : vector<16x256xf32>
    %343 = vector.extract_strided_slice %328 {offsets = [0, 32], sizes = [16, 256], strides = [1, 1]} : vector<16x290xf32> to vector<16x256xf32>
    %344 = vector.broadcast %64 : vector<1x256xf32> to vector<16x256xf32>
    %345 = arith.mulf %343, %344 : vector<16x256xf32>
    %346 = vector.extract_strided_slice %328 {offsets = [0, 33], sizes = [16, 256], strides = [1, 1]} : vector<16x290xf32> to vector<16x256xf32>
    %347 = vector.extract_strided_slice %328 {offsets = [0, 34], sizes = [16, 256], strides = [1, 1]} : vector<16x290xf32> to vector<16x256xf32>
    %348 = vector.broadcast %65 : vector<1x256xf32> to vector<16x256xf32>
    %349 = arith.mulf %347, %348 : vector<16x256xf32>
    %350 = tpu.concatenate %331, %332, %335, %338, %339, %342, %345, %346, %349 in 0 : vector<16x256xf32>, vector<16x256xf32>, vector<16x256xf32>, vector<16x256xf32>, vector<16x256xf32>, vector<16x256xf32>, vector<16x256xf32>, vector<16x256xf32>, vector<16x256xf32> -> vector<144x256xf32>
    %c0_115 = arith.constant 0 : index
    %c0_116 = arith.constant 0 : index
    %351 = vector.load %arg4[%c0_115, %c0_116] : memref<64x144xf32, #tpu.memory_space<vmem>>, vector<64x144xf32>
    %cst_117 = arith.constant dense<0.000000e+00> : vector<64x256xf32>
    %352 = tpu.matmul %351, %350, %cst_117 {dimension_numbers = #tpu.dot_dimension_numbers<[1], [0], [0], [1], [0, 0, 1, 1], [], []>} : vector<64x144xf32>, vector<144x256xf32>, vector<64x256xf32> -> vector<64x256xf32>
    %353 = arith.addf %327, %352 : vector<64x256xf32>
    %354 = vector.extract_strided_slice %353 {offsets = [0, 0], sizes = [48, 256], strides = [1, 1]} : vector<64x256xf32> to vector<48x256xf32>
    %355 = arith.negf %354 : vector<48x256xf32>
    %356 = math.exp %355 : vector<48x256xf32>
    %cst_118 = arith.constant 1.000000e+00 : f32
    %357 = vector.broadcast %cst_118 : f32 to vector<48x256xf32>
    %358 = arith.addf %357, %356 : vector<48x256xf32>
    %359 = arith.divf %357, %358 : vector<48x256xf32>
    %360 = vector.extract_strided_slice %353 {offsets = [48, 0], sizes = [16, 256], strides = [1, 1]} : vector<64x256xf32> to vector<16x256xf32>
    %361 = math.tanh %360 : vector<16x256xf32>
    %362 = vector.extract_strided_slice %359 {offsets = [0, 0], sizes = [16, 256], strides = [1, 1]} : vector<48x256xf32> to vector<16x256xf32>
    %363 = vector.extract_strided_slice %359 {offsets = [16, 0], sizes = [16, 256], strides = [1, 1]} : vector<48x256xf32> to vector<16x256xf32>
    %364 = vector.extract_strided_slice %359 {offsets = [32, 0], sizes = [16, 256], strides = [1, 1]} : vector<48x256xf32> to vector<16x256xf32>
    %365 = arith.mulf %363, %324 : vector<16x256xf32>
    %366 = arith.mulf %362, %361 : vector<16x256xf32>
    %367 = arith.addf %365, %366 : vector<16x256xf32>
    %368 = math.tanh %367 : vector<16x256xf32>
    %369 = arith.mulf %364, %368 : vector<16x256xf32>
    %c0_119 = arith.constant 0 : index
    %c1792_120 = arith.constant 1792 : index
    %370 = vector.load %arg12[%c0_119, %c1792_120] : memref<64x2048xf32, #tpu.memory_space<vmem>>, vector<64x256xf32>
    %371 = tpu.concatenate %66, %369, %66 in 1 : vector<16x17xf32>, vector<16x256xf32>, vector<16x17xf32> -> vector<16x290xf32>
    %372 = vector.extract_strided_slice %371 {offsets = [0, 0], sizes = [16, 256], strides = [1, 1]} : vector<16x290xf32> to vector<16x256xf32>
    %373 = vector.broadcast %64 : vector<1x256xf32> to vector<16x256xf32>
    %374 = arith.mulf %372, %373 : vector<16x256xf32>
    %375 = vector.extract_strided_slice %371 {offsets = [0, 1], sizes = [16, 256], strides = [1, 1]} : vector<16x290xf32> to vector<16x256xf32>
    %376 = vector.extract_strided_slice %371 {offsets = [0, 2], sizes = [16, 256], strides = [1, 1]} : vector<16x290xf32> to vector<16x256xf32>
    %377 = vector.broadcast %65 : vector<1x256xf32> to vector<16x256xf32>
    %378 = arith.mulf %376, %377 : vector<16x256xf32>
    %379 = vector.extract_strided_slice %371 {offsets = [0, 16], sizes = [16, 256], strides = [1, 1]} : vector<16x290xf32> to vector<16x256xf32>
    %380 = vector.broadcast %64 : vector<1x256xf32> to vector<16x256xf32>
    %381 = arith.mulf %379, %380 : vector<16x256xf32>
    %382 = vector.extract_strided_slice %371 {offsets = [0, 17], sizes = [16, 256], strides = [1, 1]} : vector<16x290xf32> to vector<16x256xf32>
    %383 = vector.extract_strided_slice %371 {offsets = [0, 18], sizes = [16, 256], strides = [1, 1]} : vector<16x290xf32> to vector<16x256xf32>
    %384 = vector.broadcast %65 : vector<1x256xf32> to vector<16x256xf32>
    %385 = arith.mulf %383, %384 : vector<16x256xf32>
    %386 = vector.extract_strided_slice %371 {offsets = [0, 32], sizes = [16, 256], strides = [1, 1]} : vector<16x290xf32> to vector<16x256xf32>
    %387 = vector.broadcast %64 : vector<1x256xf32> to vector<16x256xf32>
    %388 = arith.mulf %386, %387 : vector<16x256xf32>
    %389 = vector.extract_strided_slice %371 {offsets = [0, 33], sizes = [16, 256], strides = [1, 1]} : vector<16x290xf32> to vector<16x256xf32>
    %390 = vector.extract_strided_slice %371 {offsets = [0, 34], sizes = [16, 256], strides = [1, 1]} : vector<16x290xf32> to vector<16x256xf32>
    %391 = vector.broadcast %65 : vector<1x256xf32> to vector<16x256xf32>
    %392 = arith.mulf %390, %391 : vector<16x256xf32>
    %393 = tpu.concatenate %374, %375, %378, %381, %382, %385, %388, %389, %392 in 0 : vector<16x256xf32>, vector<16x256xf32>, vector<16x256xf32>, vector<16x256xf32>, vector<16x256xf32>, vector<16x256xf32>, vector<16x256xf32>, vector<16x256xf32>, vector<16x256xf32> -> vector<144x256xf32>
    %c0_121 = arith.constant 0 : index
    %c0_122 = arith.constant 0 : index
    %394 = vector.load %arg4[%c0_121, %c0_122] : memref<64x144xf32, #tpu.memory_space<vmem>>, vector<64x144xf32>
    %cst_123 = arith.constant dense<0.000000e+00> : vector<64x256xf32>
    %395 = tpu.matmul %394, %393, %cst_123 {dimension_numbers = #tpu.dot_dimension_numbers<[1], [0], [0], [1], [0, 0, 1, 1], [], []>} : vector<64x144xf32>, vector<144x256xf32>, vector<64x256xf32> -> vector<64x256xf32>
    %396 = arith.addf %370, %395 : vector<64x256xf32>
    %397 = vector.extract_strided_slice %396 {offsets = [0, 0], sizes = [48, 256], strides = [1, 1]} : vector<64x256xf32> to vector<48x256xf32>
    %398 = arith.negf %397 : vector<48x256xf32>
    %399 = math.exp %398 : vector<48x256xf32>
    %cst_124 = arith.constant 1.000000e+00 : f32
    %400 = vector.broadcast %cst_124 : f32 to vector<48x256xf32>
    %401 = arith.addf %400, %399 : vector<48x256xf32>
    %402 = arith.divf %400, %401 : vector<48x256xf32>
    %403 = vector.extract_strided_slice %396 {offsets = [48, 0], sizes = [16, 256], strides = [1, 1]} : vector<64x256xf32> to vector<16x256xf32>
    %404 = math.tanh %403 : vector<16x256xf32>
    %405 = vector.extract_strided_slice %402 {offsets = [0, 0], sizes = [16, 256], strides = [1, 1]} : vector<48x256xf32> to vector<16x256xf32>
    %406 = vector.extract_strided_slice %402 {offsets = [16, 0], sizes = [16, 256], strides = [1, 1]} : vector<48x256xf32> to vector<16x256xf32>
    %407 = vector.extract_strided_slice %402 {offsets = [32, 0], sizes = [16, 256], strides = [1, 1]} : vector<48x256xf32> to vector<16x256xf32>
    %408 = arith.mulf %406, %367 : vector<16x256xf32>
    %409 = arith.mulf %405, %404 : vector<16x256xf32>
    %410 = arith.addf %408, %409 : vector<16x256xf32>
    %411 = math.tanh %410 : vector<16x256xf32>
    %412 = arith.mulf %407, %411 : vector<16x256xf32>
    %c0_125 = arith.constant 0 : index
    %c0_126 = arith.constant 0 : index
    %413 = vector.load %arg6[%c0_125, %c0_126] : memref<9x256xf32, #tpu.memory_space<vmem>>, vector<1x256xf32>
    %414 = vector.broadcast %413 : vector<1x256xf32> to vector<16x256xf32>
    %415 = arith.mulf %412, %414 : vector<16x256xf32>
    %cst_127 = arith.constant dense<0.000000e+00> : vector<16xf32>
    %416 = vector.multi_reduction <add>, %415, %cst_127 [1] : vector<16x256xf32> to vector<16xf32>
    %417 = vector.shape_cast %416 : vector<16xf32> to vector<16x1xf32>
    %c1_128 = arith.constant 1 : index
    %c0_129 = arith.constant 0 : index
    %418 = vector.load %arg6[%c1_128, %c0_129] : memref<9x256xf32, #tpu.memory_space<vmem>>, vector<1x256xf32>
    %419 = vector.broadcast %418 : vector<1x256xf32> to vector<16x256xf32>
    %420 = arith.mulf %412, %419 : vector<16x256xf32>
    %cst_130 = arith.constant dense<0.000000e+00> : vector<16xf32>
    %421 = vector.multi_reduction <add>, %420, %cst_130 [1] : vector<16x256xf32> to vector<16xf32>
    %422 = vector.shape_cast %421 : vector<16xf32> to vector<16x1xf32>
    %c2 = arith.constant 2 : index
    %c0_131 = arith.constant 0 : index
    %423 = vector.load %arg6[%c2, %c0_131] : memref<9x256xf32, #tpu.memory_space<vmem>>, vector<1x256xf32>
    %424 = vector.broadcast %423 : vector<1x256xf32> to vector<16x256xf32>
    %425 = arith.mulf %412, %424 : vector<16x256xf32>
    %cst_132 = arith.constant dense<0.000000e+00> : vector<16xf32>
    %426 = vector.multi_reduction <add>, %425, %cst_132 [1] : vector<16x256xf32> to vector<16xf32>
    %427 = vector.shape_cast %426 : vector<16xf32> to vector<16x1xf32>
    %c3 = arith.constant 3 : index
    %c0_133 = arith.constant 0 : index
    %428 = vector.load %arg6[%c3, %c0_133] : memref<9x256xf32, #tpu.memory_space<vmem>>, vector<1x256xf32>
    %429 = vector.broadcast %428 : vector<1x256xf32> to vector<16x256xf32>
    %430 = arith.mulf %412, %429 : vector<16x256xf32>
    %cst_134 = arith.constant dense<0.000000e+00> : vector<16xf32>
    %431 = vector.multi_reduction <add>, %430, %cst_134 [1] : vector<16x256xf32> to vector<16xf32>
    %432 = vector.shape_cast %431 : vector<16xf32> to vector<16x1xf32>
    %c4 = arith.constant 4 : index
    %c0_135 = arith.constant 0 : index
    %433 = vector.load %arg6[%c4, %c0_135] : memref<9x256xf32, #tpu.memory_space<vmem>>, vector<1x256xf32>
    %434 = vector.broadcast %433 : vector<1x256xf32> to vector<16x256xf32>
    %435 = arith.mulf %412, %434 : vector<16x256xf32>
    %cst_136 = arith.constant dense<0.000000e+00> : vector<16xf32>
    %436 = vector.multi_reduction <add>, %435, %cst_136 [1] : vector<16x256xf32> to vector<16xf32>
    %437 = vector.shape_cast %436 : vector<16xf32> to vector<16x1xf32>
    %c5 = arith.constant 5 : index
    %c0_137 = arith.constant 0 : index
    %438 = vector.load %arg6[%c5, %c0_137] : memref<9x256xf32, #tpu.memory_space<vmem>>, vector<1x256xf32>
    %439 = vector.broadcast %438 : vector<1x256xf32> to vector<16x256xf32>
    %440 = arith.mulf %412, %439 : vector<16x256xf32>
    %cst_138 = arith.constant dense<0.000000e+00> : vector<16xf32>
    %441 = vector.multi_reduction <add>, %440, %cst_138 [1] : vector<16x256xf32> to vector<16xf32>
    %442 = vector.shape_cast %441 : vector<16xf32> to vector<16x1xf32>
    %c6 = arith.constant 6 : index
    %c0_139 = arith.constant 0 : index
    %443 = vector.load %arg6[%c6, %c0_139] : memref<9x256xf32, #tpu.memory_space<vmem>>, vector<1x256xf32>
    %444 = vector.broadcast %443 : vector<1x256xf32> to vector<16x256xf32>
    %445 = arith.mulf %412, %444 : vector<16x256xf32>
    %cst_140 = arith.constant dense<0.000000e+00> : vector<16xf32>
    %446 = vector.multi_reduction <add>, %445, %cst_140 [1] : vector<16x256xf32> to vector<16xf32>
    %447 = vector.shape_cast %446 : vector<16xf32> to vector<16x1xf32>
    %c7 = arith.constant 7 : index
    %c0_141 = arith.constant 0 : index
    %448 = vector.load %arg6[%c7, %c0_141] : memref<9x256xf32, #tpu.memory_space<vmem>>, vector<1x256xf32>
    %449 = vector.broadcast %448 : vector<1x256xf32> to vector<16x256xf32>
    %450 = arith.mulf %412, %449 : vector<16x256xf32>
    %cst_142 = arith.constant dense<0.000000e+00> : vector<16xf32>
    %451 = vector.multi_reduction <add>, %450, %cst_142 [1] : vector<16x256xf32> to vector<16xf32>
    %452 = vector.shape_cast %451 : vector<16xf32> to vector<16x1xf32>
    %c8 = arith.constant 8 : index
    %c0_143 = arith.constant 0 : index
    %453 = vector.load %arg6[%c8, %c0_143] : memref<9x256xf32, #tpu.memory_space<vmem>>, vector<1x256xf32>
    %454 = vector.broadcast %453 : vector<1x256xf32> to vector<16x256xf32>
    %455 = arith.mulf %412, %454 : vector<16x256xf32>
    %cst_144 = arith.constant dense<0.000000e+00> : vector<16xf32>
    %456 = vector.multi_reduction <add>, %455, %cst_144 [1] : vector<16x256xf32> to vector<16xf32>
    %457 = vector.shape_cast %456 : vector<16xf32> to vector<16x1xf32>
    %458 = tpu.concatenate %417, %422, %427, %432, %437, %442, %447, %452, %457 in 0 : vector<16x1xf32>, vector<16x1xf32>, vector<16x1xf32>, vector<16x1xf32>, vector<16x1xf32>, vector<16x1xf32>, vector<16x1xf32>, vector<16x1xf32>, vector<16x1xf32> -> vector<144x1xf32>
    %c0_145 = arith.constant 0 : index
    %c0_146 = arith.constant 0 : index
    %459 = vector.load %arg7[%c0_145, %c0_146] : memref<128x144xf32, #tpu.memory_space<vmem>>, vector<128x144xf32>
    %cst_147 = arith.constant dense<0.000000e+00> : vector<128x1xf32>
    %460 = tpu.matmul %459, %458, %cst_147 {dimension_numbers = #tpu.dot_dimension_numbers<[1], [0], [0], [1], [0, 0, 1, 1], [], []>} : vector<128x144xf32>, vector<144x1xf32>, vector<128x1xf32> -> vector<128x1xf32>
    %c0_148 = arith.constant 0 : index
    %c0_149 = arith.constant 0 : index
    %461 = vector.load %arg8[%c0_148, %c0_149] : memref<128x1xf32, #tpu.memory_space<vmem>>, vector<128x1xf32>
    %462 = arith.addf %460, %461 : vector<128x1xf32>
    %cst_150 = arith.constant 0.000000e+00 : f32
    %463 = vector.broadcast %cst_150 : f32 to vector<128x1xf32>
    %464 = arith.maximumf %462, %463 : vector<128x1xf32>
    %c0_151 = arith.constant 0 : index
    %c0_152 = arith.constant 0 : index
    %465 = vector.load %arg9[%c0_151, %c0_152] : memref<10x128xf32, #tpu.memory_space<vmem>>, vector<10x128xf32>
    %cst_153 = arith.constant dense<0.000000e+00> : vector<10x1xf32>
    %466 = tpu.matmul %465, %464, %cst_153 {dimension_numbers = #tpu.dot_dimension_numbers<[1], [0], [0], [1], [0, 0, 1, 1], [], []>} : vector<10x128xf32>, vector<128x1xf32>, vector<10x1xf32> -> vector<10x1xf32>
    %c0_154 = arith.constant 0 : index
    %c0_155 = arith.constant 0 : index
    %467 = vector.load %arg10[%c0_154, %c0_155] : memref<10x1xf32, #tpu.memory_space<vmem>>, vector<10x1xf32>
    %468 = arith.addf %466, %467 : vector<10x1xf32>
    %c0_156 = arith.constant 0 : index
    %c0_157 = arith.constant 0 : index
    %c0_158 = arith.constant 0 : index
    %469 = vector.load %arg11[%c0_156, %c0_157, %c0_158] : memref<1x10x1xf32, #tpu.memory_space<vmem>>, vector<1x10x1xf32>
    %470 = vector.shape_cast %469 : vector<1x10x1xf32> to vector<10x1xf32>
    %471 = vector.shape_cast %468 : vector<10x1xf32> to vector<1x10x1xf32>
    tpu.vector_store %arg11[%c0_156, %c0_157, %c0_158], %471 {strides = array<i32>} : memref<1x10x1xf32, #tpu.memory_space<vmem>>, vector<1x10x1xf32>,
    return
  }
  func.func @transform_0(%arg0: i32) -> (i32, i32, i32) {
    %c0_i32 = arith.constant 0 : i32
    %c0_i32_0 = arith.constant 0 : i32
    %c0_i32_1 = arith.constant 0 : i32
    return %arg0, %c0_i32, %c0_i32_0 : i32, i32, i32
  }
  func.func @transform_1(%arg0: i32) -> (i32, i32) {
    %c0_i32 = arith.constant 0 : i32
    %c0_i32_0 = arith.constant 0 : i32
    %c0_i32_1 = arith.constant 0 : i32
    return %c0_i32, %c0_i32_0 : i32, i32
  }
  func.func @transform_2(%arg0: i32) -> (i32, i32) {
    %c0_i32 = arith.constant 0 : i32
    %c0_i32_0 = arith.constant 0 : i32
    %c0_i32_1 = arith.constant 0 : i32
    return %c0_i32, %c0_i32_0 : i32, i32
  }
  func.func @transform_3(%arg0: i32) -> (i32, i32) {
    %c0_i32 = arith.constant 0 : i32
    %c0_i32_0 = arith.constant 0 : i32
    %c0_i32_1 = arith.constant 0 : i32
    return %c0_i32, %c0_i32_0 : i32, i32
  }
  func.func @transform_4(%arg0: i32) -> (i32, i32) {
    %c0_i32 = arith.constant 0 : i32
    %c0_i32_0 = arith.constant 0 : i32
    %c0_i32_1 = arith.constant 0 : i32
    return %c0_i32, %c0_i32_0 : i32, i32
  }
  func.func @transform_5(%arg0: i32) -> (i32, i32) {
    %c0_i32 = arith.constant 0 : i32
    %c0_i32_0 = arith.constant 0 : i32
    %c0_i32_1 = arith.constant 0 : i32
    return %c0_i32, %c0_i32_0 : i32, i32
  }
  func.func @transform_6(%arg0: i32) -> (i32, i32) {
    %c0_i32 = arith.constant 0 : i32
    %c0_i32_0 = arith.constant 0 : i32
    %c0_i32_1 = arith.constant 0 : i32
    return %c0_i32, %c0_i32_0 : i32, i32
  }
  func.func @transform_7(%arg0: i32) -> (i32, i32) {
    %c0_i32 = arith.constant 0 : i32
    %c0_i32_0 = arith.constant 0 : i32
    %c0_i32_1 = arith.constant 0 : i32
    return %c0_i32, %c0_i32_0 : i32, i32
  }
  func.func @transform_8(%arg0: i32) -> (i32, i32) {
    %c0_i32 = arith.constant 0 : i32
    %c0_i32_0 = arith.constant 0 : i32
    %c0_i32_1 = arith.constant 0 : i32
    return %c0_i32, %c0_i32_0 : i32, i32
  }
  func.func @transform_9(%arg0: i32) -> (i32, i32) {
    %c0_i32 = arith.constant 0 : i32
    %c0_i32_0 = arith.constant 0 : i32
    %c0_i32_1 = arith.constant 0 : i32
    return %c0_i32, %c0_i32_0 : i32, i32
  }
  func.func @transform_10(%arg0: i32) -> (i32, i32, i32) {
    %c0_i32 = arith.constant 0 : i32
    %c0_i32_0 = arith.constant 0 : i32
    %c0_i32_1 = arith.constant 0 : i32
    return %arg0, %c0_i32, %c0_i32_0 : i32, i32, i32
  }
}

</mosaic_0001>

<bundles_post_ra>
// kernel: tpu_custom_call.1
= control target key start
LH: loop header
LB: loop body
LE: loop exit
PB: predicated region body
PF: predicated region fallthrough
CT: control target
= control target key end

     0   :  { %s7675_s13 = smov 0   ;;  %s11057_s0 = inlined_call_operand.vmem [shape: f32[2,27,2048], index: 0, kind: input, shape index: {}]   ;;  %s11058_s1 = inlined_call_operand.vmem [shape: f32[64,27], index: 1, kind: input, shape index: {}]   ;;  %s11059_s2 = inlined_call_operand.vmem [shape: f32[64,1], index: 2, kind: input, shape index: {}]   ;;  %s11060_s3 = inlined_call_operand.vmem [shape: f32[64,144], index: 3, kind: input, shape index: {}]   ;;  %s11061_s4 = inlined_call_operand.vmem [shape: f32[2,256], index: 4, kind: input, shape index: {}]   ;;  %s11062_s5 = inlined_call_operand.vmem [shape: f32[9,256], index: 5, kind: input, shape index: {}]   ;;  %s11063_s6 = inlined_call_operand.vmem [shape: f32[128,144], index: 6, kind: input, shape index: {}]   ;;  %s11064_s7 = inlined_call_operand.vmem [shape: f32[128,1], index: 7, kind: input, shape index: {}]   ;;  %s11065_s8 = inlined_call_operand.vmem [shape: f32[10,128], index: 8, kind: input, shape index: {}]   ;;  %s11066_s9 = inlined_call_operand.vmem [shape: f32[10,1], index: 9, kind: input, shape index: {}]   ;;  %s11067_s10 = inlined_call_operand.vmem [shape: f32[2,10,1], index: 10, kind: output, shape index: {}]  }
   0x1 LB: > { %s6648_s14 = sadd.s32 4294967295, %s7602_s13   ;;  %p6652_p0 = scmp.ge.s32.totalorder %s7602_s13, 1  ;;  %s7602_s13 = sphi %s7675_s13, %s20_s13  }
   0x2   : > { %p312_p1 = scmp.lt.s32.totalorder %s7602_s13, 3 }
   0x4   : > { %p313_p2 = pnand %p6652_p0, %p312_p1 }
   0x6   : > { %316 = sbr.rel (%p313_p2) target bundleno = 5306 (0x14ba), region = 60 }
   0xb   : > { %v2166_v0 = vlaneseq  ;;  %v11070_v1 = vmov 0.0   ;;  %v2146_v3 = vld [vmem:[%s11061_s4] ss:$2 sm:$0x3]  ;;  %s7605_s19 = smov 32   ;;  %s7606_s20 = smov 18  }
   0xc   : > { %966 = vmatprep.mubr.f32.mxu0 %v11070_v1  ;;  %520 = vmatprep.mubr.f32.mxu1 %v11070_v1  ;;  %v6737_v4 = vld [vmem:[%s11061_s4 + $0x1] ss:$2 sm:$0x3]  ;;  %s7607_s21 = smov 16   ;;  %s7608_s22 = smov 2   ;;  %vm449_vm0 = vcmask 1042432  }
   0xd   : > { %v2167_v2 = vshrl.u32 %v2166_v0, 7  ;;  %s7609_s23 = smov 34   ;;  %s7610_s24 = smov 95   ;;  %vm424_vm1 = vcmask 220160   ;;  %v7734_v19 = vld [vmem:[%s11058_s1] sm:$0xff]  ;;  %v7747_v24 = vld [vmem:[%s11058_s1 + $0x8] sm:$0xff] }
   0xe   : > { %p350_p3 = scmp.lt.s32.totalorder %s6648_s14, 1  ;;  %v7760_v29 = vld [vmem:[%s11058_s1 + $0x10] sm:$0xff]  ;;  %v7770_v31 = vld [vmem:[%s11058_s1 + $0x18] sm:$0xff]  ;;  %v7778_v32 = vld [vmem:[%s11058_s1 + $0x20] sm:$0xff]  ;;  %vm2227_vm2 = vcmask 261120   ;;  %s7611_s29 = smov 96  }
   0xf   : > { %v7691_v5 = vsub.s32 0, %v2167_v2  ;;  %v7693_v6 = vsub.s32 1, %v2167_v2  ;;  %v7786_v33 = vld [vmem:[%s11058_s1 + $0x28] sm:$0xff]  ;;  %v7794_v34 = vld [vmem:[%s11058_s1 + $0x30] sm:$0xff]  ;;  %v7802_v35 = vld [vmem:[%s11058_s1 + $0x38] sm:$0xff]  ;;  %vm2215_vm3 = vcmask 146432  }
  0x10   : > { %s11467_s14 = smov (!%p350_p3, %s6648_s14), 1  ;;  %s7612_s30 = smov 110   ;;  %vm2191_vm4 = vcmask 15360   ;;  %vm2203_vm5 = vcmask 130048   ;;  %vm2239_vm6 = vcmask 277504   ;;  %vm2307_vm7 = vcmask 785408  }
  0x11   : > { %11159 = vst [vmem:[#allocation3_spill] sm:$0xff] %v7691_v5  ;;  %11160 = vst [vmem:[#allocation4_spill] sm:$0xff] %v7693_v6  ;;  %v7696_v7 = vrot.slane %v2146_v3, %v7691_v5  ;;  %v2182_v8 = vrot.slane %v6737_v4, %v7691_v5  ;;  %v7701_v9 = vrot.slane %v2146_v3, %v7693_v6  ;;  %s6924_s25 = sshll.u32 %s11467_s14, 9  ;;  %s7613_s11 = smov 111   ;;  %vm2293_vm8 = vcmask 900096  }
  0x12   : > { %v2186_v10 = vrot.slane %v6737_v4, %v7693_v6  ;;  %s7719_s28 = scalar_lea.vmem %s11057_s0, %s6924_s25  ;;  %s7614_s12 = smov 112   ;;  %vm2275_vm9 = vcmask 916480   ;;  %vm2261_vm10 = vcmask 1031168   ;;  %vm2325_vm11 = vcmask 769024  }
  0x13   : > { %2223 = vrot.lane.b32.xlu0 %v7696_v7, %s7605_s19  ;;  %2211 = vrot.lane.b32.xlu1 %v2182_v8, %s7606_s20  ;;  %v823_v11 = vld [vmem:[%s7719_s28 + $0x1a8] sm:$0x7]  ;;  %v822_v12 = vld [vmem:[%s7719_s28 + $0x1a0] sm:$0x7]  ;;  %s7615_s15 = smov 126   ;;  %s11076_s18 = smov 127  }
  0x14   : > { %v821_v13 = vld [vmem:[%s7719_s28 + $0x128] sm:$0xff]  ;;  %6677 = vmatprep.subr.msk.mxu0 %vm449_vm0, %v823_v11  ;;  %v820_v14 = vld [vmem:[%s7719_s28 + $0x120] sm:$0xff]  ;;  %vm2623_vm12 = vcmask 138240   ;;  %vm2314_vm13 = vcmask 777216   ;;  %vm2282_vm14 = vcmask 908288   ;;  %vm2250_vm15 = vcmask 1039360  }
  0x15   : > { %6678 = vmatpush1.msk.msra.mxu0 %vm449_vm0, %v822_v12  ;;  %v819_v15 = vld [vmem:[%s7719_s28 + $0xa8] sm:$0xff]  ;;  %v818_v16 = vld [vmem:[%s7719_s28 + $0xa0] sm:$0xff] }
  0x16   : > { %928 = vmatprep.subr.mxu0 %v821_v13  ;;  %v817_v17 = vld [vmem:[%s7719_s28 + $0x28] sm:$0xff]  ;;  %v816_v18 = vld [vmem:[%s7719_s28 + $0x20] sm:$0xff] }
  0x17   : > { %2225 = vrot.lane.b32.xlu0 %v7701_v9, %s7605_s19  ;;  %2213 = vrot.lane.b32.xlu1 %v2186_v10, %s7606_s20  ;;  %v1269_v20 = vld [vmem:[%s7719_s28 + $0x1c8] sm:$0x7]  ;;  %v1268_v21 = vld [vmem:[%s7719_s28 + $0x1c0] sm:$0x7]  ;;  %s11068_s19 = smov 94   ;;  %s7619_s20 = smov 17  }
  0x18   : > { %929 = vmatpush1.msra.mxu0 %v820_v14  ;;  %v1267_v22 = vld [vmem:[%s7719_s28 + $0x148] sm:$0xff]  ;;  %v1266_v23 = vld [vmem:[%s7719_s28 + $0x140] sm:$0xff] }
  0x19   : > { %930 = vmatprep.subr.mxu0 %v819_v15  ;;  %v1265_v25 = vld [vmem:[%s7719_s28 + $0xc8] sm:$0xff]  ;;  %v1264_v26 = vld [vmem:[%s7719_s28 + $0xc0] sm:$0xff] }
  0x1a   : > { %931 = vmatpush1.msra.mxu0 %v818_v16  ;;  %v1263_v27 = vld [vmem:[%s7719_s28 + $0x48] sm:$0xff]  ;;  %v1262_v28 = vld [vmem:[%s7719_s28 + $0x40] sm:$0xff] }
  0x1b   : > { %2201 = vrot.lane.b32.xlu1 %v7701_v9, %s7607_s21  ;;  %2199 = vrot.lane.b32.xlu0 %v7696_v7, %s7607_s21  ;;  %v1715_v30 = vld [vmem:[%s7719_s28 + $0x1e8] sm:$0x7]  ;;  %v1714_v36 = vld [vmem:[%s7719_s28 + $0x1e0] sm:$0x7] }
  0x1c   : > { %932 = vmatprep.subr.mxu0 %v817_v17  ;;  %v1713_v37 = vld [vmem:[%s7719_s28 + $0x168] sm:$0xff]  ;;  %v1712_v38 = vld [vmem:[%s7719_s28 + $0x160] sm:$0xff] }
  0x1d   : > { %933 = vmatpush1.msra.mxu0 %v816_v18  ;;  %v1711_v39 = vld [vmem:[%s7719_s28 + $0xe8] sm:$0xff]  ;;  %v1710_v40 = vld [vmem:[%s7719_s28 + $0xe0] sm:$0xff] }
  0x1e   : > { %6679 = vmatmul.mubr.msk.f32.vlgmr.msra.gmra.mxu0 %vm424_vm1, %v7734_v19  ;;  %6697 = vmatprep.subr.msk.mxu0 %vm449_vm0, %v1269_v20  ;;  %v1709_v41 = vld [vmem:[%s7719_s28 + $0x68] sm:$0xff]  ;;  %v1708_v42 = vld [vmem:[%s7719_s28 + $0x60] sm:$0xff] }
  0x1f   : > { %2189 = vrot.lane.b32.xlu1 %v2186_v10, %s7608_s22  ;;  %2187 = vrot.lane.b32.xlu0 %v2182_v8, %s7608_s22  ;;  %v375_v43 = vld [vmem:[%s7719_s28 + $0x188] sm:$0x7]  ;;  %v374_v44 = vld [vmem:[%s7719_s28 + $0x180] sm:$0x7] }
  0x20   : > { %972 = vmatprep.mubr.f32.mxu0 %v11070_v1  ;;  %6698 = vmatpush1.msk.msra.mxu0 %vm449_vm0, %v1268_v21  ;;  %v373_v45 = vld [vmem:[%s7719_s28 + $0x108] sm:$0xff]  ;;  %v372_v46 = vld [vmem:[%s7719_s28 + $0x100] sm:$0xff] }
  0x21   : > { %1374 = vmatprep.subr.mxu0 %v1267_v22  ;;  %6657 = vmatprep.subr.msk.mxu1 %vm449_vm0, %v375_v43  ;;  %v371_v49 = vld [vmem:[%s7719_s28 + $0x88] sm:$0xff]  ;;  %v370_v51 = vld [vmem:[%s7719_s28 + $0x80] sm:$0xff] }
  0x22   : > { %1375 = vmatpush1.msra.mxu0 %v1266_v23  ;;  %6658 = vmatpush1.msk.msra.mxu1 %vm449_vm0, %v374_v44  ;;  %v369_v52 = vld [vmem:[%s7719_s28 + $0x8] sm:$0xff]  ;;  %v368_v53 = vld [vmem:[%s7719_s28] sm:$0xff] }
  0x23   : > { %2237 = vrot.lane.b32.xlu1 %v2186_v10, %s7609_s23  ;;  %2235 = vrot.lane.b32.xlu0 %v2182_v8, %s7609_s23  ;;  %v7963_v21 = vld [vmem:[%s11060_s3 + $0x8] sm:$0xff]  ;;  %s11223_s23 = smov 94  }
  0x24   : > { %6680 = vmatmul.mubr.msk.f32.gmra.mxu0 %vm424_vm1, %v7747_v24  ;;  %1376 = vmatprep.subr.mxu0 %v1265_v25  ;;  %v377_v25 = vld [vmem:[%s11059_s2 + $0x8] sm:$0xff] }
  0x25   : > { %978 = vmatprep.mubr.f32.mxu0 %v11070_v1  ;;  %1377 = vmatpush1.msra.mxu0 %v1264_v26  ;;  %v7618_v26 = vmov 0  }
  0x26   : > { %1378 = vmatprep.subr.mxu0 %v1263_v27  ;;  %482 = vmatprep.subr.mxu1 %v373_v45  ;;  %v378_v27 = vld [vmem:[%s11059_s2 + $0x10] sm:$0xff] }
  0x27   : > { %2312 = vrot.lane.b32.xlu0 %v11070_v1, %s7610_s24  ;;  %1379 = vmatpush1.msra.mxu0 %v1262_v28  ;;  %v376_v28 = vld [vmem:[%s11059_s2] sm:$0xff] }
  0x28   : > { %6681 = vmatmul.mubr.msk.f32.gmra.mxu0 %vm424_vm1, %v7760_v29  ;;  %6717 = vmatprep.subr.msk.mxu0 %vm449_vm0, %v1715_v30  ;;  %v381_v30 = vld [vmem:[%s11059_s2 + $0x28] sm:$0xff] }
  0x29   : > { %984 = vmatprep.mubr.f32.mxu0 %v11070_v1  ;;  %483 = vmatpush1.msra.mxu1 %v372_v46 }
  0x2a   : > { %484 = vmatprep.subr.mxu1 %v371_v49  ;;  %7004 = vset.pattern.permute.xlu1 %v7618_v26 }
  0x2b   : > { %485 = vmatpush1.msra.mxu1 %v370_v51  ;;  %7003 = vset.pattern.permute.xlu0 %v7618_v26 }
  0x2c   : > { %6682 = vmatmul.mubr.msk.f32.gmra.mxu0 %vm424_vm1, %v7770_v31  ;;  %486 = vmatprep.subr.mxu1 %v369_v52 }
  0x2d   : > { %990 = vmatprep.mubr.f32.mxu0 %v11070_v1  ;;  %487 = vmatpush1.msra.mxu1 %v368_v53 }
  0x2e   : > { %6659 = vmatmul.mubr.msk.f32.vlgmr.msra.gmra.mxu1 %vm424_vm1, %v7734_v19 }
  0x2f   : > { %526 = vmatprep.mubr.f32.mxu1 %v11070_v1 }
  0x30   : > { %6683 = vmatmul.mubr.msk.f32.gmra.mxu0 %vm424_vm1, %v7778_v32 }
  0x31   : > { %996 = vmatprep.mubr.f32.mxu0 %v11070_v1 }
  0x32   : > { %6660 = vmatmul.mubr.msk.f32.gmra.mxu1 %vm424_vm1, %v7747_v24 }
  0x33   : > { %532 = vmatprep.mubr.f32.mxu1 %v11070_v1 }
  0x34   : > { %6684 = vmatmul.mubr.msk.f32.gmra.mxu0 %vm424_vm1, %v7786_v33 }
  0x35   : > { %1002 = vmatprep.mubr.f32.mxu0 %v11070_v1 }
  0x36   : > { %6661 = vmatmul.mubr.msk.f32.gmra.mxu1 %vm424_vm1, %v7760_v29 }
  0x37   : > { %538 = vmatprep.mubr.f32.mxu1 %v11070_v1 }
  0x38   : > { %6685 = vmatmul.mubr.msk.f32.gmra.mxu0 %vm424_vm1, %v7794_v34 }
  0x39   : > { %1008 = vmatprep.mubr.f32.mxu0 %v11070_v1 }
  0x3a   : > { %6662 = vmatmul.mubr.msk.f32.gmra.mxu1 %vm424_vm1, %v7770_v31 }
  0x3b   : > { %544 = vmatprep.mubr.f32.mxu1 %v11070_v1 }
  0x3c   : > { %6686 = vmatmul.mubr.msk.f32.gmra.mxu0 %vm424_vm1, %v7802_v35 }
  0x3d   : > { %1412 = vmatprep.mubr.f32.mxu0 %v11070_v1 }
  0x3e   : > { %6663 = vmatmul.mubr.msk.f32.gmra.mxu1 %vm424_vm1, %v7778_v32 }
  0x3f   : > { %550 = vmatprep.mubr.f32.mxu1 %v11070_v1 }
  0x40   : > { %6699 = vmatmul.mubr.msk.f32.vlgmr.msra.gmra.mxu0 %vm424_vm1, %v7734_v19 }
  0x41   : > { %1418 = vmatprep.mubr.f32.mxu0 %v11070_v1  ;;  %6718 = vmatpush1.msk.msra.mxu0 %vm449_vm0, %v1714_v36 }
  0x42   : > { %1820 = vmatprep.subr.mxu0 %v1713_v37  ;;  %6664 = vmatmul.mubr.msk.f32.gmra.mxu1 %vm424_vm1, %v7786_v33 }
  0x43   : > { %1821 = vmatpush1.msra.mxu0 %v1712_v38  ;;  %556 = vmatprep.mubr.f32.mxu1 %v11070_v1 }
  0x44   : > { %6700 = vmatmul.mubr.msk.f32.gmra.mxu0 %vm424_vm1, %v7747_v24  ;;  %1822 = vmatprep.subr.mxu0 %v1711_v39 }
  0x45   : > { %1424 = vmatprep.mubr.f32.mxu0 %v11070_v1  ;;  %1823 = vmatpush1.msra.mxu0 %v1710_v40 }
  0x46   : > { %1824 = vmatprep.subr.mxu0 %v1709_v41  ;;  %6665 = vmatmul.mubr.msk.f32.gmra.mxu1 %vm424_vm1, %v7794_v34 }
  0x47   : > { %1825 = vmatpush1.msra.mxu0 %v1708_v42  ;;  %562 = vmatprep.mubr.f32.mxu1 %v11070_v1 }
  0x48   : > { %6701 = vmatmul.mubr.msk.f32.gmra.mxu0 %vm424_vm1, %v7760_v29 }
  0x49   : > { %1430 = vmatprep.mubr.f32.mxu0 %v11070_v1 }
  0x4a   : > { %6666 = vmatmul.mubr.msk.f32.gmra.mxu1 %vm424_vm1, %v7802_v35 }
  0x4b   : > { %743 = vmatprep.mubr.f32.mxu1 %v11070_v1 }
  0x4c   : > { %6702 = vmatmul.mubr.msk.f32.gmra.mxu0 %vm424_vm1, %v7770_v31 }
  0x4d   : > { %1436 = vmatprep.mubr.f32.mxu0 %v11070_v1 }
  0x50   : > { %6703 = vmatmul.mubr.msk.f32.gmra.mxu0 %vm424_vm1, %v7778_v32 }
  0x51   : > { %1442 = vmatprep.mubr.f32.mxu0 %v11070_v1 }
  0x54   : > { %6704 = vmatmul.mubr.msk.f32.gmra.mxu0 %vm424_vm1, %v7786_v33 }
  0x55   : > { %1448 = vmatprep.mubr.f32.mxu0 %v11070_v1 }
  0x58   : > { %6705 = vmatmul.mubr.msk.f32.gmra.mxu0 %vm424_vm1, %v7794_v34 }
  0x59   : > { %1454 = vmatprep.mubr.f32.mxu0 %v11070_v1 }
  0x5c   : > { %6706 = vmatmul.mubr.msk.f32.gmra.mxu0 %vm424_vm1, %v7802_v35 }
  0x5d   : > { %1858 = vmatprep.mubr.f32.mxu0 %v11070_v1 }
  0x60   : > { %6719 = vmatmul.mubr.msk.f32.vlgmr.msra.gmra.mxu0 %vm424_vm1, %v7734_v19 }
  0x61   : > { %1864 = vmatprep.mubr.f32.mxu0 %v11070_v1 }
  0x64   : > { %6720 = vmatmul.mubr.msk.f32.gmra.mxu0 %vm424_vm1, %v7747_v24  ;;  %v379_v24 = vld [vmem:[%s11059_s2 + $0x18] sm:$0xff] }
  0x65   : > { %1870 = vmatprep.mubr.f32.mxu0 %v11070_v1 }
  0x68   : > { %6721 = vmatmul.mubr.msk.f32.gmra.mxu0 %vm424_vm1, %v7760_v29  ;;  %v383_v29 = vld [vmem:[%s11059_s2 + $0x38] sm:$0xff] }
  0x69   : > { %1876 = vmatprep.mubr.f32.mxu0 %v11070_v1 }
  0x6c   : > { %6722 = vmatmul.mubr.msk.f32.gmra.mxu0 %vm424_vm1, %v7770_v31  ;;  %v382_v31 = vld [vmem:[%s11059_s2 + $0x30] sm:$0xff] }
  0x6d   : > { %1882 = vmatprep.mubr.f32.mxu0 %v11070_v1 }
  0x70   : > { %6723 = vmatmul.mubr.msk.f32.gmra.mxu0 %vm424_vm1, %v7778_v32  ;;  %v380_v32 = vld [vmem:[%s11059_s2 + $0x20] sm:$0xff] }
  0x71   : > { %1888 = vmatprep.mubr.f32.mxu0 %v11070_v1 }
  0x74   : > { %6724 = vmatmul.mubr.msk.f32.gmra.mxu0 %vm424_vm1, %v7786_v33 }
  0x75   : > { %1894 = vmatprep.mubr.f32.mxu0 %v11070_v1 }
  0x78   : > { %6725 = vmatmul.mubr.msk.f32.gmra.mxu0 %vm424_vm1, %v7794_v34 }
  0x79   : > { %1900 = vmatprep.mubr.f32.mxu0 %v11070_v1 }
  0x7c   : > { %6726 = vmatmul.mubr.msk.f32.gmra.mxu0 %vm424_vm1, %v7802_v35 }
  0x7d   : > { %6738 = vmatprep.mubr.msk.f32.mxu0 %vm2203_vm5, %v7963_v21 }
  0x85   : > { %v7856_v47 = vpop.permute.xlu0 %2223  ;;  %v7858_v48 = vpop.permute.xlu1 %2211 }
  0x86   : > { %11161 = vst [vmem:[#allocation5_spill] sm:$0xff] %v7858_v48  ;;  %v2232_v50 = vmul.f32 0.0, %v7856_v47  ;;  %v2220_v62 = vmul.f32 0.0, %v7858_v48 }
  0x88   : > { %2301 = vrot.lane.b32.xlu1 %v2232_v50, %s7611_s29 }
  0x89   : > { %v7867_v54 = vpop.permute.xlu0 %2225  ;;  %v7869_v55 = vpop.permute.xlu1 %2213 }
  0x8a   : > { %11162 = vst [vmem:[#allocation6_spill] sm:$0xff] %v7869_v55  ;;  %v2234_v56 = vmul.f32 0.0, %v7867_v54  ;;  %v7876_v57 = vsel %vm2227_vm2, %v7856_v47, %v7867_v54  ;;  %v2222_v59 = vmul.f32 0.0, %v7869_v55  ;;  %v7898_v63 = vsel %vm2215_vm3, %v7858_v48, %v7869_v55 }
  0x8b   : > { %11163 = vst [vmem:[#allocation7_spill] sm:$0xff] %v7876_v57  ;;  %v2233_v58 = vmul.f32 0.0, %v7876_v57  ;;  %11166 = vst [vmem:[#allocation10_spill] sm:$0xff] %v7898_v63  ;;  %v2221_v2 = vmul.f32 0.0, %v7898_v63 }
  0x8c   : > { %2305 = vrot.lane.b32.xlu0 %v2234_v56, %s7611_s29 }
  0x8d   : > { %2303 = vrot.lane.b32.xlu1 %v2233_v58, %s7611_s29  ;;  %v7886_v60 = vpop.permute.xlu1 %2201  ;;  %v7888_v61 = vpop.permute.xlu0 %2199 }
  0x8e   : > { %11164 = vst [vmem:[#allocation8_spill] sm:$0xff] %v7886_v60  ;;  %11165 = vst [vmem:[#allocation9_spill] sm:$0xff] %v7888_v61  ;;  %v2208_v4 = vmul.f32 0.0, %v7888_v61  ;;  %v2210_v8 = vmul.f32 0.0, %v7886_v60  ;;  %v7932_v12 = vsel %vm2203_vm5, %v7888_v61, %v7886_v60 }
  0x8f   : > { %11171 = vst [vmem:[#allocation15_spill] sm:$0xff] %v7932_v12  ;;  %v2209_v15 = vmul.f32 0.0, %v7932_v12 }
  0x90   : > { %2287 = vrot.lane.b32.xlu0 %v2220_v62, %s7612_s30 }
  0x91   : > { %2291 = vrot.lane.b32.xlu1 %v2222_v59, %s7612_s30  ;;  %v7903_v0 = vpop.permute.xlu0 %2187  ;;  %v7911_v3 = vpop.permute.xlu1 %2189 }
  0x92   : > { %11167 = vst [vmem:[#allocation11_spill] sm:$0xff] %v7903_v0  ;;  %11168 = vst [vmem:[#allocation12_spill] sm:$0xff] %v7911_v3  ;;  %v7925_v11 = vsel %vm2191_vm4, %v7903_v0, %v7911_v3  ;;  %v2198_v17 = vmul.f32 0.0, %v7911_v3  ;;  %v2196_v19 = vmul.f32 0.0, %v7903_v0 }
  0x93   : > { %11170 = vst [vmem:[#allocation14_spill] sm:$0xff] %v7925_v11  ;;  %v2197_v13 = vmul.f32 0.0, %v7925_v11 }
  0x94   : > { %2289 = vrot.lane.b32.xlu0 %v2221_v2, %s7612_s30  ;;  %v2177_v2 = vmul.f32 0.0, %v7701_v9 }
  0x95   : > { %2280 = vrot.lane.b32.xlu1 %v11070_v1, %s7613_s11  ;;  %v7919_v10 = vpop.permute.xlu0 %2235  ;;  %v7941_v16 = vpop.permute.xlu1 %2237 }
  0x96   : > { %11169 = vst [vmem:[#allocation13_spill] sm:$0xff] %v7919_v10  ;;  %11172 = vst [vmem:[#allocation16_spill] sm:$0xff] %v7941_v16  ;;  %v7949_v18 = vsel %vm2239_vm6, %v7919_v10, %v7941_v16  ;;  %v2246_v22 = vmul.f32 0.0, %v7941_v16  ;;  %v2244_v23 = vmul.f32 0.0, %v7919_v10 }
  0x97   : > { %11173 = vst [vmem:[#allocation17_spill] sm:$0xff] %v7949_v18  ;;  %v2245_v20 = vmul.f32 0.0, %v7949_v18 }
  0x98   : > { %2269 = vrot.lane.b32.xlu0 %v2208_v4, %s7614_s12  ;;  %v2176_v4 = vmul.f32 0.0, %v7696_v7 }
  0x99   : > { %2273 = vrot.lane.b32.xlu1 %v2210_v8, %s7614_s12  ;;  %v2313_v14 = vpop.permute.xlu0 %2312 }
  0x9a   : > { %2370 = vmatprep.subr.mxu0 %v2313_v14 }
  0x9b   : > { %2371 = vmatpush1.msra.mxu0 %v2313_v14 }
  0x9c   : > { %2271 = vrot.lane.b32.xlu0 %v2209_v15, %s7614_s12  ;;  %2372 = vmatprep.subr.mxu0 %v2313_v14 }
  0x9d   : > { %2257 = vrot.lane.b32.xlu1 %v2197_v13, %s7615_s15  ;;  %2373 = vmatpush1.msra.mxu0 %v2313_v14 }
  0xa0   : > { %2259 = vrot.lane.b32.xlu0 %v2198_v17, %s7615_s15  ;;  %v2330_v17 = vld [vmem:[%s11060_s3] sm:$0xff] }
  0xa1   : > { %2255 = vrot.lane.b32.xlu1 %v2196_v19, %s7615_s15  ;;  %v2333_v19 = vld [vmem:[%s11060_s3 + $0x18] sm:$0xff] }
  0xa4   : > { %2248 = vrot.lane.b32.xlu0 %v11070_v1, %s11076_s18 }
  0xa5   : > { %2321 = vrot.lane.b32.xlu1 %v2245_v20, %s11068_s19  ;;  %v2332_v20 = vld [vmem:[%s11060_s3 + $0x10] sm:$0xff] }
  0xa8   : > { %2323 = vrot.lane.b32.xlu0 %v2246_v22, %s11068_s19  ;;  %v2335_v22 = vld [vmem:[%s11060_s3 + $0x28] sm:$0xff] }
  0xa9   : > { %2319 = vrot.lane.b32.xlu1 %v2244_v23, %s11068_s19 }
  0xac   : > { %391 = vperm.xlu0 %7003, %v377_v25   ;;  %v2337_v25 = vld [vmem:[%s11060_s3 + $0x38] sm:$0xff] }
  0xad   : > { %401 = vperm.xlu1 %7004, %v379_v24   ;;  %v2334_v24 = vld [vmem:[%s11060_s3 + $0x20] sm:$0xff] }
  0xb0   : > { %396 = vperm.xlu0 %7003, %v378_v27   ;;  %v2336_v27 = vld [vmem:[%s11060_s3 + $0x30] sm:$0xff] }
  0xb1   : > { %386 = vperm.xlu1 %7004, %v376_v28   ;;  %v2339_v28 = vld [vmem:[%s11060_s3 + $0x48] sm:$0xff] }
  0xb4   : > { %421 = vperm.xlu0 %7003, %v383_v29  }
  0xb5   : > { %411 = vperm.xlu1 %7004, %v381_v30   ;;  %v2338_v30 = vld [vmem:[%s11060_s3 + $0x40] sm:$0xff] }
  0xb8   : > { %416 = vperm.xlu0 %7003, %v382_v31   ;;  %v2341_v31 = vld [vmem:[%s11060_s3 + $0x58] sm:$0xff] }
  0xb9   : > { %406 = vperm.xlu1 %7004, %v380_v32  }
  0xde   : > { %v8027_v23 = vpop.f32.mrf.mxu0 }
  0xdf   : > { %11174 = vst [vmem:[#allocation18_spill] sm:$0xff] %v8027_v23 }
  0xe0   : > { %v8036_v26 = vpop.f32.mrf.mxu0 }
  0xe1   : > { %11175 = vst [vmem:[#allocation19_spill] sm:$0xff] %v8036_v26 }
  0xe4   : > { %v8045_v29 = vpop.f32.mrf.mxu0 }
  0xe5   : > { %11176 = vst [vmem:[#allocation20_spill] sm:$0xff] %v8045_v29 }
  0xe6   : > { %v8054_v32 = vpop.f32.mrf.mxu0 }
  0xe7   : > { %11177 = vst [vmem:[#allocation21_spill] sm:$0xff] %v8054_v32 }
  0xfa   : > { %v2302_v33 = vpop.permute.xlu1 %2301 }
  0xfe   : > { %v2306_v34 = vpop.permute.xlu0 %2305 }
  0xff   : > { %v2304_v35 = vpop.permute.xlu1 %2303 }
 0x100   : > { %v2309_v36 = vsel %vm2307_vm7, %v2304_v35, %v2306_v34  ;;  %v2308_v37 = vsel %vm2307_vm7, %v2302_v33, %v2304_v35  ;;  %v2340_v33 = vld [vmem:[%s11060_s3 + $0x50] sm:$0xff]  ;;  %v2343_v34 = vld [vmem:[%s11060_s3 + $0x68] sm:$0xff]  ;;  %v8063_v35 = vpop.f32.mrf.mxu0 }
 0x101   : > { %2374 = vmatprep.subr.mxu0 %v2309_v36  ;;  %11178 = vst [vmem:[#allocation22_spill] sm:$0xff] %v8063_v35 }
 0x102   : > { %v2288_v38 = vpop.permute.xlu0 %2287  ;;  %2375 = vmatpush1.msra.mxu0 %v2308_v37 }
 0x103   : > { %v2292_v39 = vpop.permute.xlu1 %2291  ;;  %2376 = vmatprep.subr.mxu0 %v2309_v36  ;;  %v2342_v36 = vld [vmem:[%s11060_s3 + $0x60] sm:$0xff] }
 0x104   : > { %2377 = vmatpush1.msra.mxu0 %v2308_v37  ;;  %v2345_v37 = vld [vmem:[%s11060_s3 + $0x78] sm:$0xff] }
 0x106   : > { %v2290_v40 = vpop.permute.xlu0 %2289 }
 0x107   : > { %v2281_v41 = vpop.permute.xlu1 %2280  ;;  %v2295_v42 = vsel %vm2293_vm8, %v2290_v40, %v2292_v39  ;;  %v2294_v43 = vsel %vm2293_vm8, %v2288_v38, %v2290_v40  ;;  %v8072_v38 = vpop.f32.mrf.mxu0  ;;  %v2344_v39 = vld [vmem:[%s11060_s3 + $0x70] sm:$0xff] }
 0x108   : > { %2378 = vmatprep.subr.mxu0 %v2295_v42  ;;  %11179 = vst [vmem:[#allocation23_spill] sm:$0xff] %v8072_v38 }
 0x109   : > { %2379 = vmatpush1.msra.mxu0 %v2294_v43  ;;  %v8078_v40 = vpop.f32.mrf.mxu0 }
 0x10a   : > { %v2270_v44 = vpop.permute.xlu0 %2269  ;;  %2380 = vmatprep.subr.mxu0 %v2295_v42  ;;  %11180 = vst [vmem:[#allocation24_spill] sm:$0xff] %v8078_v40 }
 0x10b   : > { %v2274_v45 = vpop.permute.xlu1 %2273  ;;  %2381 = vmatpush1.msra.mxu0 %v2294_v43 }
 0x10c   : > { %2382 = vmatprep.subr.mxu0 %v2281_v41 }
 0x10d   : > { %2383 = vmatpush1.msra.mxu0 %v2281_v41 }
 0x10e   : > { %v2272_v46 = vpop.permute.xlu0 %2271  ;;  %2384 = vmatprep.subr.mxu0 %v2281_v41 }
 0x10f   : > { %v2258_v49 = vpop.permute.xlu1 %2257  ;;  %2385 = vmatpush1.msra.mxu0 %v2281_v41  ;;  %v2277_v50 = vsel %vm2275_vm9, %v2272_v46, %v2274_v45  ;;  %v2276_v51 = vsel %vm2275_vm9, %v2270_v44, %v2272_v46  ;;  %v8082_v41 = vpop.f32.mrf.mxu0 }
 0x110   : > { %2386 = vmatprep.subr.mxu0 %v2277_v50  ;;  %11181 = vst [vmem:[#allocation25_spill] sm:$0xff] %v8082_v41 }
 0x111   : > { %2387 = vmatpush1.msra.mxu0 %v2276_v51  ;;  %v8084_v42 = vpop.f32.mrf.mxu0 }
 0x112   : > { %v2260_v52 = vpop.permute.xlu0 %2259  ;;  %2388 = vmatprep.subr.mxu0 %v2277_v50  ;;  %11182 = vst [vmem:[#allocation26_spill] sm:$0xff] %v8084_v42 }
 0x113   : > { %v2256_v53 = vpop.permute.xlu1 %2255  ;;  %2389 = vmatpush1.msra.mxu0 %v2276_v51  ;;  %v2263_v56 = vsel %vm2261_vm10, %v2258_v49, %v2260_v52  ;;  %v8086_v43 = vpop.f32.mrf.mxu0 }
 0x114   : > { %v2262_v58 = vsel %vm2261_vm10, %v2256_v53, %v2258_v49  ;;  %2390 = vmatprep.subr.mxu0 %v2263_v56  ;;  %11183 = vst [vmem:[#allocation27_spill] sm:$0xff] %v8086_v43 }
 0x115   : > { %2391 = vmatpush1.msra.mxu0 %v2262_v58  ;;  %v8088_v44 = vpop.f32.mrf.mxu0 }
 0x116   : > { %v2249_v59 = vpop.permute.xlu0 %2248  ;;  %2392 = vmatprep.subr.mxu0 %v2263_v56  ;;  %11184 = vst [vmem:[#allocation28_spill] sm:$0xff] %v8088_v44 }
 0x117   : > { %v2322_v62 = vpop.permute.xlu1 %2321  ;;  %2393 = vmatpush1.msra.mxu0 %v2262_v58  ;;  %v8090_v45 = vpop.f32.mrf.mxu0 }
 0x118   : > { %2394 = vmatprep.subr.mxu0 %v2249_v59  ;;  %11185 = vst [vmem:[#allocation29_spill] sm:$0xff] %v8090_v45 }
 0x119   : > { %2395 = vmatpush1.msra.mxu0 %v2249_v59  ;;  %v8092_v46 = vpop.f32.mrf.mxu0 }
 0x11a   : > { %2396 = vmatprep.subr.mxu0 %v2249_v59  ;;  %v2324_v8 = vpop.permute.xlu0 %2323  ;;  %11186 = vst [vmem:[#allocation30_spill] sm:$0xff] %v8092_v46 }
 0x11b   : > { %2397 = vmatpush1.msra.mxu0 %v2249_v59  ;;  %v2320_v13 = vpop.permute.xlu1 %2319  ;;  %v2327_v14 = vsel %vm2325_vm11, %v2322_v62, %v2324_v8  ;;  %v8094_v49 = vpop.f32.mrf.mxu0 }
 0x11c   : > { %2398 = vmatprep.subr.mxu0 %v2177_v2  ;;  %v2326_v15 = vsel %vm2325_vm11, %v2320_v13, %v2322_v62  ;;  %11187 = vst [vmem:[#allocation31_spill] sm:$0xff] %v8094_v49 }
 0x11d   : > { %2399 = vmatpush1.msra.mxu0 %v2176_v4  ;;  %v8096_v50 = vpop.f32.mrf.mxu0 }
 0x11e   : > { %2400 = vmatprep.subr.mxu0 %v2177_v2  ;;  %11188 = vst [vmem:[#allocation32_spill] sm:$0xff] %v8096_v50 }
 0x11f   : > { %2401 = vmatpush1.msra.mxu0 %v2176_v4  ;;  %v8098_v51 = vpop.f32.mrf.mxu0 }
 0x120   : > { %2430 = vmatprep.subr.mxu0 %v2327_v14  ;;  %11189 = vst [vmem:[#allocation33_spill] sm:$0xff] %v8098_v51 }
 0x121   : > { %2431 = vmatpush2.msra.mxu0 %v2326_v15  ;;  %v8100_v52 = vpop.f32.mrf.mxu0 }
 0x122   : > { %2432 = vmatprep.subr.mxu0 %v2327_v14  ;;  %11190 = vst [vmem:[#allocation34_spill] sm:$0xff] %v8100_v52 }
 0x123   : > { %2433 = vmatpush2.msra.mxu0 %v2326_v15 }
 0x124   : > { %2435 = vmatmul.mubr.f32.vlgmr.msra.gmra.mxu0 %v2330_v17 }
 0x125   : > { %6739 = vmatprep.mubr.msk.f32.mxu0 %vm2203_vm5, %v2333_v19 }
 0x128   : > { %2441 = vmatmul.mubr.f32.gmra.mxu0 %v2332_v20 }
 0x129   : > { %6740 = vmatprep.mubr.msk.f32.mxu0 %vm2203_vm5, %v2335_v22 }
 0x12c   : > { %2447 = vmatmul.mubr.f32.gmra.mxu0 %v2334_v24  ;;  %v600_v24 = vld [vmem:[%s7719_s28 + $0x198] sm:$0x7] }
 0x12d   : > { %6741 = vmatprep.mubr.msk.f32.mxu0 %vm2203_vm5, %v2337_v25  ;;  %v599_v25 = vld [vmem:[%s7719_s28 + $0x190] sm:$0x7]  ;;  %6667 = vmatprep.subr.msk.mxu1 %vm449_vm0, %v600_v24 }
 0x12e   : > { %6668 = vmatpush1.msk.msra.mxu1 %vm449_vm0, %v599_v25 }
 0x130   : > { %2453 = vmatmul.mubr.f32.gmra.mxu0 %v2336_v27 }
 0x131   : > { %6742 = vmatprep.mubr.msk.f32.mxu0 %vm2203_vm5, %v2339_v28 }
 0x134   : > { %2459 = vmatmul.mubr.f32.gmra.mxu0 %v2338_v30 }
 0x135   : > { %6743 = vmatprep.mubr.msk.f32.mxu0 %vm2203_vm5, %v2341_v31 }
 0x138   : > { %2465 = vmatmul.mubr.f32.gmra.mxu0 %v2340_v33 }
 0x139   : > { %6744 = vmatprep.mubr.msk.f32.mxu0 %vm2203_vm5, %v2343_v34 }
 0x13c   : > { %2471 = vmatmul.mubr.f32.gmra.mxu0 %v2342_v36 }
 0x13d   : > { %6745 = vmatprep.mubr.msk.f32.mxu0 %vm2203_vm5, %v2345_v37  ;;  %v522_v37 = vpop.f32.mrf.mxu1 }
 0x13f   : > { %v524_v24 = vpop.f32.mrf.mxu1 }
 0x140   : > { %2477 = vmatmul.mubr.f32.gmra.mxu0 %v2344_v39 }
 0x141   : > { %6778 = vmatprep.mubr.msk.f32.mxu0 %vm2203_vm5, %v7963_v21  ;;  %v8102_v21 = vpop.f32.mrf.mxu0  ;;  %v528_v6 = vpop.f32.mrf.mxu1 }
 0x142   : > { %11191 = vst [vmem:[#allocation35_spill] sm:$0xff] %v8102_v21 }
 0x143   : > { %v8104_v53 = vpop.f32.mrf.mxu0  ;;  %v530_v5 = vpop.f32.mrf.mxu1 }
 0x144   : > { %11192 = vst [vmem:[#allocation36_spill] sm:$0xff] %v8104_v53 }
 0x145   : > { %v8106_v56 = vpop.f32.mrf.mxu0 }
 0x146   : > { %11193 = vst [vmem:[#allocation37_spill] sm:$0xff] %v8106_v56 }
 0x147   : > { %v8108_v58 = vpop.f32.mrf.mxu0 }
 0x148   : > { %11194 = vst [vmem:[#allocation38_spill] sm:$0xff] %v8108_v58 }
 0x149   : > { %v8110_v59 = vpop.f32.mrf.mxu0 }
 0x14a   : > { %11195 = vst [vmem:[#allocation39_spill] sm:$0xff] %v8110_v59 }
 0x14b   : > { %v8112_v62 = vpop.f32.mrf.mxu0 }
 0x14c   : > { %11196 = vst [vmem:[#allocation40_spill] sm:$0xff] %v8112_v62 }
 0x14d   : > { %v8114_v2 = vpop.f32.mrf.mxu0 }
 0x14e   : > { %11197 = vst [vmem:[#allocation41_spill] sm:$0xff] %v8114_v2 }
 0x14f   : > { %v8116_v4 = vpop.f32.mrf.mxu0 }
 0x150   : > { %11198 = vst [vmem:[#allocation42_spill] sm:$0xff] %v8116_v4 }
 0x151   : > { %v8118_v8 = vpop.f32.mrf.mxu0 }
 0x152   : > { %11199 = vst [vmem:[#allocation43_spill] sm:$0xff] %v8118_v8 }
 0x153   : > { %v8120_v13 = vpop.f32.mrf.mxu0 }
 0x154   : > { %11200 = vst [vmem:[#allocation44_spill] sm:$0xff] %v8120_v13 }
 0x155   : > { %v8122_v14 = vpop.f32.mrf.mxu0 }
 0x156   : > { %11201 = vst [vmem:[#allocation45_spill] sm:$0xff] %v8122_v14 }
 0x157   : > { %v8124_v15 = vpop.f32.mrf.mxu0 }
 0x158   : > { %11202 = vst [vmem:[#allocation46_spill] sm:$0xff] %v8124_v15 }
 0x159   : > { %v8126_v17 = vpop.f32.mrf.mxu0 }
 0x15a   : > { %11203 = vst [vmem:[#allocation47_spill] sm:$0xff] %v8126_v17 }
 0x15b   : > { %v8128_v19 = vpop.f32.mrf.mxu0 }
 0x15c   : > { %11204 = vst [vmem:[#allocation48_spill] sm:$0xff] %v8128_v19 }
 0x15d   : > { %v8130_v20 = vpop.f32.mrf.mxu0 }
 0x15e   : > { %11205 = vst [vmem:[#allocation49_spill] sm:$0xff] %v8130_v20 }
 0x15f   : > { %v8132_v22 = vpop.f32.mrf.mxu0 }
 0x160   : > { %11206 = vst [vmem:[#allocation50_spill] sm:$0xff] %v8132_v22 }
 0x161   : > { %v8137_v27 = vpop.f32.mrf.mxu0 }
 0x162   : > { %11207 = vst [vmem:[#allocation51_spill] sm:$0xff] %v8137_v27  ;;  %v402_v27 = vpop.permute.xlu1 %401 }
 0x163   : > { %v8140_v28 = vpop.f32.mrf.mxu0 }
 0x164   : > { %11208 = vst [vmem:[#allocation52_spill] sm:$0xff] %v8140_v28 }
 0x165   : > { %v8142_v30 = vpop.f32.mrf.mxu0 }
 0x166   : > { %11209 = vst [vmem:[#allocation53_spill] sm:$0xff] %v8142_v30  ;;  %v534_v30 = vpop.f32.mrf.mxu1  ;;  %v387_v20 = vpop.permute.xlu1 %386 }
 0x167   : > { %v8144_v31 = vpop.f32.mrf.mxu0  ;;  %v523_v19 = vadd.f32 %v522_v37, %v387_v20 }
 0x168   : > { %11210 = vst [vmem:[#allocation54_spill] sm:$0xff] %v8144_v31 }
 0x169   : > { %v8146_v33 = vpop.f32.mrf.mxu0 }
 0x16a   : > { %11211 = vst [vmem:[#allocation55_spill] sm:$0xff] %v8146_v33  ;;  %v536_v33 = vpop.f32.mrf.mxu1  ;;  %v412_v56 = vpop.permute.xlu1 %411 }
 0x16b   : > { %v8148_v34 = vpop.f32.mrf.mxu0 }
 0x16c   : > { %11212 = vst [vmem:[#allocation56_spill] sm:$0xff] %v8148_v34 }
 0x16d   : > { %v8150_v36 = vpop.f32.mrf.mxu0 }
 0x16e   : > { %11213 = vst [vmem:[#allocation57_spill] sm:$0xff] %v8150_v36  ;;  %v540_v36 = vpop.f32.mrf.mxu1 }
 0x16f   : > { %v8152_v39 = vpop.f32.mrf.mxu0 }
 0x170   : > { %11214 = vst [vmem:[#allocation58_spill] sm:$0xff] %v8152_v39  ;;  %v542_v39 = vpop.f32.mrf.mxu1 }
 0x171   : > { %v8154_v1 = vpop.f32.mrf.mxu0 }
 0x172   : > { %11215 = vst [vmem:[#allocation59_spill] sm:$0xff] %v8154_v1  ;;  %v546_v17 = vpop.f32.mrf.mxu1 }
 0x173   : > { %v8156_v25 = vpop.f32.mrf.mxu0 }
 0x174   : > { %11216 = vst [vmem:[#allocation60_spill] sm:$0xff] %v8156_v25  ;;  %v392_v25 = vpop.permute.xlu0 %391 }
 0x175   : > { %v8158_v28 = vpop.f32.mrf.mxu0  ;;  %v529_v13 = vadd.f32 %v528_v6, %v392_v25  ;;  %v531_v58 = vadd.f32 %v530_v5, %v392_v25 }
 0x176   : > { %11217 = vst [vmem:[#allocation61_spill] sm:$0xff] %v8158_v28  ;;  %v525_v28 = vadd.f32 %v524_v24, %v387_v20 }
 0x177   : > { %v8160_v31 = vpop.f32.mrf.mxu0 }
 0x178   : > { %11218 = vst [vmem:[#allocation62_spill] sm:$0xff] %v8160_v31  ;;  %v548_v31 = vpop.f32.mrf.mxu1 }
 0x179   : > { %v8162_v34 = vpop.f32.mrf.mxu0 }
 0x17a   : > { %11219 = vst [vmem:[#allocation63_spill] sm:$0xff] %v8162_v34  ;;  %v397_v34 = vpop.permute.xlu0 %396  ;;  %v552_v53 = vpop.f32.mrf.mxu1 }
 0x17b   : > { %v8164_v22 = vpop.f32.mrf.mxu0  ;;  %v535_v52 = vadd.f32 %v534_v30, %v397_v34  ;;  %v537_v20 = vadd.f32 %v536_v33, %v397_v34 }
 0x17c   : > { %11220 = vst [vmem:[#allocation64_spill] sm:$0xff] %v8164_v22 }
 0x17d   : > { %v8166_v1 = vpop.f32.mrf.mxu0 }
 0x17e   : > { %11221 = vst [vmem:[#allocation65_spill] sm:$0xff] %v8166_v1  ;;  %v422_v30 = vpop.permute.xlu0 %421 }
 0x1e4   : > { %v2436_v15 = vpop.f32.mrf.mxu0 }
 0x1e5   : > { %v2483_v14 = vadd.f32 %v2436_v15, %v523_v19 }
 0x1e6   : > { %v2438_v8 = vpop.f32.mrf.mxu0 }
 0x1e7   : > { %v6746_v4 = vmul.f32 -1.442695, %v2483_v14  ;;  %v2484_v2 = vadd.f32 %v2438_v8, %v525_v28  ;;  %v554_v8 = vpop.f32.mrf.mxu1 }
 0x1e8   : > { %v2442_v62 = vpop.f32.mrf.mxu0 }
 0x1e9   : > { %7005 = vpow2.f32 %v6746_v4  ;;  %v6747_v59 = vmul.f32 -1.442695, %v2484_v2  ;;  %v2485_v22 = vadd.f32 %v2442_v62, %v529_v13  ;;  %v541_v2 = vadd.f32 %v540_v36, %v402_v27  ;;  %v407_v62 = vpop.permute.xlu1 %406 }
 0x1ea   : > { %v2444_v37 = vpop.f32.mrf.mxu0 }
 0x1eb   : > { %7007 = vpow2.f32 %v6747_v59  ;;  %v6748_v1 = vmul.f32 -1.442695, %v2485_v22  ;;  %v2486_v21 = vadd.f32 %v2444_v37, %v531_v58  ;;  %v543_v59 = vadd.f32 %v542_v39, %v402_v27  ;;  %v558_v58 = vpop.f32.mrf.mxu1 }
 0x1ec   : > { %v2448_v15 = vpop.f32.mrf.mxu0  ;;  %v549_v37 = vadd.f32 %v548_v31, %v407_v62 }
 0x1ed   : > { %7009 = vpow2.f32 %v6748_v1  ;;  %v6749_v6 = vmul.f32 -1.442695, %v2486_v21  ;;  %v2487_v19 = vadd.f32 %v2448_v15, %v535_v52  ;;  %v547_v52 = vadd.f32 %v546_v17, %v407_v62 }
 0x1ee   : > { %v2450_v14 = vpop.f32.mrf.mxu0 }
 0x1ef   : > { %7011 = vpow2.f32 %v6749_v6  ;;  %v6750_v28 = vmul.f32 -1.442695, %v2487_v19  ;;  %v2488_v4 = vadd.f32 %v2450_v14, %v537_v20  ;;  %v553_v6 = vadd.f32 %v552_v53, %v412_v56  ;;  %v560_v19 = vpop.f32.mrf.mxu1 }
 0x1f0   : > { %v2454_v5 = vpop.f32.mrf.mxu0 }
 0x1f1   : > { %7013 = vpow2.f32 %v6750_v28  ;;  %v6751_v13 = vmul.f32 -1.442695, %v2488_v4  ;;  %v2489_v24 = vadd.f32 %v2454_v5, %v541_v2  ;;  %v555_v4 = vadd.f32 %v554_v8, %v412_v56  ;;  %v417_v5 = vpop.permute.xlu0 %416  ;;  %v564_v31 = vpop.f32.mrf.mxu1 }
 0x1f2   : > { %v2456_v22 = vpop.f32.mrf.mxu0 }
 0x1f3   : > { %7015 = vpow2.f32 %v6751_v13  ;;  %v6752_v1 = vmul.f32 -1.442695, %v2489_v24  ;;  %v2490_v21 = vadd.f32 %v2456_v22, %v543_v59 }
 0x1f4   : > { %v2460_v33 = vpop.f32.mrf.mxu0 }
 0x1f5   : > { %7017 = vpow2.f32 %v6752_v1  ;;  %v6753_v34 = vmul.f32 -1.442695, %v2490_v21  ;;  %v2491_v25 = vadd.f32 %v2460_v33, %v547_v52  ;;  %v559_v21 = vadd.f32 %v558_v58, %v417_v5 }
 0x1f6   : > { %v7006_v15 = vpop.eup %7005  ;;  %v2462_v36 = vpop.f32.mrf.mxu0 }
 0x1f7   : > { %v2535_v20 = vadd.f32 1.0, %v7006_v15  ;;  %7019 = vpow2.f32 %v6753_v34  ;;  %v6754_v14 = vmul.f32 -1.442695, %v2491_v25  ;;  %v2492_v27 = vadd.f32 %v2462_v36, %v549_v37  ;;  %v566_v15 = vpop.f32.mrf.mxu1 }
 0x1f8   : > { %v7008_v39 = vpop.eup %7007  ;;  %v2466_v28 = vpop.f32.mrf.mxu0  ;;  %v561_v25 = vadd.f32 %v560_v19, %v417_v5 }
 0x1f9   : > { %7021 = vrcp.f32 %v2535_v20  ;;  %v2536_v2 = vadd.f32 1.0, %v7008_v39  ;;  %v6755_v17 = vmul.f32 -1.442695, %v2492_v27  ;;  %v2493_v13 = vadd.f32 %v2466_v28, %v553_v6 }
 0x1fa   : > { %v7010_v24 = vpop.eup %7009  ;;  %7023 = vpow2.f32 %v6754_v14  ;;  %v2468_v59 = vpop.f32.mrf.mxu0  ;;  %v565_v20 = vadd.f32 %v564_v31, %v422_v30  ;;  %v567_v28 = vadd.f32 %v566_v15, %v422_v30 }
 0x1fb   : > { %7025 = vrcp.f32 %v2536_v2  ;;  %v2537_v62 = vadd.f32 1.0, %v7010_v24  ;;  %v6756_v53 = vmul.f32 -1.442695, %v2493_v13  ;;  %v2494_v22 = vadd.f32 %v2468_v59, %v555_v4 }
 0x1fc   : > { %v7012_v1 = vpop.eup %7011  ;;  %7027 = vpow2.f32 %v6755_v17  ;;  %v2472_v52 = vpop.f32.mrf.mxu0 }
 0x1fd   : > { %7029 = vrcp.f32 %v2537_v62  ;;  %v2538_v33 = vadd.f32 1.0, %v7012_v1  ;;  %v6757_v56 = vmul.f32 -1.442695, %v2494_v22  ;;  %v2495_v34 = vadd.f32 %v2472_v52, %v559_v21 }
 0x1fe   : > { %v7014_v8 = vpop.eup %7013  ;;  %7031 = vpow2.f32 %v6756_v53  ;;  %v2474_v37 = vpop.f32.mrf.mxu0 }
 0x1ff   : > { %7033 = vrcp.f32 %v2538_v33  ;;  %v2539_v36 = vadd.f32 1.0, %v7014_v8  ;;  %v2496_v14 = vadd.f32 %v2474_v37, %v561_v25 }
 0x200   : > { %v7016_v6 = vpop.eup %7015  ;;  %7035 = vpow2.f32 %v6757_v56  ;;  %v2478_v27 = vpop.f32.mrf.mxu0 }
 0x201   : > { %7037 = vrcp.f32 %v2539_v36  ;;  %v2540_v39 = vadd.f32 1.0, %v7016_v6  ;;  %v2497_v4 = vadd.f32 %v2478_v27, %v565_v20 }
 0x202   : > { %v7018_v58 = vpop.eup %7017  ;;  %7039 = vtanh.f32 %v2495_v34  ;;  %v2480_v2 = vpop.f32.mrf.mxu0 }
 0x203   : > { %7041 = vrcp.f32 %v2540_v39  ;;  %v2541_v17 = vadd.f32 1.0, %v7018_v58  ;;  %v2498_v19 = vadd.f32 %v2480_v2, %v567_v28 }
 0x204   : > { %v7020_v13 = vpop.eup %7019  ;;  %7043 = vtanh.f32 %v2496_v14 }
 0x205   : > { %7045 = vrcp.f32 %v2541_v17  ;;  %v2542_v5 = vadd.f32 1.0, %v7020_v13 }
 0x206   : > { %v7022_v24 = vpop.eup %7021  ;;  %7047 = vtanh.f32 %v2497_v4 }
 0x207   : > { %v7024_v59 = vpop.eup %7023  ;;  %7049 = vrcp.f32 %v2542_v5 }
 0x208   : > { %v7026_v31 = vpop.eup %7025  ;;  %7051 = vtanh.f32 %v2498_v19  ;;  %v2543_v56 = vadd.f32 1.0, %v7024_v59  ;;  %v597_v59 = vld [vmem:[%s7719_s28 + $0x110] sm:$0xff] }
 0x209   : > { %v7028_v62 = vpop.eup %7027 }
 0x20a   : > { %v7030_v53 = vpop.eup %7029  ;;  %v2544_v15 = vadd.f32 1.0, %v7028_v62  ;;  %7053 = vrcp.f32 %v2543_v56  ;;  %v596_v62 = vld [vmem:[%s7719_s28 + $0x98] sm:$0xff] }
 0x20b   : > { %v7032_v22 = vpop.eup %7031 }
 0x20c   : > { %v7034_v30 = vpop.eup %7033  ;;  %v2545_v39 = vadd.f32 1.0, %v7032_v22  ;;  %v594_v22 = vld [vmem:[%s7719_s28 + $0x18] sm:$0xff] }
 0x20d   : > { %v7036_v1 = vpop.eup %7035 }
 0x20e   : > { %v7038_v21 = vpop.eup %7037  ;;  %v2546_v13 = vadd.f32 1.0, %v7036_v1  ;;  %v7517_v1 = vld [vmem:[%s11058_s1] sm:$0xff] }
 0x20f   : > { %v7040_v52 = vpop.eup %7039  ;;  %v2575_v33 = vmul.f32 0.0, %v7038_v21  ;;  %v11222_v21 = vmov 0.0  }
 0x210   : > { %v7042_v8 = vpop.eup %7041  ;;  %v2579_v34 = vmul.f32 %v7040_v52, %v7022_v24  ;;  %v598_v24 = vld [vmem:[%s7719_s28 + $0x118] sm:$0xff] }
 0x211   : > { %v7044_v25 = vpop.eup %7043  ;;  %v2576_v37 = vmul.f32 0.0, %v7042_v8  ;;  %705 = vmatprep.subr.mxu1 %v598_v24  ;;  %v1046_v24 = vld [vmem:[%s7719_s28 + $0x1b8] sm:$0x7] }
 0x212   : > { %v7046_v36 = vpop.eup %7045  ;;  %v8168_v6 = vadd.f32 %v2579_v34, %v2575_v33  ;;  %v2580_v20 = vmul.f32 %v7044_v25, %v7026_v31  ;;  %706 = vmatpush1.msra.mxu1 %v597_v59  ;;  %v7518_v34 = vld [vmem:[%s11058_s1 + $0x8] sm:$0xff]  ;;  %v1045_v59 = vld [vmem:[%s7719_s28 + $0x1b0] sm:$0x7] }
 0x213   : > { %v7048_v14 = vpop.eup %7047  ;;  %v2577_v27 = vmul.f32 0.0, %v7046_v36  ;;  %707 = vmatprep.subr.mxu1 %v596_v62  ;;  %v1044_v62 = vld [vmem:[%s7719_s28 + $0x138] sm:$0xff] }
 0x214   : > { %v7050_v58 = vpop.eup %7049  ;;  %v8170_v28 = vadd.f32 %v2580_v20, %v2576_v37  ;;  %v2581_v4 = vmul.f32 %v7048_v14, %v7030_v53  ;;  %7055 = vtanh.f32 %v8168_v6  ;;  %v595_v53 = vld [vmem:[%s7719_s28 + $0x90] sm:$0xff] }
 0x215   : > { %v7052_v2 = vpop.eup %7051  ;;  %v2578_v17 = vmul.f32 0.0, %v7050_v58  ;;  %7057 = vrcp.f32 %v2544_v15  ;;  %708 = vmatpush1.msra.mxu1 %v595_v53  ;;  %v1043_v53 = vld [vmem:[%s7719_s28 + $0x130] sm:$0xff] }
 0x216   : > { %v8173_v19 = vadd.f32 %v2581_v4, %v2577_v27  ;;  %v2582_v5 = vmul.f32 %v7052_v2, %v7034_v30  ;;  %7059 = vtanh.f32 %v8170_v28  ;;  %v593_v30 = vld [vmem:[%s7719_s28 + $0x10] sm:$0xff]  ;;  %709 = vmatprep.subr.mxu1 %v594_v22  ;;  %v7520_v4 = vld [vmem:[%s11058_s1 + $0x18] sm:$0xff]  ;;  %v7521_v2 = vld [vmem:[%s11058_s1 + $0x20] sm:$0xff] }
 0x217   : > { %7061 = vrcp.f32 %v2545_v39  ;;  %710 = vmatpush1.msra.mxu1 %v593_v30  ;;  %v7054_v52 = vpop.eup %7053  ;;  %v7519_v27 = vld [vmem:[%s11058_s1 + $0x10] sm:$0xff]  ;;  %v1042_v22 = vld [vmem:[%s7719_s28 + $0xb8] sm:$0xff] }
 0x218   : > { %v8178_v31 = vadd.f32 %v2582_v5, %v2578_v17  ;;  %7063 = vtanh.f32 %v8173_v19  ;;  %6669 = vmatmul.mubr.msk.f32.vlgmr.msra.gmra.mxu1 %vm424_vm1, %v7517_v1  ;;  %v7522_v17 = vld [vmem:[%s11058_s1 + $0x28] sm:$0xff]  ;;  %v7524_v5 = vld [vmem:[%s11058_s1 + $0x38] sm:$0xff]  ;;  %6687 = vmatprep.subr.msk.mxu1 %vm449_vm0, %v1046_v24  ;;  %v1041_v30 = vld [vmem:[%s7719_s28 + $0xb0] sm:$0xff] }
 0x219   : > { %7065 = vrcp.f32 %v2546_v13  ;;  %749 = vmatprep.mubr.f32.mxu1 %v11222_v21  ;;  %v7523_v13 = vld [vmem:[%s11058_s1 + $0x30] sm:$0xff]  ;;  %6688 = vmatpush1.msk.msra.mxu1 %vm449_vm0, %v1045_v59  ;;  %v1040_v1 = vld [vmem:[%s7719_s28 + $0x38] sm:$0xff] }
 0x21a   : > { %7067 = vtanh.f32 %v8178_v31  ;;  %1151 = vmatprep.subr.mxu1 %v1044_v62  ;;  %v1486_v24 = vld [vmem:[%s7719_s28 + $0x58] sm:$0xff]  ;;  %v1485_v59 = vld [vmem:[%s7719_s28 + $0x50] sm:$0xff] }
 0x21b   : > { %1152 = vmatpush1.msra.mxu1 %v1043_v53 }
 0x21c   : > { %6670 = vmatmul.mubr.msk.f32.gmra.mxu1 %vm424_vm1, %v7518_v34  ;;  %1153 = vmatprep.subr.mxu1 %v1042_v22  ;;  %v8267_v34 = vld [vmem:[%s11058_s1 + $0x18] sm:$0xff] }
 0x21d   : > { %755 = vmatprep.mubr.f32.mxu1 %v11222_v21  ;;  %1154 = vmatpush1.msra.mxu1 %v1041_v30 }
 0x21e   : > { %1155 = vmatprep.subr.mxu1 %v1040_v1 }
 0x220   : > { %6671 = vmatmul.mubr.msk.f32.gmra.mxu1 %vm424_vm1, %v7519_v27  ;;  %v8297_v27 = vld [vmem:[%s11058_s1 + $0x30] sm:$0xff] }
 0x221   : > { %v7056_v33 = vpop.eup %7055  ;;  %761 = vmatprep.mubr.f32.mxu1 %v11222_v21 }
 0x222   : > { %v7058_v56 = vpop.eup %7057  ;;  %v2591_v8 = vmul.f32 %v7056_v33, %v7054_v52  ;;  %v1039_v52 = vld [vmem:[%s7719_s28 + $0x30] sm:$0xff]  ;;  %v8243_v33 = vld [vmem:[%s11058_s1] sm:$0xff] }
 0x223   : > { %v7060_v25 = vpop.eup %7059  ;;  %1156 = vmatpush1.msra.mxu1 %v1039_v52 }
 0x224   : > { %v7062_v37 = vpop.eup %7061  ;;  %2615 = vrot.lane.b32.xlu1 %v2591_v8, %s7619_s20  ;;  %v2592_v15 = vmul.f32 %v7060_v25, %v7058_v56  ;;  %6672 = vmatmul.mubr.msk.f32.gmra.mxu1 %vm424_vm1, %v7520_v4  ;;  %v8251_v56 = vld [vmem:[%s11058_s1 + $0x8] sm:$0xff]  ;;  %v8259_v8 = vld [vmem:[%s11058_s1 + $0x10] sm:$0xff]  ;;  %v1492_v25 = vld [vmem:[%s7719_s28 + $0x1d8] sm:$0x7] }
 0x225   : > { %v7064_v36 = vpop.eup %7063  ;;  %767 = vmatprep.mubr.f32.mxu1 %v11222_v21  ;;  %6707 = vmatprep.subr.msk.mxu1 %vm449_vm0, %v1492_v25 }
 0x226   : > { %v7066_v20 = vpop.eup %7065  ;;  %2617 = vrot.lane.b32.xlu0 %v2592_v15, %s7619_s20  ;;  %v2593_v14 = vmul.f32 %v7064_v36, %v7062_v37  ;;  %v1491_v37 = vld [vmem:[%s7719_s28 + $0x1d0] sm:$0x7]  ;;  %v8279_v15 = vld [vmem:[%s11058_s1 + $0x20] sm:$0xff]  ;;  %v8287_v36 = vld [vmem:[%s11058_s1 + $0x28] sm:$0xff] }
 0x227   : > { %v7068_v39 = vpop.eup %7067 }
 0x228   : > { %2619 = vrot.lane.b32.xlu1 %v2593_v14, %s7619_s20  ;;  %v2594_v58 = vmul.f32 %v7068_v39, %v7066_v20  ;;  %6673 = vmatmul.mubr.msk.f32.gmra.mxu1 %vm424_vm1, %v7521_v2  ;;  %v1490_v20 = vld [vmem:[%s7719_s28 + $0x158] sm:$0xff]  ;;  %v1489_v14 = vld [vmem:[%s7719_s28 + $0x150] sm:$0xff] }
 0x229   : > { %773 = vmatprep.mubr.f32.mxu1 %v11222_v21  ;;  %v8310_v2 = vld [vmem:[%s11058_s1 + $0x38] sm:$0xff] }
 0x22a   : > { %2621 = vrot.lane.b32.xlu0 %v2594_v58, %s7619_s20 }
 0x22c   : > { %6674 = vmatmul.mubr.msk.f32.gmra.mxu1 %vm424_vm1, %v7522_v17  ;;  %v1488_v17 = vld [vmem:[%s7719_s28 + $0xd8] sm:$0xff] }
 0x22d   : > { %779 = vmatprep.mubr.f32.mxu1 %v11222_v21 }
 0x230   : > { %6675 = vmatmul.mubr.msk.f32.gmra.mxu1 %vm424_vm1, %v7523_v13  ;;  %v1487_v13 = vld [vmem:[%s7719_s28 + $0xd0] sm:$0xff] }
 0x231   : > { %785 = vmatprep.mubr.f32.mxu1 %v11222_v21 }
 0x234   : > { %6676 = vmatmul.mubr.msk.f32.gmra.mxu1 %vm424_vm1, %v7524_v5 }
 0x235   : > { %1189 = vmatprep.mubr.f32.mxu1 %v11222_v21 }
 0x238   : > { %6689 = vmatmul.mubr.msk.f32.vlgmr.msra.gmra.mxu1 %vm424_vm1, %v8243_v33 }
 0x239   : > { %1195 = vmatprep.mubr.f32.mxu1 %v11222_v21  ;;  %6708 = vmatpush1.msk.msra.mxu1 %vm449_vm0, %v1491_v37  ;;  %v1938_v37 = vld [vmem:[%s7719_s28 + $0x1f8] sm:$0x7] }
 0x23a   : > { %1597 = vmatprep.subr.mxu1 %v1490_v20  ;;  %v1937_v20 = vld [vmem:[%s7719_s28 + $0x1f0] sm:$0x7] }
 0x23b   : > { %1598 = vmatpush1.msra.mxu1 %v1489_v14 }
 0x23c   : > { %6690 = vmatmul.mubr.msk.f32.gmra.mxu1 %vm424_vm1, %v8251_v56  ;;  %1599 = vmatprep.subr.mxu1 %v1488_v17  ;;  %v1935_v17 = vld [vmem:[%s7719_s28 + $0x170] sm:$0xff] }
 0x23d   : > { %1201 = vmatprep.mubr.f32.mxu1 %v11222_v21  ;;  %1600 = vmatpush1.msra.mxu1 %v1487_v13 }
 0x23e   : > { %1601 = vmatprep.subr.mxu1 %v1486_v24 }
 0x23f   : > { %1602 = vmatpush1.msra.mxu1 %v1485_v59 }
 0x240   : > { %6691 = vmatmul.mubr.msk.f32.gmra.mxu1 %vm424_vm1, %v8259_v8  ;;  %6727 = vmatprep.subr.msk.mxu1 %vm449_vm0, %v1938_v37  ;;  %v1932_v37 = vld [vmem:[%s7719_s28 + $0x78] sm:$0xff] }
 0x241   : > { %1207 = vmatprep.mubr.f32.mxu1 %v11222_v21 }
 0x244   : > { %6692 = vmatmul.mubr.msk.f32.gmra.mxu1 %vm424_vm1, %v8267_v34 }
 0x245   : > { %1213 = vmatprep.mubr.f32.mxu1 %v11222_v21 }
 0x248   : > { %6693 = vmatmul.mubr.msk.f32.gmra.mxu1 %vm424_vm1, %v8279_v15 }
 0x249   : > { %1219 = vmatprep.mubr.f32.mxu1 %v11222_v21 }
 0x24c   : > { %6694 = vmatmul.mubr.msk.f32.gmra.mxu1 %vm424_vm1, %v8287_v36 }
 0x24d   : > { %1225 = vmatprep.mubr.f32.mxu1 %v11222_v21 }
 0x250   : > { %6695 = vmatmul.mubr.msk.f32.gmra.mxu1 %vm424_vm1, %v8297_v27 }
 0x251   : > { %1231 = vmatprep.mubr.f32.mxu1 %v11222_v21 }
 0x254   : > { %6696 = vmatmul.mubr.msk.f32.gmra.mxu1 %vm424_vm1, %v8310_v2 }
 0x255   : > { %1635 = vmatprep.mubr.f32.mxu1 %v11222_v21 }
 0x258   : > { %6709 = vmatmul.mubr.msk.f32.vlgmr.msra.gmra.mxu1 %vm424_vm1, %v8243_v33 }
 0x259   : > { %1641 = vmatprep.mubr.f32.mxu1 %v11222_v21  ;;  %6728 = vmatpush1.msk.msra.mxu1 %vm449_vm0, %v1937_v20  ;;  %vm6591_vm0 = vcmask 1024  }
 0x25c   : > { %6710 = vmatmul.mubr.msk.f32.gmra.mxu1 %vm424_vm1, %v8251_v56 }
 0x25d   : > { %1647 = vmatprep.mubr.f32.mxu1 %v11222_v21 }
 0x260   : > { %6711 = vmatmul.mubr.msk.f32.gmra.mxu1 %vm424_vm1, %v8259_v8 }
 0x261   : > { %1653 = vmatprep.mubr.f32.mxu1 %v11222_v21 }
 0x264   : > { %6712 = vmatmul.mubr.msk.f32.gmra.mxu1 %vm424_vm1, %v8267_v34 }
 0x265   : > { %1659 = vmatprep.mubr.f32.mxu1 %v11222_v21 }
 0x268   : > { %6713 = vmatmul.mubr.msk.f32.gmra.mxu1 %vm424_vm1, %v8279_v15 }
 0x269   : > { %1665 = vmatprep.mubr.f32.mxu1 %v11222_v21 }
 0x26c   : > { %6714 = vmatmul.mubr.msk.f32.gmra.mxu1 %vm424_vm1, %v8287_v36 }
 0x26d   : > { %1671 = vmatprep.mubr.f32.mxu1 %v11222_v21 }
 0x270   : > { %6715 = vmatmul.mubr.msk.f32.gmra.mxu1 %vm424_vm1, %v8297_v27 }
 0x271   : > { %1677 = vmatprep.mubr.f32.mxu1 %v11222_v21 }
 0x274   : > { %6716 = vmatmul.mubr.msk.f32.gmra.mxu1 %vm424_vm1, %v8310_v2 }
 0x275   : > { %2081 = vmatprep.mubr.f32.mxu1 %v11222_v21 }
 0x296   : > { %v2616_v39 = vpop.permute.xlu1 %2615 }
 0x297   : > { %v8303_v58 = vsel %vm2623_vm12, 0.0, %v2616_v39 }
 0x298   : > { %v2618_v4 = vpop.permute.xlu0 %2617  ;;  %2818 = vrot.lane.b32.xlu0 %v8303_v58, %s7610_s24  ;;  %v2658_v30 = vmul.f32 %v8303_v58, %v7856_v47  ;;  %v2652_v52 = vmul.f32 %v8303_v58, %v7858_v48  ;;  %v2646_v14 = vmul.f32 %v8303_v58, %v7888_v61  ;;  %v2640_v13 = vmul.f32 %v8303_v58, %v7903_v0 }
 0x299   : > { %v8315_v5 = vsel %vm2623_vm12, %v2618_v4, 0.0  ;;  %v8329_v53 = vsel %vm2623_vm12, %v2616_v39, %v2618_v4  ;;  %v1936_v4 = vld [vmem:[%s7719_s28 + $0x178] sm:$0xff] }
 0x29a   : > { %2822 = vrot.lane.b32.xlu1 %v8315_v5, %s7610_s24  ;;  %v2620_v62 = vpop.permute.xlu1 %2619  ;;  %v2660_v1 = vmul.f32 %v8315_v5, %v7867_v54  ;;  %v2654_v25 = vmul.f32 %v8315_v5, %v7869_v55  ;;  %v2648_v39 = vmul.f32 %v8315_v5, %v7886_v60  ;;  %2043 = vmatprep.subr.mxu1 %v1936_v4 }
 0x29b   : > { %v8334_v22 = vsel %vm2623_vm12, 0.0, %v2620_v62  ;;  %2044 = vmatpush1.msra.mxu1 %v1935_v17  ;;  %v2642_v24 = vmul.f32 %v8315_v5, %v7911_v3  ;;  %v2653_v20 = vmul.f32 %v8329_v53, %v7898_v63  ;;  %v2641_v17 = vmul.f32 %v8329_v53, %v7925_v11 }
 0x29c   : > { %2746 = vrot.lane.b32.xlu0 %v8303_v58, %s7613_s11  ;;  %v2622_v59 = vpop.permute.xlu0 %2621  ;;  %v2655_v4 = vmul.f32 %v8334_v22, %v7858_v48 }
 0x29e   : > { %2750 = vrot.lane.b32.xlu1 %v8315_v5, %s7613_s11 }
 0x2a0   : > { %2820 = vrot.lane.b32.xlu0 %v8329_v53, %s7610_s24 }
 0x2a2   : > { %2824 = vrot.lane.b32.xlu1 %v8334_v22, %s7610_s24 }
 0x2a4   : > { %2798 = vrot.lane.b32.xlu0 %v2658_v30, %s7611_s29  ;;  %v2659_v30 = vmul.f32 %v8329_v53, %v7876_v57 }
 0x2a6   : > { %2802 = vrot.lane.b32.xlu1 %v2660_v1, %s7611_s29  ;;  %v1934_v1 = vld [vmem:[%s7719_s28 + $0xf8] sm:$0xff] }
 0x2a7   : > { %2045 = vmatprep.subr.mxu1 %v1934_v1  ;;  %v2665_v1 = vmul.f32 %v8329_v53, %v7949_v18 }
 0x2a8   : > { %2772 = vrot.lane.b32.xlu0 %v2652_v52, %s7612_s30  ;;  %v1933_v52 = vld [vmem:[%s7719_s28 + $0xf0] sm:$0xff] }
 0x2a9   : > { %2046 = vmatpush1.msra.mxu1 %v1933_v52  ;;  %v2667_v52 = vmul.f32 %v8334_v22, %v7919_v10 }
 0x2aa   : > { %2776 = vrot.lane.b32.xlu1 %v2654_v25, %s7612_s30  ;;  %v8396_v25 = vsel %vm2623_vm12, %v2620_v62, %v2622_v59  ;;  %v2661_v62 = vmul.f32 %v8334_v22, %v7856_v47  ;;  %2047 = vmatprep.subr.mxu1 %v1932_v37 }
 0x2ac   : > { %2748 = vrot.lane.b32.xlu0 %v8329_v53, %s7613_s11 }
 0x2ae   : > { %2752 = vrot.lane.b32.xlu1 %v8334_v22, %s7613_s11 }
 0x2b0   : > { %2726 = vrot.lane.b32.xlu0 %v2646_v14, %s7614_s12  ;;  %v1931_v14 = vld [vmem:[%s7719_s28 + $0x70] sm:$0xff] }
 0x2b1   : > { %2048 = vmatpush1.msra.mxu1 %v1931_v14  ;;  %v2664_v14 = vmul.f32 %v8303_v58, %v7919_v10 }
 0x2b2   : > { %2730 = vrot.lane.b32.xlu1 %v2648_v39, %s7614_s12  ;;  %v2647_v39 = vmul.f32 %v8329_v53, %v7932_v12  ;;  %6729 = vmatmul.mubr.msk.f32.vlgmr.msra.gmra.mxu1 %vm424_vm1, %v8243_v33  ;;  %v2649_v33 = vmul.f32 %v8334_v22, %v7888_v61 }
 0x2b3   : > { %2087 = vmatprep.mubr.f32.mxu1 %v11222_v21 }
 0x2b4   : > { %2700 = vrot.lane.b32.xlu0 %v2640_v13, %s7615_s15  ;;  %v2635_v13 = vsel %vm2623_vm12, %v2622_v59, 0.0  ;;  %v8478_v59 = vld [vmem:[%s11060_s3 + $0x8] sm:$0xff] }
 0x2b5   : > { %v2669_v37 = vmul.f32 %v2635_v13, %v7941_v16 }
 0x2b6   : > { %2704 = vrot.lane.b32.xlu1 %v2642_v24, %s7615_s15  ;;  %6730 = vmatmul.mubr.msk.f32.gmra.mxu1 %vm424_vm1, %v8251_v56  ;;  %v2643_v56 = vmul.f32 %v8334_v22, %v7903_v0  ;;  %v2657_v24 = vmul.f32 %v2635_v13, %v7869_v55 }
 0x2b7   : > { %2093 = vmatprep.mubr.f32.mxu1 %v11222_v21 }
 0x2b8   : > { %2800 = vrot.lane.b32.xlu0 %v2659_v30, %s7611_s29  ;;  %v2644_v30 = vmul.f32 %v8396_v25, %v7925_v11 }
 0x2ba   : > { %2826 = vrot.lane.b32.xlu1 %v8396_v25, %s7610_s24  ;;  %6731 = vmatmul.mubr.msk.f32.gmra.mxu1 %vm424_vm1, %v8259_v8  ;;  %v2663_v8 = vmul.f32 %v2635_v13, %v7867_v54 }
 0x2bb   : > { %2099 = vmatprep.mubr.f32.mxu1 %v11222_v21 }
 0x2bc   : > { %2774 = vrot.lane.b32.xlu0 %v2653_v20, %s7612_s30  ;;  %v2668_v20 = vmul.f32 %v8396_v25, %v7949_v18 }
 0x2be   : > { %2804 = vrot.lane.b32.xlu1 %v2661_v62, %s7611_s29  ;;  %6732 = vmatmul.mubr.msk.f32.gmra.mxu1 %vm424_vm1, %v8267_v34  ;;  %v2662_v34 = vmul.f32 %v8396_v25, %v7876_v57  ;;  %v2666_v62 = vmul.f32 %v8315_v5, %v7941_v16 }
 0x2bf   : > { %2105 = vmatprep.mubr.f32.mxu1 %v11222_v21 }
 0x2c0   : > { %2728 = vrot.lane.b32.xlu0 %v2647_v39, %s7614_s12  ;;  %v7526_v39 = vld [vmem:[%s11059_s2 + $0x18] sm:$0xff] }
 0x2c2   : > { %2778 = vrot.lane.b32.xlu1 %v2655_v4, %s7612_s30  ;;  %6733 = vmatmul.mubr.msk.f32.gmra.mxu1 %vm424_vm1, %v8279_v15  ;;  %v2656_v15 = vmul.f32 %v8396_v25, %v7898_v63  ;;  %v7527_v4 = vld [vmem:[%s11059_s2 + $0x8] sm:$0xff] }
 0x2c3   : > { %2111 = vmatprep.mubr.f32.mxu1 %v11222_v21 }
 0x2c4   : > { %2702 = vrot.lane.b32.xlu0 %v2641_v17, %s7615_s15  ;;  %v7528_v17 = vld [vmem:[%s11059_s2 + $0x10] sm:$0xff] }
 0x2c6   : > { %2754 = vrot.lane.b32.xlu1 %v8396_v25, %s7613_s11  ;;  %6734 = vmatmul.mubr.msk.f32.gmra.mxu1 %vm424_vm1, %v8287_v36  ;;  %v2651_v36 = vmul.f32 %v2635_v13, %v7886_v60 }
 0x2c7   : > { %2117 = vmatprep.mubr.f32.mxu1 %v11222_v21 }
 0x2c8   : > { %2828 = vrot.lane.b32.xlu0 %v2635_v13, %s7610_s24 }
 0x2ca   : > { %2732 = vrot.lane.b32.xlu1 %v2649_v33, %s7614_s12  ;;  %6735 = vmatmul.mubr.msk.f32.gmra.mxu1 %vm424_vm1, %v8297_v27  ;;  %v2650_v27 = vmul.f32 %v8396_v25, %v7932_v12  ;;  %v7531_v33 = vld [vmem:[%s11059_s2 + $0x28] sm:$0xff] }
 0x2cb   : > { %2123 = vmatprep.mubr.f32.mxu1 %v11222_v21 }
 0x2cc   : > { %2756 = vrot.lane.b32.xlu0 %v2635_v13, %s7613_s11 }
 0x2ce   : > { %2706 = vrot.lane.b32.xlu1 %v2643_v56, %s7615_s15  ;;  %6736 = vmatmul.mubr.msk.f32.gmra.mxu1 %vm424_vm1, %v8310_v2  ;;  %v2645_v2 = vmul.f32 %v2635_v13, %v7911_v3  ;;  %v7532_v56 = vld [vmem:[%s11059_s2 + $0x30] sm:$0xff]  ;;  %vm6589_vm1 = vcmask 7168  }
 0x2cf   : > { %6758 = vmatprep.mubr.msk.f32.mxu1 %vm2203_vm5, %v8478_v59 }
 0x2d0   : > { %2684 = vrot.lane.b32.xlu0 %v2635_v13, %s11076_s18  ;;  %v7530_v13 = vld [vmem:[%s11059_s2 + $0x38] sm:$0xff] }
 0x2d2   : > { %2682 = vrot.lane.b32.xlu1 %v8396_v25, %s11076_s18 }
 0x2d4   : > { %2808 = vrot.lane.b32.xlu0 %v2663_v8, %s7611_s29  ;;  %v7533_v8 = vld [vmem:[%s11059_s2 + $0x20] sm:$0xff] }
 0x2d6   : > { %2806 = vrot.lane.b32.xlu1 %v2662_v34, %s7611_s29 }
 0x2d8   : > { %2782 = vrot.lane.b32.xlu0 %v2657_v24, %s7612_s30  ;;  %v8554_v21 = vpop.f32.mrf.mxu1 }
 0x2da   : > { %2780 = vrot.lane.b32.xlu1 %v2656_v15, %s7612_s30  ;;  %v8558_v49 = vpop.f32.mrf.mxu1 }
 0x2dc   : > { %2676 = vrot.lane.b32.xlu0 %v8329_v53, %s11076_s18  ;;  %v8560_v44 = vpop.f32.mrf.mxu1 }
 0x2de   : > { %2680 = vrot.lane.b32.xlu1 %v8334_v22, %s11076_s18  ;;  %v8566_v32 = vpop.f32.mrf.mxu1 }
 0x2e0   : > { %2736 = vrot.lane.b32.xlu0 %v2651_v36, %s7614_s12  ;;  %v8570_v23 = vpop.f32.mrf.mxu1 }
 0x2e2   : > { %2734 = vrot.lane.b32.xlu1 %v2650_v27, %s7614_s12  ;;  %v8574_v16 = vpop.f32.mrf.mxu1 }
 0x2e4   : > { %2710 = vrot.lane.b32.xlu0 %v2645_v2, %s7615_s15 }
 0x2e6   : > { %2708 = vrot.lane.b32.xlu1 %v2644_v30, %s7615_s15 }
 0x2e8   : > { %2674 = vrot.lane.b32.xlu0 %v8303_v58, %s11076_s18 }
 0x2ea   : > { %2678 = vrot.lane.b32.xlu1 %v8315_v5, %s11076_s18  ;;  %v7529_v5 = vld [vmem:[%s11059_s2] sm:$0xff]  ;;  %s11276_s18 = smov 127  }
 0x2ec   : > { %2846 = vrot.lane.b32.xlu0 %v2665_v1, %s11223_s23 }
 0x2ee   : > { %2850 = vrot.lane.b32.xlu1 %v2667_v52, %s11223_s23 }
 0x2f0   : > { %2854 = vrot.lane.b32.xlu0 %v2669_v37, %s11223_s23 }
 0x2f2   : > { %2852 = vrot.lane.b32.xlu1 %v2668_v20, %s11223_s23 }
 0x2f4   : > { %2844 = vrot.lane.b32.xlu0 %v2664_v14, %s11223_s23 }
 0x2f6   : > { %2848 = vrot.lane.b32.xlu1 %v2666_v62, %s11223_s23 }
 0x2f8   : > { %626 = vperm.xlu0 %7003, %v7526_v39  }
 0x2fa   : > { %616 = vperm.xlu1 %7004, %v7527_v4  }
 0x2fc   : > { %621 = vperm.xlu0 %7003, %v7528_v17  }
 0x2fe   : > { %611 = vperm.xlu1 %7004, %v7529_v5  }
 0x300   : > { %646 = vperm.xlu0 %7003, %v7530_v13  }
 0x302   : > { %636 = vperm.xlu1 %7004, %v7531_v33  }
 0x304   : > { %641 = vperm.xlu0 %7003, %v7532_v56  }
 0x306   : > { %631 = vperm.xlu1 %7004, %v7533_v8  }
 0x30a   : > { %v2819_v34 = vpop.permute.xlu0 %2818 }
 0x30c   : > { %v2823_v24 = vpop.permute.xlu1 %2822 }
 0x30e   : > { %v8536_v15 = vpop.permute.xlu0 %2746 }
 0x310   : > { %v8538_v36 = vpop.permute.xlu1 %2750 }
 0x312   : > { %v2821_v27 = vpop.permute.xlu0 %2820 }
 0x313   : > { %v2831_v40 = vsel %vm2314_vm13, %v2821_v27, %v2823_v24  ;;  %v2830_v35 = vsel %vm2314_vm13, %v2819_v34, %v2821_v27  ;;  %v8578_v34 = vpop.f32.mrf.mxu1 }
 0x314   : > { %v2825_v2 = vpop.permute.xlu1 %2824 }
 0x316   : > { %v2799_v30 = vpop.permute.xlu0 %2798 }
 0x318   : > { %v2803_v1 = vpop.permute.xlu1 %2802 }
 0x31a   : > { %v2773_v52 = vpop.permute.xlu0 %2772 }
 0x31c   : > { %v2777_v37 = vpop.permute.xlu1 %2776 }
 0x31e   : > { %v8540_v20 = vpop.permute.xlu0 %2748 }
 0x320   : > { %v8542_v14 = vpop.permute.xlu1 %2752 }
 0x322   : > { %v8544_v62 = vpop.permute.xlu0 %2726 }
 0x324   : > { %v8546_v39 = vpop.permute.xlu1 %2730 }
 0x326   : > { %v8548_v4 = vpop.permute.xlu0 %2700 }
 0x328   : > { %v8550_v17 = vpop.permute.xlu1 %2704 }
 0x32a   : > { %v2801_v5 = vpop.permute.xlu0 %2800 }
 0x32c   : > { %v2827_v13 = vpop.permute.xlu1 %2826 }
 0x32d   : > { %v2832_v41 = vsel %vm2314_vm13, %v2825_v2, %v2827_v13 }
 0x32e   : > { %v2775_v33 = vpop.permute.xlu0 %2774 }
 0x330   : > { %v2805_v56 = vpop.permute.xlu1 %2804 }
 0x332   : > { %v8552_v8 = vpop.permute.xlu0 %2728 }
 0x334   : > { %v2779_v51 = vpop.permute.xlu1 %2778 }
 0x336   : > { %v8556_v50 = vpop.permute.xlu0 %2702 }
 0x338   : > { %v2755_v46 = vpop.permute.xlu1 %2754 }
 0x33a   : > { %v2829_v45 = vpop.permute.xlu0 %2828 }
 0x33b   : > { %v2833_v43 = vsel %vm2314_vm13, %v2827_v13, %v2829_v45  ;;  %v2810_v13 = vsel %vm2307_vm7, %v2799_v30, %v2801_v5 }
 0x33c   : > { %2864 = vmatprep.subr.mxu1 %v2833_v43  ;;  %v2733_v42 = vpop.permute.xlu1 %2732 }
 0x33d   : > { %2865 = vmatpush1.msra.mxu1 %v2832_v41 }
 0x33e   : > { %v2757_v38 = vpop.permute.xlu0 %2756  ;;  %2866 = vmatprep.subr.mxu1 %v2831_v40 }
 0x33f   : > { %2867 = vmatpush1.msra.mxu1 %v2830_v35  ;;  %v2811_v35 = vsel %vm2307_vm7, %v2801_v5, %v2803_v1  ;;  %v2784_v1 = vsel %vm2293_vm8, %v2773_v52, %v2775_v33  ;;  %v2761_v30 = vsel %vm2282_vm14, %v2755_v46, %v2757_v38  ;;  %v2758_v52 = vsel %vm2282_vm14, %v8536_v15, %v8540_v20 }
 0x340   : > { %v2707_v29 = vpop.permute.xlu1 %2706  ;;  %v2738_v15 = vsel %vm2275_vm9, %v8544_v62, %v8552_v8  ;;  %v2712_v62 = vsel %vm2261_vm10, %v8548_v4, %v8556_v50 }
 0x342   : > { %v8568_v26 = vpop.permute.xlu0 %2684 }
 0x344   : > { %v8572_v45 = vpop.permute.xlu1 %2682 }
 0x346   : > { %v2809_v43 = vpop.permute.xlu0 %2808 }
 0x348   : > { %v2807_v41 = vpop.permute.xlu1 %2806 }
 0x349   : > { %v2813_v24 = vsel %vm2307_vm7, %v2807_v41, %v2809_v43  ;;  %v2812_v40 = vsel %vm2307_vm7, %v2805_v56, %v2807_v41  ;;  %v8584_v43 = vpop.f32.mrf.mxu1  ;;  %v2785_v56 = vsel %vm2293_vm8, %v2775_v33, %v2777_v37 }
 0x34a   : > { %v2783_v2 = vpop.permute.xlu0 %2782  ;;  %2868 = vmatprep.subr.mxu1 %v2813_v24 }
 0x34b   : > { %2869 = vmatpush1.msra.mxu1 %v2812_v40  ;;  %v8591_v24 = vpop.f32.mrf.mxu1 }
 0x34c   : > { %2870 = vmatprep.subr.mxu1 %v2811_v35  ;;  %v2781_v27 = vpop.permute.xlu1 %2780 }
 0x34d   : > { %2871 = vmatpush1.msra.mxu1 %v2810_v13  ;;  %v2787_v10 = vsel %vm2293_vm8, %v2781_v27, %v2783_v2  ;;  %v2786_v18 = vsel %vm2293_vm8, %v2779_v51, %v2781_v27  ;;  %v2760_v51 = vsel %vm2282_vm14, %v8542_v14, %v2755_v46  ;;  %v8601_v46 = vpop.f32.mrf.mxu1 }
 0x34e   : > { %v2677_v11 = vpop.permute.xlu0 %2676  ;;  %2872 = vmatprep.subr.mxu1 %v2787_v10  ;;  %v2759_v10 = vsel %vm2282_vm14, %v8540_v20, %v8538_v36  ;;  %v2739_v36 = vsel %vm2275_vm9, %v8552_v8, %v8546_v39  ;;  %v2713_v39 = vsel %vm2261_vm10, %v8556_v50, %v8550_v17  ;;  %v2639_v50 = vmul.f32 %v8396_v25, %v7701_v9 }
 0x34f   : > { %2873 = vmatpush1.msra.mxu1 %v2786_v18  ;;  %v8611_v2 = vpop.f32.mrf.mxu1 }
 0x350   : > { %2874 = vmatprep.subr.mxu1 %v2785_v56  ;;  %v2681_v41 = vpop.permute.xlu1 %2680 }
 0x351   : > { %2875 = vmatpush1.msra.mxu1 %v2784_v1  ;;  %v2688_v8 = vsel %vm2250_vm15, %v2681_v41, %v8572_v45  ;;  %v8624_v13 = vpop.f32.mrf.mxu1 }
 0x352   : > { %v2737_v5 = vpop.permute.xlu0 %2736  ;;  %2876 = vmatprep.subr.mxu1 %v2761_v30 }
 0x353   : > { %2877 = vmatpush1.msra.mxu1 %v2760_v51  ;;  %v8634_v41 = vpop.f32.mrf.mxu1 }
 0x354   : > { %2878 = vmatprep.subr.mxu1 %v2759_v10  ;;  %v2735_v18 = vpop.permute.xlu1 %2734 }
 0x355   : > { %2879 = vmatpush1.msra.mxu1 %v2758_v52  ;;  %v2741_v38 = vsel %vm2275_vm9, %v2735_v18, %v2737_v5  ;;  %v2740_v37 = vsel %vm2275_vm9, %v2733_v42, %v2735_v18 }
 0x356   : > { %v2711_v33 = vpop.permute.xlu0 %2710  ;;  %2880 = vmatprep.subr.mxu1 %v2741_v38  ;;  %v8655_v38 = vld [vmem:[%s11060_s3 + $0x18] sm:$0xff] }
 0x357   : > { %2881 = vmatpush1.msra.mxu1 %v2740_v37 }
 0x358   : > { %2882 = vmatprep.subr.mxu1 %v2739_v36  ;;  %v2709_v14 = vpop.permute.xlu1 %2708 }
 0x359   : > { %2883 = vmatpush1.msra.mxu1 %v2738_v15  ;;  %v2715_v20 = vsel %vm2261_vm10, %v2709_v14, %v2711_v33  ;;  %v2714_v42 = vsel %vm2261_vm10, %v2707_v29, %v2709_v14  ;;  %v2689_v29 = vsel %vm2250_vm15, %v8572_v45, %v8568_v26  ;;  %v2638_v26 = vmul.f32 %v8334_v22, %v7696_v7  ;;  %v8640_v22 = vpop.f32.mrf.mxu1  ;;  %v8664_v33 = vld [vmem:[%s11060_s3 + $0x10] sm:$0xff]  ;;  %v8672_v14 = vld [vmem:[%s11060_s3 + $0x28] sm:$0xff]  ;;  %v8679_v15 = vld [vmem:[%s11060_s3 + $0x20] sm:$0xff] }
 0x35a   : > { %v2675_v40 = vpop.permute.xlu0 %2674  ;;  %2884 = vmatprep.subr.mxu1 %v2715_v20  ;;  %v2637_v45 = vmul.f32 %v8329_v53, %v7701_v9 }
 0x35b   : > { %2885 = vmatpush1.msra.mxu1 %v2714_v42  ;;  %v2686_v56 = vsel %vm2250_vm15, %v2675_v40, %v2677_v11  ;;  %v8644_v52 = vpop.f32.mrf.mxu1  ;;  %v8687_v42 = vld [vmem:[%s11060_s3 + $0x38] sm:$0xff]  ;;  %v8694_v40 = vld [vmem:[%s11060_s3 + $0x30] sm:$0xff] }
 0x35c   : > { %2886 = vmatprep.subr.mxu1 %v2713_v39  ;;  %v2679_v35 = vpop.permute.xlu1 %2678 }
 0x35d   : > { %2887 = vmatpush1.msra.mxu1 %v2712_v62  ;;  %v2687_v17 = vsel %vm2250_vm15, %v2677_v11, %v2679_v35  ;;  %v2636_v11 = vmul.f32 %v8303_v58, %v7696_v7  ;;  %v8649_v58 = vld [vmem:[%s11060_s3] sm:$0xff]  ;;  %v8659_v37 = vpop.f32.mrf.mxu1  ;;  %v8702_v35 = vld [vmem:[%s11060_s3 + $0x48] sm:$0xff] }
 0x35e   : > { %v2847_v27 = vpop.permute.xlu0 %2846  ;;  %2888 = vmatprep.subr.mxu1 %v2689_v29  ;;  %v8709_v62 = vld [vmem:[%s11060_s3 + $0x40] sm:$0xff] }
 0x35f   : > { %2889 = vmatpush1.msra.mxu1 %v2688_v8  ;;  %v8667_v36 = vpop.f32.mrf.mxu1  ;;  %v8717_v8 = vld [vmem:[%s11060_s3 + $0x58] sm:$0xff] }
 0x360   : > { %2890 = vmatprep.subr.mxu1 %v2687_v17  ;;  %v2851_v1 = vpop.permute.xlu1 %2850  ;;  %11224 = vst [vmem:[#allocation66_spill] sm:$0xff] %v8667_v36 }
 0x361   : > { %2891 = vmatpush1.msra.mxu1 %v2686_v56  ;;  %v8682_v20 = vpop.f32.mrf.mxu1  ;;  %v8732_v56 = vld [vmem:[%s11060_s3 + $0x68] sm:$0xff] }
 0x362   : > { %v2855_v4 = vpop.permute.xlu0 %2854  ;;  %2892 = vmatprep.subr.mxu1 %v2639_v50  ;;  %11225 = vst [vmem:[#allocation67_spill] sm:$0xff] %v8682_v20 }
 0x363   : > { %2893 = vmatpush1.msra.mxu1 %v2638_v26  ;;  %v8697_v39 = vpop.f32.mrf.mxu1  ;;  %v8747_v26 = vld [vmem:[%s11060_s3 + $0x78] sm:$0xff] }
 0x364   : > { %2894 = vmatprep.subr.mxu1 %v2637_v45  ;;  %v2853_v30 = vpop.permute.xlu1 %2852  ;;  %11226 = vst [vmem:[#allocation68_spill] sm:$0xff] %v8697_v39  ;;  %11231 = vst [vmem:[#allocation73_spill] sm:$0xff] %v8747_v26 }
 0x365   : > { %2895 = vmatpush1.msra.mxu1 %v2636_v11  ;;  %v2859_v25 = vsel %vm2325_vm11, %v2853_v30, %v2855_v4  ;;  %v2858_v5 = vsel %vm2325_vm11, %v2851_v1, %v2853_v30  ;;  %v8712_v29 = vpop.f32.mrf.mxu1  ;;  %v8739_v1 = vld [vmem:[%s11060_s3 + $0x60] sm:$0xff]  ;;  %v8754_v4 = vld [vmem:[%s11060_s3 + $0x70] sm:$0xff] }
 0x366   : > { %2924 = vmatprep.subr.mxu1 %v2859_v25  ;;  %v2845_v51 = vpop.permute.xlu0 %2844  ;;  %11227 = vst [vmem:[#allocation69_spill] sm:$0xff] %v8712_v29  ;;  %11229 = vst [vmem:[#allocation71_spill] sm:$0xff] %v8739_v1 }
 0x367   : > { %2925 = vmatpush2.msra.mxu1 %v2858_v5  ;;  %v2856_v18 = vsel %vm2325_vm11, %v2845_v51, %v2847_v27  ;;  %v8727_v17 = vpop.f32.mrf.mxu1  ;;  %11232 = vst [vmem:[#allocation74_spill] sm:$0xff] %v8754_v4 }
 0x368   : > { %v2849_v10 = vpop.permute.xlu1 %2848  ;;  %11228 = vst [vmem:[#allocation70_spill] sm:$0xff] %v8727_v17 }
 0x369   : > { %v2857_v53 = vsel %vm2325_vm11, %v2847_v27, %v2849_v10  ;;  %v8724_v27 = vld [vmem:[%s11060_s3 + $0x50] sm:$0xff]  ;;  %v8742_v50 = vpop.f32.mrf.mxu1 }
 0x36a   : > { %2926 = vmatprep.subr.mxu1 %v2857_v53  ;;  %11230 = vst [vmem:[#allocation72_spill] sm:$0xff] %v8742_v50 }
 0x36b   : > { %2927 = vmatpush2.msra.mxu1 %v2856_v18  ;;  %v8757_v45 = vpop.f32.mrf.mxu1 }
 0x36c   : > { %2929 = vmatmul.mubr.f32.vlgmr.msra.gmra.mxu1 %v8649_v58  ;;  %11233 = vst [vmem:[#allocation75_spill] sm:$0xff] %v8757_v45 }
 0x36d   : > { %6759 = vmatprep.mubr.msk.f32.mxu1 %vm2203_vm5, %v8655_v38  ;;  %v8761_v11 = vpop.f32.mrf.mxu1 }
 0x36e   : > { %11234 = vst [vmem:[#allocation76_spill] sm:$0xff] %v8761_v11 }
 0x36f   : > { %v8763_v30 = vpop.f32.mrf.mxu1 }
 0x370   : > { %2935 = vmatmul.mubr.f32.gmra.mxu1 %v8664_v33  ;;  %11235 = vst [vmem:[#allocation77_spill] sm:$0xff] %v8763_v30 }
 0x371   : > { %6760 = vmatprep.mubr.msk.f32.mxu1 %vm2203_vm5, %v8672_v14  ;;  %v8765_v25 = vpop.f32.mrf.mxu1 }
 0x372   : > { %11236 = vst [vmem:[#allocation78_spill] sm:$0xff] %v8765_v25 }
 0x373   : > { %v8767_v5 = vpop.f32.mrf.mxu1  ;;  %v627_v17 = vpop.permute.xlu0 %626 }
 0x374   : > { %2941 = vmatmul.mubr.f32.gmra.mxu1 %v8679_v15  ;;  %11237 = vst [vmem:[#allocation79_spill] sm:$0xff] %v8767_v5 }
 0x375   : > { %6761 = vmatprep.mubr.msk.f32.mxu1 %vm2203_vm5, %v8687_v42  ;;  %v8769_v51 = vpop.f32.mrf.mxu1 }
 0x376   : > { %11238 = vst [vmem:[#allocation80_spill] sm:$0xff] %v8769_v51 }
 0x377   : > { %v8771_v10 = vpop.f32.mrf.mxu1  ;;  %v622_v20 = vpop.permute.xlu0 %621 }
 0x378   : > { %2947 = vmatmul.mubr.f32.gmra.mxu1 %v8694_v40  ;;  %11239 = vst [vmem:[#allocation81_spill] sm:$0xff] %v8771_v10 }
 0x379   : > { %6762 = vmatprep.mubr.msk.f32.mxu1 %vm2203_vm5, %v8702_v35  ;;  %v8773_v53 = vpop.f32.mrf.mxu1 }
 0x37a   : > { %11240 = vst [vmem:[#allocation82_spill] sm:$0xff] %v8773_v53 }
 0x37b   : > { %v8775_v18 = vpop.f32.mrf.mxu1 }
 0x37c   : > { %2953 = vmatmul.mubr.f32.gmra.mxu1 %v8709_v62  ;;  %11241 = vst [vmem:[#allocation83_spill] sm:$0xff] %v8775_v18 }
 0x37d   : > { %6763 = vmatprep.mubr.msk.f32.mxu1 %vm2203_vm5, %v8717_v8  ;;  %v8777_v45 = vpop.f32.mrf.mxu1 }
 0x37e   : > { %11242 = vst [vmem:[#allocation84_spill] sm:$0xff] %v8777_v45 }
 0x37f   : > { %v8779_v50 = vpop.f32.mrf.mxu1 }
 0x380   : > { %2959 = vmatmul.mubr.f32.gmra.mxu1 %v8724_v27  ;;  %11243 = vst [vmem:[#allocation85_spill] sm:$0xff] %v8779_v50 }
 0x381   : > { %6764 = vmatprep.mubr.msk.f32.mxu1 %vm2203_vm5, %v8732_v56 }
 0x384   : > { %2965 = vmatmul.mubr.f32.gmra.mxu1 %v8739_v1 }
 0x385   : > { %6765 = vmatprep.mubr.msk.f32.mxu1 %vm2203_vm5, %v8747_v26 }
 0x388   : > { %2971 = vmatmul.mubr.f32.gmra.mxu1 %v8754_v4 }
 0x389   : > { %6798 = vmatprep.mubr.msk.f32.mxu1 %vm2203_vm5, %v8478_v59  ;;  %v8781_v59 = vpop.f32.mrf.mxu1 }
 0x38a   : > { %11244 = vst [vmem:[#allocation86_spill] sm:$0xff] %v8781_v59 }
 0x38b   : > { %v8783_v11 = vpop.f32.mrf.mxu1 }
 0x38c   : > { %11245 = vst [vmem:[#allocation87_spill] sm:$0xff] %v8783_v11 }
 0x38d   : > { %v8785_v30 = vpop.f32.mrf.mxu1 }
 0x38e   : > { %11246 = vst [vmem:[#allocation88_spill] sm:$0xff] %v8785_v30 }
 0x38f   : > { %v8787_v25 = vpop.f32.mrf.mxu1 }
 0x390   : > { %11247 = vst [vmem:[#allocation89_spill] sm:$0xff] %v8787_v25 }
 0x391   : > { %v8789_v5 = vpop.f32.mrf.mxu1 }
 0x392   : > { %11248 = vst [vmem:[#allocation90_spill] sm:$0xff] %v8789_v5 }
 0x393   : > { %v8791_v51 = vpop.f32.mrf.mxu1 }
 0x394   : > { %11249 = vst [vmem:[#allocation91_spill] sm:$0xff] %v8791_v51 }
 0x395   : > { %v8793_v10 = vpop.f32.mrf.mxu1 }
 0x396   : > { %11250 = vst [vmem:[#allocation92_spill] sm:$0xff] %v8793_v10 }
 0x397   : > { %v8795_v53 = vpop.f32.mrf.mxu1 }
 0x398   : > { %11251 = vst [vmem:[#allocation93_spill] sm:$0xff] %v8795_v53 }
 0x399   : > { %v8797_v18 = vpop.f32.mrf.mxu1 }
 0x39a   : > { %11252 = vst [vmem:[#allocation94_spill] sm:$0xff] %v8797_v18 }
 0x39b   : > { %v8799_v45 = vpop.f32.mrf.mxu1 }
 0x39c   : > { %11253 = vst [vmem:[#allocation95_spill] sm:$0xff] %v8799_v45 }
 0x39d   : > { %v8801_v50 = vpop.f32.mrf.mxu1 }
 0x39e   : > { %11254 = vst [vmem:[#allocation96_spill] sm:$0xff] %v8801_v50 }
 0x39f   : > { %v8803_v59 = vpop.f32.mrf.mxu1 }
 0x3a0   : > { %11255 = vst [vmem:[#allocation97_spill] sm:$0xff] %v8803_v59 }
 0x3a1   : > { %v8805_v11 = vpop.f32.mrf.mxu1 }
 0x3a2   : > { %11256 = vst [vmem:[#allocation98_spill] sm:$0xff] %v8805_v11 }
 0x3a3   : > { %v8807_v30 = vpop.f32.mrf.mxu1 }
 0x3a4   : > { %11257 = vst [vmem:[#allocation99_spill] sm:$0xff] %v8807_v30 }
 0x3a5   : > { %v8809_v25 = vpop.f32.mrf.mxu1 }
 0x3a6   : > { %11258 = vst [vmem:[#allocation100_spill] sm:$0xff] %v8809_v25 }
 0x3a7   : > { %v8811_v5 = vpop.f32.mrf.mxu1 }
 0x3a8   : > { %11259 = vst [vmem:[#allocation101_spill] sm:$0xff] %v8811_v5 }
 0x3a9   : > { %v8813_v51 = vpop.f32.mrf.mxu1 }
 0x3aa   : > { %11260 = vst [vmem:[#allocation102_spill] sm:$0xff] %v8813_v51 }
 0x3ab   : > { %v8815_v10 = vpop.f32.mrf.mxu1 }
 0x3ac   : > { %11261 = vst [vmem:[#allocation103_spill] sm:$0xff] %v8815_v10  ;;  %v617_v10 = vpop.permute.xlu1 %616 }
 0x3ad   : > { %v8817_v53 = vpop.f32.mrf.mxu1  ;;  %v754_v4 = vadd.f32 %v8566_v32, %v617_v10 }
 0x3ae   : > { %11262 = vst [vmem:[#allocation104_spill] sm:$0xff] %v8817_v53 }
 0x3af   : > { %v8819_v18 = vpop.f32.mrf.mxu1 }
 0x3b0   : > { %11263 = vst [vmem:[#allocation105_spill] sm:$0xff] %v8819_v18 }
 0x3b1   : > { %v8821_v45 = vpop.f32.mrf.mxu1 }
 0x3b2   : > { %11264 = vst [vmem:[#allocation106_spill] sm:$0xff] %v8821_v45  ;;  %v612_v45 = vpop.permute.xlu1 %611 }
 0x3b3   : > { %v8823_v50 = vpop.f32.mrf.mxu1 }
 0x3b4   : > { %11265 = vst [vmem:[#allocation107_spill] sm:$0xff] %v8823_v50 }
 0x3b5   : > { %v8825_v59 = vpop.f32.mrf.mxu1 }
 0x3b6   : > { %11266 = vst [vmem:[#allocation108_spill] sm:$0xff] %v8825_v59  ;;  %v746_v59 = vadd.f32 %v8554_v21, %v612_v45  ;;  %v637_v26 = vpop.permute.xlu1 %636 }
 0x3b7   : > { %v8827_v11 = vpop.f32.mrf.mxu1 }
 0x3b8   : > { %11267 = vst [vmem:[#allocation109_spill] sm:$0xff] %v8827_v11 }
 0x3b9   : > { %v8829_v30 = vpop.f32.mrf.mxu1 }
 0x3ba   : > { %11268 = vst [vmem:[#allocation110_spill] sm:$0xff] %v8829_v30  ;;  %v748_v30 = vadd.f32 %v8558_v49, %v612_v45  ;;  %v632_v32 = vpop.permute.xlu1 %631 }
 0x3bb   : > { %v8831_v25 = vpop.f32.mrf.mxu1 }
 0x3bc   : > { %11269 = vst [vmem:[#allocation111_spill] sm:$0xff] %v8831_v25 }
 0x3bd   : > { %v8833_v5 = vpop.f32.mrf.mxu1 }
 0x3be   : > { %11270 = vst [vmem:[#allocation112_spill] sm:$0xff] %v8833_v5 }
 0x3bf   : > { %v8835_v51 = vpop.f32.mrf.mxu1 }
 0x3c0   : > { %11271 = vst [vmem:[#allocation113_spill] sm:$0xff] %v8835_v51  ;;  %v752_v51 = vadd.f32 %v8560_v44, %v617_v10  ;;  %v760_v44 = vadd.f32 %v8574_v16, %v622_v20  ;;  %v770_v16 = vadd.f32 %v8591_v24, %v632_v32 }
 0x3c1   : > { %v8837_v53 = vpop.f32.mrf.mxu1 }
 0x3c2   : > { %11272 = vst [vmem:[#allocation114_spill] sm:$0xff] %v8837_v53 }
 0x3c3   : > { %v8839_v18 = vpop.f32.mrf.mxu1 }
 0x3c4   : > { %11273 = vst [vmem:[#allocation115_spill] sm:$0xff] %v8839_v18 }
 0x3c5   : > { %v8841_v50 = vpop.f32.mrf.mxu1 }
 0x3c6   : > { %11274 = vst [vmem:[#allocation116_spill] sm:$0xff] %v8841_v50 }
 0x42c   : > { %v2930_v11 = vpop.f32.mrf.mxu1 }
 0x42d   : > { %v2977_v29 = vadd.f32 %v2930_v11, %v746_v59  ;;  %v758_v11 = vadd.f32 %v8570_v23, %v622_v20 }
 0x42e   : > { %v2932_v25 = vpop.f32.mrf.mxu1 }
 0x42f   : > { %v6766_v39 = vmul.f32 -1.442695, %v2977_v29  ;;  %v2978_v5 = vadd.f32 %v2932_v25, %v748_v30 }
 0x430   : > { %v2936_v36 = vpop.f32.mrf.mxu1 }
 0x431   : > { %7069 = vpow2.f32 %v6766_v39  ;;  %v6767_v53 = vmul.f32 -1.442695, %v2978_v5  ;;  %v2979_v18 = vadd.f32 %v2936_v36, %v752_v51  ;;  %v764_v36 = vadd.f32 %v8578_v34, %v627_v17 }
 0x432   : > { %v2938_v50 = vpop.f32.mrf.mxu1  ;;  %v772_v34 = vadd.f32 %v8601_v46, %v632_v32 }
 0x433   : > { %7071 = vpow2.f32 %v6767_v53  ;;  %v6768_v21 = vmul.f32 -1.442695, %v2979_v18  ;;  %v2980_v1 = vadd.f32 %v2938_v50, %v754_v4  ;;  %v766_v50 = vadd.f32 %v8584_v43, %v627_v17  ;;  %v647_v4 = vpop.permute.xlu0 %646 }
 0x434   : > { %v2942_v49 = vpop.f32.mrf.mxu1 }
 0x435   : > { %7073 = vpow2.f32 %v6768_v21  ;;  %v6769_v29 = vmul.f32 -1.442695, %v2980_v1  ;;  %v2981_v45 = vadd.f32 %v2942_v49, %v758_v11  ;;  %v776_v49 = vadd.f32 %v8611_v2, %v637_v26 }
 0x436   : > { %v2944_v30 = vpop.f32.mrf.mxu1 }
 0x437   : > { %7075 = vpow2.f32 %v6769_v29  ;;  %v6770_v39 = vmul.f32 -1.442695, %v2981_v45  ;;  %v2982_v25 = vadd.f32 %v2944_v30, %v760_v44  ;;  %v778_v30 = vadd.f32 %v8624_v13, %v637_v26 }
 0x438   : > { %v2948_v5 = vpop.f32.mrf.mxu1 }
 0x439   : > { %7077 = vpow2.f32 %v6770_v39  ;;  %v6771_v51 = vmul.f32 -1.442695, %v2982_v25  ;;  %v2983_v10 = vadd.f32 %v2948_v5, %v764_v36  ;;  %v642_v39 = vpop.permute.xlu0 %641 }
 0x43a   : > { %v2950_v23 = vpop.f32.mrf.mxu1 }
 0x43b   : > { %7079 = vpow2.f32 %v6771_v51  ;;  %v6772_v1 = vmul.f32 -1.442695, %v2983_v10  ;;  %v2984_v53 = vadd.f32 %v2950_v23, %v766_v50  ;;  %v782_v50 = vadd.f32 %v8634_v41, %v642_v39 }
 0x43c   : > { %v2954_v20 = vpop.f32.mrf.mxu1 }
 0x43d   : > { %7081 = vpow2.f32 %v6772_v1  ;;  %v6773_v18 = vmul.f32 -1.442695, %v2984_v53  ;;  %v2985_v59 = vadd.f32 %v2954_v20, %v770_v16  ;;  %v784_v16 = vadd.f32 %v8640_v22, %v642_v39 }
 0x43e   : > { %v7070_v21 = vpop.eup %7069  ;;  %v2956_v11 = vpop.f32.mrf.mxu1 }
 0x43f   : > { %v3029_v29 = vadd.f32 1.0, %v7070_v21  ;;  %7083 = vpow2.f32 %v6773_v18  ;;  %v6774_v43 = vmul.f32 -1.442695, %v2985_v59  ;;  %v2986_v17 = vadd.f32 %v2956_v11, %v772_v34 }
 0x440   : > { %v7072_v45 = vpop.eup %7071  ;;  %v2960_v44 = vpop.f32.mrf.mxu1  ;;  %v788_v21 = vadd.f32 %v8644_v52, %v647_v4 }
 0x441   : > { %7085 = vrcp.f32 %v3029_v29  ;;  %v3030_v24 = vadd.f32 1.0, %v7072_v45  ;;  %v6775_v25 = vmul.f32 -1.442695, %v2986_v17  ;;  %v2987_v36 = vadd.f32 %v2960_v44, %v776_v49 }
 0x442   : > { %v7074_v5 = vpop.eup %7073  ;;  %7087 = vpow2.f32 %v6774_v43  ;;  %v2962_v46 = vpop.f32.mrf.mxu1  ;;  %v790_v43 = vadd.f32 %v8659_v37, %v647_v4 }
 0x443   : > { %7089 = vrcp.f32 %v3030_v24  ;;  %v3031_v32 = vadd.f32 1.0, %v7074_v5  ;;  %v6776_v51 = vmul.f32 -1.442695, %v2987_v36  ;;  %v2988_v2 = vadd.f32 %v2962_v46, %v778_v30 }
 0x444   : > { %v7076_v10 = vpop.eup %7075  ;;  %7091 = vpow2.f32 %v6775_v25  ;;  %v2966_v23 = vpop.f32.mrf.mxu1 }
 0x445   : > { %7093 = vrcp.f32 %v3031_v32  ;;  %v3032_v1 = vadd.f32 1.0, %v7076_v10  ;;  %v6777_v13 = vmul.f32 -1.442695, %v2988_v2  ;;  %v2989_v53 = vadd.f32 %v2966_v23, %v782_v50 }
 0x446   : > { %v7078_v26 = vpop.eup %7077  ;;  %7095 = vpow2.f32 %v6776_v51  ;;  %v2968_v20 = vpop.f32.mrf.mxu1 }
 0x447   : > { %7097 = vrcp.f32 %v3032_v1  ;;  %v3033_v18 = vadd.f32 1.0, %v7078_v26  ;;  %v2990_v34 = vadd.f32 %v2968_v20, %v784_v16 }
 0x448   : > { %v7080_v59 = vpop.eup %7079  ;;  %7099 = vpow2.f32 %v6777_v13  ;;  %v2972_v11 = vpop.f32.mrf.mxu1 }
 0x449   : > { %7101 = vrcp.f32 %v3033_v18  ;;  %v3034_v41 = vadd.f32 1.0, %v7080_v59  ;;  %v2991_v29 = vadd.f32 %v2972_v11, %v788_v21 }
 0x44a   : > { %v7082_v49 = vpop.eup %7081  ;;  %7103 = vtanh.f32 %v2989_v53  ;;  %v2974_v17 = vpop.f32.mrf.mxu1 }
 0x44b   : > { %7105 = vrcp.f32 %v3034_v41  ;;  %v3035_v45 = vadd.f32 1.0, %v7082_v49  ;;  %v2992_v44 = vadd.f32 %v2974_v17, %v790_v43 }
 0x44c   : > { %v7084_v22 = vpop.eup %7083  ;;  %7107 = vtanh.f32 %v2990_v34 }
 0x44d   : > { %7109 = vrcp.f32 %v3035_v45  ;;  %v3036_v30 = vadd.f32 1.0, %v7084_v22 }
 0x44e   : > { %v7086_v39 = vpop.eup %7085  ;;  %7111 = vtanh.f32 %v2991_v29 }
 0x44f   : > { %v7088_v24 = vpop.eup %7087  ;;  %7113 = vrcp.f32 %v3036_v30 }
 0x450   : > { %v7090_v52 = vpop.eup %7089  ;;  %7115 = vtanh.f32 %v2992_v44  ;;  %v3037_v51 = vadd.f32 1.0, %v7088_v24 }
 0x451   : > { %v7092_v25 = vpop.eup %7091 }
 0x452   : > { %v7094_v36 = vpop.eup %7093  ;;  %v3038_v1 = vadd.f32 1.0, %v7092_v25  ;;  %7117 = vrcp.f32 %v3037_v51 }
 0x453   : > { %v7096_v5 = vpop.eup %7095 }
 0x454   : > { %v7098_v46 = vpop.eup %7097  ;;  %v3039_v18 = vadd.f32 1.0, %v7096_v5 }
 0x455   : > { %v7100_v32 = vpop.eup %7099 }
 0x456   : > { %v7102_v37 = vpop.eup %7101  ;;  %v3040_v41 = vadd.f32 1.0, %v7100_v32 }
 0x457   : > { %v7104_v4 = vpop.eup %7103  ;;  %v3069_v2 = vmul.f32 %v7102_v37, %v8168_v6 }
 0x458   : > { %v7106_v10 = vpop.eup %7105  ;;  %v3073_v50 = vmul.f32 %v7104_v4, %v7086_v39 }
 0x459   : > { %v7108_v23 = vpop.eup %7107  ;;  %v3070_v13 = vmul.f32 %v7106_v10, %v8170_v28 }
 0x45a   : > { %v7110_v26 = vpop.eup %7109  ;;  %v8861_v53 = vadd.f32 %v3073_v50, %v3069_v2  ;;  %v3074_v16 = vmul.f32 %v7108_v23, %v7090_v52 }
 0x45b   : > { %v7112_v20 = vpop.eup %7111  ;;  %v3071_v59 = vmul.f32 %v7110_v26, %v8173_v19 }
 0x45c   : > { %v7114_v34 = vpop.eup %7113  ;;  %v8864_v21 = vadd.f32 %v3074_v16, %v3070_v13  ;;  %v3075_v11 = vmul.f32 %v7112_v20, %v7094_v36  ;;  %7119 = vtanh.f32 %v8861_v53 }
 0x45d   : > { %v7116_v6 = vpop.eup %7115  ;;  %7121 = vrcp.f32 %v3038_v1  ;;  %v3072_v28 = vmul.f32 %v7114_v34, %v8178_v31 }
 0x45e   : > { %v8868_v49 = vadd.f32 %v3075_v11, %v3071_v59  ;;  %v3076_v29 = vmul.f32 %v7116_v6, %v7098_v46  ;;  %7123 = vtanh.f32 %v8864_v21 }
 0x45f   : > { %7125 = vrcp.f32 %v3039_v18  ;;  %v7118_v43 = vpop.eup %7117 }
 0x460   : > { %7127 = vtanh.f32 %v8868_v49  ;;  %v8872_v19 = vadd.f32 %v3076_v29, %v3072_v28  ;;  %v11275_v29 = vld [vmem:[#allocation14_spill] sm:$0xff] }
 0x461   : > { %7129 = vrcp.f32 %v3040_v41 }
 0x462   : > { %7131 = vtanh.f32 %v8872_v19 }
 0x469   : > { %v7120_v17 = vpop.eup %7119 }
 0x46a   : > { %v7122_v45 = vpop.eup %7121  ;;  %v3085_v22 = vmul.f32 %v7120_v17, %v7118_v43 }
 0x46b   : > { %v7124_v44 = vpop.eup %7123 }
 0x46c   : > { %v7126_v30 = vpop.eup %7125  ;;  %3109 = vrot.lane.b32.xlu1 %v3085_v22, %s7619_s20  ;;  %v3086_v31 = vmul.f32 %v7124_v44, %v7122_v45 }
 0x46d   : > { %v7128_v39 = vpop.eup %7127 }
 0x46e   : > { %v7130_v24 = vpop.eup %7129  ;;  %3111 = vrot.lane.b32.xlu0 %v3086_v31, %s7619_s20  ;;  %v3087_v52 = vmul.f32 %v7128_v39, %v7126_v30 }
 0x46f   : > { %v7132_v25 = vpop.eup %7131 }
 0x470   : > { %3113 = vrot.lane.b32.xlu1 %v3087_v52, %s7619_s20  ;;  %v3088_v36 = vmul.f32 %v7132_v25, %v7130_v24 }
 0x472   : > { %3115 = vrot.lane.b32.xlu0 %v3088_v36, %s7619_s20 }
 0x4de   : > { %v3110_v5 = vpop.permute.xlu1 %3109 }
 0x4df   : > { %v8880_v46 = vsel %vm2623_vm12, 0.0, %v3110_v5 }
 0x4e0   : > { %v3112_v32 = vpop.permute.xlu0 %3111  ;;  %3311 = vrot.lane.b32.xlu0 %v8880_v46, %s7610_s24  ;;  %v3151_v10 = vmul.f32 %v8880_v46, %v7856_v47  ;;  %v3145_v23 = vmul.f32 %v8880_v46, %v7858_v48  ;;  %v3139_v13 = vmul.f32 %v8880_v46, %v7888_v61  ;;  %v3133_v16 = vmul.f32 %v8880_v46, %v7903_v0 }
 0x4e1   : > { %v8885_v37 = vsel %vm2623_vm12, %v3112_v32, 0.0  ;;  %v8894_v51 = vsel %vm2623_vm12, %v3110_v5, %v3112_v32  ;;  %v11277_v5 = vld [vmem:[#allocation17_spill] sm:$0xff] }
 0x4e2   : > { %3315 = vrot.lane.b32.xlu1 %v8885_v37, %s7610_s24  ;;  %v3114_v4 = vpop.permute.xlu1 %3113  ;;  %v3153_v50 = vmul.f32 %v8885_v37, %v7867_v54  ;;  %v3147_v1 = vmul.f32 %v8885_v37, %v7869_v55  ;;  %v3141_v26 = vmul.f32 %v8885_v37, %v7886_v60  ;;  %v3135_v20 = vmul.f32 %v8885_v37, %v7911_v3 }
 0x4e3   : > { %v8899_v2 = vsel %vm2623_vm12, 0.0, %v3114_v4  ;;  %v3152_v59 = vmul.f32 %v8894_v51, %v7876_v57  ;;  %v3146_v11 = vmul.f32 %v8894_v51, %v7898_v63  ;;  %v3140_v41 = vmul.f32 %v8894_v51, %v7932_v12 }
 0x4e4   : > { %3239 = vrot.lane.b32.xlu0 %v8880_v46, %s7613_s11  ;;  %v3116_v18 = vpop.permute.xlu0 %3115  ;;  %v3154_v6 = vmul.f32 %v8899_v2, %v7856_v47  ;;  %v3148_v28 = vmul.f32 %v8899_v2, %v7858_v48  ;;  %v3134_v43 = vmul.f32 %v8894_v51, %v11275_v29  ;;  %v3142_v45 = vmul.f32 %v8899_v2, %v7888_v61 }
 0x4e5   : > { %v8935_v34 = vsel %vm2623_vm12, %v3114_v4, %v3116_v18  ;;  %v3128_v17 = vsel %vm2623_vm12, %v3116_v18, 0.0  ;;  %v3136_v22 = vmul.f32 %v8899_v2, %v7903_v0  ;;  %v3158_v32 = vmul.f32 %v8894_v51, %v11277_v5  ;;  %v11278_v4 = vld [vmem:[#allocation13_spill] sm:$0xff] }
 0x4e6   : > { %3243 = vrot.lane.b32.xlu1 %v8885_v37, %s7613_s11  ;;  %v3156_v44 = vmul.f32 %v3128_v17, %v7867_v54  ;;  %v3155_v30 = vmul.f32 %v8935_v34, %v7876_v57  ;;  %v3150_v31 = vmul.f32 %v3128_v17, %v7869_v55  ;;  %v3149_v39 = vmul.f32 %v8935_v34, %v7898_v63  ;;  %v9027_v18 = vld [vmem:[%s11059_s2 + $0x10] sm:$0xff] }
 0x4e7   : > { %v3144_v24 = vmul.f32 %v3128_v17, %v7886_v60  ;;  %v3143_v52 = vmul.f32 %v8935_v34, %v7932_v12  ;;  %v3138_v25 = vmul.f32 %v3128_v17, %v7911_v3  ;;  %v3137_v36 = vmul.f32 %v8935_v34, %v11275_v29  ;;  %11282 = vst [vmem:[#allocation119_spill] sm:$0xff] %v9027_v18 }
 0x4e8   : > { %3313 = vrot.lane.b32.xlu0 %v8894_v51, %s7610_s24 }
 0x4ea   : > { %3317 = vrot.lane.b32.xlu1 %v8899_v2, %s7610_s24 }
 0x4ec   : > { %3291 = vrot.lane.b32.xlu0 %v3151_v10, %s7611_s29  ;;  %v3160_v10 = vmul.f32 %v8899_v2, %v11278_v4 }
 0x4ee   : > { %3295 = vrot.lane.b32.xlu1 %v3153_v50, %s7611_s29  ;;  %v11279_v50 = vld [vmem:[#allocation16_spill] sm:$0xff] }
 0x4f0   : > { %3265 = vrot.lane.b32.xlu0 %v3145_v23, %s7612_s30  ;;  %v3162_v23 = vmul.f32 %v3128_v17, %v11279_v50 }
 0x4f2   : > { %3269 = vrot.lane.b32.xlu1 %v3147_v1, %s7612_s30  ;;  %v3161_v1 = vmul.f32 %v8935_v34, %v11277_v5 }
 0x4f4   : > { %3241 = vrot.lane.b32.xlu0 %v8894_v51, %s7613_s11 }
 0x4f6   : > { %3245 = vrot.lane.b32.xlu1 %v8899_v2, %s7613_s11 }
 0x4f8   : > { %3219 = vrot.lane.b32.xlu0 %v3139_v13, %s7614_s12  ;;  %v3157_v13 = vmul.f32 %v8880_v46, %v11278_v4 }
 0x4fa   : > { %3223 = vrot.lane.b32.xlu1 %v3141_v26, %s7614_s12  ;;  %v3159_v26 = vmul.f32 %v8885_v37, %v11279_v50 }
 0x4fc   : > { %3193 = vrot.lane.b32.xlu0 %v3133_v16, %s7615_s15  ;;  %v9015_v16 = vld [vmem:[%s11059_s2 + $0x18] sm:$0xff] }
 0x4fd   : > { %11280 = vst [vmem:[#allocation117_spill] sm:$0xff] %v9015_v16 }
 0x4fe   : > { %3197 = vrot.lane.b32.xlu1 %v3135_v20, %s7615_s15  ;;  %v9021_v20 = vld [vmem:[%s11059_s2 + $0x8] sm:$0xff] }
 0x4ff   : > { %11281 = vst [vmem:[#allocation118_spill] sm:$0xff] %v9021_v20 }
 0x500   : > { %3293 = vrot.lane.b32.xlu0 %v3152_v59, %s7611_s29  ;;  %v9039_v59 = vld [vmem:[%s11059_s2 + $0x38] sm:$0xff] }
 0x501   : > { %11284 = vst [vmem:[#allocation121_spill] sm:$0xff] %v9039_v59 }
 0x502   : > { %3319 = vrot.lane.b32.xlu1 %v8935_v34, %s7610_s24 }
 0x504   : > { %3267 = vrot.lane.b32.xlu0 %v3146_v11, %s7612_s30  ;;  %v9045_v11 = vld [vmem:[%s11059_s2 + $0x28] sm:$0xff] }
 0x505   : > { %11285 = vst [vmem:[#allocation122_spill] sm:$0xff] %v9045_v11 }
 0x506   : > { %3297 = vrot.lane.b32.xlu1 %v3154_v6, %s7611_s29  ;;  %v9051_v6 = vld [vmem:[%s11059_s2 + $0x30] sm:$0xff] }
 0x507   : > { %11286 = vst [vmem:[#allocation123_spill] sm:$0xff] %v9051_v6 }
 0x508   : > { %3221 = vrot.lane.b32.xlu0 %v3140_v41, %s7614_s12  ;;  %v9057_v41 = vld [vmem:[%s11059_s2 + $0x20] sm:$0xff] }
 0x509   : > { %11287 = vst [vmem:[#allocation124_spill] sm:$0xff] %v9057_v41 }
 0x50a   : > { %3271 = vrot.lane.b32.xlu1 %v3148_v28, %s7612_s30 }
 0x50c   : > { %3195 = vrot.lane.b32.xlu0 %v3134_v43, %s7615_s15 }
 0x50e   : > { %3247 = vrot.lane.b32.xlu1 %v8935_v34, %s7613_s11 }
 0x510   : > { %3321 = vrot.lane.b32.xlu0 %v3128_v17, %s7610_s24 }
 0x512   : > { %3225 = vrot.lane.b32.xlu1 %v3142_v45, %s7614_s12 }
 0x514   : > { %3249 = vrot.lane.b32.xlu0 %v3128_v17, %s7613_s11 }
 0x516   : > { %3199 = vrot.lane.b32.xlu1 %v3136_v22, %s7615_s15 }
 0x518   : > { %3177 = vrot.lane.b32.xlu0 %v3128_v17, %s11276_s18 }
 0x51a   : > { %3175 = vrot.lane.b32.xlu1 %v8935_v34, %s11276_s18 }
 0x51c   : > { %3301 = vrot.lane.b32.xlu0 %v3156_v44, %s7611_s29 }
 0x51e   : > { %3299 = vrot.lane.b32.xlu1 %v3155_v30, %s7611_s29 }
 0x520   : > { %3275 = vrot.lane.b32.xlu0 %v3150_v31, %s7612_s30 }
 0x522   : > { %3273 = vrot.lane.b32.xlu1 %v3149_v39, %s7612_s30 }
 0x524   : > { %3169 = vrot.lane.b32.xlu0 %v8894_v51, %s11276_s18 }
 0x526   : > { %3173 = vrot.lane.b32.xlu1 %v8899_v2, %s11276_s18 }
 0x528   : > { %3229 = vrot.lane.b32.xlu0 %v3144_v24, %s7614_s12 }
 0x52a   : > { %3227 = vrot.lane.b32.xlu1 %v3143_v52, %s7614_s12 }
 0x52c   : > { %3203 = vrot.lane.b32.xlu0 %v3138_v25, %s7615_s15 }
 0x52e   : > { %3201 = vrot.lane.b32.xlu1 %v3137_v36, %s7615_s15 }
 0x530   : > { %3167 = vrot.lane.b32.xlu0 %v8880_v46, %s11276_s18 }
 0x532   : > { %3171 = vrot.lane.b32.xlu1 %v8885_v37, %s11276_s18  ;;  %v9033_v37 = vld [vmem:[%s11059_s2] sm:$0xff] }
 0x533   : > { %11283 = vst [vmem:[#allocation120_spill] sm:$0xff] %v9033_v37 }
 0x534   : > { %3339 = vrot.lane.b32.xlu0 %v3158_v32, %s11223_s23 }
 0x536   : > { %3343 = vrot.lane.b32.xlu1 %v3160_v10, %s11223_s23 }
 0x538   : > { %3347 = vrot.lane.b32.xlu0 %v3162_v23, %s11223_s23 }
 0x53a   : > { %3345 = vrot.lane.b32.xlu1 %v3161_v1, %s11223_s23 }
 0x53c   : > { %3337 = vrot.lane.b32.xlu0 %v3157_v13, %s11223_s23 }
 0x53e   : > { %3341 = vrot.lane.b32.xlu1 %v3159_v26, %s11223_s23 }
 0x540   : > { %849 = vperm.xlu0 %7003, %v9015_v16  }
 0x542   : > { %839 = vperm.xlu1 %7004, %v9021_v20  }
 0x544   : > { %844 = vperm.xlu0 %7003, %v9027_v18  }
 0x546   : > { %834 = vperm.xlu1 %7004, %v9033_v37  }
 0x548   : > { %869 = vperm.xlu0 %7003, %v9039_v59  }
 0x54a   : > { %859 = vperm.xlu1 %7004, %v9045_v11  }
 0x54c   : > { %864 = vperm.xlu0 %7003, %v9051_v6  }
 0x54e   : > { %854 = vperm.xlu1 %7004, %v9057_v41  }
 0x552   : > { %v3312_v28 = vpop.permute.xlu0 %3311 }
 0x554   : > { %v3316_v43 = vpop.permute.xlu1 %3315 }
 0x556   : > { %v9061_v17 = vpop.permute.xlu0 %3239 }
 0x558   : > { %v9063_v45 = vpop.permute.xlu1 %3243 }
 0x55a   : > { %v3314_v22 = vpop.permute.xlu0 %3313 }
 0x55b   : > { %v3324_v4 = vsel %vm2314_vm13, %v3314_v22, %v3316_v43  ;;  %v3323_v29 = vsel %vm2314_vm13, %v3312_v28, %v3314_v22 }
 0x55c   : > { %v3318_v44 = vpop.permute.xlu1 %3317 }
 0x55e   : > { %v3292_v30 = vpop.permute.xlu0 %3291 }
 0x560   : > { %v3296_v31 = vpop.permute.xlu1 %3295 }
 0x562   : > { %v3266_v39 = vpop.permute.xlu0 %3265 }
 0x564   : > { %v3270_v24 = vpop.permute.xlu1 %3269 }
 0x566   : > { %v3242_v52 = vpop.permute.xlu0 %3241 }
 0x568   : > { %v3246_v25 = vpop.permute.xlu1 %3245 }
 0x56a   : > { %v9065_v36 = vpop.permute.xlu0 %3219 }
 0x56c   : > { %v9067_v32 = vpop.permute.xlu1 %3223 }
 0x56e   : > { %v9069_v10 = vpop.permute.xlu0 %3193 }
 0x570   : > { %v9071_v23 = vpop.permute.xlu1 %3197 }
 0x572   : > { %v3294_v1 = vpop.permute.xlu0 %3293 }
 0x574   : > { %v3320_v13 = vpop.permute.xlu1 %3319 }
 0x575   : > { %v3325_v50 = vsel %vm2314_vm13, %v3318_v44, %v3320_v13 }
 0x576   : > { %v3268_v26 = vpop.permute.xlu0 %3267 }
 0x578   : > { %v3298_v41 = vpop.permute.xlu1 %3297 }
 0x57a   : > { %v3222_v6 = vpop.permute.xlu0 %3221 }
 0x57c   : > { %v3272_v11 = vpop.permute.xlu1 %3271 }
 0x57e   : > { %v9073_v59 = vpop.permute.xlu0 %3195 }
 0x580   : > { %v3248_v37 = vpop.permute.xlu1 %3247 }
 0x582   : > { %v3322_v18 = vpop.permute.xlu0 %3321 }
 0x583   : > { %v3326_v20 = vsel %vm2314_vm13, %v3320_v13, %v3322_v18 }
 0x584   : > { %3357 = vmatprep.subr.mxu0 %v3326_v20  ;;  %v3226_v16 = vpop.permute.xlu1 %3225 }
 0x585   : > { %3358 = vmatpush1.msra.mxu0 %v3325_v50  ;;  %v3304_v50 = vsel %vm2307_vm7, %v3294_v1, %v3296_v31 }
 0x586   : > { %v3250_v5 = vpop.permute.xlu0 %3249  ;;  %3359 = vmatprep.subr.mxu0 %v3324_v4  ;;  %v3303_v4 = vsel %vm2307_vm7, %v3292_v30, %v3294_v1  ;;  %v3253_v30 = vsel %vm2282_vm14, %v3246_v25, %v3248_v37 }
 0x587   : > { %3360 = vmatpush1.msra.mxu0 %v3323_v29 }
 0x588   : > { %v3200_v12 = vpop.permute.xlu1 %3199 }
 0x58a   : > { %v3178_v63 = vpop.permute.xlu0 %3177 }
 0x58c   : > { %v3176_v57 = vpop.permute.xlu1 %3175 }
 0x58e   : > { %v3302_v3 = vpop.permute.xlu0 %3301 }
 0x590   : > { %v3300_v0 = vpop.permute.xlu1 %3299 }
 0x591   : > { %v3306_v60 = vsel %vm2307_vm7, %v3300_v0, %v3302_v3  ;;  %v3305_v20 = vsel %vm2307_vm7, %v3298_v41, %v3300_v0  ;;  %v3278_v3 = vsel %vm2293_vm8, %v3268_v26, %v3270_v24  ;;  %v3254_v41 = vsel %vm2282_vm14, %v3248_v37, %v3250_v5 }
 0x592   : > { %v3276_v18 = vpop.permute.xlu0 %3275  ;;  %3361 = vmatprep.subr.mxu0 %v3306_v60  ;;  %v3277_v60 = vsel %vm2293_vm8, %v3266_v39, %v3268_v26  ;;  %v3251_v24 = vsel %vm2282_vm14, %v9061_v17, %v3242_v52  ;;  %v3232_v5 = vsel %vm2275_vm9, %v3222_v6, %v9067_v32  ;;  %v3205_v32 = vsel %vm2261_vm10, %v9069_v10, %v9073_v59 }
 0x593   : > { %3362 = vmatpush1.msra.mxu0 %v3305_v20 }
 0x594   : > { %3363 = vmatprep.subr.mxu0 %v3304_v50  ;;  %v3274_v43 = vpop.permute.xlu1 %3273  ;;  %v3132_v50 = vmul.f32 %v8935_v34, %v7701_v9 }
 0x595   : > { %3364 = vmatpush1.msra.mxu0 %v3303_v4  ;;  %v3280_v29 = vsel %vm2293_vm8, %v3274_v43, %v3276_v18  ;;  %v3279_v28 = vsel %vm2293_vm8, %v3272_v11, %v3274_v43  ;;  %v3252_v11 = vsel %vm2282_vm14, %v3242_v52, %v9063_v45  ;;  %v3231_v45 = vsel %vm2275_vm9, %v9065_v36, %v3222_v6 }
 0x596   : > { %v3170_v22 = vpop.permute.xlu0 %3169  ;;  %3365 = vmatprep.subr.mxu0 %v3280_v29  ;;  %v3182_v6 = vsel %vm2250_vm15, %v3176_v57, %v3178_v63  ;;  %v3129_v63 = vmul.f32 %v8880_v46, %v7696_v7 }
 0x597   : > { %3366 = vmatpush1.msra.mxu0 %v3279_v28 }
 0x598   : > { %3367 = vmatprep.subr.mxu0 %v3278_v3  ;;  %v3174_v0 = vpop.permute.xlu1 %3173 }
 0x599   : > { %3368 = vmatpush1.msra.mxu0 %v3277_v60  ;;  %v3181_v36 = vsel %vm2250_vm15, %v3174_v0, %v3176_v57  ;;  %v3130_v57 = vmul.f32 %v8894_v51, %v7701_v9  ;;  %v11293_v60 = vld [vmem:[#allocation20_spill] sm:$0xff] }
 0x59a   : > { %v3230_v44 = vpop.permute.xlu0 %3229  ;;  %3369 = vmatprep.subr.mxu0 %v3254_v41 }
 0x59b   : > { %3370 = vmatpush1.msra.mxu0 %v3253_v30 }
 0x59c   : > { %3371 = vmatprep.subr.mxu0 %v3252_v11  ;;  %v3228_v31 = vpop.permute.xlu1 %3227 }
 0x59d   : > { %3372 = vmatpush1.msra.mxu0 %v3251_v24  ;;  %v3234_v1 = vsel %vm2275_vm9, %v3228_v31, %v3230_v44  ;;  %v3233_v39 = vsel %vm2275_vm9, %v3226_v16, %v3228_v31  ;;  %v3206_v16 = vsel %vm2261_vm10, %v9073_v59, %v9071_v23  ;;  %v3131_v59 = vmul.f32 %v8899_v2, %v7696_v7  ;;  %v11294_v24 = vld [vmem:[#allocation21_spill] sm:$0xff] }
 0x59e   : > { %v3204_v13 = vpop.permute.xlu0 %3203  ;;  %3373 = vmatprep.subr.mxu0 %v3234_v1 }
 0x59f   : > { %3374 = vmatpush1.msra.mxu0 %v3233_v39 }
 0x5a0   : > { %3375 = vmatprep.subr.mxu0 %v3232_v5  ;;  %v3202_v37 = vpop.permute.xlu1 %3201 }
 0x5a1   : > { %3376 = vmatpush1.msra.mxu0 %v3231_v45  ;;  %v3208_v25 = vsel %vm2261_vm10, %v3202_v37, %v3204_v13  ;;  %v3207_v17 = vsel %vm2261_vm10, %v3200_v12, %v3202_v37  ;;  %v11295_v45 = vld [vmem:[#allocation22_spill] sm:$0xff] }
 0x5a2   : > { %v3168_v52 = vpop.permute.xlu0 %3167  ;;  %3377 = vmatprep.subr.mxu0 %v3208_v25 }
 0x5a3   : > { %3378 = vmatpush1.msra.mxu0 %v3207_v17  ;;  %v3179_v18 = vsel %vm2250_vm15, %v3168_v52, %v3170_v22 }
 0x5a4   : > { %3379 = vmatprep.subr.mxu0 %v3206_v16  ;;  %v3172_v26 = vpop.permute.xlu1 %3171 }
 0x5a5   : > { %3380 = vmatpush1.msra.mxu0 %v3205_v32  ;;  %v3180_v12 = vsel %vm2250_vm15, %v3170_v22, %v3172_v26  ;;  %v11296_v26 = vld [vmem:[#allocation23_spill] sm:$0xff] }
 0x5a6   : > { %v3340_v20 = vpop.permute.xlu0 %3339  ;;  %3381 = vmatprep.subr.mxu0 %v3182_v6 }
 0x5a7   : > { %3382 = vmatpush1.msra.mxu0 %v3181_v36 }
 0x5a8   : > { %3383 = vmatprep.subr.mxu0 %v3180_v12  ;;  %v3344_v23 = vpop.permute.xlu1 %3343  ;;  %v11297_v12 = vld [vmem:[#allocation24_spill] sm:$0xff] }
 0x5a9   : > { %3384 = vmatpush1.msra.mxu0 %v3179_v18 }
 0x5aa   : > { %v3348_v10 = vpop.permute.xlu0 %3347  ;;  %3385 = vmatprep.subr.mxu0 %v3132_v50 }
 0x5ab   : > { %3386 = vmatpush1.msra.mxu0 %v3131_v59 }
 0x5ac   : > { %3387 = vmatprep.subr.mxu0 %v3130_v57  ;;  %v3346_v43 = vpop.permute.xlu1 %3345  ;;  %v11298_v57 = vld [vmem:[#allocation25_spill] sm:$0xff] }
 0x5ad   : > { %3388 = vmatpush1.msra.mxu0 %v3129_v63  ;;  %v3352_v4 = vsel %vm2325_vm11, %v3346_v43, %v3348_v10  ;;  %v3351_v34 = vsel %vm2325_vm11, %v3344_v23, %v3346_v43 }
 0x5ae   : > { %3417 = vmatprep.subr.mxu0 %v3352_v4  ;;  %v3338_v29 = vpop.permute.xlu0 %3337 }
 0x5af   : > { %3418 = vmatpush2.msra.mxu0 %v3351_v34  ;;  %v3349_v22 = vsel %vm2325_vm11, %v3338_v29, %v3340_v20 }
 0x5b0   : > { %v3342_v2 = vpop.permute.xlu1 %3341 }
 0x5b1   : > { %v3350_v28 = vsel %vm2325_vm11, %v3340_v20, %v3342_v2  ;;  %v11299_v2 = vld [vmem:[#allocation26_spill] sm:$0xff] }
 0x5b2   : > { %3419 = vmatprep.subr.mxu0 %v3350_v28 }
 0x5b3   : > { %3420 = vmatpush2.msra.mxu0 %v3349_v22 }
 0x5b4   : > { %3422 = vmatmul.mubr.f32.vlgmr.msra.gmra.mxu0 %v8649_v58  ;;  %v11288_v58 = vld [vmem:[#allocation71_spill] sm:$0xff] }
 0x5b5   : > { %6779 = vmatprep.mubr.msk.f32.mxu0 %vm2203_vm5, %v8655_v38  ;;  %v11289_v38 = vld [vmem:[#allocation73_spill] sm:$0xff] }
 0x5b8   : > { %3428 = vmatmul.mubr.f32.gmra.mxu0 %v8664_v33  ;;  %v11290_v33 = vld [vmem:[#allocation74_spill] sm:$0xff] }
 0x5b9   : > { %6780 = vmatprep.mubr.msk.f32.mxu0 %vm2203_vm5, %v8672_v14  ;;  %v9148_v14 = vld [vmem:[%s11060_s3 + $0x8] sm:$0xff] }
 0x5bc   : > { %3434 = vmatmul.mubr.f32.gmra.mxu0 %v8679_v15 }
 0x5bd   : > { %6781 = vmatprep.mubr.msk.f32.mxu0 %vm2203_vm5, %v8687_v42  ;;  %v840_v15 = vpop.permute.xlu1 %839 }
 0x5be   : > { %v975_v41 = vadd.f32 %v11293_v60, %v840_v15  ;;  %v977_v1 = vadd.f32 %v11294_v24, %v840_v15 }
 0x5c0   : > { %3440 = vmatmul.mubr.f32.gmra.mxu0 %v8694_v40  ;;  %v850_v40 = vpop.permute.xlu0 %849 }
 0x5c1   : > { %6782 = vmatprep.mubr.msk.f32.mxu0 %vm2203_vm5, %v8702_v35  ;;  %v835_v42 = vpop.permute.xlu1 %834  ;;  %v11291_v35 = vld [vmem:[#allocation18_spill] sm:$0xff]  ;;  %v987_v18 = vadd.f32 %v11297_v12, %v850_v40  ;;  %v989_v63 = vadd.f32 %v11298_v57, %v850_v40 }
 0x5c4   : > { %3446 = vmatmul.mubr.f32.gmra.mxu0 %v8709_v62  ;;  %v969_v62 = vadd.f32 %v11291_v35, %v835_v42  ;;  %v845_v44 = vpop.permute.xlu0 %844 }
 0x5c5   : > { %6783 = vmatprep.mubr.msk.f32.mxu0 %vm2203_vm5, %v8717_v8  ;;  %v860_v39 = vpop.permute.xlu1 %859  ;;  %v981_v25 = vadd.f32 %v11295_v45, %v845_v44  ;;  %v983_v32 = vadd.f32 %v11296_v26, %v845_v44  ;;  %v11304_v26 = vld [vmem:[#allocation31_spill] sm:$0xff] }
 0x5c8   : > { %3452 = vmatmul.mubr.f32.gmra.mxu0 %v8724_v27  ;;  %v870_v4 = vpop.permute.xlu0 %869 }
 0x5c9   : > { %6784 = vmatprep.mubr.msk.f32.mxu0 %vm2203_vm5, %v8732_v56  ;;  %v11292_v56 = vld [vmem:[#allocation19_spill] sm:$0xff]  ;;  %v855_v23 = vpop.permute.xlu1 %854 }
 0x5ca   : > { %v971_v46 = vadd.f32 %v11292_v56, %v835_v42  ;;  %v993_v28 = vadd.f32 %v11299_v2, %v855_v23 }
 0x5cc   : > { %3458 = vmatmul.mubr.f32.gmra.mxu0 %v11288_v58  ;;  %v865_v60 = vpop.permute.xlu0 %864 }
 0x5cd   : > { %6785 = vmatprep.mubr.msk.f32.mxu0 %vm2203_vm5, %v11289_v38 }
 0x5d0   : > { %3464 = vmatmul.mubr.f32.gmra.mxu0 %v11290_v33  ;;  %v11300_v33 = vld [vmem:[#allocation27_spill] sm:$0xff] }
 0x5d1   : > { %6818 = vmatprep.mubr.msk.f32.mxu0 %vm2203_vm5, %v9148_v14  ;;  %v995_v15 = vadd.f32 %v11300_v33, %v855_v23 }
 0x674   : > { %v3423_v8 = vpop.f32.mrf.mxu0 }
 0x675   : > { %v3470_v27 = vadd.f32 %v3423_v8, %v969_v62  ;;  %v11301_v62 = vld [vmem:[#allocation28_spill] sm:$0xff] }
 0x676   : > { %v3425_v51 = vpop.f32.mrf.mxu0  ;;  %v999_v8 = vadd.f32 %v11301_v62, %v860_v39 }
 0x677   : > { %v6786_v3 = vmul.f32 -1.442695, %v3470_v27  ;;  %v3471_v0 = vadd.f32 %v3425_v51, %v971_v46 }
 0x678   : > { %v3429_v30 = vpop.f32.mrf.mxu0 }
 0x679   : > { %7133 = vpow2.f32 %v6786_v3  ;;  %v6787_v11 = vmul.f32 -1.442695, %v3471_v0  ;;  %v3472_v31 = vadd.f32 %v3429_v30, %v975_v41  ;;  %v11302_v3 = vld [vmem:[#allocation29_spill] sm:$0xff] }
 0x67a   : > { %v3431_v13 = vpop.f32.mrf.mxu0  ;;  %v1001_v0 = vadd.f32 %v11302_v3, %v860_v39 }
 0x67b   : > { %7135 = vpow2.f32 %v6787_v11  ;;  %v6788_v5 = vmul.f32 -1.442695, %v3472_v31  ;;  %v3473_v37 = vadd.f32 %v3431_v13, %v977_v1 }
 0x67c   : > { %v3435_v17 = vpop.f32.mrf.mxu0 }
 0x67d   : > { %7137 = vpow2.f32 %v6788_v5  ;;  %v6789_v52 = vmul.f32 -1.442695, %v3473_v37  ;;  %v3474_v16 = vadd.f32 %v3435_v17, %v981_v25  ;;  %v11303_v37 = vld [vmem:[#allocation30_spill] sm:$0xff] }
 0x67e   : > { %v3437_v6 = vpop.f32.mrf.mxu0  ;;  %v1005_v45 = vadd.f32 %v11303_v37, %v865_v60 }
 0x67f   : > { %7139 = vpow2.f32 %v6789_v52  ;;  %v6790_v36 = vmul.f32 -1.442695, %v3474_v16  ;;  %v3475_v20 = vadd.f32 %v3437_v6, %v983_v32  ;;  %v1007_v32 = vadd.f32 %v11304_v26, %v865_v60 }
 0x680   : > { %v3441_v50 = vpop.f32.mrf.mxu0 }
 0x681   : > { %7141 = vpow2.f32 %v6790_v36  ;;  %v6791_v59 = vmul.f32 -1.442695, %v3475_v20  ;;  %v3476_v10 = vadd.f32 %v3441_v50, %v987_v18  ;;  %v11305_v18 = vld [vmem:[#allocation32_spill] sm:$0xff] }
 0x682   : > { %v3443_v43 = vpop.f32.mrf.mxu0  ;;  %v1011_v23 = vadd.f32 %v11305_v18, %v870_v4 }
 0x683   : > { %7143 = vpow2.f32 %v6791_v59  ;;  %v6792_v34 = vmul.f32 -1.442695, %v3476_v10  ;;  %v3477_v29 = vadd.f32 %v3443_v43, %v989_v63  ;;  %v11306_v63 = vld [vmem:[#allocation33_spill] sm:$0xff] }
 0x684   : > { %v3447_v22 = vpop.f32.mrf.mxu0  ;;  %v1013_v43 = vadd.f32 %v11306_v63, %v870_v4 }
 0x685   : > { %7145 = vpow2.f32 %v6792_v34  ;;  %v6793_v58 = vmul.f32 -1.442695, %v3477_v29  ;;  %v3478_v38 = vadd.f32 %v3447_v22, %v993_v28 }
 0x686   : > { %v7134_v42 = vpop.eup %7133  ;;  %v3449_v35 = vpop.f32.mrf.mxu0 }
 0x687   : > { %v3522_v27 = vadd.f32 1.0, %v7134_v42  ;;  %7147 = vpow2.f32 %v6793_v58  ;;  %v6794_v40 = vmul.f32 -1.442695, %v3478_v38  ;;  %v3479_v56 = vadd.f32 %v3449_v35, %v995_v15 }
 0x688   : > { %v7136_v46 = vpop.eup %7135  ;;  %v3453_v51 = vpop.f32.mrf.mxu0 }
 0x689   : > { %7149 = vrcp.f32 %v3522_v27  ;;  %v3523_v41 = vadd.f32 1.0, %v7136_v46  ;;  %v6795_v44 = vmul.f32 -1.442695, %v3479_v56  ;;  %v3480_v30 = vadd.f32 %v3453_v51, %v999_v8 }
 0x68a   : > { %v7138_v11 = vpop.eup %7137  ;;  %7151 = vpow2.f32 %v6794_v40  ;;  %v3455_v31 = vpop.f32.mrf.mxu0 }
 0x68b   : > { %7153 = vrcp.f32 %v3523_v41  ;;  %v3524_v24 = vadd.f32 1.0, %v7138_v11  ;;  %v6796_v1 = vmul.f32 -1.442695, %v3480_v30  ;;  %v3481_v13 = vadd.f32 %v3455_v31, %v1001_v0 }
 0x68c   : > { %v7140_v5 = vpop.eup %7139  ;;  %7155 = vpow2.f32 %v6795_v44  ;;  %v3459_v25 = vpop.f32.mrf.mxu0 }
 0x68d   : > { %7157 = vrcp.f32 %v3524_v24  ;;  %v3525_v17 = vadd.f32 1.0, %v7140_v5  ;;  %v6797_v39 = vmul.f32 -1.442695, %v3481_v13  ;;  %v3482_v16 = vadd.f32 %v3459_v25, %v1005_v45 }
 0x68e   : > { %v7142_v52 = vpop.eup %7141  ;;  %7159 = vpow2.f32 %v6796_v1  ;;  %v3461_v6 = vpop.f32.mrf.mxu0 }
 0x68f   : > { %7161 = vrcp.f32 %v3525_v17  ;;  %v3526_v36 = vadd.f32 1.0, %v7142_v52  ;;  %v3483_v12 = vadd.f32 %v3461_v6, %v1007_v32 }
 0x690   : > { %v7144_v20 = vpop.eup %7143  ;;  %7163 = vpow2.f32 %v6797_v39  ;;  %v3465_v50 = vpop.f32.mrf.mxu0 }
 0x691   : > { %7165 = vrcp.f32 %v3526_v36  ;;  %v3527_v59 = vadd.f32 1.0, %v7144_v20  ;;  %v3484_v57 = vadd.f32 %v3465_v50, %v1011_v23 }
 0x692   : > { %v7146_v10 = vpop.eup %7145  ;;  %7167 = vtanh.f32 %v3482_v16  ;;  %v3467_v34 = vpop.f32.mrf.mxu0 }
 0x693   : > { %7169 = vrcp.f32 %v3527_v59  ;;  %v3528_v29 = vadd.f32 1.0, %v7146_v10  ;;  %v3485_v28 = vadd.f32 %v3467_v34, %v1013_v43 }
 0x694   : > { %v7148_v2 = vpop.eup %7147  ;;  %7171 = vtanh.f32 %v3483_v12 }
 0x695   : > { %7173 = vrcp.f32 %v3528_v29  ;;  %v3529_v22 = vadd.f32 1.0, %v7148_v2 }
 0x696   : > { %v7150_v58 = vpop.eup %7149  ;;  %7175 = vtanh.f32 %v3484_v57 }
 0x697   : > { %v7152_v38 = vpop.eup %7151  ;;  %7177 = vrcp.f32 %v3529_v22 }
 0x698   : > { %v7154_v33 = vpop.eup %7153  ;;  %7179 = vtanh.f32 %v3485_v28  ;;  %v3530_v40 = vadd.f32 1.0, %v7152_v38 }
 0x699   : > { %v7156_v15 = vpop.eup %7155 }
 0x69a   : > { %v7158_v42 = vpop.eup %7157  ;;  %v3531_v0 = vadd.f32 1.0, %v7156_v15  ;;  %7181 = vrcp.f32 %v3530_v40  ;;  %v11311_v40 = vld [vmem:[#allocation10_spill] sm:$0xff] }
 0x69b   : > { %v7160_v35 = vpop.eup %7159 }
 0x69c   : > { %v7162_v62 = vpop.eup %7161  ;;  %v3532_v31 = vadd.f32 1.0, %v7160_v35 }
 0x69d   : > { %v7164_v8 = vpop.eup %7163 }
 0x69e   : > { %v7166_v4 = vpop.eup %7165  ;;  %v3533_v37 = vadd.f32 1.0, %v7164_v8  ;;  %v11310_v8 = vld [vmem:[#allocation7_spill] sm:$0xff] }
 0x69f   : > { %v7168_v27 = vpop.eup %7167  ;;  %v3562_v56 = vmul.f32 %v7166_v4, %v8861_v53 }
 0x6a0   : > { %v7170_v46 = vpop.eup %7169  ;;  %v3566_v51 = vmul.f32 %v7168_v27, %v7150_v58  ;;  %v11307_v58 = vld [vmem:[#allocation8_spill] sm:$0xff] }
 0x6a1   : > { %v7172_v3 = vpop.eup %7171  ;;  %v3563_v60 = vmul.f32 %v7170_v46, %v8864_v21 }
 0x6a2   : > { %v7174_v41 = vpop.eup %7173  ;;  %v9170_v44 = vadd.f32 %v3566_v51, %v3562_v56  ;;  %v3567_v30 = vmul.f32 %v7172_v3, %v7154_v33  ;;  %v11308_v33 = vld [vmem:[#allocation11_spill] sm:$0xff] }
 0x6a3   : > { %v7176_v11 = vpop.eup %7175  ;;  %v3564_v24 = vmul.f32 %v7174_v41, %v8868_v49  ;;  %v11312_v51 = vld [vmem:[#allocation15_spill] sm:$0xff] }
 0x6a4   : > { %v7178_v1 = vpop.eup %7177  ;;  %7183 = vtanh.f32 %v9170_v44  ;;  %v9174_v13 = vadd.f32 %v3567_v30, %v3563_v60  ;;  %v3568_v53 = vmul.f32 %v7176_v11, %v7158_v42  ;;  %v11309_v42 = vld [vmem:[#allocation12_spill] sm:$0xff]  ;;  %v11313_v60 = vld [vmem:[#allocation14_spill] sm:$0xff] }
 0x6a5   : > { %v7180_v5 = vpop.eup %7179  ;;  %7185 = vrcp.f32 %v3531_v0  ;;  %v3565_v21 = vmul.f32 %v7178_v1, %v8872_v19 }
 0x6a6   : > { %7187 = vtanh.f32 %v9174_v13  ;;  %v9178_v45 = vadd.f32 %v3568_v53, %v3564_v24  ;;  %v3569_v25 = vmul.f32 %v7180_v5, %v7162_v62 }
 0x6a7   : > { %7189 = vrcp.f32 %v3532_v31  ;;  %v7182_v17 = vpop.eup %7181 }
 0x6a8   : > { %7191 = vtanh.f32 %v9178_v45  ;;  %v9181_v49 = vadd.f32 %v3569_v25, %v3565_v21 }
 0x6a9   : > { %7193 = vrcp.f32 %v3533_v37 }
 0x6aa   : > { %7195 = vtanh.f32 %v9181_v49 }
 0x6b1   : > { %v7184_v39 = vpop.eup %7183 }
 0x6b2   : > { %v7186_v52 = vpop.eup %7185  ;;  %v3578_v16 = vmul.f32 %v7184_v39, %v7182_v17  ;;  %v11314_v39 = vld [vmem:[#allocation17_spill] sm:$0xff] }
 0x6b3   : > { %v7188_v26 = vpop.eup %7187 }
 0x6b4   : > { %v7190_v32 = vpop.eup %7189  ;;  %3602 = vrot.lane.b32.xlu1 %v3578_v16, %s7619_s20  ;;  %v3579_v19 = vmul.f32 %v7188_v26, %v7186_v52  ;;  %v11315_v16 = vld [vmem:[#allocation13_spill] sm:$0xff] }
 0x6b5   : > { %v7192_v6 = vpop.eup %7191 }
 0x6b6   : > { %v7194_v36 = vpop.eup %7193  ;;  %3604 = vrot.lane.b32.xlu0 %v3579_v19, %s7619_s20  ;;  %v3580_v20 = vmul.f32 %v7192_v6, %v7190_v32  ;;  %v11316_v32 = vld [vmem:[#allocation16_spill] sm:$0xff] }
 0x6b7   : > { %v7196_v12 = vpop.eup %7195 }
 0x6b8   : > { %3606 = vrot.lane.b32.xlu1 %v3580_v20, %s7619_s20  ;;  %v3581_v18 = vmul.f32 %v7196_v12, %v7194_v36  ;;  %v11317_v12 = vld [vmem:[#allocation117_spill] sm:$0xff] }
 0x6ba   : > { %3608 = vrot.lane.b32.xlu0 %v3581_v18, %s7619_s20  ;;  %v11318_v18 = vld [vmem:[#allocation118_spill] sm:$0xff] }
 0x726   : > { %v3603_v23 = vpop.permute.xlu1 %3602 }
 0x727   : > { %v9189_v50 = vsel %vm2623_vm12, 0.0, %v3603_v23 }
 0x728   : > { %v3605_v59 = vpop.permute.xlu0 %3604  ;;  %3804 = vrot.lane.b32.xlu0 %v9189_v50, %s7610_s24  ;;  %v3644_v34 = vmul.f32 %v9189_v50, %v7856_v47  ;;  %v3638_v2 = vmul.f32 %v9189_v50, %v7858_v48  ;;  %v3632_v22 = vmul.f32 %v9189_v50, %v7888_v61  ;;  %v3626_v15 = vmul.f32 %v9189_v50, %v11308_v33 }
 0x729   : > { %v9194_v10 = vsel %vm2623_vm12, %v3605_v59, 0.0  ;;  %v9203_v63 = vsel %vm2623_vm12, %v3603_v23, %v3605_v59  ;;  %v3650_v36 = vmul.f32 %v9189_v50, %v11315_v16  ;;  %v11319_v23 = vld [vmem:[#allocation119_spill] sm:$0xff]  ;;  %v11320_v59 = vld [vmem:[#allocation120_spill] sm:$0xff] }
 0x72a   : > { %3808 = vrot.lane.b32.xlu1 %v9194_v10, %s7610_s24  ;;  %v3607_v57 = vpop.permute.xlu1 %3606  ;;  %v3646_v29 = vmul.f32 %v9194_v10, %v7867_v54  ;;  %v3640_v28 = vmul.f32 %v9194_v10, %v7869_v55  ;;  %v3634_v38 = vmul.f32 %v9194_v10, %v11307_v58  ;;  %v3628_v35 = vmul.f32 %v9194_v10, %v11309_v42 }
 0x72b   : > { %v9208_v43 = vsel %vm2623_vm12, 0.0, %v3607_v57  ;;  %v3645_v4 = vmul.f32 %v9203_v63, %v11310_v8  ;;  %v3639_v56 = vmul.f32 %v9203_v63, %v11311_v40  ;;  %v3633_v3 = vmul.f32 %v9203_v63, %v11312_v51 }
 0x72c   : > { %3732 = vrot.lane.b32.xlu0 %v9189_v50, %s7613_s11  ;;  %v3609_v62 = vpop.permute.xlu0 %3608  ;;  %v3647_v46 = vmul.f32 %v9208_v43, %v7856_v47  ;;  %v3641_v0 = vmul.f32 %v9208_v43, %v7858_v48  ;;  %v3627_v41 = vmul.f32 %v9203_v63, %v11313_v60  ;;  %v3635_v11 = vmul.f32 %v9208_v43, %v7888_v61 }
 0x72d   : > { %v9244_v27 = vsel %vm2623_vm12, %v3607_v57, %v3609_v62  ;;  %v3621_v30 = vsel %vm2623_vm12, %v3609_v62, 0.0  ;;  %v3629_v31 = vmul.f32 %v9208_v43, %v11308_v33  ;;  %v3651_v52 = vmul.f32 %v9203_v63, %v11314_v39  ;;  %v11321_v57 = vld [vmem:[#allocation121_spill] sm:$0xff] }
 0x72e   : > { %3736 = vrot.lane.b32.xlu1 %v9194_v10, %s7613_s11  ;;  %v3649_v24 = vmul.f32 %v3621_v30, %v7867_v54  ;;  %v3648_v1 = vmul.f32 %v9244_v27, %v11310_v8  ;;  %v3643_v53 = vmul.f32 %v3621_v30, %v7869_v55  ;;  %v3642_v5 = vmul.f32 %v9244_v27, %v11311_v40 }
 0x72f   : > { %v3637_v37 = vmul.f32 %v3621_v30, %v11307_v58  ;;  %v3636_v21 = vmul.f32 %v9244_v27, %v11312_v51  ;;  %v3631_v25 = vmul.f32 %v3621_v30, %v11309_v42  ;;  %v3630_v17 = vmul.f32 %v9244_v27, %v11313_v60 }
 0x730   : > { %3806 = vrot.lane.b32.xlu0 %v9203_v63, %s7610_s24  ;;  %v3653_v26 = vmul.f32 %v9208_v43, %v11315_v16  ;;  %v3655_v19 = vmul.f32 %v3621_v30, %v11316_v32  ;;  %v3654_v6 = vmul.f32 %v9244_v27, %v11314_v39  ;;  %v3652_v20 = vmul.f32 %v9194_v10, %v11316_v32 }
 0x732   : > { %3810 = vrot.lane.b32.xlu1 %v9208_v43, %s7610_s24 }
 0x734   : > { %3784 = vrot.lane.b32.xlu0 %v3644_v34, %s7611_s29  ;;  %v11322_v34 = vld [vmem:[#allocation122_spill] sm:$0xff] }
 0x736   : > { %3788 = vrot.lane.b32.xlu1 %v3646_v29, %s7611_s29  ;;  %v11323_v29 = vld [vmem:[#allocation123_spill] sm:$0xff] }
 0x738   : > { %3758 = vrot.lane.b32.xlu0 %v3638_v2, %s7612_s30  ;;  %v11324_v2 = vld [vmem:[#allocation124_spill] sm:$0xff] }
 0x73a   : > { %3762 = vrot.lane.b32.xlu1 %v3640_v28, %s7612_s30 }
 0x73c   : > { %3734 = vrot.lane.b32.xlu0 %v9203_v63, %s7613_s11 }
 0x73e   : > { %3738 = vrot.lane.b32.xlu1 %v9208_v43, %s7613_s11 }
 0x740   : > { %3712 = vrot.lane.b32.xlu0 %v3632_v22, %s7614_s12 }
 0x742   : > { %3716 = vrot.lane.b32.xlu1 %v3634_v38, %s7614_s12 }
 0x744   : > { %3686 = vrot.lane.b32.xlu0 %v3626_v15, %s7615_s15 }
 0x746   : > { %3690 = vrot.lane.b32.xlu1 %v3628_v35, %s7615_s15 }
 0x748   : > { %3786 = vrot.lane.b32.xlu0 %v3645_v4, %s7611_s29 }
 0x74a   : > { %3812 = vrot.lane.b32.xlu1 %v9244_v27, %s7610_s24 }
 0x74c   : > { %3760 = vrot.lane.b32.xlu0 %v3639_v56, %s7612_s30 }
 0x74e   : > { %3790 = vrot.lane.b32.xlu1 %v3647_v46, %s7611_s29 }
 0x750   : > { %3714 = vrot.lane.b32.xlu0 %v3633_v3, %s7614_s12 }
 0x752   : > { %3764 = vrot.lane.b32.xlu1 %v3641_v0, %s7612_s30 }
 0x754   : > { %3688 = vrot.lane.b32.xlu0 %v3627_v41, %s7615_s15 }
 0x756   : > { %3740 = vrot.lane.b32.xlu1 %v9244_v27, %s7613_s11 }
 0x758   : > { %3814 = vrot.lane.b32.xlu0 %v3621_v30, %s7610_s24 }
 0x75a   : > { %3718 = vrot.lane.b32.xlu1 %v3635_v11, %s7614_s12 }
 0x75c   : > { %3742 = vrot.lane.b32.xlu0 %v3621_v30, %s7613_s11 }
 0x75e   : > { %3692 = vrot.lane.b32.xlu1 %v3629_v31, %s7615_s15 }
 0x760   : > { %3670 = vrot.lane.b32.xlu0 %v3621_v30, %s11276_s18 }
 0x762   : > { %3668 = vrot.lane.b32.xlu1 %v9244_v27, %s11276_s18 }
 0x764   : > { %3794 = vrot.lane.b32.xlu0 %v3649_v24, %s7611_s29 }
 0x766   : > { %3792 = vrot.lane.b32.xlu1 %v3648_v1, %s7611_s29 }
 0x768   : > { %3768 = vrot.lane.b32.xlu0 %v3643_v53, %s7612_s30 }
 0x76a   : > { %3766 = vrot.lane.b32.xlu1 %v3642_v5, %s7612_s30 }
 0x76c   : > { %3662 = vrot.lane.b32.xlu0 %v9203_v63, %s11276_s18 }
 0x76e   : > { %3666 = vrot.lane.b32.xlu1 %v9208_v43, %s11276_s18 }
 0x770   : > { %3722 = vrot.lane.b32.xlu0 %v3637_v37, %s7614_s12 }
 0x772   : > { %3720 = vrot.lane.b32.xlu1 %v3636_v21, %s7614_s12 }
 0x774   : > { %3696 = vrot.lane.b32.xlu0 %v3631_v25, %s7615_s15 }
 0x776   : > { %3694 = vrot.lane.b32.xlu1 %v3630_v17, %s7615_s15 }
 0x778   : > { %3660 = vrot.lane.b32.xlu0 %v9189_v50, %s11276_s18 }
 0x77a   : > { %3664 = vrot.lane.b32.xlu1 %v9194_v10, %s11276_s18 }
 0x77c   : > { %3832 = vrot.lane.b32.xlu0 %v3651_v52, %s11223_s23 }
 0x77e   : > { %3836 = vrot.lane.b32.xlu1 %v3653_v26, %s11223_s23 }
 0x780   : > { %3840 = vrot.lane.b32.xlu0 %v3655_v19, %s11223_s23 }
 0x782   : > { %3838 = vrot.lane.b32.xlu1 %v3654_v6, %s11223_s23 }
 0x784   : > { %3830 = vrot.lane.b32.xlu0 %v3650_v36, %s11223_s23 }
 0x786   : > { %3834 = vrot.lane.b32.xlu1 %v3652_v20, %s11223_s23 }
 0x788   : > { %1072 = vperm.xlu0 %7003, %v11317_v12  }
 0x78a   : > { %1062 = vperm.xlu1 %7004, %v11318_v18  }
 0x78c   : > { %1067 = vperm.xlu0 %7003, %v11319_v23  }
 0x78e   : > { %1057 = vperm.xlu1 %7004, %v11320_v59  }
 0x790   : > { %1092 = vperm.xlu0 %7003, %v11321_v57  }
 0x792   : > { %1082 = vperm.xlu1 %7004, %v11322_v34  }
 0x794   : > { %1087 = vperm.xlu0 %7003, %v11323_v29  }
 0x796   : > { %1077 = vperm.xlu1 %7004, %v11324_v2  }
 0x79a   : > { %v3805_v28 = vpop.permute.xlu0 %3804 }
 0x79c   : > { %v3809_v10 = vpop.permute.xlu1 %3808 }
 0x79e   : > { %v9330_v22 = vpop.permute.xlu0 %3732 }
 0x7a0   : > { %v9332_v38 = vpop.permute.xlu1 %3736 }
 0x7a2   : > { %v3807_v15 = vpop.permute.xlu0 %3806 }
 0x7a3   : > { %v3817_v36 = vsel %vm2314_vm13, %v3807_v15, %v3809_v10  ;;  %v3816_v12 = vsel %vm2314_vm13, %v3805_v28, %v3807_v15 }
 0x7a4   : > { %v3811_v35 = vpop.permute.xlu1 %3810 }
 0x7a6   : > { %v3785_v62 = vpop.permute.xlu0 %3784 }
 0x7a8   : > { %v3789_v4 = vpop.permute.xlu1 %3788 }
 0x7aa   : > { %v3759_v56 = vpop.permute.xlu0 %3758 }
 0x7ac   : > { %v3763_v46 = vpop.permute.xlu1 %3762 }
 0x7ae   : > { %v3735_v3 = vpop.permute.xlu0 %3734 }
 0x7b0   : > { %v3739_v0 = vpop.permute.xlu1 %3738 }
 0x7b2   : > { %v9334_v41 = vpop.permute.xlu0 %3712 }
 0x7b4   : > { %v9336_v30 = vpop.permute.xlu1 %3716 }
 0x7b6   : > { %v9338_v11 = vpop.permute.xlu0 %3686 }
 0x7b8   : > { %v9340_v31 = vpop.permute.xlu1 %3690 }
 0x7ba   : > { %v3787_v24 = vpop.permute.xlu0 %3786 }
 0x7bc   : > { %v3813_v1 = vpop.permute.xlu1 %3812 }
 0x7bd   : > { %v3818_v6 = vsel %vm2314_vm13, %v3811_v35, %v3813_v1  ;;  %v3797_v35 = vsel %vm2307_vm7, %v3787_v24, %v3789_v4 }
 0x7be   : > { %v3761_v53 = vpop.permute.xlu0 %3760 }
 0x7c0   : > { %v3791_v5 = vpop.permute.xlu1 %3790 }
 0x7c2   : > { %v3715_v37 = vpop.permute.xlu0 %3714 }
 0x7c4   : > { %v3765_v21 = vpop.permute.xlu1 %3764 }
 0x7c6   : > { %v9342_v25 = vpop.permute.xlu0 %3688 }
 0x7c8   : > { %v3741_v17 = vpop.permute.xlu1 %3740 }
 0x7ca   : > { %v3815_v52 = vpop.permute.xlu0 %3814 }
 0x7cb   : > { %v3819_v26 = vsel %vm2314_vm13, %v3813_v1, %v3815_v52  ;;  %v3796_v1 = vsel %vm2307_vm7, %v3785_v62, %v3787_v24  ;;  %v3746_v62 = vsel %vm2282_vm14, %v3739_v0, %v3741_v17  ;;  %v3745_v24 = vsel %vm2282_vm14, %v3735_v3, %v9332_v38 }
 0x7cc   : > { %3850 = vmatprep.subr.mxu1 %v3819_v26  ;;  %v3719_v19 = vpop.permute.xlu1 %3718  ;;  %v3725_v0 = vsel %vm2275_vm9, %v3715_v37, %v9336_v30  ;;  %v3724_v38 = vsel %vm2275_vm9, %v9334_v41, %v3715_v37  ;;  %v3698_v30 = vsel %vm2261_vm10, %v9338_v11, %v9342_v25  ;;  %v3624_v11 = vmul.f32 %v9208_v43, %v7696_v7 }
 0x7cd   : > { %3851 = vmatpush1.msra.mxu1 %v3818_v6  ;;  %v3771_v6 = vsel %vm2293_vm8, %v3761_v53, %v3763_v46  ;;  %v3744_v46 = vsel %vm2282_vm14, %v9330_v22, %v3735_v3 }
 0x7ce   : > { %v3743_v20 = vpop.permute.xlu0 %3742  ;;  %3852 = vmatprep.subr.mxu1 %v3817_v36  ;;  %v3770_v36 = vsel %vm2293_vm8, %v3759_v56, %v3761_v53 }
 0x7cf   : > { %3853 = vmatpush1.msra.mxu1 %v3816_v12  ;;  %v3747_v4 = vsel %vm2282_vm14, %v3741_v17, %v3743_v20 }
 0x7d0   : > { %v3693_v18 = vpop.permute.xlu1 %3692 }
 0x7d2   : > { %v3671_v23 = vpop.permute.xlu0 %3670 }
 0x7d4   : > { %v3669_v59 = vpop.permute.xlu1 %3668 }
 0x7d5   : > { %v3675_v41 = vsel %vm2250_vm15, %v3669_v59, %v3671_v23  ;;  %v3623_v23 = vmul.f32 %v9203_v63, %v7701_v9  ;;  %v9401_v63 = vld [vmem:[%s11060_s3 + $0x18] sm:$0xff] }
 0x7d6   : > { %v3795_v57 = vpop.permute.xlu0 %3794 }
 0x7d8   : > { %v3793_v34 = vpop.permute.xlu1 %3792 }
 0x7d9   : > { %v3799_v29 = vsel %vm2307_vm7, %v3793_v34, %v3795_v57  ;;  %v3798_v2 = vsel %vm2307_vm7, %v3791_v5, %v3793_v34 }
 0x7da   : > { %v3769_v52 = vpop.permute.xlu0 %3768  ;;  %3854 = vmatprep.subr.mxu1 %v3799_v29 }
 0x7db   : > { %3855 = vmatpush1.msra.mxu1 %v3798_v2 }
 0x7dc   : > { %3856 = vmatprep.subr.mxu1 %v3797_v35  ;;  %v3767_v10 = vpop.permute.xlu1 %3766 }
 0x7dd   : > { %3857 = vmatpush1.msra.mxu1 %v3796_v1  ;;  %v3773_v28 = vsel %vm2293_vm8, %v3767_v10, %v3769_v52  ;;  %v3772_v15 = vsel %vm2293_vm8, %v3765_v21, %v3767_v10  ;;  %v3625_v52 = vmul.f32 %v9244_v27, %v7701_v9 }
 0x7de   : > { %v3663_v26 = vpop.permute.xlu0 %3662  ;;  %3858 = vmatprep.subr.mxu1 %v3773_v28 }
 0x7df   : > { %3859 = vmatpush1.msra.mxu1 %v3772_v15 }
 0x7e0   : > { %3860 = vmatprep.subr.mxu1 %v3771_v6  ;;  %v3667_v5 = vpop.permute.xlu1 %3666  ;;  %v9414_v6 = vld [vmem:[%s11060_s3 + $0x28] sm:$0xff] }
 0x7e1   : > { %3861 = vmatpush1.msra.mxu1 %v3770_v36  ;;  %v3674_v37 = vsel %vm2250_vm15, %v3667_v5, %v3669_v59  ;;  %v3622_v59 = vmul.f32 %v9189_v50, %v7696_v7  ;;  %v9395_v50 = vld [vmem:[%s11060_s3] sm:$0xff]  ;;  %v9427_v36 = vld [vmem:[%s11060_s3 + $0x38] sm:$0xff] }
 0x7e2   : > { %v3723_v12 = vpop.permute.xlu0 %3722  ;;  %3862 = vmatprep.subr.mxu1 %v3747_v4  ;;  %v9421_v5 = vld [vmem:[%s11060_s3 + $0x20] sm:$0xff]  ;;  %v9434_v4 = vld [vmem:[%s11060_s3 + $0x30] sm:$0xff] }
 0x7e3   : > { %3863 = vmatpush1.msra.mxu1 %v3746_v62  ;;  %v9447_v62 = vld [vmem:[%s11060_s3 + $0x40] sm:$0xff] }
 0x7e4   : > { %3864 = vmatprep.subr.mxu1 %v3745_v24  ;;  %v3721_v21 = vpop.permute.xlu1 %3720  ;;  %v9453_v24 = vld [vmem:[%s11060_s3 + $0x58] sm:$0xff] }
 0x7e5   : > { %3865 = vmatpush1.msra.mxu1 %v3744_v46  ;;  %v3727_v57 = vsel %vm2275_vm9, %v3721_v21, %v3723_v12  ;;  %v3726_v56 = vsel %vm2275_vm9, %v3719_v19, %v3721_v21  ;;  %v3699_v19 = vsel %vm2261_vm10, %v9342_v25, %v9340_v31  ;;  %v9440_v12 = vld [vmem:[%s11060_s3 + $0x48] sm:$0xff]  ;;  %v9460_v21 = vld [vmem:[%s11060_s3 + $0x50] sm:$0xff] }
 0x7e6   : > { %v3697_v53 = vpop.permute.xlu0 %3696  ;;  %3866 = vmatprep.subr.mxu1 %v3727_v57  ;;  %v9466_v46 = vld [vmem:[%s11060_s3 + $0x68] sm:$0xff]  ;;  %v9473_v57 = vld [vmem:[%s11060_s3 + $0x60] sm:$0xff] }
 0x7e7   : > { %3867 = vmatpush1.msra.mxu1 %v3726_v56  ;;  %v9479_v56 = vld [vmem:[%s11060_s3 + $0x78] sm:$0xff] }
 0x7e8   : > { %3868 = vmatprep.subr.mxu1 %v3725_v0  ;;  %v3695_v17 = vpop.permute.xlu1 %3694 }
 0x7e9   : > { %3869 = vmatpush1.msra.mxu1 %v3724_v38  ;;  %v3701_v20 = vsel %vm2261_vm10, %v3695_v17, %v3697_v53  ;;  %v3700_v22 = vsel %vm2261_vm10, %v3693_v18, %v3695_v17  ;;  %v9486_v53 = vld [vmem:[%s11060_s3 + $0x70] sm:$0xff] }
 0x7ea   : > { %v3661_v3 = vpop.permute.xlu0 %3660  ;;  %3870 = vmatprep.subr.mxu1 %v3701_v20  ;;  %v11325_v20 = vld [vmem:[#allocation66_spill] sm:$0xff] }
 0x7eb   : > { %3871 = vmatpush1.msra.mxu1 %v3700_v22  ;;  %v3672_v2 = vsel %vm2250_vm15, %v3661_v3, %v3663_v26 }
 0x7ec   : > { %3872 = vmatprep.subr.mxu1 %v3699_v19  ;;  %v3665_v34 = vpop.permute.xlu1 %3664 }
 0x7ed   : > { %3873 = vmatpush1.msra.mxu1 %v3698_v30  ;;  %v3673_v18 = vsel %vm2250_vm15, %v3663_v26, %v3665_v34  ;;  %v9408_v26 = vld [vmem:[%s11060_s3 + $0x10] sm:$0xff]  ;;  %v11326_v34 = vld [vmem:[#allocation67_spill] sm:$0xff] }
 0x7ee   : > { %v3833_v29 = vpop.permute.xlu0 %3832  ;;  %3874 = vmatprep.subr.mxu1 %v3675_v41 }
 0x7ef   : > { %3875 = vmatpush1.msra.mxu1 %v3674_v37 }
 0x7f0   : > { %3876 = vmatprep.subr.mxu1 %v3673_v18  ;;  %v3837_v31 = vpop.permute.xlu1 %3836  ;;  %v11327_v18 = vld [vmem:[#allocation68_spill] sm:$0xff] }
 0x7f1   : > { %3877 = vmatpush1.msra.mxu1 %v3672_v2 }
 0x7f2   : > { %v3841_v25 = vpop.permute.xlu0 %3840  ;;  %3878 = vmatprep.subr.mxu1 %v3625_v52 }
 0x7f3   : > { %3879 = vmatpush1.msra.mxu1 %v3624_v11 }
 0x7f4   : > { %3880 = vmatprep.subr.mxu1 %v3623_v23  ;;  %v3839_v35 = vpop.permute.xlu1 %3838 }
 0x7f5   : > { %3881 = vmatpush1.msra.mxu1 %v3622_v59  ;;  %v3845_v10 = vsel %vm2325_vm11, %v3839_v35, %v3841_v25  ;;  %v3844_v27 = vsel %vm2325_vm11, %v3837_v31, %v3839_v35 }
 0x7f6   : > { %3910 = vmatprep.subr.mxu1 %v3845_v10  ;;  %v3831_v1 = vpop.permute.xlu0 %3830 }
 0x7f7   : > { %3911 = vmatpush2.msra.mxu1 %v3844_v27  ;;  %v3842_v15 = vsel %vm2325_vm11, %v3831_v1, %v3833_v29  ;;  %v11329_v1 = vld [vmem:[#allocation70_spill] sm:$0xff] }
 0x7f8   : > { %v3835_v43 = vpop.permute.xlu1 %3834 }
 0x7f9   : > { %v3843_v28 = vsel %vm2325_vm11, %v3833_v29, %v3835_v43 }
 0x7fa   : > { %3912 = vmatprep.subr.mxu1 %v3843_v28 }
 0x7fb   : > { %3913 = vmatpush2.msra.mxu1 %v3842_v15 }
 0x7fc   : > { %3915 = vmatmul.mubr.f32.vlgmr.msra.gmra.mxu1 %v9395_v50 }
 0x7fd   : > { %6799 = vmatprep.mubr.msk.f32.mxu1 %vm2203_vm5, %v9401_v63 }
 0x800   : > { %3921 = vmatmul.mubr.f32.gmra.mxu1 %v9408_v26 }
 0x801   : > { %6800 = vmatprep.mubr.msk.f32.mxu1 %vm2203_vm5, %v9414_v6 }
 0x803   : > { %v1073_v38 = vpop.permute.xlu0 %1072 }
 0x804   : > { %3927 = vmatmul.mubr.f32.gmra.mxu1 %v9421_v5 }
 0x805   : > { %6801 = vmatprep.mubr.msk.f32.mxu1 %vm2203_vm5, %v9427_v36  ;;  %v1063_v0 = vpop.permute.xlu1 %1062 }
 0x806   : > { %v1198_v2 = vadd.f32 %v11327_v18, %v1063_v0 }
 0x807   : > { %v1068_v31 = vpop.permute.xlu0 %1067 }
 0x808   : > { %3933 = vmatmul.mubr.f32.gmra.mxu1 %v9434_v4  ;;  %v1204_v43 = vadd.f32 %v11329_v1, %v1068_v31 }
 0x809   : > { %6802 = vmatprep.mubr.msk.f32.mxu1 %vm2203_vm5, %v9440_v12  ;;  %v1058_v17 = vpop.permute.xlu1 %1057 }
 0x80a   : > { %v1192_v22 = vadd.f32 %v11325_v20, %v1058_v17  ;;  %v1194_v30 = vadd.f32 %v11326_v34, %v1058_v17  ;;  %v11330_v20 = vld [vmem:[#allocation72_spill] sm:$0xff] }
 0x80c   : > { %3939 = vmatmul.mubr.f32.gmra.mxu1 %v9447_v62 }
 0x80d   : > { %6803 = vmatprep.mubr.msk.f32.mxu1 %vm2203_vm5, %v9453_v24  ;;  %v1083_v59 = vpop.permute.xlu1 %1082 }
 0x810   : > { %3945 = vmatmul.mubr.f32.gmra.mxu1 %v9460_v21 }
 0x811   : > { %6804 = vmatprep.mubr.msk.f32.mxu1 %vm2203_vm5, %v9466_v46 }
 0x814   : > { %3951 = vmatmul.mubr.f32.gmra.mxu1 %v9473_v57 }
 0x815   : > { %6805 = vmatprep.mubr.msk.f32.mxu1 %vm2203_vm5, %v9479_v56 }
 0x818   : > { %3957 = vmatmul.mubr.f32.gmra.mxu1 %v9486_v53 }
 0x819   : > { %6838 = vmatprep.mubr.msk.f32.mxu1 %vm2203_vm5, %v9148_v14  ;;  %v11328_v14 = vld [vmem:[#allocation69_spill] sm:$0xff] }
 0x81a   : > { %v1200_v23 = vadd.f32 %v11328_v14, %v1063_v0  ;;  %v1078_v0 = vpop.permute.xlu1 %1077 }
 0x8bc   : > { %v3916_v3 = vpop.f32.mrf.mxu1 }
 0x8bd   : > { %v3963_v19 = vadd.f32 %v3916_v3, %v1192_v22  ;;  %v1206_v22 = vadd.f32 %v11330_v20, %v1068_v31  ;;  %v11335_v20 = vld [vmem:[#allocation79_spill] sm:$0xff] }
 0x8be   : > { %v3918_v41 = vpop.f32.mrf.mxu1 }
 0x8bf   : > { %v6806_v37 = vmul.f32 -1.442695, %v3963_v19  ;;  %v3964_v29 = vadd.f32 %v3918_v41, %v1194_v30  ;;  %v11331_v30 = vld [vmem:[#allocation75_spill] sm:$0xff] }
 0x8c0   : > { %v3922_v52 = vpop.f32.mrf.mxu1  ;;  %v1210_v41 = vadd.f32 %v11331_v30, %v1073_v38 }
 0x8c1   : > { %7197 = vpow2.f32 %v6806_v37  ;;  %v6807_v11 = vmul.f32 -1.442695, %v3964_v29  ;;  %v3965_v25 = vadd.f32 %v3922_v52, %v1198_v2  ;;  %v11332_v2 = vld [vmem:[#allocation76_spill] sm:$0xff] }
 0x8c2   : > { %v3924_v35 = vpop.f32.mrf.mxu1  ;;  %v1212_v52 = vadd.f32 %v11332_v2, %v1073_v38 }
 0x8c3   : > { %7199 = vpow2.f32 %v6807_v11  ;;  %v6808_v10 = vmul.f32 -1.442695, %v3965_v25  ;;  %v3966_v27 = vadd.f32 %v3924_v35, %v1200_v23  ;;  %v1093_v25 = vpop.permute.xlu0 %1092  ;;  %v11333_v35 = vld [vmem:[#allocation77_spill] sm:$0xff] }
 0x8c4   : > { %v3928_v28 = vpop.f32.mrf.mxu1  ;;  %v1216_v31 = vadd.f32 %v11333_v35, %v1078_v0 }
 0x8c5   : > { %7201 = vpow2.f32 %v6808_v10  ;;  %v6809_v15 = vmul.f32 -1.442695, %v3966_v27  ;;  %v3967_v17 = vadd.f32 %v3928_v28, %v1204_v43  ;;  %v11334_v43 = vld [vmem:[#allocation78_spill] sm:$0xff] }
 0x8c6   : > { %v3930_v3 = vpop.f32.mrf.mxu1  ;;  %v1218_v28 = vadd.f32 %v11334_v43, %v1078_v0 }
 0x8c7   : > { %7203 = vpow2.f32 %v6809_v15  ;;  %v6810_v19 = vmul.f32 -1.442695, %v3967_v17  ;;  %v3968_v34 = vadd.f32 %v3930_v3, %v1206_v22  ;;  %v1222_v22 = vadd.f32 %v11335_v20, %v1083_v59 }
 0x8c8   : > { %v3934_v37 = vpop.f32.mrf.mxu1 }
 0x8c9   : > { %7205 = vpow2.f32 %v6810_v19  ;;  %v6811_v29 = vmul.f32 -1.442695, %v3968_v34  ;;  %v3969_v18 = vadd.f32 %v3934_v37, %v1210_v41  ;;  %v11336_v41 = vld [vmem:[#allocation80_spill] sm:$0xff] }
 0x8ca   : > { %v3936_v11 = vpop.f32.mrf.mxu1  ;;  %v1224_v37 = vadd.f32 %v11336_v41, %v1083_v59 }
 0x8cb   : > { %7207 = vpow2.f32 %v6811_v29  ;;  %v6812_v14 = vmul.f32 -1.442695, %v3969_v18  ;;  %v3970_v23 = vadd.f32 %v3936_v11, %v1212_v52  ;;  %v1088_v29 = vpop.permute.xlu0 %1087 }
 0x8cc   : > { %v3940_v10 = vpop.f32.mrf.mxu1 }
 0x8cd   : > { %7209 = vpow2.f32 %v6812_v14  ;;  %v6813_v27 = vmul.f32 -1.442695, %v3970_v23  ;;  %v3971_v1 = vadd.f32 %v3940_v10, %v1216_v31  ;;  %v11337_v10 = vld [vmem:[#allocation81_spill] sm:$0xff] }
 0x8ce   : > { %v7198_v15 = vpop.eup %7197  ;;  %v3942_v17 = vpop.f32.mrf.mxu1 }
 0x8cf   : > { %v4015_v3 = vadd.f32 1.0, %v7198_v15  ;;  %7211 = vpow2.f32 %v6813_v27  ;;  %v6814_v38 = vmul.f32 -1.442695, %v3971_v1  ;;  %v3972_v19 = vadd.f32 %v3942_v17, %v1218_v28  ;;  %v11338_v17 = vld [vmem:[#allocation82_spill] sm:$0xff] }
 0x8d0   : > { %v7200_v34 = vpop.eup %7199  ;;  %v3946_v30 = vpop.f32.mrf.mxu1  ;;  %v1228_v27 = vadd.f32 %v11337_v10, %v1088_v29  ;;  %v1230_v20 = vadd.f32 %v11338_v17, %v1088_v29 }
 0x8d1   : > { %7213 = vrcp.f32 %v4015_v3  ;;  %v4016_v18 = vadd.f32 1.0, %v7200_v34  ;;  %v6815_v2 = vmul.f32 -1.442695, %v3972_v19  ;;  %v3973_v52 = vadd.f32 %v3946_v30, %v1222_v22  ;;  %v11339_v34 = vld [vmem:[#allocation83_spill] sm:$0xff] }
 0x8d2   : > { %v7202_v11 = vpop.eup %7201  ;;  %7215 = vpow2.f32 %v6814_v38  ;;  %v3948_v0 = vpop.f32.mrf.mxu1  ;;  %v1234_v30 = vadd.f32 %v11339_v34, %v1093_v25 }
 0x8d3   : > { %7217 = vrcp.f32 %v4016_v18  ;;  %v4017_v14 = vadd.f32 1.0, %v7202_v11  ;;  %v6816_v23 = vmul.f32 -1.442695, %v3973_v52  ;;  %v3974_v35 = vadd.f32 %v3948_v0, %v1224_v37  ;;  %v11340_v52 = vld [vmem:[#allocation84_spill] sm:$0xff] }
 0x8d4   : > { %v7204_v31 = vpop.eup %7203  ;;  %7219 = vpow2.f32 %v6815_v2  ;;  %v3952_v1 = vpop.f32.mrf.mxu1  ;;  %v1236_v11 = vadd.f32 %v11340_v52, %v1093_v25 }
 0x8d5   : > { %7221 = vrcp.f32 %v4017_v14  ;;  %v4018_v43 = vadd.f32 1.0, %v7204_v31  ;;  %v6817_v59 = vmul.f32 -1.442695, %v3974_v35  ;;  %v3975_v15 = vadd.f32 %v3952_v1, %v1228_v27 }
 0x8d6   : > { %v7206_v28 = vpop.eup %7205  ;;  %7223 = vpow2.f32 %v6816_v23  ;;  %v3954_v22 = vpop.f32.mrf.mxu1 }
 0x8d7   : > { %7225 = vrcp.f32 %v4018_v43  ;;  %v4019_v3 = vadd.f32 1.0, %v7206_v28  ;;  %v3976_v19 = vadd.f32 %v3954_v22, %v1230_v20 }
 0x8d8   : > { %v7208_v38 = vpop.eup %7207  ;;  %7227 = vpow2.f32 %v6817_v59  ;;  %v3958_v41 = vpop.f32.mrf.mxu1 }
 0x8d9   : > { %7229 = vrcp.f32 %v4019_v3  ;;  %v4020_v37 = vadd.f32 1.0, %v7208_v38  ;;  %v3977_v2 = vadd.f32 %v3958_v41, %v1234_v30 }
 0x8da   : > { %v7210_v18 = vpop.eup %7209  ;;  %7231 = vtanh.f32 %v3975_v15  ;;  %v3960_v0 = vpop.f32.mrf.mxu1 }
 0x8db   : > { %7233 = vrcp.f32 %v4020_v37  ;;  %v4021_v14 = vadd.f32 1.0, %v7210_v18  ;;  %v3978_v23 = vadd.f32 %v3960_v0, %v1236_v11 }
 0x8dc   : > { %v7212_v29 = vpop.eup %7211  ;;  %7235 = vtanh.f32 %v3976_v19 }
 0x8dd   : > { %7237 = vrcp.f32 %v4021_v14  ;;  %v4022_v35 = vadd.f32 1.0, %v7212_v29 }
 0x8de   : > { %v7214_v31 = vpop.eup %7213  ;;  %7239 = vtanh.f32 %v3977_v2 }
 0x8df   : > { %v7216_v10 = vpop.eup %7215  ;;  %7241 = vrcp.f32 %v4022_v35 }
 0x8e0   : > { %v7218_v27 = vpop.eup %7217  ;;  %7243 = vtanh.f32 %v3978_v23  ;;  %v4023_v20 = vadd.f32 1.0, %v7216_v10 }
 0x8e1   : > { %v7220_v1 = vpop.eup %7219 }
 0x8e2   : > { %v7222_v43 = vpop.eup %7221  ;;  %v4024_v34 = vadd.f32 1.0, %v7220_v1  ;;  %7245 = vrcp.f32 %v4023_v20 }
 0x8e3   : > { %v7224_v59 = vpop.eup %7223 }
 0x8e4   : > { %v7226_v28 = vpop.eup %7225  ;;  %v4025_v52 = vadd.f32 1.0, %v7224_v59 }
 0x8e5   : > { %v7228_v15 = vpop.eup %7227 }
 0x8e6   : > { %v7230_v25 = vpop.eup %7229  ;;  %v4026_v23 = vadd.f32 1.0, %v7228_v15 }
 0x8e7   : > { %v7232_v17 = vpop.eup %7231  ;;  %v4055_v22 = vmul.f32 %v7230_v25, %v9170_v44 }
 0x8e8   : > { %v7234_v3 = vpop.eup %7233  ;;  %v4059_v38 = vmul.f32 %v7232_v17, %v7214_v31 }
 0x8e9   : > { %v7236_v19 = vpop.eup %7235  ;;  %v4056_v30 = vmul.f32 %v7234_v3, %v9174_v13 }
 0x8ea   : > { %v7238_v41 = vpop.eup %7237  ;;  %v9509_v37 = vadd.f32 %v4059_v38, %v4055_v22  ;;  %v4060_v18 = vmul.f32 %v7236_v19, %v7218_v27 }
 0x8eb   : > { %v7240_v2 = vpop.eup %7239  ;;  %v4057_v11 = vmul.f32 %v7238_v41, %v9178_v45 }
 0x8ec   : > { %v7242_v0 = vpop.eup %7241  ;;  %7247 = vtanh.f32 %v9509_v37  ;;  %v9513_v14 = vadd.f32 %v4060_v18, %v4056_v30  ;;  %v4061_v44 = vmul.f32 %v7240_v2, %v7222_v43 }
 0x8ed   : > { %v7244_v29 = vpop.eup %7243  ;;  %7249 = vrcp.f32 %v4024_v34  ;;  %v4058_v13 = vmul.f32 %v7242_v0, %v9181_v49 }
 0x8ee   : > { %7251 = vtanh.f32 %v9513_v14  ;;  %v9517_v35 = vadd.f32 %v4061_v44, %v4057_v11  ;;  %v4062_v31 = vmul.f32 %v7244_v29, %v7226_v28 }
 0x8ef   : > { %7253 = vrcp.f32 %v4025_v52  ;;  %v7246_v10 = vpop.eup %7245 }
 0x8f0   : > { %7255 = vtanh.f32 %v9517_v35  ;;  %v9520_v45 = vadd.f32 %v4062_v31, %v4058_v13 }
 0x8f1   : > { %7257 = vrcp.f32 %v4026_v23 }
 0x8f2   : > { %7259 = vtanh.f32 %v9520_v45 }
 0x8f9   : > { %v7248_v27 = vpop.eup %7247 }
 0x8fa   : > { %v7250_v1 = vpop.eup %7249  ;;  %v4071_v43 = vmul.f32 %v7248_v27, %v7246_v10 }
 0x8fb   : > { %v7252_v59 = vpop.eup %7251 }
 0x8fc   : > { %v7254_v15 = vpop.eup %7253  ;;  %4095 = vrot.lane.b32.xlu1 %v4071_v43, %s7619_s20  ;;  %v4072_v49 = vmul.f32 %v7252_v59, %v7250_v1 }
 0x8fd   : > { %v7256_v25 = vpop.eup %7255 }
 0x8fe   : > { %v7258_v17 = vpop.eup %7257  ;;  %4097 = vrot.lane.b32.xlu0 %v4072_v49, %s7619_s20  ;;  %v4073_v28 = vmul.f32 %v7256_v25, %v7254_v15 }
 0x8ff   : > { %v7260_v20 = vpop.eup %7259 }
 0x900   : > { %4099 = vrot.lane.b32.xlu1 %v4073_v28, %s7619_s20  ;;  %v4074_v22 = vmul.f32 %v7260_v20, %v7258_v17 }
 0x902   : > { %4101 = vrot.lane.b32.xlu0 %v4074_v22, %s7619_s20 }
 0x96e   : > { %v4096_v3 = vpop.permute.xlu1 %4095 }
 0x96f   : > { %v9528_v38 = vsel %vm2623_vm12, 0.0, %v4096_v3 }
 0x970   : > { %v4098_v19 = vpop.permute.xlu0 %4097  ;;  %4297 = vrot.lane.b32.xlu0 %v9528_v38, %s7610_s24  ;;  %v4137_v2 = vmul.f32 %v9528_v38, %v7856_v47  ;;  %v4131_v11 = vmul.f32 %v9528_v38, %v7858_v48  ;;  %v4125_v44 = vmul.f32 %v9528_v38, %v7888_v61  ;;  %v4119_v23 = vmul.f32 %v9528_v38, %v11308_v33 }
 0x971   : > { %v9533_v34 = vsel %vm2623_vm12, %v4098_v19, 0.0  ;;  %v9542_v41 = vsel %vm2623_vm12, %v4096_v3, %v4098_v19 }
 0x972   : > { %4301 = vrot.lane.b32.xlu1 %v9533_v34, %s7610_s24  ;;  %v4100_v30 = vpop.permute.xlu1 %4099  ;;  %v4139_v52 = vmul.f32 %v9533_v34, %v7867_v54  ;;  %v4133_v0 = vmul.f32 %v9533_v34, %v7869_v55  ;;  %v4127_v29 = vmul.f32 %v9533_v34, %v11307_v58  ;;  %v4121_v13 = vmul.f32 %v9533_v34, %v11309_v42 }
 0x973   : > { %v9547_v18 = vsel %vm2623_vm12, 0.0, %v4100_v30  ;;  %v4138_v10 = vmul.f32 %v9542_v41, %v11310_v8  ;;  %v4132_v1 = vmul.f32 %v9542_v41, %v11311_v40  ;;  %v4126_v59 = vmul.f32 %v9542_v41, %v11312_v51 }
 0x974   : > { %4225 = vrot.lane.b32.xlu0 %v9528_v38, %s7613_s11  ;;  %v4102_v31 = vpop.permute.xlu0 %4101  ;;  %v4140_v43 = vmul.f32 %v9547_v18, %v7856_v47  ;;  %v4134_v15 = vmul.f32 %v9547_v18, %v7858_v48  ;;  %v4120_v49 = vmul.f32 %v9542_v41, %v11313_v60  ;;  %v4128_v17 = vmul.f32 %v9547_v18, %v7888_v61 }
 0x975   : > { %v9583_v27 = vsel %vm2623_vm12, %v4100_v30, %v4102_v31  ;;  %v4114_v25 = vsel %vm2623_vm12, %v4102_v31, 0.0  ;;  %v4122_v28 = vmul.f32 %v9547_v18, %v11308_v33  ;;  %v4145_v31 = vmul.f32 %v9533_v34, %v11316_v32 }
 0x976   : > { %4229 = vrot.lane.b32.xlu1 %v9533_v34, %s7613_s11  ;;  %v4142_v20 = vmul.f32 %v4114_v25, %v7867_v54  ;;  %v4141_v22 = vmul.f32 %v9583_v27, %v11310_v8  ;;  %v4136_v3 = vmul.f32 %v4114_v25, %v7869_v55  ;;  %v4135_v19 = vmul.f32 %v9583_v27, %v11311_v40 }
 0x977   : > { %v4130_v30 = vmul.f32 %v4114_v25, %v11307_v58 }
 0x978   : > { %4299 = vrot.lane.b32.xlu0 %v9542_v41, %s7610_s24 }
 0x97a   : > { %4303 = vrot.lane.b32.xlu1 %v9547_v18, %s7610_s24 }
 0x97c   : > { %4277 = vrot.lane.b32.xlu0 %v4137_v2, %s7611_s29  ;;  %v4129_v2 = vmul.f32 %v9583_v27, %v11312_v51 }
 0x97e   : > { %4281 = vrot.lane.b32.xlu1 %v4139_v52, %s7611_s29  ;;  %v4124_v52 = vmul.f32 %v4114_v25, %v11309_v42 }
 0x980   : > { %4251 = vrot.lane.b32.xlu0 %v4131_v11, %s7612_s30  ;;  %v4123_v11 = vmul.f32 %v9583_v27, %v11313_v60 }
 0x982   : > { %4255 = vrot.lane.b32.xlu1 %v4133_v0, %s7612_s30  ;;  %v4144_v0 = vmul.f32 %v9542_v41, %v11314_v39 }
 0x984   : > { %4227 = vrot.lane.b32.xlu0 %v9542_v41, %s7613_s11 }
 0x986   : > { %4231 = vrot.lane.b32.xlu1 %v9547_v18, %s7613_s11 }
 0x988   : > { %4205 = vrot.lane.b32.xlu0 %v4125_v44, %s7614_s12  ;;  %v4146_v44 = vmul.f32 %v9547_v18, %v11315_v16 }
 0x98a   : > { %4209 = vrot.lane.b32.xlu1 %v4127_v29, %s7614_s12  ;;  %v4148_v29 = vmul.f32 %v4114_v25, %v11316_v32 }
 0x98c   : > { %4179 = vrot.lane.b32.xlu0 %v4119_v23, %s7615_s15  ;;  %v4147_v23 = vmul.f32 %v9583_v27, %v11314_v39 }
 0x98e   : > { %4183 = vrot.lane.b32.xlu1 %v4121_v13, %s7615_s15  ;;  %v4143_v13 = vmul.f32 %v9528_v38, %v11315_v16 }
 0x990   : > { %4279 = vrot.lane.b32.xlu0 %v4138_v10, %s7611_s29  ;;  %v9663_v10 = vld [vmem:[%s11059_s2 + $0x18] sm:$0xff] }
 0x991   : > { %11341 = vst [vmem:[#allocation71_spill] sm:$0xff] %v9663_v10 }
 0x992   : > { %4305 = vrot.lane.b32.xlu1 %v9583_v27, %s7610_s24 }
 0x994   : > { %4253 = vrot.lane.b32.xlu0 %v4132_v1, %s7612_s30  ;;  %v9669_v1 = vld [vmem:[%s11059_s2 + $0x8] sm:$0xff] }
 0x995   : > { %11342 = vst [vmem:[#allocation73_spill] sm:$0xff] %v9669_v1 }
 0x996   : > { %4283 = vrot.lane.b32.xlu1 %v4140_v43, %s7611_s29  ;;  %v9675_v43 = vld [vmem:[%s11059_s2 + $0x10] sm:$0xff] }
 0x997   : > { %11343 = vst [vmem:[#allocation74_spill] sm:$0xff] %v9675_v43 }
 0x998   : > { %4207 = vrot.lane.b32.xlu0 %v4126_v59, %s7614_s12  ;;  %v9687_v59 = vld [vmem:[%s11059_s2 + $0x38] sm:$0xff] }
 0x999   : > { %11345 = vst [vmem:[#allocation19_spill] sm:$0xff] %v9687_v59 }
 0x99a   : > { %4257 = vrot.lane.b32.xlu1 %v4134_v15, %s7612_s30  ;;  %v9693_v15 = vld [vmem:[%s11059_s2 + $0x28] sm:$0xff] }
 0x99b   : > { %11346 = vst [vmem:[#allocation20_spill] sm:$0xff] %v9693_v15 }
 0x99c   : > { %4181 = vrot.lane.b32.xlu0 %v4120_v49, %s7615_s15  ;;  %v9699_v49 = vld [vmem:[%s11059_s2 + $0x30] sm:$0xff] }
 0x99d   : > { %11347 = vst [vmem:[#allocation21_spill] sm:$0xff] %v9699_v49 }
 0x99e   : > { %4233 = vrot.lane.b32.xlu1 %v9583_v27, %s7613_s11 }
 0x9a0   : > { %4307 = vrot.lane.b32.xlu0 %v4114_v25, %s7610_s24 }
 0x9a2   : > { %4211 = vrot.lane.b32.xlu1 %v4128_v17, %s7614_s12 }
 0x9a4   : > { %4235 = vrot.lane.b32.xlu0 %v4114_v25, %s7613_s11 }
 0x9a6   : > { %4185 = vrot.lane.b32.xlu1 %v4122_v28, %s7615_s15 }
 0x9a8   : > { %4163 = vrot.lane.b32.xlu0 %v4114_v25, %s11276_s18  ;;  %v9705_v25 = vld [vmem:[%s11059_s2 + $0x20] sm:$0xff] }
 0x9a9   : > { %11348 = vst [vmem:[#allocation22_spill] sm:$0xff] %v9705_v25 }
 0x9aa   : > { %4161 = vrot.lane.b32.xlu1 %v9583_v27, %s11276_s18 }
 0x9ac   : > { %4287 = vrot.lane.b32.xlu0 %v4142_v20, %s7611_s29 }
 0x9ae   : > { %4285 = vrot.lane.b32.xlu1 %v4141_v22, %s7611_s29 }
 0x9b0   : > { %4261 = vrot.lane.b32.xlu0 %v4136_v3, %s7612_s30 }
 0x9b2   : > { %4259 = vrot.lane.b32.xlu1 %v4135_v19, %s7612_s30 }
 0x9b4   : > { %4155 = vrot.lane.b32.xlu0 %v9542_v41, %s11276_s18 }
 0x9b6   : > { %4159 = vrot.lane.b32.xlu1 %v9547_v18, %s11276_s18 }
 0x9b8   : > { %4215 = vrot.lane.b32.xlu0 %v4130_v30, %s7614_s12 }
 0x9ba   : > { %4213 = vrot.lane.b32.xlu1 %v4129_v2, %s7614_s12 }
 0x9bc   : > { %4189 = vrot.lane.b32.xlu0 %v4124_v52, %s7615_s15 }
 0x9be   : > { %4187 = vrot.lane.b32.xlu1 %v4123_v11, %s7615_s15 }
 0x9c0   : > { %4153 = vrot.lane.b32.xlu0 %v9528_v38, %s11276_s18 }
 0x9c2   : > { %4157 = vrot.lane.b32.xlu1 %v9533_v34, %s11276_s18  ;;  %v9681_v34 = vld [vmem:[%s11059_s2] sm:$0xff] }
 0x9c3   : > { %11344 = vst [vmem:[#allocation18_spill] sm:$0xff] %v9681_v34 }
 0x9c4   : > { %4325 = vrot.lane.b32.xlu0 %v4144_v0, %s11223_s23 }
 0x9c6   : > { %4329 = vrot.lane.b32.xlu1 %v4146_v44, %s11223_s23 }
 0x9c8   : > { %4333 = vrot.lane.b32.xlu0 %v4148_v29, %s11223_s23 }
 0x9ca   : > { %4331 = vrot.lane.b32.xlu1 %v4147_v23, %s11223_s23 }
 0x9cc   : > { %4323 = vrot.lane.b32.xlu0 %v4143_v13, %s11223_s23 }
 0x9ce   : > { %4327 = vrot.lane.b32.xlu1 %v4145_v31, %s11223_s23 }
 0x9d0   : > { %1295 = vperm.xlu0 %7003, %v9663_v10  }
 0x9d2   : > { %1285 = vperm.xlu1 %7004, %v9669_v1  }
 0x9d4   : > { %1290 = vperm.xlu0 %7003, %v9675_v43  }
 0x9d6   : > { %1280 = vperm.xlu1 %7004, %v9681_v34  }
 0x9d8   : > { %1315 = vperm.xlu0 %7003, %v9687_v59  }
 0x9da   : > { %1305 = vperm.xlu1 %7004, %v9693_v15  }
 0x9dc   : > { %1310 = vperm.xlu0 %7003, %v9699_v49  }
 0x9de   : > { %1300 = vperm.xlu1 %7004, %v9705_v25  }
 0x9e2   : > { %v4298_v17 = vpop.permute.xlu0 %4297 }
 0x9e4   : > { %v4302_v28 = vpop.permute.xlu1 %4301 }
 0x9e6   : > { %v9709_v20 = vpop.permute.xlu0 %4225 }
 0x9e8   : > { %v9711_v22 = vpop.permute.xlu1 %4229 }
 0x9ea   : > { %v4300_v3 = vpop.permute.xlu0 %4299 }
 0x9eb   : > { %v4310_v51 = vsel %vm2314_vm13, %v4300_v3, %v4302_v28  ;;  %v4309_v8 = vsel %vm2314_vm13, %v4298_v17, %v4300_v3 }
 0x9ec   : > { %v4304_v19 = vpop.permute.xlu1 %4303 }
 0x9ee   : > { %v4278_v30 = vpop.permute.xlu0 %4277 }
 0x9f0   : > { %v4282_v2 = vpop.permute.xlu1 %4281 }
 0x9f2   : > { %v4252_v52 = vpop.permute.xlu0 %4251 }
 0x9f4   : > { %v4256_v11 = vpop.permute.xlu1 %4255 }
 0x9f6   : > { %v4228_v0 = vpop.permute.xlu0 %4227 }
 0x9f8   : > { %v4232_v44 = vpop.permute.xlu1 %4231 }
 0x9fa   : > { %v9713_v29 = vpop.permute.xlu0 %4205 }
 0x9fc   : > { %v9715_v23 = vpop.permute.xlu1 %4209 }
 0x9fe   : > { %v9717_v13 = vpop.permute.xlu0 %4179 }
 0xa00   : > { %v9719_v31 = vpop.permute.xlu1 %4183 }
 0xa02   : > { %v4280_v25 = vpop.permute.xlu0 %4279 }
 0xa04   : > { %v4306_v49 = vpop.permute.xlu1 %4305 }
 0xa05   : > { %v4311_v60 = vsel %vm2314_vm13, %v4304_v19, %v4306_v49 }
 0xa06   : > { %v4254_v15 = vpop.permute.xlu0 %4253 }
 0xa08   : > { %v4284_v59 = vpop.permute.xlu1 %4283 }
 0xa0a   : > { %v4208_v34 = vpop.permute.xlu0 %4207 }
 0xa0c   : > { %v4258_v43 = vpop.permute.xlu1 %4257 }
 0xa0e   : > { %v9721_v1 = vpop.permute.xlu0 %4181 }
 0xa10   : > { %v4234_v10 = vpop.permute.xlu1 %4233 }
 0xa12   : > { %v4308_v32 = vpop.permute.xlu0 %4307 }
 0xa13   : > { %v4312_v16 = vsel %vm2314_vm13, %v4306_v49, %v4308_v32 }
 0xa14   : > { %4343 = vmatprep.subr.mxu0 %v4312_v16  ;;  %v4212_v39 = vpop.permute.xlu1 %4211 }
 0xa15   : > { %4344 = vmatpush1.msra.mxu0 %v4311_v60  ;;  %v4290_v60 = vsel %vm2307_vm7, %v4280_v25, %v4282_v2 }
 0xa16   : > { %v4236_v40 = vpop.permute.xlu0 %4235  ;;  %4345 = vmatprep.subr.mxu0 %v4310_v51  ;;  %v4289_v51 = vsel %vm2307_vm7, %v4278_v30, %v4280_v25  ;;  %v4239_v25 = vsel %vm2282_vm14, %v4232_v44, %v4234_v10  ;;  %v4237_v30 = vsel %vm2282_vm14, %v9709_v20, %v4228_v0 }
 0xa17   : > { %4346 = vmatpush1.msra.mxu0 %v4309_v8 }
 0xa18   : > { %v4186_v42 = vpop.permute.xlu1 %4185 }
 0xa1a   : > { %v4164_v33 = vpop.permute.xlu0 %4163 }
 0xa1c   : > { %v4162_v58 = vpop.permute.xlu1 %4161 }
 0xa1e   : > { %v4288_v61 = vpop.permute.xlu0 %4287 }
 0xa20   : > { %v4286_v55 = vpop.permute.xlu1 %4285 }
 0xa21   : > { %v4292_v48 = vsel %vm2307_vm7, %v4286_v55, %v4288_v61  ;;  %v4291_v16 = vsel %vm2307_vm7, %v4284_v59, %v4286_v55  ;;  %v4264_v61 = vsel %vm2293_vm8, %v4254_v15, %v4256_v11  ;;  %v4240_v59 = vsel %vm2282_vm14, %v4234_v10, %v4236_v40 }
 0xa22   : > { %v4262_v32 = vpop.permute.xlu0 %4261  ;;  %4347 = vmatprep.subr.mxu0 %v4292_v48  ;;  %v4263_v48 = vsel %vm2293_vm8, %v4252_v52, %v4254_v15  ;;  %v4218_v40 = vsel %vm2275_vm9, %v4208_v34, %v9715_v23  ;;  %v4191_v23 = vsel %vm2261_vm10, %v9717_v13, %v9721_v1 }
 0xa23   : > { %4348 = vmatpush1.msra.mxu0 %v4291_v16 }
 0xa24   : > { %4349 = vmatprep.subr.mxu0 %v4290_v60  ;;  %v4260_v49 = vpop.permute.xlu1 %4259  ;;  %v4118_v60 = vmul.f32 %v9583_v27, %v7701_v9 }
 0xa25   : > { %4350 = vmatpush1.msra.mxu0 %v4289_v51  ;;  %v4266_v8 = vsel %vm2293_vm8, %v4260_v49, %v4262_v32  ;;  %v4265_v17 = vsel %vm2293_vm8, %v4258_v43, %v4260_v49  ;;  %v4238_v43 = vsel %vm2282_vm14, %v4228_v0, %v9711_v22  ;;  %v4217_v22 = vsel %vm2275_vm9, %v9713_v29, %v4208_v34 }
 0xa26   : > { %v4156_v28 = vpop.permute.xlu0 %4155  ;;  %4351 = vmatprep.subr.mxu0 %v4266_v8  ;;  %v4168_v34 = vsel %vm2250_vm15, %v4162_v58, %v4164_v33  ;;  %v4115_v33 = vmul.f32 %v9528_v38, %v7696_v7 }
 0xa27   : > { %4352 = vmatpush1.msra.mxu0 %v4265_v17 }
 0xa28   : > { %4353 = vmatprep.subr.mxu0 %v4264_v61  ;;  %v4160_v55 = vpop.permute.xlu1 %4159 }
 0xa29   : > { %4354 = vmatpush1.msra.mxu0 %v4263_v48  ;;  %v4167_v29 = vsel %vm2250_vm15, %v4160_v55, %v4162_v58  ;;  %v4116_v58 = vmul.f32 %v9542_v41, %v7701_v9  ;;  %v11352_v48 = vld [vmem:[#allocation37_spill] sm:$0xff] }
 0xa2a   : > { %v4216_v3 = vpop.permute.xlu0 %4215  ;;  %4355 = vmatprep.subr.mxu0 %v4240_v59 }
 0xa2b   : > { %4356 = vmatpush1.msra.mxu0 %v4239_v25 }
 0xa2c   : > { %4357 = vmatprep.subr.mxu0 %v4238_v43  ;;  %v4214_v19 = vpop.permute.xlu1 %4213 }
 0xa2d   : > { %4358 = vmatpush1.msra.mxu0 %v4237_v30  ;;  %v4220_v2 = vsel %vm2275_vm9, %v4214_v19, %v4216_v3  ;;  %v4219_v15 = vsel %vm2275_vm9, %v4212_v39, %v4214_v19  ;;  %v4192_v39 = vsel %vm2261_vm10, %v9721_v1, %v9719_v31  ;;  %v4117_v1 = vmul.f32 %v9547_v18, %v7696_v7  ;;  %v11353_v30 = vld [vmem:[#allocation38_spill] sm:$0xff] }
 0xa2e   : > { %v4190_v52 = vpop.permute.xlu0 %4189  ;;  %4359 = vmatprep.subr.mxu0 %v4220_v2 }
 0xa2f   : > { %4360 = vmatpush1.msra.mxu0 %v4219_v15 }
 0xa30   : > { %4361 = vmatprep.subr.mxu0 %v4218_v40  ;;  %v4188_v10 = vpop.permute.xlu1 %4187 }
 0xa31   : > { %4362 = vmatpush1.msra.mxu0 %v4217_v22  ;;  %v4194_v11 = vsel %vm2261_vm10, %v4188_v10, %v4190_v52  ;;  %v4193_v20 = vsel %vm2261_vm10, %v4186_v42, %v4188_v10  ;;  %v11354_v10 = vld [vmem:[#allocation39_spill] sm:$0xff] }
 0xa32   : > { %v4154_v0 = vpop.permute.xlu0 %4153  ;;  %4363 = vmatprep.subr.mxu0 %v4194_v11 }
 0xa33   : > { %4364 = vmatpush1.msra.mxu0 %v4193_v20  ;;  %v4165_v32 = vsel %vm2250_vm15, %v4154_v0, %v4156_v28 }
 0xa34   : > { %4365 = vmatprep.subr.mxu0 %v4192_v39  ;;  %v4158_v44 = vpop.permute.xlu1 %4157  ;;  %v11355_v39 = vld [vmem:[#allocation40_spill] sm:$0xff] }
 0xa35   : > { %4366 = vmatpush1.msra.mxu0 %v4191_v23  ;;  %v4166_v42 = vsel %vm2250_vm15, %v4156_v28, %v4158_v44 }
 0xa36   : > { %v4326_v16 = vpop.permute.xlu0 %4325  ;;  %4367 = vmatprep.subr.mxu0 %v4168_v34 }
 0xa37   : > { %4368 = vmatpush1.msra.mxu0 %v4167_v29 }
 0xa38   : > { %4369 = vmatprep.subr.mxu0 %v4166_v42  ;;  %v4330_v31 = vpop.permute.xlu1 %4329  ;;  %v11356_v42 = vld [vmem:[#allocation41_spill] sm:$0xff] }
 0xa39   : > { %4370 = vmatpush1.msra.mxu0 %v4165_v32 }
 0xa3a   : > { %v4334_v13 = vpop.permute.xlu0 %4333  ;;  %4371 = vmatprep.subr.mxu0 %v4118_v60 }
 0xa3b   : > { %4372 = vmatpush1.msra.mxu0 %v4117_v1 }
 0xa3c   : > { %4373 = vmatprep.subr.mxu0 %v4116_v58  ;;  %v4332_v49 = vpop.permute.xlu1 %4331  ;;  %v11357_v58 = vld [vmem:[#allocation42_spill] sm:$0xff] }
 0xa3d   : > { %4374 = vmatpush1.msra.mxu0 %v4115_v33  ;;  %v4338_v51 = vsel %vm2325_vm11, %v4332_v49, %v4334_v13  ;;  %v4337_v27 = vsel %vm2325_vm11, %v4330_v31, %v4332_v49 }
 0xa3e   : > { %4403 = vmatprep.subr.mxu0 %v4338_v51  ;;  %v4324_v8 = vpop.permute.xlu0 %4323 }
 0xa3f   : > { %4404 = vmatpush2.msra.mxu0 %v4337_v27  ;;  %v4335_v28 = vsel %vm2325_vm11, %v4324_v8, %v4326_v16  ;;  %v11358_v8 = vld [vmem:[#allocation43_spill] sm:$0xff] }
 0xa40   : > { %v4328_v18 = vpop.permute.xlu1 %4327 }
 0xa41   : > { %v4336_v17 = vsel %vm2325_vm11, %v4326_v16, %v4328_v18 }
 0xa42   : > { %4405 = vmatprep.subr.mxu0 %v4336_v17 }
 0xa43   : > { %4406 = vmatpush2.msra.mxu0 %v4335_v28 }
 0xa44   : > { %4408 = vmatmul.mubr.f32.vlgmr.msra.gmra.mxu0 %v9395_v50  ;;  %v9796_v50 = vld [vmem:[%s11060_s3 + $0x8] sm:$0xff] }
 0xa45   : > { %6819 = vmatprep.mubr.msk.f32.mxu0 %vm2203_vm5, %v9401_v63 }
 0xa48   : > { %4414 = vmatmul.mubr.f32.gmra.mxu0 %v9408_v26 }
 0xa49   : > { %6820 = vmatprep.mubr.msk.f32.mxu0 %vm2203_vm5, %v9414_v6 }
 0xa4b   : > { %v1296_v6 = vpop.permute.xlu0 %1295 }
 0xa4c   : > { %4420 = vmatmul.mubr.f32.gmra.mxu0 %v9421_v5  ;;  %v11349_v5 = vld [vmem:[#allocation34_spill] sm:$0xff]  ;;  %v1433_v44 = vadd.f32 %v11355_v39, %v1296_v6  ;;  %v1435_v32 = vadd.f32 %v11356_v42, %v1296_v6 }
 0xa4d   : > { %6821 = vmatprep.mubr.msk.f32.mxu0 %vm2203_vm5, %v9427_v36  ;;  %v1286_v63 = vpop.permute.xlu1 %1285 }
 0xa4e   : > { %v1423_v59 = vadd.f32 %v11352_v48, %v1286_v63 }
 0xa4f   : > { %v1291_v38 = vpop.permute.xlu0 %1290 }
 0xa50   : > { %4426 = vmatmul.mubr.f32.gmra.mxu0 %v9434_v4  ;;  %v1427_v2 = vadd.f32 %v11353_v30, %v1291_v38  ;;  %v1429_v22 = vadd.f32 %v11354_v10, %v1291_v38 }
 0xa51   : > { %6822 = vmatprep.mubr.msk.f32.mxu0 %vm2203_vm5, %v9440_v12  ;;  %v1281_v26 = vpop.permute.xlu1 %1280 }
 0xa52   : > { %v1415_v36 = vadd.f32 %v11349_v5, %v1281_v26 }
 0xa53   : > { %v1316_v60 = vpop.permute.xlu0 %1315 }
 0xa54   : > { %4432 = vmatmul.mubr.f32.gmra.mxu0 %v9447_v62  ;;  %v11350_v62 = vld [vmem:[#allocation35_spill] sm:$0xff] }
 0xa55   : > { %6823 = vmatprep.mubr.msk.f32.mxu0 %vm2203_vm5, %v9453_v24  ;;  %v1417_v24 = vadd.f32 %v11350_v62, %v1281_v26  ;;  %v1306_v3 = vpop.permute.xlu1 %1305  ;;  %v11360_v62 = vld [vmem:[#allocation45_spill] sm:$0xff] }
 0xa58   : > { %4438 = vmatmul.mubr.f32.gmra.mxu0 %v9460_v21 }
 0xa59   : > { %6824 = vmatprep.mubr.msk.f32.mxu0 %vm2203_vm5, %v9466_v46  ;;  %v1301_v23 = vpop.permute.xlu1 %1300 }
 0xa5a   : > { %v1439_v33 = vadd.f32 %v11357_v58, %v1301_v23  ;;  %v1441_v18 = vadd.f32 %v11358_v8, %v1301_v23 }
 0xa5c   : > { %4444 = vmatmul.mubr.f32.gmra.mxu0 %v9473_v57 }
 0xa5d   : > { %6825 = vmatprep.mubr.msk.f32.mxu0 %vm2203_vm5, %v9479_v56  ;;  %v11351_v56 = vld [vmem:[#allocation36_spill] sm:$0xff] }
 0xa60   : > { %4450 = vmatmul.mubr.f32.gmra.mxu0 %v9486_v53  ;;  %v1421_v53 = vadd.f32 %v11351_v56, %v1286_v63  ;;  %v11359_v63 = vld [vmem:[#allocation44_spill] sm:$0xff] }
 0xa61   : > { %6858 = vmatprep.mubr.msk.f32.mxu0 %vm2203_vm5, %v9796_v50  ;;  %v1445_v26 = vadd.f32 %v11359_v63, %v1306_v3 }
 0xb04   : > { %v4409_v4 = vpop.f32.mrf.mxu0 }
 0xb05   : > { %v4456_v12 = vadd.f32 %v4409_v4, %v1415_v36 }
 0xb06   : > { %v4411_v21 = vpop.f32.mrf.mxu0 }
 0xb07   : > { %v6826_v46 = vmul.f32 -1.442695, %v4456_v12  ;;  %v4457_v57 = vadd.f32 %v4411_v21, %v1417_v24  ;;  %v1447_v24 = vadd.f32 %v11360_v62, %v1306_v3  ;;  %v1311_v21 = vpop.permute.xlu0 %1310 }
 0xb08   : > { %v4415_v41 = vpop.f32.mrf.mxu0 }
 0xb09   : > { %7261 = vpow2.f32 %v6826_v46  ;;  %v6827_v61 = vmul.f32 -1.442695, %v4457_v57  ;;  %v4458_v55 = vadd.f32 %v4415_v41, %v1421_v53 }
 0xb0a   : > { %v4417_v25 = vpop.f32.mrf.mxu0 }
 0xb0b   : > { %7263 = vpow2.f32 %v6827_v61  ;;  %v6828_v43 = vmul.f32 -1.442695, %v4458_v55  ;;  %v4459_v19 = vadd.f32 %v4417_v25, %v1423_v59  ;;  %v11361_v59 = vld [vmem:[#allocation46_spill] sm:$0xff] }
 0xb0c   : > { %v4421_v15 = vpop.f32.mrf.mxu0  ;;  %v1451_v25 = vadd.f32 %v11361_v59, %v1311_v21 }
 0xb0d   : > { %7265 = vpow2.f32 %v6828_v43  ;;  %v6829_v52 = vmul.f32 -1.442695, %v4459_v19  ;;  %v4460_v40 = vadd.f32 %v4421_v15, %v1427_v2  ;;  %v11362_v15 = vld [vmem:[#allocation47_spill] sm:$0xff] }
 0xb0e   : > { %v4423_v11 = vpop.f32.mrf.mxu0 }
 0xb0f   : > { %7267 = vpow2.f32 %v6829_v52  ;;  %v6830_v20 = vmul.f32 -1.442695, %v4460_v40  ;;  %v4461_v0 = vadd.f32 %v4423_v11, %v1429_v22  ;;  %v1453_v52 = vadd.f32 %v11362_v15, %v1311_v21 }
 0xb10   : > { %v4427_v34 = vpop.f32.mrf.mxu0 }
 0xb11   : > { %7269 = vpow2.f32 %v6830_v20  ;;  %v6831_v29 = vmul.f32 -1.442695, %v4461_v0  ;;  %v4462_v16 = vadd.f32 %v4427_v34, %v1433_v44  ;;  %v11363_v20 = vld [vmem:[#allocation48_spill] sm:$0xff] }
 0xb12   : > { %v4429_v31 = vpop.f32.mrf.mxu0  ;;  %v1457_v0 = vadd.f32 %v11363_v20, %v1316_v60 }
 0xb13   : > { %7271 = vpow2.f32 %v6831_v29  ;;  %v6832_v1 = vmul.f32 -1.442695, %v4462_v16  ;;  %v4463_v13 = vadd.f32 %v4429_v31, %v1435_v32  ;;  %v11364_v29 = vld [vmem:[#allocation49_spill] sm:$0xff] }
 0xb14   : > { %v4433_v49 = vpop.f32.mrf.mxu0  ;;  %v1459_v16 = vadd.f32 %v11364_v29, %v1316_v60 }
 0xb15   : > { %7273 = vpow2.f32 %v6832_v1  ;;  %v6833_v51 = vmul.f32 -1.442695, %v4463_v13  ;;  %v4464_v27 = vadd.f32 %v4433_v49, %v1439_v33 }
 0xb16   : > { %v7262_v17 = vpop.eup %7261  ;;  %v4435_v28 = vpop.f32.mrf.mxu0 }
 0xb17   : > { %v4508_v5 = vadd.f32 1.0, %v7262_v17  ;;  %7275 = vpow2.f32 %v6833_v51  ;;  %v6834_v6 = vmul.f32 -1.442695, %v4464_v27  ;;  %v4465_v36 = vadd.f32 %v4435_v28, %v1441_v18 }
 0xb18   : > { %v7264_v4 = vpop.eup %7263  ;;  %v4439_v12 = vpop.f32.mrf.mxu0 }
 0xb19   : > { %7277 = vrcp.f32 %v4508_v5  ;;  %v4509_v46 = vadd.f32 1.0, %v7264_v4  ;;  %v6835_v57 = vmul.f32 -1.442695, %v4465_v36  ;;  %v4466_v56 = vadd.f32 %v4439_v12, %v1445_v26 }
 0xb1a   : > { %v7266_v53 = vpop.eup %7265  ;;  %7279 = vpow2.f32 %v6834_v6  ;;  %v4441_v38 = vpop.f32.mrf.mxu0 }
 0xb1b   : > { %7281 = vrcp.f32 %v4509_v46  ;;  %v4510_v41 = vadd.f32 1.0, %v7266_v53  ;;  %v6836_v61 = vmul.f32 -1.442695, %v4466_v56  ;;  %v4467_v55 = vadd.f32 %v4441_v38, %v1447_v24 }
 0xb1c   : > { %v7268_v48 = vpop.eup %7267  ;;  %7283 = vpow2.f32 %v6835_v57  ;;  %v4445_v43 = vpop.f32.mrf.mxu0 }
 0xb1d   : > { %7285 = vrcp.f32 %v4510_v41  ;;  %v4511_v19 = vadd.f32 1.0, %v7268_v48  ;;  %v6837_v3 = vmul.f32 -1.442695, %v4467_v55  ;;  %v4468_v2 = vadd.f32 %v4445_v43, %v1451_v25 }
 0xb1e   : > { %v7270_v30 = vpop.eup %7269  ;;  %7287 = vpow2.f32 %v6836_v61  ;;  %v4447_v40 = vpop.f32.mrf.mxu0 }
 0xb1f   : > { %7289 = vrcp.f32 %v4511_v19  ;;  %v4512_v10 = vadd.f32 1.0, %v7270_v30  ;;  %v4469_v11 = vadd.f32 %v4447_v40, %v1453_v52 }
 0xb20   : > { %v7272_v22 = vpop.eup %7271  ;;  %7291 = vpow2.f32 %v6837_v3  ;;  %v4451_v39 = vpop.f32.mrf.mxu0 }
 0xb21   : > { %7293 = vrcp.f32 %v4512_v10  ;;  %v4513_v44 = vadd.f32 1.0, %v7272_v22  ;;  %v4470_v34 = vadd.f32 %v4451_v39, %v1457_v0 }
 0xb22   : > { %v7274_v23 = vpop.eup %7273  ;;  %7295 = vtanh.f32 %v4468_v2  ;;  %v4453_v42 = vpop.f32.mrf.mxu0 }
 0xb23   : > { %7297 = vrcp.f32 %v4513_v44  ;;  %v4514_v32 = vadd.f32 1.0, %v7274_v23  ;;  %v4471_v1 = vadd.f32 %v4453_v42, %v1459_v16  ;;  %v11365_v16 = vld [vmem:[#allocation5_spill] sm:$0xff] }
 0xb24   : > { %v7276_v31 = vpop.eup %7275  ;;  %7299 = vtanh.f32 %v4469_v11 }
 0xb25   : > { %7301 = vrcp.f32 %v4514_v32  ;;  %v4515_v13 = vadd.f32 1.0, %v7276_v31  ;;  %v11366_v32 = vld [vmem:[#allocation6_spill] sm:$0xff] }
 0xb26   : > { %v7278_v58 = vpop.eup %7277  ;;  %7303 = vtanh.f32 %v4470_v34 }
 0xb27   : > { %v7280_v33 = vpop.eup %7279  ;;  %7305 = vrcp.f32 %v4515_v13 }
 0xb28   : > { %v7282_v49 = vpop.eup %7281  ;;  %7307 = vtanh.f32 %v4471_v1  ;;  %v4516_v63 = vadd.f32 1.0, %v7280_v33  ;;  %v11367_v1 = vld [vmem:[#allocation9_spill] sm:$0xff] }
 0xb29   : > { %v7284_v51 = vpop.eup %7283 }
 0xb2a   : > { %v7286_v27 = vpop.eup %7285  ;;  %v4517_v4 = vadd.f32 1.0, %v7284_v51  ;;  %7309 = vrcp.f32 %v4516_v63  ;;  %v11372_v63 = vld [vmem:[#allocation10_spill] sm:$0xff] }
 0xb2b   : > { %v7288_v8 = vpop.eup %7287 }
 0xb2c   : > { %v7290_v18 = vpop.eup %7289  ;;  %v4518_v57 = vadd.f32 1.0, %v7288_v8 }
 0xb2d   : > { %v7292_v17 = vpop.eup %7291 }
 0xb2e   : > { %v7294_v60 = vpop.eup %7293  ;;  %v4519_v61 = vadd.f32 1.0, %v7292_v17  ;;  %v11371_v17 = vld [vmem:[#allocation7_spill] sm:$0xff] }
 0xb2f   : > { %v7296_v28 = vpop.eup %7295  ;;  %v4548_v26 = vmul.f32 %v7294_v60, %v9509_v37 }
 0xb30   : > { %v7298_v5 = vpop.eup %7297  ;;  %v4552_v6 = vmul.f32 %v7296_v28, %v7278_v58  ;;  %v11368_v58 = vld [vmem:[#allocation8_spill] sm:$0xff] }
 0xb31   : > { %v7300_v36 = vpop.eup %7299  ;;  %v4549_v12 = vmul.f32 %v7298_v5, %v9513_v14 }
 0xb32   : > { %v7302_v62 = vpop.eup %7301  ;;  %v9818_v24 = vadd.f32 %v4552_v6, %v4548_v26  ;;  %v4553_v21 = vmul.f32 %v7300_v36, %v7282_v49  ;;  %v11369_v49 = vld [vmem:[#allocation11_spill] sm:$0xff] }
 0xb33   : > { %v7304_v46 = vpop.eup %7303  ;;  %v4550_v56 = vmul.f32 %v7302_v62, %v9517_v35  ;;  %v11373_v6 = vld [vmem:[#allocation15_spill] sm:$0xff] }
 0xb34   : > { %v7306_v53 = vpop.eup %7305  ;;  %7311 = vtanh.f32 %v9818_v24  ;;  %v9822_v38 = vadd.f32 %v4553_v21, %v4549_v12  ;;  %v4554_v37 = vmul.f32 %v7304_v46, %v7286_v27  ;;  %v11370_v27 = vld [vmem:[#allocation12_spill] sm:$0xff]  ;;  %v11374_v12 = vld [vmem:[#allocation14_spill] sm:$0xff] }
 0xb35   : > { %v7308_v41 = vpop.eup %7307  ;;  %7313 = vrcp.f32 %v4517_v4  ;;  %v4551_v14 = vmul.f32 %v7306_v53, %v9520_v45 }
 0xb36   : > { %7315 = vtanh.f32 %v9822_v38  ;;  %v9826_v55 = vadd.f32 %v4554_v37, %v4550_v56  ;;  %v4555_v48 = vmul.f32 %v7308_v41, %v7290_v18 }
 0xb37   : > { %7317 = vrcp.f32 %v4518_v57  ;;  %v7310_v59 = vpop.eup %7309 }
 0xb38   : > { %7319 = vtanh.f32 %v9826_v55  ;;  %v9829_v35 = vadd.f32 %v4555_v48, %v4551_v14 }
 0xb39   : > { %7321 = vrcp.f32 %v4519_v61 }
 0xb3a   : > { %7323 = vtanh.f32 %v9829_v35 }
 0xb41   : > { %v7312_v25 = vpop.eup %7311 }
 0xb42   : > { %v7314_v43 = vpop.eup %7313  ;;  %v4564_v19 = vmul.f32 %v7312_v25, %v7310_v59  ;;  %v11375_v25 = vld [vmem:[#allocation17_spill] sm:$0xff] }
 0xb43   : > { %v7316_v3 = vpop.eup %7315 }
 0xb44   : > { %v7318_v30 = vpop.eup %7317  ;;  %4588 = vrot.lane.b32.xlu1 %v4564_v19, %s7619_s20  ;;  %v4565_v45 = vmul.f32 %v7316_v3, %v7314_v43  ;;  %v11376_v19 = vld [vmem:[#allocation13_spill] sm:$0xff] }
 0xb45   : > { %v7320_v2 = vpop.eup %7319 }
 0xb46   : > { %v7322_v15 = vpop.eup %7321  ;;  %4590 = vrot.lane.b32.xlu0 %v4565_v45, %s7619_s20  ;;  %v4566_v52 = vmul.f32 %v7320_v2, %v7318_v30  ;;  %v11377_v30 = vld [vmem:[#allocation16_spill] sm:$0xff] }
 0xb47   : > { %v7324_v40 = vpop.eup %7323 }
 0xb48   : > { %4592 = vrot.lane.b32.xlu1 %v4566_v52, %s7619_s20  ;;  %v4567_v10 = vmul.f32 %v7324_v40, %v7322_v15  ;;  %v11378_v40 = vld [vmem:[#allocation71_spill] sm:$0xff] }
 0xb4a   : > { %4594 = vrot.lane.b32.xlu0 %v4567_v10, %s7619_s20  ;;  %v11379_v10 = vld [vmem:[#allocation73_spill] sm:$0xff] }
 0xbb6   : > { %v4589_v22 = vpop.permute.xlu1 %4588 }
 0xbb7   : > { %v9837_v11 = vsel %vm2623_vm12, 0.0, %v4589_v22 }
 0xbb8   : > { %v4591_v20 = vpop.permute.xlu0 %4590  ;;  %4790 = vrot.lane.b32.xlu0 %v9837_v11, %s7610_s24  ;;  %v4630_v34 = vmul.f32 %v9837_v11, %v7856_v47  ;;  %v4624_v42 = vmul.f32 %v9837_v11, %v11365_v16  ;;  %v4618_v13 = vmul.f32 %v9837_v11, %v11367_v1  ;;  %v4612_v51 = vmul.f32 %v9837_v11, %v11369_v49 }
 0xbb9   : > { %v9842_v0 = vsel %vm2623_vm12, %v4591_v20, 0.0  ;;  %v9851_v44 = vsel %vm2623_vm12, %v4589_v22, %v4591_v20  ;;  %v4636_v15 = vmul.f32 %v9837_v11, %v11376_v19  ;;  %v11380_v22 = vld [vmem:[#allocation74_spill] sm:$0xff] }
 0xbba   : > { %4794 = vrot.lane.b32.xlu1 %v9842_v0, %s7610_s24  ;;  %v4593_v39 = vpop.permute.xlu1 %4592  ;;  %v4632_v29 = vmul.f32 %v9842_v0, %v7867_v54  ;;  %v4626_v31 = vmul.f32 %v9842_v0, %v11366_v32  ;;  %v4620_v33 = vmul.f32 %v9842_v0, %v11368_v58  ;;  %v4614_v8 = vmul.f32 %v9842_v0, %v11370_v27  ;;  %v11381_v20 = vld [vmem:[#allocation18_spill] sm:$0xff] }
 0xbbb   : > { %v9856_v23 = vsel %vm2623_vm12, 0.0, %v4593_v39  ;;  %v4631_v60 = vmul.f32 %v9851_v44, %v11371_v17  ;;  %v4625_v26 = vmul.f32 %v9851_v44, %v11372_v63  ;;  %v4619_v36 = vmul.f32 %v9851_v44, %v11373_v6 }
 0xbbc   : > { %4718 = vrot.lane.b32.xlu0 %v9837_v11, %s7613_s11  ;;  %v4595_v18 = vpop.permute.xlu0 %4594  ;;  %v4633_v5 = vmul.f32 %v9856_v23, %v7856_v47  ;;  %v4627_v4 = vmul.f32 %v9856_v23, %v11365_v16  ;;  %v4613_v62 = vmul.f32 %v9851_v44, %v11374_v12  ;;  %v4621_v46 = vmul.f32 %v9856_v23, %v11367_v1 }
 0xbbd   : > { %v9892_v28 = vsel %vm2623_vm12, %v4593_v39, %v4595_v18  ;;  %v4607_v21 = vsel %vm2623_vm12, %v4595_v18, 0.0  ;;  %v4615_v57 = vmul.f32 %v9856_v23, %v11369_v49  ;;  %v4637_v43 = vmul.f32 %v9851_v44, %v11375_v25  ;;  %v11382_v39 = vld [vmem:[#allocation19_spill] sm:$0xff] }
 0xbbe   : > { %4722 = vrot.lane.b32.xlu1 %v9842_v0, %s7613_s11  ;;  %v4635_v56 = vmul.f32 %v4607_v21, %v7867_v54  ;;  %v4634_v53 = vmul.f32 %v9892_v28, %v11371_v17  ;;  %v4629_v37 = vmul.f32 %v4607_v21, %v11366_v32  ;;  %v4628_v41 = vmul.f32 %v9892_v28, %v11372_v63 }
 0xbbf   : > { %v4623_v61 = vmul.f32 %v4607_v21, %v11368_v58  ;;  %v4622_v14 = vmul.f32 %v9892_v28, %v11373_v6  ;;  %v4617_v48 = vmul.f32 %v4607_v21, %v11370_v27  ;;  %v4616_v59 = vmul.f32 %v9892_v28, %v11374_v12 }
 0xbc0   : > { %4792 = vrot.lane.b32.xlu0 %v9851_v44, %s7610_s24  ;;  %v4639_v3 = vmul.f32 %v9856_v23, %v11376_v19  ;;  %v4641_v45 = vmul.f32 %v4607_v21, %v11377_v30  ;;  %v4640_v2 = vmul.f32 %v9892_v28, %v11375_v25  ;;  %v4638_v52 = vmul.f32 %v9842_v0, %v11377_v30 }
 0xbc2   : > { %4796 = vrot.lane.b32.xlu1 %v9856_v23, %s7610_s24 }
 0xbc4   : > { %4770 = vrot.lane.b32.xlu0 %v4630_v34, %s7611_s29  ;;  %v11383_v34 = vld [vmem:[#allocation20_spill] sm:$0xff] }
 0xbc6   : > { %4774 = vrot.lane.b32.xlu1 %v4632_v29, %s7611_s29  ;;  %v11384_v29 = vld [vmem:[#allocation21_spill] sm:$0xff] }
 0xbc8   : > { %4744 = vrot.lane.b32.xlu0 %v4624_v42, %s7612_s30  ;;  %v11385_v42 = vld [vmem:[#allocation22_spill] sm:$0xff] }
 0xbca   : > { %4748 = vrot.lane.b32.xlu1 %v4626_v31, %s7612_s30 }
 0xbcc   : > { %4720 = vrot.lane.b32.xlu0 %v9851_v44, %s7613_s11 }
 0xbce   : > { %4724 = vrot.lane.b32.xlu1 %v9856_v23, %s7613_s11 }
 0xbd0   : > { %4698 = vrot.lane.b32.xlu0 %v4618_v13, %s7614_s12 }
 0xbd2   : > { %4702 = vrot.lane.b32.xlu1 %v4620_v33, %s7614_s12 }
 0xbd4   : > { %4672 = vrot.lane.b32.xlu0 %v4612_v51, %s7615_s15 }
 0xbd6   : > { %4676 = vrot.lane.b32.xlu1 %v4614_v8, %s7615_s15 }
 0xbd8   : > { %4772 = vrot.lane.b32.xlu0 %v4631_v60, %s7611_s29 }
 0xbda   : > { %4798 = vrot.lane.b32.xlu1 %v9892_v28, %s7610_s24 }
 0xbdc   : > { %4746 = vrot.lane.b32.xlu0 %v4625_v26, %s7612_s30 }
 0xbde   : > { %4776 = vrot.lane.b32.xlu1 %v4633_v5, %s7611_s29 }
 0xbe0   : > { %4700 = vrot.lane.b32.xlu0 %v4619_v36, %s7614_s12 }
 0xbe2   : > { %4750 = vrot.lane.b32.xlu1 %v4627_v4, %s7612_s30 }
 0xbe4   : > { %4674 = vrot.lane.b32.xlu0 %v4613_v62, %s7615_s15 }
 0xbe6   : > { %4726 = vrot.lane.b32.xlu1 %v9892_v28, %s7613_s11 }
 0xbe8   : > { %4800 = vrot.lane.b32.xlu0 %v4607_v21, %s7610_s24 }
 0xbea   : > { %4704 = vrot.lane.b32.xlu1 %v4621_v46, %s7614_s12 }
 0xbec   : > { %4728 = vrot.lane.b32.xlu0 %v4607_v21, %s7613_s11 }
 0xbee   : > { %4678 = vrot.lane.b32.xlu1 %v4615_v57, %s7615_s15 }
 0xbf0   : > { %4656 = vrot.lane.b32.xlu0 %v4607_v21, %s11276_s18 }
 0xbf2   : > { %4654 = vrot.lane.b32.xlu1 %v9892_v28, %s11276_s18 }
 0xbf4   : > { %4780 = vrot.lane.b32.xlu0 %v4635_v56, %s7611_s29 }
 0xbf6   : > { %4778 = vrot.lane.b32.xlu1 %v4634_v53, %s7611_s29 }
 0xbf8   : > { %4754 = vrot.lane.b32.xlu0 %v4629_v37, %s7612_s30 }
 0xbfa   : > { %4752 = vrot.lane.b32.xlu1 %v4628_v41, %s7612_s30 }
 0xbfc   : > { %4648 = vrot.lane.b32.xlu0 %v9851_v44, %s11276_s18 }
 0xbfe   : > { %4652 = vrot.lane.b32.xlu1 %v9856_v23, %s11276_s18 }
 0xc00   : > { %4708 = vrot.lane.b32.xlu0 %v4623_v61, %s7614_s12 }
 0xc02   : > { %4706 = vrot.lane.b32.xlu1 %v4622_v14, %s7614_s12 }
 0xc04   : > { %4682 = vrot.lane.b32.xlu0 %v4617_v48, %s7615_s15 }
 0xc06   : > { %4680 = vrot.lane.b32.xlu1 %v4616_v59, %s7615_s15 }
 0xc08   : > { %4646 = vrot.lane.b32.xlu0 %v9837_v11, %s11276_s18 }
 0xc0a   : > { %4650 = vrot.lane.b32.xlu1 %v9842_v0, %s11276_s18 }
 0xc0c   : > { %4818 = vrot.lane.b32.xlu0 %v4637_v43, %s11223_s23 }
 0xc0e   : > { %4822 = vrot.lane.b32.xlu1 %v4639_v3, %s11223_s23 }
 0xc10   : > { %4826 = vrot.lane.b32.xlu0 %v4641_v45, %s11223_s23 }
 0xc12   : > { %4824 = vrot.lane.b32.xlu1 %v4640_v2, %s11223_s23 }
 0xc14   : > { %4816 = vrot.lane.b32.xlu0 %v4636_v15, %s11223_s23 }
 0xc16   : > { %4820 = vrot.lane.b32.xlu1 %v4638_v52, %s11223_s23 }
 0xc18   : > { %1518 = vperm.xlu0 %7003, %v11378_v40  }
 0xc1a   : > { %1508 = vperm.xlu1 %7004, %v11379_v10  }
 0xc1c   : > { %1513 = vperm.xlu0 %7003, %v11380_v22  }
 0xc1e   : > { %1503 = vperm.xlu1 %7004, %v11381_v20  }
 0xc20   : > { %1538 = vperm.xlu0 %7003, %v11382_v39  }
 0xc22   : > { %1528 = vperm.xlu1 %7004, %v11383_v34  }
 0xc24   : > { %1533 = vperm.xlu0 %7003, %v11384_v29  }
 0xc26   : > { %1523 = vperm.xlu1 %7004, %v11385_v42  }
 0xc2a   : > { %v4791_v31 = vpop.permute.xlu0 %4790 }
 0xc2c   : > { %v4795_v0 = vpop.permute.xlu1 %4794 }
 0xc2e   : > { %v9978_v13 = vpop.permute.xlu0 %4718 }
 0xc30   : > { %v9980_v33 = vpop.permute.xlu1 %4722 }
 0xc32   : > { %v4793_v51 = vpop.permute.xlu0 %4792 }
 0xc33   : > { %v4803_v15 = vsel %vm2314_vm13, %v4793_v51, %v4795_v0  ;;  %v4802_v40 = vsel %vm2314_vm13, %v4791_v31, %v4793_v51 }
 0xc34   : > { %v4797_v8 = vpop.permute.xlu1 %4796 }
 0xc36   : > { %v4771_v18 = vpop.permute.xlu0 %4770 }
 0xc38   : > { %v4775_v60 = vpop.permute.xlu1 %4774 }
 0xc3a   : > { %v4745_v26 = vpop.permute.xlu0 %4744 }
 0xc3c   : > { %v4749_v5 = vpop.permute.xlu1 %4748 }
 0xc3e   : > { %v4721_v36 = vpop.permute.xlu0 %4720 }
 0xc40   : > { %v4725_v4 = vpop.permute.xlu1 %4724 }
 0xc42   : > { %v9982_v62 = vpop.permute.xlu0 %4698 }
 0xc44   : > { %v9984_v21 = vpop.permute.xlu1 %4702 }
 0xc46   : > { %v9986_v46 = vpop.permute.xlu0 %4672 }
 0xc48   : > { %v9988_v57 = vpop.permute.xlu1 %4676 }
 0xc4a   : > { %v4773_v56 = vpop.permute.xlu0 %4772 }
 0xc4c   : > { %v4799_v53 = vpop.permute.xlu1 %4798 }
 0xc4d   : > { %v4804_v2 = vsel %vm2314_vm13, %v4797_v8, %v4799_v53  ;;  %v4783_v8 = vsel %vm2307_vm7, %v4773_v56, %v4775_v60 }
 0xc4e   : > { %v4747_v37 = vpop.permute.xlu0 %4746 }
 0xc50   : > { %v4777_v41 = vpop.permute.xlu1 %4776 }
 0xc52   : > { %v4701_v61 = vpop.permute.xlu0 %4700 }
 0xc54   : > { %v4751_v14 = vpop.permute.xlu1 %4750 }
 0xc56   : > { %v9990_v48 = vpop.permute.xlu0 %4674 }
 0xc58   : > { %v4727_v59 = vpop.permute.xlu1 %4726 }
 0xc5a   : > { %v4801_v43 = vpop.permute.xlu0 %4800 }
 0xc5b   : > { %v4805_v3 = vsel %vm2314_vm13, %v4799_v53, %v4801_v43  ;;  %v4782_v53 = vsel %vm2307_vm7, %v4771_v18, %v4773_v56  ;;  %v4732_v18 = vsel %vm2282_vm14, %v4725_v4, %v4727_v59  ;;  %v4731_v56 = vsel %vm2282_vm14, %v4721_v36, %v9980_v33 }
 0xc5c   : > { %4836 = vmatprep.subr.mxu1 %v4805_v3  ;;  %v4705_v45 = vpop.permute.xlu1 %4704  ;;  %v4711_v4 = vsel %vm2275_vm9, %v4701_v61, %v9984_v21  ;;  %v4710_v33 = vsel %vm2275_vm9, %v9982_v62, %v4701_v61  ;;  %v4684_v21 = vsel %vm2261_vm10, %v9986_v46, %v9990_v48  ;;  %v4610_v46 = vmul.f32 %v9856_v23, %v7696_v7 }
 0xc5d   : > { %4837 = vmatpush1.msra.mxu1 %v4804_v2  ;;  %v4757_v2 = vsel %vm2293_vm8, %v4747_v37, %v4749_v5  ;;  %v4730_v5 = vsel %vm2282_vm14, %v9978_v13, %v4721_v36 }
 0xc5e   : > { %v4729_v52 = vpop.permute.xlu0 %4728  ;;  %4838 = vmatprep.subr.mxu1 %v4803_v15  ;;  %v4756_v15 = vsel %vm2293_vm8, %v4745_v26, %v4747_v37 }
 0xc5f   : > { %4839 = vmatpush1.msra.mxu1 %v4802_v40  ;;  %v4733_v60 = vsel %vm2282_vm14, %v4727_v59, %v4729_v52 }
 0xc60   : > { %v4679_v10 = vpop.permute.xlu1 %4678 }
 0xc62   : > { %v4657_v22 = vpop.permute.xlu0 %4656 }
 0xc64   : > { %v4655_v20 = vpop.permute.xlu1 %4654 }
 0xc65   : > { %v4661_v62 = vsel %vm2250_vm15, %v4655_v20, %v4657_v22  ;;  %v4609_v22 = vmul.f32 %v9851_v44, %v7701_v9  ;;  %v10049_v44 = vld [vmem:[%s11060_s3 + $0x18] sm:$0xff] }
 0xc66   : > { %v4781_v39 = vpop.permute.xlu0 %4780 }
 0xc68   : > { %v4779_v34 = vpop.permute.xlu1 %4778 }
 0xc69   : > { %v4785_v29 = vsel %vm2307_vm7, %v4779_v34, %v4781_v39  ;;  %v4784_v42 = vsel %vm2307_vm7, %v4777_v41, %v4779_v34 }
 0xc6a   : > { %v4755_v43 = vpop.permute.xlu0 %4754  ;;  %4840 = vmatprep.subr.mxu1 %v4785_v29 }
 0xc6b   : > { %4841 = vmatpush1.msra.mxu1 %v4784_v42 }
 0xc6c   : > { %4842 = vmatprep.subr.mxu1 %v4783_v8  ;;  %v4753_v0 = vpop.permute.xlu1 %4752 }
 0xc6d   : > { %4843 = vmatpush1.msra.mxu1 %v4782_v53  ;;  %v4759_v31 = vsel %vm2293_vm8, %v4753_v0, %v4755_v43  ;;  %v4758_v51 = vsel %vm2293_vm8, %v4751_v14, %v4753_v0  ;;  %v4611_v43 = vmul.f32 %v9892_v28, %v7701_v9 }
 0xc6e   : > { %v4649_v3 = vpop.permute.xlu0 %4648  ;;  %4844 = vmatprep.subr.mxu1 %v4759_v31 }
 0xc6f   : > { %4845 = vmatpush1.msra.mxu1 %v4758_v51 }
 0xc70   : > { %4846 = vmatprep.subr.mxu1 %v4757_v2  ;;  %v4653_v41 = vpop.permute.xlu1 %4652  ;;  %v10062_v2 = vld [vmem:[%s11060_s3 + $0x28] sm:$0xff] }
 0xc71   : > { %4847 = vmatpush1.msra.mxu1 %v4756_v15  ;;  %v4660_v61 = vsel %vm2250_vm15, %v4653_v41, %v4655_v20  ;;  %v4608_v20 = vmul.f32 %v9837_v11, %v7696_v7  ;;  %v10043_v11 = vld [vmem:[%s11060_s3] sm:$0xff]  ;;  %v10075_v15 = vld [vmem:[%s11060_s3 + $0x38] sm:$0xff] }
 0xc72   : > { %v4709_v40 = vpop.permute.xlu0 %4708  ;;  %4848 = vmatprep.subr.mxu1 %v4733_v60  ;;  %v10069_v41 = vld [vmem:[%s11060_s3 + $0x20] sm:$0xff]  ;;  %v10082_v60 = vld [vmem:[%s11060_s3 + $0x30] sm:$0xff] }
 0xc73   : > { %4849 = vmatpush1.msra.mxu1 %v4732_v18  ;;  %v10095_v18 = vld [vmem:[%s11060_s3 + $0x40] sm:$0xff] }
 0xc74   : > { %4850 = vmatprep.subr.mxu1 %v4731_v56  ;;  %v4707_v14 = vpop.permute.xlu1 %4706  ;;  %v10101_v56 = vld [vmem:[%s11060_s3 + $0x58] sm:$0xff] }
 0xc75   : > { %4851 = vmatpush1.msra.mxu1 %v4730_v5  ;;  %v4713_v39 = vsel %vm2275_vm9, %v4707_v14, %v4709_v40  ;;  %v4712_v26 = vsel %vm2275_vm9, %v4705_v45, %v4707_v14  ;;  %v4685_v45 = vsel %vm2261_vm10, %v9990_v48, %v9988_v57  ;;  %v10088_v40 = vld [vmem:[%s11060_s3 + $0x48] sm:$0xff]  ;;  %v10108_v14 = vld [vmem:[%s11060_s3 + $0x50] sm:$0xff] }
 0xc76   : > { %v4683_v37 = vpop.permute.xlu0 %4682  ;;  %4852 = vmatprep.subr.mxu1 %v4713_v39  ;;  %v10114_v5 = vld [vmem:[%s11060_s3 + $0x68] sm:$0xff]  ;;  %v10121_v39 = vld [vmem:[%s11060_s3 + $0x60] sm:$0xff] }
 0xc77   : > { %4853 = vmatpush1.msra.mxu1 %v4712_v26  ;;  %v10127_v26 = vld [vmem:[%s11060_s3 + $0x78] sm:$0xff] }
 0xc78   : > { %4854 = vmatprep.subr.mxu1 %v4711_v4  ;;  %v4681_v59 = vpop.permute.xlu1 %4680 }
 0xc79   : > { %4855 = vmatpush1.msra.mxu1 %v4710_v33  ;;  %v4687_v52 = vsel %vm2261_vm10, %v4681_v59, %v4683_v37  ;;  %v4686_v13 = vsel %vm2261_vm10, %v4679_v10, %v4681_v59  ;;  %v10134_v37 = vld [vmem:[%s11060_s3 + $0x70] sm:$0xff] }
 0xc7a   : > { %v4647_v36 = vpop.permute.xlu0 %4646  ;;  %4856 = vmatprep.subr.mxu1 %v4687_v52  ;;  %v11386_v52 = vld [vmem:[#allocation85_spill] sm:$0xff] }
 0xc7b   : > { %4857 = vmatpush1.msra.mxu1 %v4686_v13  ;;  %v4658_v42 = vsel %vm2250_vm15, %v4647_v36, %v4649_v3 }
 0xc7c   : > { %4858 = vmatprep.subr.mxu1 %v4685_v45  ;;  %v4651_v34 = vpop.permute.xlu1 %4650 }
 0xc7d   : > { %4859 = vmatpush1.msra.mxu1 %v4684_v21  ;;  %v4659_v10 = vsel %vm2250_vm15, %v4649_v3, %v4651_v34  ;;  %v10056_v3 = vld [vmem:[%s11060_s3 + $0x10] sm:$0xff]  ;;  %v11387_v34 = vld [vmem:[#allocation86_spill] sm:$0xff] }
 0xc7e   : > { %v4819_v29 = vpop.permute.xlu0 %4818  ;;  %4860 = vmatprep.subr.mxu1 %v4661_v62 }
 0xc7f   : > { %4861 = vmatpush1.msra.mxu1 %v4660_v61 }
 0xc80   : > { %4862 = vmatprep.subr.mxu1 %v4659_v10  ;;  %v4823_v57 = vpop.permute.xlu1 %4822  ;;  %v11388_v10 = vld [vmem:[#allocation87_spill] sm:$0xff] }
 0xc81   : > { %4863 = vmatpush1.msra.mxu1 %v4658_v42 }
 0xc82   : > { %v4827_v48 = vpop.permute.xlu0 %4826  ;;  %4864 = vmatprep.subr.mxu1 %v4611_v43 }
 0xc83   : > { %4865 = vmatpush1.msra.mxu1 %v4610_v46 }
 0xc84   : > { %4866 = vmatprep.subr.mxu1 %v4609_v22  ;;  %v4825_v8 = vpop.permute.xlu1 %4824 }
 0xc85   : > { %4867 = vmatpush1.msra.mxu1 %v4608_v20  ;;  %v4831_v0 = vsel %vm2325_vm11, %v4825_v8, %v4827_v48  ;;  %v4830_v28 = vsel %vm2325_vm11, %v4823_v57, %v4825_v8 }
 0xc86   : > { %4896 = vmatprep.subr.mxu1 %v4831_v0  ;;  %v4817_v53 = vpop.permute.xlu0 %4816 }
 0xc87   : > { %4897 = vmatpush2.msra.mxu1 %v4830_v28  ;;  %v4828_v51 = vsel %vm2325_vm11, %v4817_v53, %v4819_v29  ;;  %v11390_v53 = vld [vmem:[#allocation89_spill] sm:$0xff] }
 0xc88   : > { %v4821_v23 = vpop.permute.xlu1 %4820 }
 0xc89   : > { %v4829_v31 = vsel %vm2325_vm11, %v4819_v29, %v4821_v23 }
 0xc8a   : > { %4898 = vmatprep.subr.mxu1 %v4829_v31 }
 0xc8b   : > { %4899 = vmatpush2.msra.mxu1 %v4828_v51 }
 0xc8c   : > { %4901 = vmatmul.mubr.f32.vlgmr.msra.gmra.mxu1 %v10043_v11 }
 0xc8d   : > { %6839 = vmatprep.mubr.msk.f32.mxu1 %vm2203_vm5, %v10049_v44 }
 0xc90   : > { %4907 = vmatmul.mubr.f32.gmra.mxu1 %v10056_v3 }
 0xc91   : > { %6840 = vmatprep.mubr.msk.f32.mxu1 %vm2203_vm5, %v10062_v2 }
 0xc93   : > { %v1519_v33 = vpop.permute.xlu0 %1518 }
 0xc94   : > { %4913 = vmatmul.mubr.f32.gmra.mxu1 %v10069_v41 }
 0xc95   : > { %6841 = vmatprep.mubr.msk.f32.mxu1 %vm2203_vm5, %v10075_v15  ;;  %v1509_v4 = vpop.permute.xlu1 %1508 }
 0xc96   : > { %v1644_v42 = vadd.f32 %v11388_v10, %v1509_v4 }
 0xc97   : > { %v1514_v57 = vpop.permute.xlu0 %1513 }
 0xc98   : > { %4919 = vmatmul.mubr.f32.gmra.mxu1 %v10082_v60  ;;  %v1650_v23 = vadd.f32 %v11390_v53, %v1514_v57 }
 0xc99   : > { %6842 = vmatprep.mubr.msk.f32.mxu1 %vm2203_vm5, %v10088_v40  ;;  %v1504_v59 = vpop.permute.xlu1 %1503 }
 0xc9a   : > { %v1638_v13 = vadd.f32 %v11386_v52, %v1504_v59  ;;  %v1640_v21 = vadd.f32 %v11387_v34, %v1504_v59  ;;  %v11391_v52 = vld [vmem:[#allocation90_spill] sm:$0xff] }
 0xc9c   : > { %4925 = vmatmul.mubr.f32.gmra.mxu1 %v10095_v18 }
 0xc9d   : > { %6843 = vmatprep.mubr.msk.f32.mxu1 %vm2203_vm5, %v10101_v56  ;;  %v1529_v20 = vpop.permute.xlu1 %1528 }
 0xca0   : > { %4931 = vmatmul.mubr.f32.gmra.mxu1 %v10108_v14 }
 0xca1   : > { %6844 = vmatprep.mubr.msk.f32.mxu1 %vm2203_vm5, %v10114_v5 }
 0xca4   : > { %4937 = vmatmul.mubr.f32.gmra.mxu1 %v10121_v39 }
 0xca5   : > { %6845 = vmatprep.mubr.msk.f32.mxu1 %vm2203_vm5, %v10127_v26 }
 0xca8   : > { %4943 = vmatmul.mubr.f32.gmra.mxu1 %v10134_v37 }
 0xca9   : > { %6878 = vmatprep.mubr.msk.f32.mxu1 %vm2203_vm5, %v9796_v50  ;;  %v11389_v50 = vld [vmem:[#allocation88_spill] sm:$0xff] }
 0xcaa   : > { %v1646_v22 = vadd.f32 %v11389_v50, %v1509_v4  ;;  %v1524_v4 = vpop.permute.xlu1 %1523 }
 0xd4c   : > { %v4902_v36 = vpop.f32.mrf.mxu1 }
 0xd4d   : > { %v4949_v45 = vadd.f32 %v4902_v36, %v1638_v13  ;;  %v1652_v13 = vadd.f32 %v11391_v52, %v1514_v57  ;;  %v11396_v52 = vld [vmem:[#allocation95_spill] sm:$0xff] }
 0xd4e   : > { %v4904_v62 = vpop.f32.mrf.mxu1 }
 0xd4f   : > { %v6846_v61 = vmul.f32 -1.442695, %v4949_v45  ;;  %v4950_v29 = vadd.f32 %v4904_v62, %v1640_v21  ;;  %v11392_v21 = vld [vmem:[#allocation91_spill] sm:$0xff] }
 0xd50   : > { %v4908_v43 = vpop.f32.mrf.mxu1  ;;  %v1656_v62 = vadd.f32 %v11392_v21, %v1519_v33 }
 0xd51   : > { %7325 = vpow2.f32 %v6846_v61  ;;  %v6847_v46 = vmul.f32 -1.442695, %v4950_v29  ;;  %v4951_v48 = vadd.f32 %v4908_v43, %v1644_v42  ;;  %v11393_v42 = vld [vmem:[#allocation92_spill] sm:$0xff] }
 0xd52   : > { %v4910_v8 = vpop.f32.mrf.mxu1  ;;  %v1658_v43 = vadd.f32 %v11393_v42, %v1519_v33 }
 0xd53   : > { %7327 = vpow2.f32 %v6847_v46  ;;  %v6848_v0 = vmul.f32 -1.442695, %v4951_v48  ;;  %v4952_v28 = vadd.f32 %v4910_v8, %v1646_v22  ;;  %v1539_v48 = vpop.permute.xlu0 %1538  ;;  %v11394_v8 = vld [vmem:[#allocation93_spill] sm:$0xff] }
 0xd54   : > { %v4914_v31 = vpop.f32.mrf.mxu1  ;;  %v1662_v57 = vadd.f32 %v11394_v8, %v1524_v4 }
 0xd55   : > { %7329 = vpow2.f32 %v6848_v0  ;;  %v6849_v51 = vmul.f32 -1.442695, %v4952_v28  ;;  %v4953_v59 = vadd.f32 %v4914_v31, %v1650_v23  ;;  %v11395_v23 = vld [vmem:[#allocation94_spill] sm:$0xff] }
 0xd56   : > { %v4916_v36 = vpop.f32.mrf.mxu1  ;;  %v1664_v31 = vadd.f32 %v11395_v23, %v1524_v4 }
 0xd57   : > { %7331 = vpow2.f32 %v6849_v51  ;;  %v6850_v45 = vmul.f32 -1.442695, %v4953_v59  ;;  %v4954_v34 = vadd.f32 %v4916_v36, %v1652_v13  ;;  %v1668_v13 = vadd.f32 %v11396_v52, %v1529_v20 }
 0xd58   : > { %v4920_v61 = vpop.f32.mrf.mxu1 }
 0xd59   : > { %7333 = vpow2.f32 %v6850_v45  ;;  %v6851_v29 = vmul.f32 -1.442695, %v4954_v34  ;;  %v4955_v10 = vadd.f32 %v4920_v61, %v1656_v62  ;;  %v11397_v62 = vld [vmem:[#allocation96_spill] sm:$0xff] }
 0xd5a   : > { %v4922_v46 = vpop.f32.mrf.mxu1  ;;  %v1670_v61 = vadd.f32 %v11397_v62, %v1529_v20 }
 0xd5b   : > { %7335 = vpow2.f32 %v6851_v29  ;;  %v6852_v50 = vmul.f32 -1.442695, %v4955_v10  ;;  %v4956_v22 = vadd.f32 %v4922_v46, %v1658_v43  ;;  %v1534_v29 = vpop.permute.xlu0 %1533 }
 0xd5c   : > { %v4926_v0 = vpop.f32.mrf.mxu1 }
 0xd5d   : > { %7337 = vpow2.f32 %v6852_v50  ;;  %v6853_v28 = vmul.f32 -1.442695, %v4956_v22  ;;  %v4957_v53 = vadd.f32 %v4926_v0, %v1662_v57  ;;  %v11398_v0 = vld [vmem:[#allocation97_spill] sm:$0xff] }
 0xd5e   : > { %v7326_v51 = vpop.eup %7325  ;;  %v4928_v59 = vpop.f32.mrf.mxu1 }
 0xd5f   : > { %v5001_v36 = vadd.f32 1.0, %v7326_v51  ;;  %7339 = vpow2.f32 %v6853_v28  ;;  %v6854_v33 = vmul.f32 -1.442695, %v4957_v53  ;;  %v4958_v45 = vadd.f32 %v4928_v59, %v1664_v31  ;;  %v11399_v59 = vld [vmem:[#allocation98_spill] sm:$0xff] }
 0xd60   : > { %v7328_v34 = vpop.eup %7327  ;;  %v4932_v21 = vpop.f32.mrf.mxu1  ;;  %v1674_v28 = vadd.f32 %v11398_v0, %v1534_v29  ;;  %v1676_v52 = vadd.f32 %v11399_v59, %v1534_v29 }
 0xd61   : > { %7341 = vrcp.f32 %v5001_v36  ;;  %v5002_v10 = vadd.f32 1.0, %v7328_v34  ;;  %v6855_v42 = vmul.f32 -1.442695, %v4958_v45  ;;  %v4959_v43 = vadd.f32 %v4932_v21, %v1668_v13  ;;  %v11400_v34 = vld [vmem:[#allocation99_spill] sm:$0xff] }
 0xd62   : > { %v7330_v46 = vpop.eup %7329  ;;  %7343 = vpow2.f32 %v6854_v33  ;;  %v4934_v4 = vpop.f32.mrf.mxu1  ;;  %v1680_v21 = vadd.f32 %v11400_v34, %v1539_v48 }
 0xd63   : > { %7345 = vrcp.f32 %v5002_v10  ;;  %v5003_v50 = vadd.f32 1.0, %v7330_v46  ;;  %v6856_v22 = vmul.f32 -1.442695, %v4959_v43  ;;  %v4960_v8 = vadd.f32 %v4934_v4, %v1670_v61  ;;  %v11401_v43 = vld [vmem:[#allocation100_spill] sm:$0xff] }
 0xd64   : > { %v7332_v57 = vpop.eup %7331  ;;  %7347 = vpow2.f32 %v6855_v42  ;;  %v4938_v53 = vpop.f32.mrf.mxu1  ;;  %v1682_v46 = vadd.f32 %v11401_v43, %v1539_v48 }
 0xd65   : > { %7349 = vrcp.f32 %v5003_v50  ;;  %v5004_v23 = vadd.f32 1.0, %v7332_v57  ;;  %v6857_v20 = vmul.f32 -1.442695, %v4960_v8  ;;  %v4961_v51 = vadd.f32 %v4938_v53, %v1674_v28 }
 0xd66   : > { %v7334_v31 = vpop.eup %7333  ;;  %7351 = vpow2.f32 %v6856_v22  ;;  %v4940_v13 = vpop.f32.mrf.mxu1 }
 0xd67   : > { %7353 = vrcp.f32 %v5004_v23  ;;  %v5005_v36 = vadd.f32 1.0, %v7334_v31  ;;  %v4962_v45 = vadd.f32 %v4940_v13, %v1676_v52 }
 0xd68   : > { %v7336_v33 = vpop.eup %7335  ;;  %7355 = vpow2.f32 %v6857_v20  ;;  %v4944_v62 = vpop.f32.mrf.mxu1 }
 0xd69   : > { %7357 = vrcp.f32 %v5005_v36  ;;  %v5006_v61 = vadd.f32 1.0, %v7336_v33  ;;  %v4963_v42 = vadd.f32 %v4944_v62, %v1680_v21 }
 0xd6a   : > { %v7338_v10 = vpop.eup %7337  ;;  %7359 = vtanh.f32 %v4961_v51  ;;  %v4946_v4 = vpop.f32.mrf.mxu1 }
 0xd6b   : > { %7361 = vrcp.f32 %v5006_v61  ;;  %v5007_v50 = vadd.f32 1.0, %v7338_v10  ;;  %v4964_v22 = vadd.f32 %v4946_v4, %v1682_v46 }
 0xd6c   : > { %v7340_v29 = vpop.eup %7339  ;;  %7363 = vtanh.f32 %v4962_v45 }
 0xd6d   : > { %7365 = vrcp.f32 %v5007_v50  ;;  %v5008_v8 = vadd.f32 1.0, %v7340_v29 }
 0xd6e   : > { %v7342_v57 = vpop.eup %7341  ;;  %7367 = vtanh.f32 %v4963_v42 }
 0xd6f   : > { %v7344_v0 = vpop.eup %7343  ;;  %7369 = vrcp.f32 %v5008_v8 }
 0xd70   : > { %v7346_v28 = vpop.eup %7345  ;;  %7371 = vtanh.f32 %v4964_v22  ;;  %v5009_v52 = vadd.f32 1.0, %v7344_v0 }
 0xd71   : > { %v7348_v53 = vpop.eup %7347 }
 0xd72   : > { %v7350_v23 = vpop.eup %7349  ;;  %v5010_v34 = vadd.f32 1.0, %v7348_v53  ;;  %7373 = vrcp.f32 %v5009_v52 }
 0xd73   : > { %v7352_v20 = vpop.eup %7351 }
 0xd74   : > { %v7354_v31 = vpop.eup %7353  ;;  %v5011_v43 = vadd.f32 1.0, %v7352_v20 }
 0xd75   : > { %v7356_v51 = vpop.eup %7355 }
 0xd76   : > { %v7358_v48 = vpop.eup %7357  ;;  %v5012_v22 = vadd.f32 1.0, %v7356_v51 }
 0xd77   : > { %v7360_v59 = vpop.eup %7359  ;;  %v5041_v13 = vmul.f32 %v7358_v48, %v9818_v24 }
 0xd78   : > { %v7362_v36 = vpop.eup %7361  ;;  %v5045_v33 = vmul.f32 %v7360_v59, %v7342_v57 }
 0xd79   : > { %v7364_v45 = vpop.eup %7363  ;;  %v5042_v21 = vmul.f32 %v7362_v36, %v9822_v38 }
 0xd7a   : > { %v7366_v62 = vpop.eup %7365  ;;  %v10157_v61 = vadd.f32 %v5045_v33, %v5041_v13  ;;  %v5046_v10 = vmul.f32 %v7364_v45, %v7346_v28 }
 0xd7b   : > { %v7368_v42 = vpop.eup %7367  ;;  %v5043_v46 = vmul.f32 %v7366_v62, %v9826_v55 }
 0xd7c   : > { %v7370_v4 = vpop.eup %7369  ;;  %7375 = vtanh.f32 %v10157_v61  ;;  %v10161_v50 = vadd.f32 %v5046_v10, %v5042_v21  ;;  %v5047_v24 = vmul.f32 %v7368_v42, %v7350_v23 }
 0xd7d   : > { %v7372_v29 = vpop.eup %7371  ;;  %7377 = vrcp.f32 %v5010_v34  ;;  %v5044_v38 = vmul.f32 %v7370_v4, %v9829_v35 }
 0xd7e   : > { %7379 = vtanh.f32 %v10161_v50  ;;  %v10165_v8 = vadd.f32 %v5047_v24, %v5043_v46  ;;  %v5048_v57 = vmul.f32 %v7372_v29, %v7354_v31 }
 0xd7f   : > { %7381 = vrcp.f32 %v5011_v43  ;;  %v7374_v0 = vpop.eup %7373 }
 0xd80   : > { %7383 = vtanh.f32 %v10165_v8  ;;  %v10168_v55 = vadd.f32 %v5048_v57, %v5044_v38 }
 0xd81   : > { %7385 = vrcp.f32 %v5012_v22 }
 0xd82   : > { %7387 = vtanh.f32 %v10168_v55 }
 0xd89   : > { %v7376_v28 = vpop.eup %7375 }
 0xd8a   : > { %v7378_v53 = vpop.eup %7377  ;;  %v5057_v23 = vmul.f32 %v7376_v28, %v7374_v0 }
 0xd8b   : > { %v7380_v20 = vpop.eup %7379 }
 0xd8c   : > { %v7382_v51 = vpop.eup %7381  ;;  %5081 = vrot.lane.b32.xlu1 %v5057_v23, %s7619_s20  ;;  %v5058_v35 = vmul.f32 %v7380_v20, %v7378_v53 }
 0xd8d   : > { %v7384_v48 = vpop.eup %7383 }
 0xd8e   : > { %v7386_v59 = vpop.eup %7385  ;;  %5083 = vrot.lane.b32.xlu0 %v5058_v35, %s7619_s20  ;;  %v5059_v31 = vmul.f32 %v7384_v48, %v7382_v51 }
 0xd8f   : > { %v7388_v52 = vpop.eup %7387 }
 0xd90   : > { %5085 = vrot.lane.b32.xlu1 %v5059_v31, %s7619_s20  ;;  %v5060_v13 = vmul.f32 %v7388_v52, %v7386_v59 }
 0xd92   : > { %5087 = vrot.lane.b32.xlu0 %v5060_v13, %s7619_s20 }
 0xdfe   : > { %v5082_v36 = vpop.permute.xlu1 %5081 }
 0xdff   : > { %v10176_v33 = vsel %vm2623_vm12, 0.0, %v5082_v36 }
 0xe00   : > { %v5084_v45 = vpop.permute.xlu0 %5083  ;;  %5283 = vrot.lane.b32.xlu0 %v10176_v33, %s7610_s24  ;;  %v5123_v42 = vmul.f32 %v10176_v33, %v7856_v47  ;;  %v5117_v46 = vmul.f32 %v10176_v33, %v11365_v16  ;;  %v5111_v24 = vmul.f32 %v10176_v33, %v11367_v1  ;;  %v5105_v22 = vmul.f32 %v10176_v33, %v11369_v49 }
 0xe01   : > { %v10181_v34 = vsel %vm2623_vm12, %v5084_v45, 0.0  ;;  %v10190_v62 = vsel %vm2623_vm12, %v5082_v36, %v5084_v45 }
 0xe02   : > { %5287 = vrot.lane.b32.xlu1 %v10181_v34, %s7610_s24  ;;  %v5086_v21 = vpop.permute.xlu1 %5085  ;;  %v5125_v43 = vmul.f32 %v10181_v34, %v7867_v54  ;;  %v5119_v4 = vmul.f32 %v10181_v34, %v11366_v32  ;;  %v5113_v29 = vmul.f32 %v10181_v34, %v11368_v58  ;;  %v5107_v38 = vmul.f32 %v10181_v34, %v11370_v27 }
 0xe03   : > { %v10195_v10 = vsel %vm2623_vm12, 0.0, %v5086_v21  ;;  %v5124_v0 = vmul.f32 %v10190_v62, %v11371_v17  ;;  %v5118_v53 = vmul.f32 %v10190_v62, %v11372_v63  ;;  %v5112_v20 = vmul.f32 %v10190_v62, %v11373_v6 }
 0xe04   : > { %5211 = vrot.lane.b32.xlu0 %v10176_v33, %s7613_s11  ;;  %v5088_v57 = vpop.permute.xlu0 %5087  ;;  %v5126_v23 = vmul.f32 %v10195_v10, %v7856_v47  ;;  %v5120_v51 = vmul.f32 %v10195_v10, %v11365_v16  ;;  %v5106_v35 = vmul.f32 %v10190_v62, %v11374_v12  ;;  %v5114_v59 = vmul.f32 %v10195_v10, %v11367_v1 }
 0xe05   : > { %v10231_v28 = vsel %vm2623_vm12, %v5086_v21, %v5088_v57  ;;  %v5100_v48 = vsel %vm2623_vm12, %v5088_v57, 0.0  ;;  %v5108_v31 = vmul.f32 %v10195_v10, %v11369_v49  ;;  %v5131_v57 = vmul.f32 %v10181_v34, %v11377_v30 }
 0xe06   : > { %5215 = vrot.lane.b32.xlu1 %v10181_v34, %s7613_s11  ;;  %v5128_v52 = vmul.f32 %v5100_v48, %v7867_v54  ;;  %v5127_v13 = vmul.f32 %v10231_v28, %v11371_v17  ;;  %v5122_v36 = vmul.f32 %v5100_v48, %v11366_v32  ;;  %v5121_v45 = vmul.f32 %v10231_v28, %v11372_v63 }
 0xe07   : > { %v5116_v21 = vmul.f32 %v5100_v48, %v11368_v58 }
 0xe08   : > { %5285 = vrot.lane.b32.xlu0 %v10190_v62, %s7610_s24 }
 0xe0a   : > { %5289 = vrot.lane.b32.xlu1 %v10195_v10, %s7610_s24 }
 0xe0c   : > { %5263 = vrot.lane.b32.xlu0 %v5123_v42, %s7611_s29  ;;  %v5115_v42 = vmul.f32 %v10231_v28, %v11373_v6 }
 0xe0e   : > { %5267 = vrot.lane.b32.xlu1 %v5125_v43, %s7611_s29  ;;  %v5110_v43 = vmul.f32 %v5100_v48, %v11370_v27 }
 0xe10   : > { %5237 = vrot.lane.b32.xlu0 %v5117_v46, %s7612_s30  ;;  %v5109_v46 = vmul.f32 %v10231_v28, %v11374_v12 }
 0xe12   : > { %5241 = vrot.lane.b32.xlu1 %v5119_v4, %s7612_s30  ;;  %v5130_v4 = vmul.f32 %v10190_v62, %v11375_v25 }
 0xe14   : > { %5213 = vrot.lane.b32.xlu0 %v10190_v62, %s7613_s11 }
 0xe16   : > { %5217 = vrot.lane.b32.xlu1 %v10195_v10, %s7613_s11 }
 0xe18   : > { %5191 = vrot.lane.b32.xlu0 %v5111_v24, %s7614_s12  ;;  %v5132_v24 = vmul.f32 %v10195_v10, %v11376_v19 }
 0xe1a   : > { %5195 = vrot.lane.b32.xlu1 %v5113_v29, %s7614_s12  ;;  %v5134_v29 = vmul.f32 %v5100_v48, %v11377_v30 }
 0xe1c   : > { %5165 = vrot.lane.b32.xlu0 %v5105_v22, %s7615_s15  ;;  %v5133_v22 = vmul.f32 %v10231_v28, %v11375_v25 }
 0xe1e   : > { %5169 = vrot.lane.b32.xlu1 %v5107_v38, %s7615_s15  ;;  %v5129_v38 = vmul.f32 %v10176_v33, %v11376_v19 }
 0xe20   : > { %5265 = vrot.lane.b32.xlu0 %v5124_v0, %s7611_s29  ;;  %v10311_v0 = vld [vmem:[%s11059_s2 + $0x18] sm:$0xff] }
 0xe21   : > { %11402 = vst [vmem:[#allocation23_spill] sm:$0xff] %v10311_v0 }
 0xe22   : > { %5291 = vrot.lane.b32.xlu1 %v10231_v28, %s7610_s24 }
 0xe24   : > { %5239 = vrot.lane.b32.xlu0 %v5118_v53, %s7612_s30  ;;  %v10317_v53 = vld [vmem:[%s11059_s2 + $0x8] sm:$0xff] }
 0xe25   : > { %11403 = vst [vmem:[#allocation24_spill] sm:$0xff] %v10317_v53 }
 0xe26   : > { %5269 = vrot.lane.b32.xlu1 %v5126_v23, %s7611_s29  ;;  %v10323_v23 = vld [vmem:[%s11059_s2 + $0x10] sm:$0xff] }
 0xe27   : > { %11404 = vst [vmem:[#allocation25_spill] sm:$0xff] %v10323_v23 }
 0xe28   : > { %5193 = vrot.lane.b32.xlu0 %v5112_v20, %s7614_s12  ;;  %v10335_v20 = vld [vmem:[%s11059_s2 + $0x38] sm:$0xff] }
 0xe29   : > { %11406 = vst [vmem:[#allocation27_spill] sm:$0xff] %v10335_v20 }
 0xe2a   : > { %5243 = vrot.lane.b32.xlu1 %v5120_v51, %s7612_s30  ;;  %v10341_v51 = vld [vmem:[%s11059_s2 + $0x28] sm:$0xff] }
 0xe2b   : > { %11407 = vst [vmem:[#allocation28_spill] sm:$0xff] %v10341_v51 }
 0xe2c   : > { %5167 = vrot.lane.b32.xlu0 %v5106_v35, %s7615_s15  ;;  %v10347_v35 = vld [vmem:[%s11059_s2 + $0x30] sm:$0xff] }
 0xe2d   : > { %11408 = vst [vmem:[#allocation29_spill] sm:$0xff] %v10347_v35 }
 0xe2e   : > { %5219 = vrot.lane.b32.xlu1 %v10231_v28, %s7613_s11 }
 0xe30   : > { %5293 = vrot.lane.b32.xlu0 %v5100_v48, %s7610_s24 }
 0xe32   : > { %5197 = vrot.lane.b32.xlu1 %v5114_v59, %s7614_s12 }
 0xe34   : > { %5221 = vrot.lane.b32.xlu0 %v5100_v48, %s7613_s11 }
 0xe36   : > { %5171 = vrot.lane.b32.xlu1 %v5108_v31, %s7615_s15 }
 0xe38   : > { %5149 = vrot.lane.b32.xlu0 %v5100_v48, %s11276_s18  ;;  %v10353_v48 = vld [vmem:[%s11059_s2 + $0x20] sm:$0xff] }
 0xe39   : > { %11409 = vst [vmem:[#allocation30_spill] sm:$0xff] %v10353_v48 }
 0xe3a   : > { %5147 = vrot.lane.b32.xlu1 %v10231_v28, %s11276_s18 }
 0xe3c   : > { %5273 = vrot.lane.b32.xlu0 %v5128_v52, %s7611_s29 }
 0xe3e   : > { %5271 = vrot.lane.b32.xlu1 %v5127_v13, %s7611_s29 }
 0xe40   : > { %5247 = vrot.lane.b32.xlu0 %v5122_v36, %s7612_s30 }
 0xe42   : > { %5245 = vrot.lane.b32.xlu1 %v5121_v45, %s7612_s30 }
 0xe44   : > { %5141 = vrot.lane.b32.xlu0 %v10190_v62, %s11276_s18 }
 0xe46   : > { %5145 = vrot.lane.b32.xlu1 %v10195_v10, %s11276_s18 }
 0xe48   : > { %5201 = vrot.lane.b32.xlu0 %v5116_v21, %s7614_s12 }
 0xe4a   : > { %5199 = vrot.lane.b32.xlu1 %v5115_v42, %s7614_s12 }
 0xe4c   : > { %5175 = vrot.lane.b32.xlu0 %v5110_v43, %s7615_s15 }
 0xe4e   : > { %5173 = vrot.lane.b32.xlu1 %v5109_v46, %s7615_s15 }
 0xe50   : > { %5139 = vrot.lane.b32.xlu0 %v10176_v33, %s11276_s18 }
 0xe52   : > { %5143 = vrot.lane.b32.xlu1 %v10181_v34, %s11276_s18  ;;  %v10329_v34 = vld [vmem:[%s11059_s2] sm:$0xff] }
 0xe53   : > { %11405 = vst [vmem:[#allocation26_spill] sm:$0xff] %v10329_v34 }
 0xe54   : > { %5311 = vrot.lane.b32.xlu0 %v5130_v4, %s11223_s23 }
 0xe56   : > { %5315 = vrot.lane.b32.xlu1 %v5132_v24, %s11223_s23 }
 0xe58   : > { %5319 = vrot.lane.b32.xlu0 %v5134_v29, %s11223_s23 }
 0xe5a   : > { %5317 = vrot.lane.b32.xlu1 %v5133_v22, %s11223_s23 }
 0xe5c   : > { %5309 = vrot.lane.b32.xlu0 %v5129_v38, %s11223_s23 }
 0xe5e   : > { %5313 = vrot.lane.b32.xlu1 %v5131_v57, %s11223_s23 }
 0xe60   : > { %1741 = vperm.xlu0 %7003, %v10311_v0  }
 0xe62   : > { %1731 = vperm.xlu1 %7004, %v10317_v53  }
 0xe64   : > { %1736 = vperm.xlu0 %7003, %v10323_v23  }
 0xe66   : > { %1726 = vperm.xlu1 %7004, %v10329_v34  }
 0xe68   : > { %1761 = vperm.xlu0 %7003, %v10335_v20  }
 0xe6a   : > { %1751 = vperm.xlu1 %7004, %v10341_v51  }
 0xe6c   : > { %1756 = vperm.xlu0 %7003, %v10347_v35  }
 0xe6e   : > { %1746 = vperm.xlu1 %7004, %v10353_v48  }
 0xe72   : > { %v5284_v59 = vpop.permute.xlu0 %5283 }
 0xe74   : > { %v5288_v31 = vpop.permute.xlu1 %5287 }
 0xe76   : > { %v10357_v52 = vpop.permute.xlu0 %5211 }
 0xe78   : > { %v10359_v13 = vpop.permute.xlu1 %5215 }
 0xe7a   : > { %v5286_v36 = vpop.permute.xlu0 %5285 }
 0xe7b   : > { %v5296_v6 = vsel %vm2314_vm13, %v5286_v36, %v5288_v31  ;;  %v5295_v17 = vsel %vm2314_vm13, %v5284_v59, %v5286_v36 }
 0xe7c   : > { %v5290_v45 = vpop.permute.xlu1 %5289 }
 0xe7e   : > { %v5264_v21 = vpop.permute.xlu0 %5263 }
 0xe80   : > { %v5268_v42 = vpop.permute.xlu1 %5267 }
 0xe82   : > { %v5238_v43 = vpop.permute.xlu0 %5237 }
 0xe84   : > { %v5242_v46 = vpop.permute.xlu1 %5241 }
 0xe86   : > { %v5214_v4 = vpop.permute.xlu0 %5213 }
 0xe88   : > { %v5218_v24 = vpop.permute.xlu1 %5217 }
 0xe8a   : > { %v10361_v29 = vpop.permute.xlu0 %5191 }
 0xe8c   : > { %v10363_v22 = vpop.permute.xlu1 %5195 }
 0xe8e   : > { %v10365_v38 = vpop.permute.xlu0 %5165 }
 0xe90   : > { %v10367_v57 = vpop.permute.xlu1 %5169 }
 0xe92   : > { %v5266_v48 = vpop.permute.xlu0 %5265 }
 0xe94   : > { %v5292_v35 = vpop.permute.xlu1 %5291 }
 0xe95   : > { %v5297_v12 = vsel %vm2314_vm13, %v5290_v45, %v5292_v35 }
 0xe96   : > { %v5240_v51 = vpop.permute.xlu0 %5239 }
 0xe98   : > { %v5270_v20 = vpop.permute.xlu1 %5269 }
 0xe9a   : > { %v5194_v34 = vpop.permute.xlu0 %5193 }
 0xe9c   : > { %v5244_v23 = vpop.permute.xlu1 %5243 }
 0xe9e   : > { %v10369_v53 = vpop.permute.xlu0 %5167 }
 0xea0   : > { %v5220_v0 = vpop.permute.xlu1 %5219 }
 0xea2   : > { %v5294_v30 = vpop.permute.xlu0 %5293 }
 0xea3   : > { %v5298_v19 = vsel %vm2314_vm13, %v5292_v35, %v5294_v30 }
 0xea4   : > { %5329 = vmatprep.subr.mxu0 %v5298_v19  ;;  %v5198_v25 = vpop.permute.xlu1 %5197 }
 0xea5   : > { %5330 = vmatpush1.msra.mxu0 %v5297_v12  ;;  %v5276_v12 = vsel %vm2307_vm7, %v5266_v48, %v5268_v42 }
 0xea6   : > { %v5222_v63 = vpop.permute.xlu0 %5221  ;;  %5331 = vmatprep.subr.mxu0 %v5296_v6  ;;  %v5275_v6 = vsel %vm2307_vm7, %v5264_v21, %v5266_v48  ;;  %v5225_v48 = vsel %vm2282_vm14, %v5218_v24, %v5220_v0  ;;  %v5223_v21 = vsel %vm2282_vm14, %v10357_v52, %v5214_v4 }
 0xea7   : > { %5332 = vmatpush1.msra.mxu0 %v5295_v17 }
 0xea8   : > { %v5172_v27 = vpop.permute.xlu1 %5171 }
 0xeaa   : > { %v5150_v49 = vpop.permute.xlu0 %5149 }
 0xeac   : > { %v5148_v58 = vpop.permute.xlu1 %5147 }
 0xeae   : > { %v5274_v1 = vpop.permute.xlu0 %5273 }
 0xeb0   : > { %v5272_v32 = vpop.permute.xlu1 %5271 }
 0xeb1   : > { %v5278_v16 = vsel %vm2307_vm7, %v5272_v32, %v5274_v1  ;;  %v5277_v19 = vsel %vm2307_vm7, %v5270_v20, %v5272_v32  ;;  %v5250_v1 = vsel %vm2293_vm8, %v5240_v51, %v5242_v46  ;;  %v5226_v20 = vsel %vm2282_vm14, %v5220_v0, %v5222_v63 }
 0xeb2   : > { %v5248_v30 = vpop.permute.xlu0 %5247  ;;  %5333 = vmatprep.subr.mxu0 %v5278_v16  ;;  %v5249_v16 = vsel %vm2293_vm8, %v5238_v43, %v5240_v51  ;;  %v5204_v63 = vsel %vm2275_vm9, %v5194_v34, %v10363_v22  ;;  %v5177_v22 = vsel %vm2261_vm10, %v10365_v38, %v10369_v53 }
 0xeb3   : > { %5334 = vmatpush1.msra.mxu0 %v5277_v19 }
 0xeb4   : > { %5335 = vmatprep.subr.mxu0 %v5276_v12  ;;  %v5246_v35 = vpop.permute.xlu1 %5245  ;;  %v5104_v12 = vmul.f32 %v10231_v28, %v7701_v9 }
 0xeb5   : > { %5336 = vmatpush1.msra.mxu0 %v5275_v6  ;;  %v5252_v17 = vsel %vm2293_vm8, %v5246_v35, %v5248_v30  ;;  %v5251_v59 = vsel %vm2293_vm8, %v5244_v23, %v5246_v35  ;;  %v5224_v23 = vsel %vm2282_vm14, %v5214_v4, %v10359_v13  ;;  %v5203_v13 = vsel %vm2275_vm9, %v10361_v29, %v5194_v34 }
 0xeb6   : > { %v5142_v31 = vpop.permute.xlu0 %5141  ;;  %5337 = vmatprep.subr.mxu0 %v5252_v17  ;;  %v5178_v4 = vsel %vm2261_vm10, %v10369_v53, %v10367_v57  ;;  %v5154_v34 = vsel %vm2250_vm15, %v5148_v58, %v5150_v49  ;;  %v5103_v53 = vmul.f32 %v10195_v10, %v7696_v7  ;;  %v5101_v49 = vmul.f32 %v10176_v33, %v7696_v7 }
 0xeb7   : > { %5338 = vmatpush1.msra.mxu0 %v5251_v59  ;;  %v11410_v33 = vmov 0.0  }
 0xeb8   : > { %5339 = vmatprep.subr.mxu0 %v5250_v1  ;;  %v5146_v32 = vpop.permute.xlu1 %5145 }
 0xeb9   : > { %5340 = vmatpush1.msra.mxu0 %v5249_v16  ;;  %v11414_v16 = vld [vmem:[#allocation53_spill] sm:$0xff] }
 0xeba   : > { %v5202_v36 = vpop.permute.xlu0 %5201  ;;  %5341 = vmatprep.subr.mxu0 %v5226_v20 }
 0xebb   : > { %5342 = vmatpush1.msra.mxu0 %v5225_v48 }
 0xebc   : > { %5343 = vmatprep.subr.mxu0 %v5224_v23  ;;  %v5200_v45 = vpop.permute.xlu1 %5199  ;;  %v11415_v23 = vld [vmem:[#allocation54_spill] sm:$0xff] }
 0xebd   : > { %v5205_v42 = vsel %vm2275_vm9, %v5198_v25, %v5200_v45  ;;  %5344 = vmatpush1.msra.mxu0 %v5223_v21  ;;  %v5206_v51 = vsel %vm2275_vm9, %v5200_v45, %v5202_v36 }
 0xebe   : > { %v5176_v43 = vpop.permute.xlu0 %5175  ;;  %5345 = vmatprep.subr.mxu0 %v5206_v51 }
 0xebf   : > { %5346 = vmatpush1.msra.mxu0 %v5205_v42 }
 0xec0   : > { %5347 = vmatprep.subr.mxu0 %v5204_v63  ;;  %v5174_v0 = vpop.permute.xlu1 %5173 }
 0xec1   : > { %v5179_v46 = vsel %vm2261_vm10, %v5172_v27, %v5174_v0  ;;  %5348 = vmatpush1.msra.mxu0 %v5203_v13  ;;  %v5180_v52 = vsel %vm2261_vm10, %v5174_v0, %v5176_v43  ;;  %v5153_v27 = vsel %vm2250_vm15, %v5146_v32, %v5148_v58  ;;  %v5102_v58 = vmul.f32 %v10190_v62, %v7701_v9  ;;  %v11416_v43 = vld [vmem:[#allocation55_spill] sm:$0xff] }
 0xec2   : > { %v5140_v25 = vpop.permute.xlu0 %5139  ;;  %5349 = vmatprep.subr.mxu0 %v5180_v52  ;;  %v11417_v52 = vld [vmem:[#allocation56_spill] sm:$0xff] }
 0xec3   : > { %5350 = vmatpush1.msra.mxu0 %v5179_v46  ;;  %v5151_v30 = vsel %vm2250_vm15, %v5140_v25, %v5142_v31 }
 0xec4   : > { %5351 = vmatprep.subr.mxu0 %v5178_v4  ;;  %v5144_v24 = vpop.permute.xlu1 %5143 }
 0xec5   : > { %5352 = vmatpush1.msra.mxu0 %v5177_v22  ;;  %v5152_v19 = vsel %vm2250_vm15, %v5142_v31, %v5144_v24 }
 0xec6   : > { %v5312_v29 = vpop.permute.xlu0 %5311  ;;  %5353 = vmatprep.subr.mxu0 %v5154_v34 }
 0xec7   : > { %5354 = vmatpush1.msra.mxu0 %v5153_v27  ;;  %v11418_v27 = vld [vmem:[#allocation57_spill] sm:$0xff] }
 0xec8   : > { %5355 = vmatprep.subr.mxu0 %v5152_v19  ;;  %v5316_v57 = vpop.permute.xlu1 %5315 }
 0xec9   : > { %5356 = vmatpush1.msra.mxu0 %v5151_v30 }
 0xeca   : > { %v5320_v38 = vpop.permute.xlu0 %5319  ;;  %5357 = vmatprep.subr.mxu0 %v5104_v12 }
 0xecb   : > { %5358 = vmatpush1.msra.mxu0 %v5103_v53  ;;  %v11419_v53 = vld [vmem:[#allocation58_spill] sm:$0xff] }
 0xecc   : > { %5359 = vmatprep.subr.mxu0 %v5102_v58  ;;  %v5318_v35 = vpop.permute.xlu1 %5317 }
 0xecd   : > { %v5323_v6 = vsel %vm2325_vm11, %v5316_v57, %v5318_v35  ;;  %5360 = vmatpush1.msra.mxu0 %v5101_v49  ;;  %v5324_v28 = vsel %vm2325_vm11, %v5318_v35, %v5320_v38 }
 0xece   : > { %5389 = vmatprep.subr.mxu0 %v5324_v28  ;;  %v5310_v17 = vpop.permute.xlu0 %5309 }
 0xecf   : > { %5390 = vmatpush2.msra.mxu0 %v5323_v6  ;;  %v5321_v31 = vsel %vm2325_vm11, %v5310_v17, %v5312_v29  ;;  %v11420_v6 = vld [vmem:[#allocation59_spill] sm:$0xff] }
 0xed0   : > { %v5314_v10 = vpop.permute.xlu1 %5313 }
 0xed1   : > { %v5322_v59 = vsel %vm2325_vm11, %v5312_v29, %v5314_v10 }
 0xed2   : > { %5391 = vmatprep.subr.mxu0 %v5322_v59 }
 0xed3   : > { %5392 = vmatpush2.msra.mxu0 %v5321_v31  ;;  %v11421_v31 = vld [vmem:[#allocation60_spill] sm:$0xff] }
 0xed4   : > { %5394 = vmatmul.mubr.f32.vlgmr.msra.gmra.mxu0 %v10043_v11  ;;  %6349 = vmatprep.subr.mxu0 %v11410_v33 }
 0xed5   : > { %6859 = vmatprep.mubr.msk.f32.mxu0 %vm2203_vm5, %v10049_v44 }
 0xed8   : > { %5400 = vmatmul.mubr.f32.gmra.mxu0 %v10056_v3 }
 0xed9   : > { %6860 = vmatprep.mubr.msk.f32.mxu0 %vm2203_vm5, %v10062_v2  ;;  %v11411_v2 = vld [vmem:[#allocation50_spill] sm:$0xff] }
 0xedb   : > { %v1742_v3 = vpop.permute.xlu0 %1741 }
 0xedc   : > { %5406 = vmatmul.mubr.f32.gmra.mxu0 %v10069_v41  ;;  %v1879_v25 = vadd.f32 %v11417_v52, %v1742_v3  ;;  %v1881_v29 = vadd.f32 %v11418_v27, %v1742_v3 }
 0xedd   : > { %6861 = vmatprep.mubr.msk.f32.mxu0 %vm2203_vm5, %v10075_v15  ;;  %v1732_v11 = vpop.permute.xlu1 %1731 }
 0xee0   : > { %5412 = vmatmul.mubr.f32.gmra.mxu0 %v10082_v60  ;;  %v11412_v60 = vld [vmem:[#allocation51_spill] sm:$0xff] }
 0xee1   : > { %6862 = vmatprep.mubr.msk.f32.mxu0 %vm2203_vm5, %v10088_v40  ;;  %v1727_v44 = vpop.permute.xlu1 %1726 }
 0xee2   : > { %v1861_v41 = vadd.f32 %v11411_v2, %v1727_v44  ;;  %v1863_v40 = vadd.f32 %v11412_v60, %v1727_v44  ;;  %v11422_v60 = vld [vmem:[#allocation61_spill] sm:$0xff] }
 0xee4   : > { %5418 = vmatmul.mubr.f32.gmra.mxu0 %v10095_v18 }
 0xee5   : > { %6863 = vmatprep.mubr.msk.f32.mxu0 %vm2203_vm5, %v10101_v56  ;;  %v1752_v36 = vpop.permute.xlu1 %1751 }
 0xee8   : > { %5424 = vmatmul.mubr.f32.gmra.mxu0 %v10108_v14  ;;  %v11413_v14 = vld [vmem:[#allocation52_spill] sm:$0xff] }
 0xee9   : > { %6864 = vmatprep.mubr.msk.f32.mxu0 %vm2203_vm5, %v10114_v5  ;;  %v1867_v62 = vadd.f32 %v11413_v14, %v1732_v11  ;;  %v1747_v22 = vpop.permute.xlu1 %1746 }
 0xeea   : > { %v1885_v38 = vadd.f32 %v11419_v53, %v1747_v22  ;;  %v1887_v28 = vadd.f32 %v11420_v6, %v1747_v22 }
 0xeec   : > { %5430 = vmatmul.mubr.f32.gmra.mxu0 %v10121_v39  ;;  %v1737_v39 = vpop.permute.xlu0 %1736 }
 0xeed   : > { %6865 = vmatprep.mubr.msk.f32.mxu0 %vm2203_vm5, %v10127_v26  ;;  %v1869_v26 = vadd.f32 %v11414_v16, %v1732_v11  ;;  %v1873_v45 = vadd.f32 %v11415_v23, %v1737_v39  ;;  %v1875_v63 = vadd.f32 %v11416_v43, %v1737_v39  ;;  %v1891_v11 = vadd.f32 %v11421_v31, %v1752_v36 }
 0xef0   : > { %5436 = vmatmul.mubr.f32.gmra.mxu0 %v10134_v37  ;;  %v1762_v12 = vpop.permute.xlu0 %1761 }
 0xf94   : > { %v5395_v15 = vpop.f32.mrf.mxu0 }
 0xf95   : > { %v5442_v18 = vadd.f32 %v5395_v15, %v1861_v41 }
 0xf96   : > { %v5397_v56 = vpop.f32.mrf.mxu0 }
 0xf97   : > { %v6866_v5 = vmul.f32 -1.442695, %v5442_v18  ;;  %v5443_v1 = vadd.f32 %v5397_v56, %v1863_v40  ;;  %v1893_v40 = vadd.f32 %v11422_v60, %v1752_v36  ;;  %v1757_v56 = vpop.permute.xlu0 %1756 }
 0xf98   : > { %v5401_v32 = vpop.f32.mrf.mxu0 }
 0xf99   : > { %7389 = vpow2.f32 %v6866_v5  ;;  %v6867_v37 = vmul.f32 -1.442695, %v5443_v1  ;;  %v5444_v20 = vadd.f32 %v5401_v32, %v1867_v62 }
 0xf9a   : > { %v5403_v48 = vpop.f32.mrf.mxu0 }
 0xf9b   : > { %7391 = vpow2.f32 %v6867_v37  ;;  %v6868_v21 = vmul.f32 -1.442695, %v5444_v20  ;;  %v5445_v42 = vadd.f32 %v5403_v48, %v1869_v26  ;;  %v11423_v20 = vld [vmem:[#allocation62_spill] sm:$0xff] }
 0xf9c   : > { %v5407_v51 = vpop.f32.mrf.mxu0  ;;  %v1897_v48 = vadd.f32 %v11423_v20, %v1757_v56 }
 0xf9d   : > { %7393 = vpow2.f32 %v6868_v21  ;;  %v6869_v0 = vmul.f32 -1.442695, %v5445_v42  ;;  %v5446_v13 = vadd.f32 %v5407_v51, %v1873_v45  ;;  %v11424_v42 = vld [vmem:[#allocation63_spill] sm:$0xff] }
 0xf9e   : > { %v5409_v46 = vpop.f32.mrf.mxu0  ;;  %v1899_v51 = vadd.f32 %v11424_v42, %v1757_v56 }
 0xf9f   : > { %7395 = vpow2.f32 %v6869_v0  ;;  %v6870_v4 = vmul.f32 -1.442695, %v5446_v13  ;;  %v5447_v24 = vadd.f32 %v5409_v46, %v1875_v63  ;;  %v11425_v46 = vld [vmem:[#allocation64_spill] sm:$0xff] }
 0xfa0   : > { %v5413_v34 = vpop.f32.mrf.mxu0  ;;  %v1903_v52 = vadd.f32 %v11425_v46, %v1762_v12 }
 0xfa1   : > { %7397 = vpow2.f32 %v6870_v4  ;;  %v6871_v19 = vmul.f32 -1.442695, %v5447_v24  ;;  %v5448_v30 = vadd.f32 %v5413_v34, %v1879_v25  ;;  %v11426_v34 = vld [vmem:[#allocation65_spill] sm:$0xff] }
 0xfa2   : > { %v5415_v57 = vpop.f32.mrf.mxu0  ;;  %v1905_v27 = vadd.f32 %v11426_v34, %v1762_v12 }
 0xfa3   : > { %7399 = vpow2.f32 %v6871_v19  ;;  %v6872_v58 = vmul.f32 -1.442695, %v5448_v30  ;;  %v5449_v49 = vadd.f32 %v5415_v57, %v1881_v29 }
 0xfa4   : > { %v5419_v35 = vpop.f32.mrf.mxu0 }
 0xfa5   : > { %7401 = vpow2.f32 %v6872_v58  ;;  %v6873_v17 = vmul.f32 -1.442695, %v5449_v49  ;;  %v5450_v10 = vadd.f32 %v5419_v35, %v1885_v38 }
 0xfa6   : > { %v7390_v59 = vpop.eup %7389  ;;  %v5421_v44 = vpop.f32.mrf.mxu0 }
 0xfa7   : > { %v5494_v3 = vadd.f32 1.0, %v7390_v59  ;;  %7403 = vpow2.f32 %v6873_v17  ;;  %v6874_v2 = vmul.f32 -1.442695, %v5450_v10  ;;  %v5451_v41 = vadd.f32 %v5421_v44, %v1887_v28 }
 0xfa8   : > { %v7392_v15 = vpop.eup %7391  ;;  %v5425_v18 = vpop.f32.mrf.mxu0 }
 0xfa9   : > { %7405 = vrcp.f32 %v5494_v3  ;;  %v5495_v14 = vadd.f32 1.0, %v7392_v15  ;;  %v6875_v62 = vmul.f32 -1.442695, %v5451_v41  ;;  %v5452_v5 = vadd.f32 %v5425_v18, %v1891_v11 }
 0xfaa   : > { %v7394_v1 = vpop.eup %7393  ;;  %7407 = vpow2.f32 %v6874_v2  ;;  %v5427_v39 = vpop.f32.mrf.mxu0 }
 0xfab   : > { %7409 = vrcp.f32 %v5495_v14  ;;  %v5496_v32 = vadd.f32 1.0, %v7394_v1  ;;  %v6876_v16 = vmul.f32 -1.442695, %v5452_v5  ;;  %v5453_v26 = vadd.f32 %v5427_v39, %v1893_v40 }
 0xfac   : > { %v7396_v37 = vpop.eup %7395  ;;  %7411 = vpow2.f32 %v6875_v62  ;;  %v5431_v23 = vpop.f32.mrf.mxu0 }
 0xfad   : > { %7413 = vrcp.f32 %v5496_v32  ;;  %v5497_v36 = vadd.f32 1.0, %v7396_v37  ;;  %v6877_v45 = vmul.f32 -1.442695, %v5453_v26  ;;  %v5454_v43 = vadd.f32 %v5431_v23, %v1897_v48 }
 0xfae   : > { %v7398_v21 = vpop.eup %7397  ;;  %7415 = vpow2.f32 %v6876_v16  ;;  %v5433_v63 = vpop.f32.mrf.mxu0 }
 0xfaf   : > { %7417 = vrcp.f32 %v5497_v36  ;;  %v5498_v0 = vadd.f32 1.0, %v7398_v21  ;;  %v5455_v25 = vadd.f32 %v5433_v63, %v1899_v51 }
 0xfb0   : > { %v7400_v13 = vpop.eup %7399  ;;  %7419 = vpow2.f32 %v6877_v45  ;;  %v5437_v4 = vpop.f32.mrf.mxu0 }
 0xfb1   : > { %7421 = vrcp.f32 %v5498_v0  ;;  %v5499_v24 = vadd.f32 1.0, %v7400_v13  ;;  %v5456_v29 = vadd.f32 %v5437_v4, %v1903_v52 }
 0xfb2   : > { %v7402_v22 = vpop.eup %7401  ;;  %7423 = vtanh.f32 %v5454_v43  ;;  %v5439_v19 = vpop.f32.mrf.mxu0 }
 0xfb3   : > { %7425 = vrcp.f32 %v5499_v24  ;;  %v5500_v30 = vadd.f32 1.0, %v7402_v22  ;;  %v5457_v53 = vadd.f32 %v5439_v19, %v1905_v27 }
 0xfb4   : > { %v7404_v57 = vpop.eup %7403  ;;  %7427 = vtanh.f32 %v5455_v25 }
 0xfb5   : > { %7429 = vrcp.f32 %v5500_v30  ;;  %v5501_v38 = vadd.f32 1.0, %v7404_v57  ;;  %v11428_v30 = vld [vmem:[#allocation6_spill] sm:$0xff] }
 0xfb6   : > { %v7406_v58 = vpop.eup %7405  ;;  %7431 = vtanh.f32 %v5456_v29  ;;  %v11427_v29 = vld [vmem:[#allocation5_spill] sm:$0xff] }
 0xfb7   : > { %v7408_v49 = vpop.eup %7407  ;;  %7433 = vrcp.f32 %v5501_v38 }
 0xfb8   : > { %v7410_v35 = vpop.eup %7409  ;;  %7435 = vtanh.f32 %v5457_v53  ;;  %v5502_v11 = vadd.f32 1.0, %v7408_v49  ;;  %v11429_v53 = vld [vmem:[#allocation9_spill] sm:$0xff] }
 0xfb9   : > { %v7412_v6 = vpop.eup %7411 }
 0xfba   : > { %v7414_v28 = vpop.eup %7413  ;;  %v5503_v15 = vadd.f32 1.0, %v7412_v6  ;;  %7437 = vrcp.f32 %v5502_v11  ;;  %v11434_v11 = vld [vmem:[#allocation10_spill] sm:$0xff] }
 0xfbb   : > { %v7416_v17 = vpop.eup %7415 }
 0xfbc   : > { %v7418_v12 = vpop.eup %7417  ;;  %v5504_v62 = vadd.f32 1.0, %v7416_v17 }
 0xfbd   : > { %v7420_v10 = vpop.eup %7419 }
 0xfbe   : > { %v7422_v59 = vpop.eup %7421  ;;  %v5505_v16 = vadd.f32 1.0, %v7420_v10  ;;  %v11433_v10 = vld [vmem:[#allocation7_spill] sm:$0xff] }
 0xfbf   : > { %v7424_v31 = vpop.eup %7423  ;;  %v5534_v44 = vmul.f32 %v7422_v59, %v10157_v61 }
 0xfc0   : > { %v7426_v3 = vpop.eup %7425  ;;  %v5538_v2 = vmul.f32 %v7424_v31, %v7406_v58  ;;  %v11430_v58 = vld [vmem:[#allocation8_spill] sm:$0xff] }
 0xfc1   : > { %v7428_v41 = vpop.eup %7427  ;;  %v5535_v60 = vmul.f32 %v7426_v3, %v10161_v50 }
 0xfc2   : > { %v7430_v40 = vpop.eup %7429  ;;  %v10460_v18 = vadd.f32 %v5538_v2, %v5534_v44  ;;  %v5539_v56 = vmul.f32 %v7428_v41, %v7410_v35  ;;  %v11431_v35 = vld [vmem:[#allocation11_spill] sm:$0xff] }
 0xfc3   : > { %v7432_v14 = vpop.eup %7431  ;;  %v5536_v5 = vmul.f32 %v7430_v40, %v10165_v8  ;;  %v11435_v2 = vld [vmem:[#allocation15_spill] sm:$0xff] }
 0xfc4   : > { %v7434_v1 = vpop.eup %7433  ;;  %7439 = vtanh.f32 %v10460_v18  ;;  %v10464_v39 = vadd.f32 %v5539_v56, %v5535_v60  ;;  %v5540_v61 = vmul.f32 %v7432_v14, %v7414_v28  ;;  %v11432_v28 = vld [vmem:[#allocation12_spill] sm:$0xff]  ;;  %v11436_v60 = vld [vmem:[#allocation14_spill] sm:$0xff] }
 0xfc5   : > { %v7436_v32 = vpop.eup %7435  ;;  %7441 = vrcp.f32 %v5503_v15  ;;  %v5537_v50 = vmul.f32 %v7434_v1, %v10168_v55 }
 0xfc6   : > { %7443 = vtanh.f32 %v10464_v39  ;;  %v10468_v26 = vadd.f32 %v5540_v61, %v5536_v5  ;;  %v5541_v37 = vmul.f32 %v7436_v32, %v7418_v12 }
 0xfc7   : > { %7445 = vrcp.f32 %v5504_v62  ;;  %v7438_v20 = vpop.eup %7437 }
 0xfc8   : > { %7447 = vtanh.f32 %v10468_v26  ;;  %v10471_v8 = vadd.f32 %v5541_v37, %v5537_v50  ;;  %v11437_v37 = vld [vmem:[#allocation17_spill] sm:$0xff] }
 0xfc9   : > { %7449 = vrcp.f32 %v5505_v16 }
 0xfca   : > { %7451 = vtanh.f32 %v10471_v8 }
 0xfd1   : > { %v7440_v48 = vpop.eup %7439 }
 0xfd2   : > { %v7442_v23 = vpop.eup %7441  ;;  %v5550_v36 = vmul.f32 %v7440_v48, %v7438_v20  ;;  %v11438_v48 = vld [vmem:[#allocation13_spill] sm:$0xff] }
 0xfd3   : > { %v7444_v45 = vpop.eup %7443 }
 0xfd4   : > { %v7446_v21 = vpop.eup %7445  ;;  %5574 = vrot.lane.b32.xlu1 %v5550_v36, %s7619_s20  ;;  %v5551_v55 = vmul.f32 %v7444_v45, %v7442_v23  ;;  %v11439_v36 = vld [vmem:[#allocation16_spill] sm:$0xff] }
 0xfd5   : > { %v7448_v42 = vpop.eup %7447 }
 0xfd6   : > { %v7450_v51 = vpop.eup %7449  ;;  %5576 = vrot.lane.b32.xlu0 %v5551_v55, %s7619_s20  ;;  %v5552_v43 = vmul.f32 %v7448_v42, %v7446_v21 }
 0xfd7   : > { %v7452_v63 = vpop.eup %7451 }
 0xfd8   : > { %5578 = vrot.lane.b32.xlu1 %v5552_v43, %s7619_s20  ;;  %v5553_v0 = vmul.f32 %v7452_v63, %v7450_v51  ;;  %v11440_v51 = vld [vmem:[#allocation23_spill] sm:$0xff]  ;;  %v11441_v43 = vld [vmem:[#allocation24_spill] sm:$0xff]  ;;  %v11442_v63 = vld [vmem:[#allocation25_spill] sm:$0xff] }
 0xfda   : > { %5580 = vrot.lane.b32.xlu0 %v5553_v0, %s7619_s20  ;;  %v11443_v0 = vld [vmem:[#allocation26_spill] sm:$0xff] }
0x1046   : > { %v5575_v13 = vpop.permute.xlu1 %5574 }
0x1047   : > { %v10479_v46 = vsel %vm2623_vm12, 0.0, %v5575_v13 }
0x1048   : > { %v5577_v52 = vpop.permute.xlu0 %5576  ;;  %5776 = vrot.lane.b32.xlu0 %v10479_v46, %s7610_s24  ;;  %v5616_v34 = vmul.f32 %v10479_v46, %v7856_v47  ;;  %v5610_v19 = vmul.f32 %v10479_v46, %v11427_v29  ;;  %v5604_v38 = vmul.f32 %v10479_v46, %v11429_v53  ;;  %v5598_v6 = vmul.f32 %v10479_v46, %v11431_v35 }
0x1049   : > { %v10484_v25 = vsel %vm2623_vm12, %v5577_v52, 0.0  ;;  %v10493_v24 = vsel %vm2623_vm12, %v5575_v13, %v5577_v52  ;;  %v5622_v55 = vmul.f32 %v10479_v46, %v11438_v48  ;;  %v11444_v13 = vld [vmem:[#allocation27_spill] sm:$0xff]  ;;  %v11445_v52 = vld [vmem:[#allocation28_spill] sm:$0xff] }
0x104a   : > { %5780 = vrot.lane.b32.xlu1 %v10484_v25, %s7610_s24  ;;  %v5579_v4 = vpop.permute.xlu1 %5578  ;;  %v5618_v27 = vmul.f32 %v10484_v25, %v7867_v54  ;;  %v5612_v57 = vmul.f32 %v10484_v25, %v11428_v30  ;;  %v5606_v49 = vmul.f32 %v10484_v25, %v11430_v58  ;;  %v5600_v17 = vmul.f32 %v10484_v25, %v11432_v28 }
0x104b   : > { %v10498_v22 = vsel %vm2623_vm12, 0.0, %v5579_v4  ;;  %v5617_v59 = vmul.f32 %v10493_v24, %v11433_v10  ;;  %v5611_v44 = vmul.f32 %v10493_v24, %v11434_v11  ;;  %v5605_v41 = vmul.f32 %v10493_v24, %v11435_v2 }
0x104c   : > { %5704 = vrot.lane.b32.xlu0 %v10479_v46, %s7613_s11  ;;  %v5581_v12 = vpop.permute.xlu0 %5580  ;;  %v5619_v3 = vmul.f32 %v10498_v22, %v7856_v47  ;;  %v5613_v15 = vmul.f32 %v10498_v22, %v11427_v29  ;;  %v5599_v40 = vmul.f32 %v10493_v24, %v11436_v60  ;;  %v5607_v56 = vmul.f32 %v10498_v22, %v11429_v53 }
0x104d   : > { %v10534_v31 = vsel %vm2623_vm12, %v5579_v4, %v5581_v12  ;;  %v5593_v47 = vsel %vm2623_vm12, %v5581_v12, 0.0  ;;  %v5601_v14 = vmul.f32 %v10498_v22, %v11431_v35  ;;  %v5623_v20 = vmul.f32 %v10493_v24, %v11437_v37  ;;  %v11446_v4 = vld [vmem:[#allocation29_spill] sm:$0xff] }
0x104e   : > { %5708 = vrot.lane.b32.xlu1 %v10484_v25, %s7613_s11  ;;  %v5621_v62 = vmul.f32 %v5593_v47, %v7867_v54  ;;  %v5620_v5 = vmul.f32 %v10534_v31, %v11433_v10  ;;  %v5615_v1 = vmul.f32 %v5593_v47, %v11428_v30  ;;  %v5614_v61 = vmul.f32 %v10534_v31, %v11434_v11 }
0x104f   : > { %v5609_v54 = vmul.f32 %v5593_v47, %v11430_v58  ;;  %v5608_v32 = vmul.f32 %v10534_v31, %v11435_v2  ;;  %v5603_v16 = vmul.f32 %v5593_v47, %v11432_v28  ;;  %v5602_v50 = vmul.f32 %v10534_v31, %v11436_v60 }
0x1050   : > { %5778 = vrot.lane.b32.xlu0 %v10493_v24, %s7610_s24  ;;  %v5625_v23 = vmul.f32 %v10498_v22, %v11438_v48  ;;  %v5627_v45 = vmul.f32 %v5593_v47, %v11439_v36  ;;  %v5626_v21 = vmul.f32 %v10534_v31, %v11437_v37  ;;  %v5624_v42 = vmul.f32 %v10484_v25, %v11439_v36 }
0x1052   : > { %5782 = vrot.lane.b32.xlu1 %v10498_v22, %s7610_s24 }
0x1054   : > { %5756 = vrot.lane.b32.xlu0 %v5616_v34, %s7611_s29  ;;  %v11447_v34 = vld [vmem:[#allocation30_spill] sm:$0xff] }
0x1056   : > { %5760 = vrot.lane.b32.xlu1 %v5618_v27, %s7611_s29 }
0x1058   : > { %5730 = vrot.lane.b32.xlu0 %v5610_v19, %s7612_s30 }
0x105a   : > { %5734 = vrot.lane.b32.xlu1 %v5612_v57, %s7612_s30 }
0x105c   : > { %5706 = vrot.lane.b32.xlu0 %v10493_v24, %s7613_s11 }
0x105e   : > { %5710 = vrot.lane.b32.xlu1 %v10498_v22, %s7613_s11 }
0x1060   : > { %5684 = vrot.lane.b32.xlu0 %v5604_v38, %s7614_s12 }
0x1062   : > { %5688 = vrot.lane.b32.xlu1 %v5606_v49, %s7614_s12 }
0x1064   : > { %5658 = vrot.lane.b32.xlu0 %v5598_v6, %s7615_s15 }
0x1066   : > { %5662 = vrot.lane.b32.xlu1 %v5600_v17, %s7615_s15 }
0x1068   : > { %5758 = vrot.lane.b32.xlu0 %v5617_v59, %s7611_s29 }
0x106a   : > { %5784 = vrot.lane.b32.xlu1 %v10534_v31, %s7610_s24 }
0x106c   : > { %5732 = vrot.lane.b32.xlu0 %v5611_v44, %s7612_s30 }
0x106e   : > { %5762 = vrot.lane.b32.xlu1 %v5619_v3, %s7611_s29 }
0x1070   : > { %5686 = vrot.lane.b32.xlu0 %v5605_v41, %s7614_s12 }
0x1072   : > { %5736 = vrot.lane.b32.xlu1 %v5613_v15, %s7612_s30 }
0x1074   : > { %5660 = vrot.lane.b32.xlu0 %v5599_v40, %s7615_s15 }
0x1076   : > { %5712 = vrot.lane.b32.xlu1 %v10534_v31, %s7613_s11 }
0x1078   : > { %5786 = vrot.lane.b32.xlu0 %v5593_v47, %s7610_s24 }
0x107a   : > { %5690 = vrot.lane.b32.xlu1 %v5607_v56, %s7614_s12 }
0x107c   : > { %5714 = vrot.lane.b32.xlu0 %v5593_v47, %s7613_s11 }
0x107e   : > { %5664 = vrot.lane.b32.xlu1 %v5601_v14, %s7615_s15 }
0x1080   : > { %5642 = vrot.lane.b32.xlu0 %v5593_v47, %s11276_s18 }
0x1082   : > { %5640 = vrot.lane.b32.xlu1 %v10534_v31, %s11276_s18 }
0x1084   : > { %5766 = vrot.lane.b32.xlu0 %v5621_v62, %s7611_s29 }
0x1086   : > { %5764 = vrot.lane.b32.xlu1 %v5620_v5, %s7611_s29 }
0x1088   : > { %5740 = vrot.lane.b32.xlu0 %v5615_v1, %s7612_s30 }
0x108a   : > { %5738 = vrot.lane.b32.xlu1 %v5614_v61, %s7612_s30 }
0x108c   : > { %5634 = vrot.lane.b32.xlu0 %v10493_v24, %s11276_s18 }
0x108e   : > { %5638 = vrot.lane.b32.xlu1 %v10498_v22, %s11276_s18 }
0x1090   : > { %5694 = vrot.lane.b32.xlu0 %v5609_v54, %s7614_s12 }
0x1092   : > { %5692 = vrot.lane.b32.xlu1 %v5608_v32, %s7614_s12  ;;  %s6925_s12 = sshll.u32 %s11467_s14, 4 }
0x1093   : > { %s359_s26 = scalar_lea.vmem %s11067_s10, %s6925_s12 }
0x1094   : > { %5668 = vrot.lane.b32.xlu0 %v5603_v16, %s7615_s15 }
0x1096   : > { %5666 = vrot.lane.b32.xlu1 %v5602_v50, %s7615_s15 }
0x1098   : > { %5632 = vrot.lane.b32.xlu0 %v10479_v46, %s11276_s18 }
0x109a   : > { %5636 = vrot.lane.b32.xlu1 %v10484_v25, %s11276_s18 }
0x109c   : > { %5804 = vrot.lane.b32.xlu0 %v5623_v20, %s11223_s23 }
0x109e   : > { %5808 = vrot.lane.b32.xlu1 %v5625_v23, %s11223_s23 }
0x10a0   : > { %5812 = vrot.lane.b32.xlu0 %v5627_v45, %s11223_s23 }
0x10a2   : > { %5810 = vrot.lane.b32.xlu1 %v5626_v21, %s11223_s23 }
0x10a4   : > { %5802 = vrot.lane.b32.xlu0 %v5622_v55, %s11223_s23 }
0x10a6   : > { %5806 = vrot.lane.b32.xlu1 %v5624_v42, %s11223_s23 }
0x10a8   : > { %1964 = vperm.xlu0 %7003, %v11440_v51  }
0x10aa   : > { %1954 = vperm.xlu1 %7004, %v11441_v43  }
0x10ac   : > { %1959 = vperm.xlu0 %7003, %v11442_v63  }
0x10ae   : > { %1949 = vperm.xlu1 %7004, %v11443_v0  }
0x10b0   : > { %1984 = vperm.xlu0 %7003, %v11444_v13  }
0x10b2   : > { %1974 = vperm.xlu1 %7004, %v11445_v52  }
0x10b4   : > { %1979 = vperm.xlu0 %7003, %v11446_v4  }
0x10b6   : > { %1969 = vperm.xlu1 %7004, %v11447_v34  }
0x10ba   : > { %v5777_v27 = vpop.permute.xlu0 %5776 }
0x10bc   : > { %v5781_v25 = vpop.permute.xlu1 %5780 }
0x10be   : > { %v10620_v29 = vpop.permute.xlu0 %5704 }
0x10c0   : > { %v10622_v19 = vpop.permute.xlu1 %5708 }
0x10c2   : > { %v5779_v30 = vpop.permute.xlu0 %5778 }
0x10c3   : > { %v5789_v62 = vsel %vm2314_vm13, %v5779_v30, %v5781_v25  ;;  %v5788_v5 = vsel %vm2314_vm13, %v5777_v27, %v5779_v30 }
0x10c4   : > { %v5783_v57 = vpop.permute.xlu1 %5782 }
0x10c6   : > { %v5757_v53 = vpop.permute.xlu0 %5756 }
0x10c8   : > { %v5761_v38 = vpop.permute.xlu1 %5760 }
0x10ca   : > { %v5731_v58 = vpop.permute.xlu0 %5730 }
0x10cc   : > { %v5735_v49 = vpop.permute.xlu1 %5734 }
0x10ce   : > { %v5707_v35 = vpop.permute.xlu0 %5706 }
0x10cf   : > { %v5717_v4 = vsel %vm2282_vm14, %v5707_v35, %v10622_v19  ;;  %v5716_v34 = vsel %vm2282_vm14, %v10620_v29, %v5707_v35 }
0x10d0   : > { %v5711_v6 = vpop.permute.xlu1 %5710 }
0x10d2   : > { %v10624_v28 = vpop.permute.xlu0 %5684 }
0x10d4   : > { %v10626_v17 = vpop.permute.xlu1 %5688 }
0x10d6   : > { %v10628_v12 = vpop.permute.xlu0 %5658 }
0x10d8   : > { %v10630_v10 = vpop.permute.xlu1 %5662 }
0x10da   : > { %v5759_v59 = vpop.permute.xlu0 %5758 }
0x10db   : > { %v5769_v23 = vsel %vm2307_vm7, %v5759_v59, %v5761_v38  ;;  %v5768_v36 = vsel %vm2307_vm7, %v5757_v53, %v5759_v59 }
0x10dc   : > { %v5785_v11 = vpop.permute.xlu1 %5784 }
0x10dd   : > { %v5790_v56 = vsel %vm2314_vm13, %v5783_v57, %v5785_v11 }
0x10de   : > { %v5733_v44 = vpop.permute.xlu0 %5732 }
0x10df   : > { %v5743_v51 = vsel %vm2293_vm8, %v5733_v44, %v5735_v49  ;;  %v5742_v43 = vsel %vm2293_vm8, %v5731_v58, %v5733_v44 }
0x10e0   : > { %v5763_v3 = vpop.permute.xlu1 %5762 }
0x10e2   : > { %v5687_v2 = vpop.permute.xlu0 %5686 }
0x10e3   : > { %v5697_v53 = vsel %vm2275_vm9, %v5687_v2, %v10626_v17  ;;  %v5696_v38 = vsel %vm2275_vm9, %v10624_v28, %v5687_v2  ;;  %v5597_v2 = vmul.f32 %v10534_v31, %v7701_v9 }
0x10e4   : > { %v5737_v41 = vpop.permute.xlu1 %5736 }
0x10e6   : > { %v10632_v15 = vpop.permute.xlu0 %5660 }
0x10e7   : > { %v5671_v35 = vsel %vm2261_vm10, %v10632_v15, %v10630_v10 }
0x10e8   : > { %v5713_v60 = vpop.permute.xlu1 %5712 }
0x10e9   : > { %v5718_v13 = vsel %vm2282_vm14, %v5711_v6, %v5713_v60  ;;  %v5670_v6 = vsel %vm2261_vm10, %v10628_v12, %v10632_v15  ;;  %v5596_v12 = vmul.f32 %v10498_v22, %v7696_v7  ;;  %v5595_v15 = vmul.f32 %v10493_v24, %v7701_v9  ;;  %v7582_v9 = vld [vmem:[%s11060_s3 + $0x18] sm:$0xff]  ;;  %v7584_v24 = vld [vmem:[%s11060_s3 + $0x28] sm:$0xff] }
0x10ea   : > { %v5787_v40 = vpop.permute.xlu0 %5786 }
0x10eb   : > { %v5791_v47 = vsel %vm2314_vm13, %v5785_v11, %v5787_v40 }
0x10ec   : > { %5822 = vmatprep.subr.mxu1 %v5791_v47  ;;  %v5691_v14 = vpop.permute.xlu1 %5690 }
0x10ed   : > { %5823 = vmatpush1.msra.mxu1 %v5790_v56 }
0x10ee   : > { %v5715_v1 = vpop.permute.xlu0 %5714  ;;  %5824 = vmatprep.subr.mxu1 %v5789_v62 }
0x10ef   : > { %5825 = vmatpush1.msra.mxu1 %v5788_v5  ;;  %v5719_v0 = vsel %vm2282_vm14, %v5713_v60, %v5715_v1  ;;  %v5594_v60 = vmul.f32 %v10479_v46, %v7696_v7  ;;  %v7581_v7 = vld [vmem:[%s11060_s3] sm:$0xff]  ;;  %v7583_v46 = vld [vmem:[%s11060_s3 + $0x10] sm:$0xff]  ;;  %v7586_v1 = vld [vmem:[%s11060_s3 + $0x38] sm:$0xff] }
0x10f0   : > { %v5665_v61 = vpop.permute.xlu1 %5664  ;;  %v7585_v5 = vld [vmem:[%s11060_s3 + $0x20] sm:$0xff] }
0x10f2   : > { %v5643_v54 = vpop.permute.xlu0 %5642 }
0x10f4   : > { %v5641_v32 = vpop.permute.xlu1 %5640 }
0x10f5   : > { %v5647_v17 = vsel %vm2250_vm15, %v5641_v32, %v5643_v54  ;;  %v7588_v54 = vld [vmem:[%s11060_s3 + $0x48] sm:$0xff] }
0x10f6   : > { %v5767_v16 = vpop.permute.xlu0 %5766 }
0x10f8   : > { %v5765_v50 = vpop.permute.xlu1 %5764 }
0x10f9   : > { %v5770_v37 = vsel %vm2307_vm7, %v5763_v3, %v5765_v50  ;;  %v5771_v20 = vsel %vm2307_vm7, %v5765_v50, %v5767_v16  ;;  %v7590_v16 = vld [vmem:[%s11060_s3 + $0x58] sm:$0xff]  ;;  %v7591_v50 = vld [vmem:[%s11060_s3 + $0x50] sm:$0xff] }
0x10fa   : > { %v5741_v48 = vpop.permute.xlu0 %5740  ;;  %5826 = vmatprep.subr.mxu1 %v5771_v20  ;;  %v7593_v20 = vld [vmem:[%s11060_s3 + $0x60] sm:$0xff] }
0x10fb   : > { %5827 = vmatpush1.msra.mxu1 %v5770_v37  ;;  %v7592_v37 = vld [vmem:[%s11060_s3 + $0x68] sm:$0xff] }
0x10fc   : > { %5828 = vmatprep.subr.mxu1 %v5769_v23  ;;  %v5739_v45 = vpop.permute.xlu1 %5738  ;;  %v7595_v23 = vld [vmem:[%s11060_s3 + $0x70] sm:$0xff] }
0x10fd   : > { %v5744_v21 = vsel %vm2293_vm8, %v5737_v41, %v5739_v45  ;;  %5829 = vmatpush1.msra.mxu1 %v5768_v36  ;;  %v5745_v55 = vsel %vm2293_vm8, %v5739_v45, %v5741_v48  ;;  %v7594_v48 = vld [vmem:[%s11060_s3 + $0x78] sm:$0xff] }
0x10fe   : > { %v5635_v42 = vpop.permute.xlu0 %5634  ;;  %5830 = vmatprep.subr.mxu1 %v5745_v55  ;;  %v11448_v55 = vld [vmem:[#allocation101_spill] sm:$0xff] }
0x10ff   : > { %5831 = vmatpush1.msra.mxu1 %v5744_v21 }
0x1100   : > { %5832 = vmatprep.subr.mxu1 %v5743_v51  ;;  %v5639_v63 = vpop.permute.xlu1 %5638 }
0x1101   : > { %5833 = vmatpush1.msra.mxu1 %v5742_v43  ;;  %v5646_v59 = vsel %vm2250_vm15, %v5639_v63, %v5641_v32  ;;  %v7589_v32 = vld [vmem:[%s11060_s3 + $0x40] sm:$0xff]  ;;  %v11449_v43 = vld [vmem:[#allocation102_spill] sm:$0xff] }
0x1102   : > { %v5695_v52 = vpop.permute.xlu0 %5694  ;;  %5834 = vmatprep.subr.mxu1 %v5719_v0 }
0x1103   : > { %5835 = vmatpush1.msra.mxu1 %v5718_v13 }
0x1104   : > { %5836 = vmatprep.subr.mxu1 %v5717_v4  ;;  %v5693_v27 = vpop.permute.xlu1 %5692 }
0x1105   : > { %v5698_v25 = vsel %vm2275_vm9, %v5691_v14, %v5693_v27  ;;  %5837 = vmatpush1.msra.mxu1 %v5716_v34  ;;  %v5699_v30 = vsel %vm2275_vm9, %v5693_v27, %v5695_v52  ;;  %v11450_v52 = vld [vmem:[#allocation103_spill] sm:$0xff] }
0x1106   : > { %v5669_v57 = vpop.permute.xlu0 %5668  ;;  %5838 = vmatprep.subr.mxu1 %v5699_v30 }
0x1107   : > { %5839 = vmatpush1.msra.mxu1 %v5698_v25 }
0x1108   : > { %5840 = vmatprep.subr.mxu1 %v5697_v53  ;;  %v5667_v19 = vpop.permute.xlu1 %5666 }
0x1109   : > { %v5672_v29 = vsel %vm2261_vm10, %v5665_v61, %v5667_v19  ;;  %5841 = vmatpush1.msra.mxu1 %v5696_v38  ;;  %v5673_v58 = vsel %vm2261_vm10, %v5667_v19, %v5669_v57  ;;  %v7587_v61 = vld [vmem:[%s11060_s3 + $0x30] sm:$0xff]  ;;  %v11451_v57 = vld [vmem:[#allocation104_spill] sm:$0xff] }
0x110a   : > { %v5633_v49 = vpop.permute.xlu0 %5632  ;;  %5842 = vmatprep.subr.mxu1 %v5673_v58 }
0x110b   : > { %5843 = vmatpush1.msra.mxu1 %v5672_v29  ;;  %v5644_v3 = vsel %vm2250_vm15, %v5633_v49, %v5635_v42  ;;  %v11452_v49 = vld [vmem:[#allocation105_spill] sm:$0xff] }
0x110c   : > { %5844 = vmatprep.subr.mxu1 %v5671_v35  ;;  %v5637_v28 = vpop.permute.xlu1 %5636 }
0x110d   : > { %5845 = vmatpush1.msra.mxu1 %v5670_v6  ;;  %v5645_v44 = vsel %vm2250_vm15, %v5635_v42, %v5637_v28 }
0x110e   : > { %v5805_v11 = vpop.permute.xlu0 %5804  ;;  %5846 = vmatprep.subr.mxu1 %v5647_v17 }
0x110f   : > { %5847 = vmatpush1.msra.mxu1 %v5646_v59  ;;  %v11453_v59 = vld [vmem:[#allocation106_spill] sm:$0xff] }
0x1110   : > { %5848 = vmatprep.subr.mxu1 %v5645_v44  ;;  %v5809_v10 = vpop.permute.xlu1 %5808 }
0x1111   : > { %5849 = vmatpush1.msra.mxu1 %v5644_v3 }
0x1112   : > { %v5813_v41 = vpop.permute.xlu0 %5812  ;;  %5850 = vmatprep.subr.mxu1 %v5597_v2  ;;  %v11454_v2 = vld [vmem:[#allocation107_spill] sm:$0xff] }
0x1113   : > { %5851 = vmatpush1.msra.mxu1 %v5596_v12 }
0x1114   : > { %5852 = vmatprep.subr.mxu1 %v5595_v15  ;;  %v5811_v40 = vpop.permute.xlu1 %5810 }
0x1115   : > { %v5816_v47 = vsel %vm2325_vm11, %v5809_v10, %v5811_v40  ;;  %5853 = vmatpush1.msra.mxu1 %v5594_v60  ;;  %v5817_v31 = vsel %vm2325_vm11, %v5811_v40, %v5813_v41 }
0x1116   : > { %5882 = vmatprep.subr.mxu1 %v5817_v31  ;;  %v5803_v56 = vpop.permute.xlu0 %5802 }
0x1117   : > { %5883 = vmatpush2.msra.mxu1 %v5816_v47  ;;  %v5814_v62 = vsel %vm2325_vm11, %v5803_v56, %v5805_v11  ;;  %v11455_v47 = vld [vmem:[#allocation108_spill] sm:$0xff] }
0x1118   : > { %v5807_v22 = vpop.permute.xlu1 %5806 }
0x1119   : > { %v5815_v14 = vsel %vm2325_vm11, %v5805_v11, %v5807_v22 }
0x111a   : > { %5884 = vmatprep.subr.mxu1 %v5815_v14 }
0x111b   : > { %5885 = vmatpush2.msra.mxu1 %v5814_v62 }
0x111c   : > { %5887 = vmatmul.mubr.f32.vlgmr.msra.gmra.mxu1 %v7581_v7  ;;  %v11456_v7 = vld [vmem:[#allocation109_spill] sm:$0xff] }
0x111d   : > { %6879 = vmatprep.mubr.msk.f32.mxu1 %vm2203_vm5, %v7582_v9 }
0x1120   : > { %5893 = vmatmul.mubr.f32.gmra.mxu1 %v7583_v46 }
0x1121   : > { %6880 = vmatprep.mubr.msk.f32.mxu1 %vm2203_vm5, %v7584_v24 }
0x1123   : > { %v1965_v21 = vpop.permute.xlu0 %1964 }
0x1124   : > { %5899 = vmatmul.mubr.f32.gmra.mxu1 %v7585_v5  ;;  %v2102_v12 = vadd.f32 %v11454_v2, %v1965_v21  ;;  %v2104_v31 = vadd.f32 %v11455_v47, %v1965_v21  ;;  %v11459_v21 = vld [vmem:[#allocation112_spill] sm:$0xff] }
0x1125   : > { %6881 = vmatprep.mubr.msk.f32.mxu1 %vm2203_vm5, %v7586_v1  ;;  %v1955_v36 = vpop.permute.xlu1 %1954  ;;  %v11457_v1 = vld [vmem:[#allocation110_spill] sm:$0xff] }
0x1126   : > { %v2090_v4 = vadd.f32 %v11450_v52, %v1955_v36  ;;  %v2092_v53 = vadd.f32 %v11451_v57, %v1955_v36 }
0x1127   : > { %v1960_v25 = vpop.permute.xlu0 %1959 }
0x1128   : > { %5905 = vmatmul.mubr.f32.gmra.mxu1 %v7587_v61  ;;  %v2096_v35 = vadd.f32 %v11452_v49, %v1960_v25  ;;  %v2098_v11 = vadd.f32 %v11453_v59, %v1960_v25  ;;  %v11462_v59 = vld [vmem:[#allocation115_spill] sm:$0xff] }
0x1129   : > { %6882 = vmatprep.mubr.msk.f32.mxu1 %vm2203_vm5, %v7588_v54  ;;  %v1950_v45 = vpop.permute.xlu1 %1949 }
0x112a   : > { %v2084_v42 = vadd.f32 %v11448_v55, %v1950_v45  ;;  %v2086_v63 = vadd.f32 %v11449_v43, %v1950_v45 }
0x112b   : > { %v1985_v62 = vpop.permute.xlu0 %1984 }
0x112c   : > { %5911 = vmatmul.mubr.f32.gmra.mxu1 %v7589_v32 }
0x112d   : > { %6883 = vmatprep.mubr.msk.f32.mxu1 %vm2203_vm5, %v7590_v16  ;;  %v1975_v29 = vpop.permute.xlu1 %1974 }
0x112e   : > { %v2116_v55 = vadd.f32 %v11459_v21, %v1975_v29 }
0x1130   : > { %5917 = vmatmul.mubr.f32.gmra.mxu1 %v7591_v50  ;;  %v11458_v50 = vld [vmem:[#allocation111_spill] sm:$0xff] }
0x1131   : > { %6884 = vmatprep.mubr.msk.f32.mxu1 %vm2203_vm5, %v7592_v37  ;;  %v1970_v60 = vpop.permute.xlu1 %1969  ;;  %v2114_v37 = vadd.f32 %v11458_v50, %v1975_v29 }
0x1132   : > { %v2108_v9 = vadd.f32 %v11456_v7, %v1970_v60  ;;  %v2110_v61 = vadd.f32 %v11457_v1, %v1970_v60 }
0x1134   : > { %5923 = vmatmul.mubr.f32.gmra.mxu1 %v7593_v20 }
0x1135   : > { %6885 = vmatprep.mubr.msk.f32.mxu1 %vm2203_vm5, %v7594_v48 }
0x1138   : > { %5929 = vmatmul.mubr.f32.gmra.mxu1 %v7595_v23 }
0x11dc   : > { %v5888_v51 = vpop.f32.mrf.mxu1 }
0x11dd   : > { %v5935_v0 = vadd.f32 %v5888_v51, %v2084_v42  ;;  %v1980_v51 = vpop.permute.xlu0 %1979 }
0x11de   : > { %v5890_v13 = vpop.f32.mrf.mxu1 }
0x11df   : > { %v6886_v34 = vmul.f32 -1.442695, %v5935_v0  ;;  %v5936_v27 = vadd.f32 %v5890_v13, %v2086_v63 }
0x11e0   : > { %v5894_v30 = vpop.f32.mrf.mxu1 }
0x11e1   : > { %7453 = vpow2.f32 %v6886_v34  ;;  %v6887_v38 = vmul.f32 -1.442695, %v5936_v27  ;;  %v5937_v19 = vadd.f32 %v5894_v30, %v2090_v4  ;;  %v11460_v30 = vld [vmem:[#allocation113_spill] sm:$0xff] }
0x11e2   : > { %v5896_v58 = vpop.f32.mrf.mxu1  ;;  %v2120_v57 = vadd.f32 %v11460_v30, %v1980_v51 }
0x11e3   : > { %7455 = vpow2.f32 %v6887_v38  ;;  %v6888_v6 = vmul.f32 -1.442695, %v5937_v19  ;;  %v5938_v28 = vadd.f32 %v5896_v58, %v2092_v53  ;;  %v11461_v58 = vld [vmem:[#allocation114_spill] sm:$0xff] }
0x11e4   : > { %v5900_v17 = vpop.f32.mrf.mxu1  ;;  %v2122_v49 = vadd.f32 %v11461_v58, %v1980_v51 }
0x11e5   : > { %7457 = vpow2.f32 %v6888_v6  ;;  %v6889_v44 = vmul.f32 -1.442695, %v5938_v28  ;;  %v5939_v3 = vadd.f32 %v5900_v17, %v2096_v35 }
0x11e6   : > { %v5902_v10 = vpop.f32.mrf.mxu1 }
0x11e7   : > { %7459 = vpow2.f32 %v6889_v44  ;;  %v6890_v41 = vmul.f32 -1.442695, %v5939_v3  ;;  %v5940_v15 = vadd.f32 %v5902_v10, %v2098_v11  ;;  %v2126_v11 = vadd.f32 %v11462_v59, %v1985_v62 }
0x11e8   : > { %v5906_v40 = vpop.f32.mrf.mxu1 }
0x11e9   : > { %7461 = vpow2.f32 %v6890_v41  ;;  %v6891_v56 = vmul.f32 -1.442695, %v5940_v15  ;;  %v5941_v22 = vadd.f32 %v5906_v40, %v2102_v12  ;;  %v11463_v12 = vld [vmem:[#allocation116_spill] sm:$0xff] }
0x11ea   : > { %v5908_v14 = vpop.f32.mrf.mxu1  ;;  %v2128_v41 = vadd.f32 %v11463_v12, %v1985_v62  ;;  %v6902_v12 = vld [vmem:[%s11062_s5 + $0x5] ss:$8 sm:$0x3] }
0x11eb   : > { %7463 = vpow2.f32 %v6891_v56  ;;  %v6892_v46 = vmul.f32 -1.442695, %v5941_v22  ;;  %v5942_v24 = vadd.f32 %v5908_v14, %v2104_v31 }
0x11ec   : > { %v5912_v5 = vpop.f32.mrf.mxu1 }
0x11ed   : > { %7465 = vpow2.f32 %v6892_v46  ;;  %v6893_v54 = vmul.f32 -1.442695, %v5942_v24  ;;  %v5943_v32 = vadd.f32 %v5912_v5, %v2108_v9 }
0x11ee   : > { %v7454_v16 = vpop.eup %7453  ;;  %v5914_v20 = vpop.f32.mrf.mxu1 }
0x11ef   : > { %v5987_v48 = vadd.f32 1.0, %v7454_v16  ;;  %7467 = vpow2.f32 %v6893_v54  ;;  %v6894_v23 = vmul.f32 -1.442695, %v5943_v32  ;;  %v5944_v36 = vadd.f32 %v5914_v20, %v2110_v61 }
0x11f0   : > { %v7456_v45 = vpop.eup %7455  ;;  %v5918_v42 = vpop.f32.mrf.mxu1 }
0x11f1   : > { %7469 = vrcp.f32 %v5987_v48  ;;  %v5988_v43 = vadd.f32 1.0, %v7456_v45  ;;  %v6895_v63 = vmul.f32 -1.442695, %v5944_v36  ;;  %v5945_v0 = vadd.f32 %v5918_v42, %v2114_v37 }
0x11f2   : > { %v7458_v13 = vpop.eup %7457  ;;  %7471 = vpow2.f32 %v6894_v23  ;;  %v5920_v52 = vpop.f32.mrf.mxu1 }
0x11f3   : > { %7473 = vrcp.f32 %v5988_v43  ;;  %v5989_v4 = vadd.f32 1.0, %v7458_v13  ;;  %v6896_v34 = vmul.f32 -1.442695, %v5945_v0  ;;  %v5946_v27 = vadd.f32 %v5920_v52, %v2116_v55 }
0x11f4   : > { %v7460_v25 = vpop.eup %7459  ;;  %7475 = vpow2.f32 %v6895_v63  ;;  %v5924_v53 = vpop.f32.mrf.mxu1 }
0x11f5   : > { %7477 = vrcp.f32 %v5989_v4  ;;  %v5990_v38 = vadd.f32 1.0, %v7460_v25  ;;  %v6897_v19 = vmul.f32 -1.442695, %v5946_v27  ;;  %v5947_v35 = vadd.f32 %v5924_v53, %v2120_v57  ;;  %v11464_v57 = vld [vmem:[#allocation3_spill] sm:$0xff] }
0x11f6   : > { %v7462_v29 = vpop.eup %7461  ;;  %7479 = vpow2.f32 %v6896_v34  ;;  %v5926_v6 = vpop.f32.mrf.mxu1 }
0x11f7   : > { %7481 = vrcp.f32 %v5990_v38  ;;  %v5991_v28 = vadd.f32 1.0, %v7462_v29  ;;  %v5948_v44 = vadd.f32 %v5926_v6, %v2122_v49 }
0x11f8   : > { %v7464_v17 = vpop.eup %7463  ;;  %7483 = vpow2.f32 %v6897_v19  ;;  %v5930_v3 = vpop.f32.mrf.mxu1 }
0x11f9   : > { %7485 = vrcp.f32 %v5991_v28  ;;  %v5992_v10 = vadd.f32 1.0, %v7464_v17  ;;  %v5949_v15 = vadd.f32 %v5930_v3, %v2126_v11 }
0x11fa   : > { %v7466_v2 = vpop.eup %7465  ;;  %7487 = vtanh.f32 %v5947_v35  ;;  %v5932_v60 = vpop.f32.mrf.mxu1  ;;  %v6903_v35 = vld [vmem:[%s11062_s5 + $0x6] ss:$8 sm:$0x3] }
0x11fb   : > { %7489 = vrcp.f32 %v5992_v10  ;;  %v5993_v40 = vadd.f32 1.0, %v7466_v2  ;;  %v5950_v31 = vadd.f32 %v5932_v60, %v2128_v41  ;;  %v6190_v10 = vrot.slane %v6903_v35, %v11464_v57 }
0x11fc   : > { %v7468_v47 = vpop.eup %7467  ;;  %7491 = vtanh.f32 %v5948_v44 }
0x11fd   : > { %7493 = vrcp.f32 %v5993_v40  ;;  %v5994_v56 = vadd.f32 1.0, %v7468_v47 }
0x11fe   : > { %v7470_v22 = vpop.eup %7469  ;;  %7495 = vtanh.f32 %v5949_v15 }
0x11ff   : > { %v7472_v14 = vpop.eup %7471  ;;  %7497 = vrcp.f32 %v5994_v56 }
0x1200   : > { %v7474_v7 = vpop.eup %7473  ;;  %7499 = vtanh.f32 %v5950_v31  ;;  %v5995_v54 = vadd.f32 1.0, %v7472_v14  ;;  %v6167_v31 = vrot.slane %v6902_v12, %v11464_v57 }
0x1201   : > { %v7476_v9 = vpop.eup %7475 }
0x1202   : > { %v7478_v46 = vpop.eup %7477  ;;  %v5996_v20 = vadd.f32 1.0, %v7476_v9  ;;  %7501 = vrcp.f32 %v5995_v54  ;;  %v6901_v9 = vld [vmem:[%s11062_s5 + $0x4] ss:$8 sm:$0x3] }
0x1203   : > { %v7480_v24 = vpop.eup %7479 }
0x1204   : > { %v7482_v62 = vpop.eup %7481  ;;  %v5997_v55 = vadd.f32 1.0, %v7480_v24 }
0x1205   : > { %v7484_v5 = vpop.eup %7483 }
0x1206   : > { %v7486_v1 = vpop.eup %7485 }
0x1207   : > { %v7488_v61 = vpop.eup %7487  ;;  %v6027_v32 = vmul.f32 %v7486_v1, %v10460_v18  ;;  %v5998_v18 = vadd.f32 1.0, %v7484_v5  ;;  %v6144_v5 = vrot.slane %v6901_v9, %v11464_v57 }
0x1208   : > { %v7490_v16 = vpop.eup %7489  ;;  %v6031_v50 = vmul.f32 %v7488_v61, %v7470_v22 }
0x1209   : > { %v7492_v37 = vpop.eup %7491  ;;  %v6028_v48 = vmul.f32 %v7490_v16, %v10464_v39  ;;  %v6900_v16 = vld [vmem:[%s11062_s5 + $0x3] ss:$8 sm:$0x3] }
0x120a   : > { %v7494_v23 = vpop.eup %7493  ;;  %v6035_v36 = vadd.f32 %v6031_v50, %v6027_v32  ;;  %v6032_v45 = vmul.f32 %v7492_v37, %v7474_v7 }
0x120b   : > { %v7496_v21 = vpop.eup %7495  ;;  %v6029_v42 = vmul.f32 %v7494_v23, %v10468_v26  ;;  %v6904_v26 = vld [vmem:[%s11062_s5 + $0x7] ss:$8 sm:$0x3] }
0x120c   : > { %v7498_v51 = vpop.eup %7497  ;;  %7503 = vtanh.f32 %v6035_v36  ;;  %v6036_v43 = vadd.f32 %v6032_v45, %v6028_v48  ;;  %v6033_v63 = vmul.f32 %v7496_v21, %v7478_v46  ;;  %v6213_v53 = vrot.slane %v6904_v26, %v11464_v57 }
0x120d   : > { %v7500_v0 = vpop.eup %7499  ;;  %7505 = vrcp.f32 %v5996_v20  ;;  %v6030_v13 = vmul.f32 %v7498_v51, %v10471_v8  ;;  %v11465_v8 = vld [vmem:[#allocation4_spill] sm:$0xff]  ;;  %v6121_v48 = vrot.slane %v6900_v16, %v11464_v57 }
0x120e   : > { %7507 = vtanh.f32 %v6036_v43  ;;  %v6037_v52 = vadd.f32 %v6033_v63, %v6029_v42  ;;  %v6034_v39 = vmul.f32 %v7500_v0, %v7482_v62  ;;  %v6217_v38 = vrot.slane %v6904_v26, %v11465_v8 }
0x120f   : > { %7509 = vrcp.f32 %v5997_v55  ;;  %v7502_v34 = vpop.eup %7501  ;;  %v6194_v2 = vrot.slane %v6903_v35, %v11465_v8  ;;  %v6171_v41 = vrot.slane %v6902_v12, %v11465_v8  ;;  %v6148_v62 = vrot.slane %v6901_v9, %v11465_v8  ;;  %v6899_v55 = vld [vmem:[%s11062_s5 + $0x2] ss:$8 sm:$0x3] }
0x1210   : > { %7511 = vtanh.f32 %v6037_v52  ;;  %v6038_v4 = vadd.f32 %v6034_v39, %v6030_v13  ;;  %v6125_v20 = vrot.slane %v6900_v16, %v11465_v8  ;;  %v6102_v43 = vrot.slane %v6899_v55, %v11465_v8  ;;  %v6898_v39 = vld [vmem:[%s11062_s5 + $0x1] ss:$8 sm:$0x3] }
0x1211   : > { %7513 = vrcp.f32 %v5998_v18  ;;  %v6098_v63 = vrot.slane %v6899_v55, %v11464_v57  ;;  %v6256_v55 = vld [vmem:[%s11063_s6 + $0x18] sm:$0xff] }
0x1212   : > { %7515 = vtanh.f32 %v6038_v4 }
0x1219   : > { %v7504_v27 = vpop.eup %7503 }
0x121a   : > { %v7506_v25 = vpop.eup %7505  ;;  %v10757_v30 = vmul.f32 %v7504_v27, %v7502_v34  ;;  %v6079_v34 = vrot.slane %v6898_v39, %v11465_v8  ;;  %v6075_v27 = vrot.slane %v6898_v39, %v11464_v57  ;;  %v6266_v39 = vld [vmem:[%s11063_s6 + $0x68] sm:$0xff] }
0x121b   : > { %v7508_v19 = vpop.eup %7507 }
0x121c   : > { %v7510_v29 = vpop.eup %7509  ;;  %v10761_v58 = vmul.f32 %v7508_v19, %v7506_v25  ;;  %v6220_v17 = vmul.f32 %v6213_v53, %v10757_v30  ;;  %v6197_v24 = vmul.f32 %v6190_v10, %v10757_v30  ;;  %v6174_v37 = vmul.f32 %v6167_v31, %v10757_v30 }
0x121d   : > { %v7512_v49 = vpop.eup %7511  ;;  %v6151_v51 = vmul.f32 %v6144_v5, %v10757_v30  ;;  %v6128_v26 = vmul.f32 %v6121_v48, %v10757_v30  ;;  %v6105_v35 = vmul.f32 %v6098_v63, %v10757_v30 }
0x121e   : > { %v7514_v6 = vpop.eup %7513  ;;  %v10766_v28 = vmul.f32 %v7512_v49, %v7510_v29  ;;  %v6221_v59 = vmul.f32 %v6217_v38, %v10761_v58  ;;  %v6198_v7 = vmul.f32 %v6194_v2, %v10761_v58  ;;  %v6175_v32 = vmul.f32 %v6171_v41, %v10761_v58  ;;  %v6047_v29 = vld [vmem:[%s11062_s5] ss:$8 sm:$0x3] }
0x121f   : > { %v7516_v11 = vpop.eup %7515  ;;  %v6152_v21 = vmul.f32 %v6148_v62, %v10761_v58  ;;  %v6129_v52 = vmul.f32 %v6125_v20, %v10761_v58  ;;  %v6106_v19 = vmul.f32 %v6102_v43, %v10761_v58 }
0x1220   : > { %v10770_v44 = vmul.f32 %v7516_v11, %v7514_v6  ;;  %v6224_v3 = vadd.f32 %v6221_v59, %v6220_v17  ;;  %v6222_v15 = vmul.f32 %v6213_v53, %v10766_v28  ;;  %v6199_v40 = vmul.f32 %v6190_v10, %v10766_v28 }
0x1221   : > { %v6176_v46 = vmul.f32 %v6167_v31, %v10766_v28  ;;  %v6201_v61 = vadd.f32 %v6198_v7, %v6197_v24  ;;  %v6153_v50 = vmul.f32 %v6144_v5, %v10766_v28  ;;  %v6178_v36 = vadd.f32 %v6175_v32, %v6174_v37 }
0x1222   : > { %6225 = vadd.xlane.f32.xlu0 %v6224_v3  ;;  %v6223_v60 = vmul.f32 %v6217_v38, %v10770_v44  ;;  %v6200_v47 = vmul.f32 %v6194_v2, %v10770_v44  ;;  %v6177_v14 = vmul.f32 %v6171_v41, %v10770_v44  ;;  %v6154_v54 = vmul.f32 %v6148_v62, %v10770_v44  ;;  %v6905_v2 = vld [vmem:[%s11062_s5 + $0x10] ss:$8 sm:$0x3] }
0x1223   : > { %v6131_v45 = vmul.f32 %v6125_v20, %v10770_v44  ;;  %v6130_v42 = vmul.f32 %v6121_v48, %v10766_v28  ;;  %v6155_v18 = vadd.f32 %v6152_v21, %v6151_v51  ;;  %v6108_v13 = vmul.f32 %v6102_v43, %v10770_v44  ;;  %v6258_v51 = vld [vmem:[%s11063_s6 + $0x28] sm:$0xff]  ;;  %v6260_v43 = vld [vmem:[%s11063_s6 + $0x38] sm:$0xff] }
0x1224   : > { %v6227_v56 = vadd.f32 %v6223_v60, %v6222_v15  ;;  %v6204_v22 = vadd.f32 %v6200_v47, %v6199_v40  ;;  %v6181_v1 = vadd.f32 %v6177_v14, %v6176_v46  ;;  %v6158_v23 = vadd.f32 %v6154_v54, %v6153_v50 }
0x1225   : > { %v6135_v0 = vadd.f32 %v6131_v45, %v6130_v42  ;;  %v6107_v4 = vmul.f32 %v6098_v63, %v10766_v28  ;;  %v6132_v53 = vadd.f32 %v6129_v52, %v6128_v26  ;;  %v6085_v38 = vmul.f32 %v6079_v34, %v10770_v44  ;;  %v6253_v45 = vld [vmem:[%s11063_s6] sm:$0xff]  ;;  %v6255_v42 = vld [vmem:[%s11063_s6 + $0x10] sm:$0xff]  ;;  %v6268_v26 = vld [vmem:[%s11063_s6 + $0x78] sm:$0xff] }
0x1226   : > { %6228 = vadd.xlane.f32.xlu1 %v6227_v56  ;;  %6205 = vadd.xlane.f32.xlu0 %v6204_v22  ;;  %v6084_v49 = vmul.f32 %v6075_v27, %v10766_v28  ;;  %v6056_v6 = vrot.slane %v6047_v29, %v11465_v8  ;;  %v6052_v17 = vrot.slane %v6047_v29, %v11464_v57  ;;  %v6259_v63 = vld [vmem:[%s11063_s6 + $0x30] sm:$0xff]  ;;  %v6273_v29 = vld [vmem:[%s11063_s6 + $0xa0] sm:$0xff] }
0x1227   : > { %v6112_v25 = vadd.f32 %v6108_v13, %v6107_v4  ;;  %v6109_v11 = vadd.f32 %v6106_v19, %v6105_v35  ;;  %v6083_v10 = vmul.f32 %v6079_v34, %v10761_v58  ;;  %v6082_v41 = vmul.f32 %v6075_v27, %v10757_v30  ;;  %v6264_v13 = vld [vmem:[%s11063_s6 + $0x58] sm:$0xff]  ;;  %v6263_v52 = vld [vmem:[%s11063_s6 + $0x50] sm:$0xff]  ;;  %v6265_v4 = vld [vmem:[%s11063_s6 + $0x60] sm:$0xff] }
0x1228   : > { %v6089_v59 = vadd.f32 %v6085_v38, %v6084_v49  ;;  %v6062_v3 = vmul.f32 %v6056_v6, %v10770_v44  ;;  %v6061_v12 = vmul.f32 %v6052_v17, %v10766_v28  ;;  %v6240_v15 = vrot.slane %v6905_v2, %v11465_v8  ;;  %v6267_v34 = vld [vmem:[%s11063_s6 + $0x70] sm:$0xff]  ;;  %v6270_v27 = vld [vmem:[%s11063_s6 + $0x88] sm:$0xff]  ;;  %v6276_v49 = vld [vmem:[%s11063_s6 + $0xb8] sm:$0xff] }
0x1229   : > { %v6236_v60 = vrot.slane %v6905_v2, %v11464_v57  ;;  %v6086_v47 = vadd.f32 %v6083_v10, %v6082_v41  ;;  %v6060_v56 = vmul.f32 %v6056_v6, %v10761_v58  ;;  %v6059_v14 = vmul.f32 %v6052_v17, %v10757_v30  ;;  %v6271_v38 = vld [vmem:[%s11063_s6 + $0x90] sm:$0xff]  ;;  %v6274_v19 = vld [vmem:[%s11063_s6 + $0xa8] sm:$0xff]  ;;  %v6277_v17 = vld [vmem:[%s11063_s6 + $0xc0] sm:$0xff] }
0x122a   : > { %6182 = vadd.xlane.f32.xlu0 %v6181_v1  ;;  %6202 = vadd.xlane.f32.xlu1 %v6201_v61  ;;  %v6066_v40 = vadd.f32 %v6062_v3, %v6061_v12  ;;  %v6246_v31 = vmul.f32 %v6240_v15, %v10770_v44  ;;  %v6244_v46 = vmul.f32 %v6240_v15, %v10761_v58  ;;  %v6254_v44 = vld [vmem:[%s11063_s6 + $0x8] sm:$0xff]  ;;  %v6275_v35 = vld [vmem:[%s11063_s6 + $0xb0] sm:$0xff]  ;;  %v6281_v10 = vld [vmem:[%s11063_s6 + $0xe0] sm:$0xff] }
0x122b   : > { %v6245_v22 = vmul.f32 %v6236_v60, %v10766_v28  ;;  %v6063_v9 = vadd.f32 %v6060_v56, %v6059_v14  ;;  %v6243_v57 = vmul.f32 %v6236_v60, %v10757_v30  ;;  %6906 = vmatprep.mubr.msk.f32.mxu0 %vm2203_vm5, %v6254_v44  ;;  %v6278_v6 = vld [vmem:[%s11063_s6 + $0xc8] sm:$0xff]  ;;  %v6284_v2 = vld [vmem:[%s11063_s6 + $0xf8] sm:$0xff]  ;;  %v6283_v12 = vld [vmem:[%s11063_s6 + $0xf0] sm:$0xff] }
0x122c   : > { %v6282_v3 = vld [vmem:[%s11063_s6 + $0xe8] sm:$0xff]  ;;  %v6510_v41 = vld [vmem:[%s11065_s8] sm:$0xff] }
0x122d   : > { %v6250_v7 = vadd.f32 %v6246_v31, %v6245_v22  ;;  %v6247_v8 = vadd.f32 %v6244_v46, %v6243_v57  ;;  %6976 = vmatprep.mubr.f32.mxu1 %v6510_v41 }
0x122e   : > { %6159 = vadd.xlane.f32.xlu0 %v6158_v23  ;;  %6179 = vadd.xlane.f32.xlu1 %v6178_v36 }
0x1232   : > { %6136 = vadd.xlane.f32.xlu0 %v6135_v0  ;;  %6156 = vadd.xlane.f32.xlu1 %v6155_v18  ;;  %v6262_v0 = vld [vmem:[%s11063_s6 + $0x48] sm:$0xff]  ;;  %v6261_v18 = vld [vmem:[%s11063_s6 + $0x40] sm:$0xff] }
0x1236   : > { %6113 = vadd.xlane.f32.xlu0 %v6112_v25  ;;  %6133 = vadd.xlane.f32.xlu1 %v6132_v53  ;;  %v6269_v25 = vld [vmem:[%s11063_s6 + $0x80] sm:$0xff]  ;;  %v6272_v53 = vld [vmem:[%s11063_s6 + $0x98] sm:$0xff] }
0x123a   : > { %6090 = vadd.xlane.f32.xlu0 %v6089_v59  ;;  %6110 = vadd.xlane.f32.xlu1 %v6109_v11  ;;  %v6280_v59 = vld [vmem:[%s11063_s6 + $0xd8] sm:$0xff]  ;;  %v6279_v11 = vld [vmem:[%s11063_s6 + $0xd0] sm:$0xff] }
0x123e   : > { %6067 = vadd.xlane.f32.xlu0 %v6066_v40  ;;  %6087 = vadd.xlane.f32.xlu1 %v6086_v47 }
0x1242   : > { %6251 = vadd.xlane.f32.xlu0 %v6250_v7  ;;  %6064 = vadd.xlane.f32.xlu1 %v6063_v9 }
0x1246   : > { %6248 = vadd.xlane.f32.xlu1 %v6247_v8 }
0x12ab   : > { %v6226_v24 = vpop.xlane.xlu0 %6225 }
0x12af   : > { %v6206_v28 = vpop.xlane.xlu0 %6205  ;;  %v6229_v62 = vpop.xlane.xlu1 %6228 }
0x12b0   : > { %6350 = vmatpush1.msra.mxu0 %v6229_v62 }
0x12b1   : > { %6351 = vmatprep.subr.mxu0 %v11410_v33 }
0x12b2   : > { %6352 = vmatpush1.msra.mxu0 %v6226_v24 }
0x12b3   : > { %v6183_v58 = vpop.xlane.xlu0 %6182  ;;  %6353 = vmatprep.subr.mxu0 %v11410_v33  ;;  %v6203_v5 = vpop.xlane.xlu1 %6202 }
0x12b4   : > { %6354 = vmatpush1.msra.mxu0 %v6206_v28 }
0x12b5   : > { %6355 = vmatprep.subr.mxu0 %v11410_v33 }
0x12b6   : > { %6356 = vmatpush1.msra.mxu0 %v6203_v5 }
0x12b7   : > { %v6160_v30 = vpop.xlane.xlu0 %6159  ;;  %6357 = vmatprep.subr.mxu0 %v11410_v33  ;;  %v6180_v1 = vpop.xlane.xlu1 %6179 }
0x12b8   : > { %6358 = vmatpush1.msra.mxu0 %v6183_v58 }
0x12b9   : > { %6359 = vmatprep.subr.mxu0 %v11410_v33 }
0x12ba   : > { %6360 = vmatpush1.msra.mxu0 %v6180_v1 }
0x12bb   : > { %v6137_v61 = vpop.xlane.xlu0 %6136  ;;  %6361 = vmatprep.subr.mxu0 %v11410_v33  ;;  %v6157_v54 = vpop.xlane.xlu1 %6156 }
0x12bc   : > { %6362 = vmatpush1.msra.mxu0 %v6160_v30 }
0x12bd   : > { %6363 = vmatprep.subr.mxu0 %v11410_v33 }
0x12be   : > { %6364 = vmatpush1.msra.mxu0 %v6157_v54 }
0x12bf   : > { %v6114_v32 = vpop.xlane.xlu0 %6113  ;;  %6365 = vmatprep.subr.mxu0 %v11410_v33  ;;  %v6134_v16 = vpop.xlane.xlu1 %6133 }
0x12c0   : > { %6366 = vmatpush1.msra.mxu0 %v6137_v61 }
0x12c1   : > { %6367 = vmatprep.subr.mxu0 %v11410_v33 }
0x12c2   : > { %6368 = vmatpush1.msra.mxu0 %v6134_v16 }
0x12c3   : > { %v6091_v50 = vpop.xlane.xlu0 %6090  ;;  %6369 = vmatprep.subr.mxu0 %v11410_v33  ;;  %v6111_v37 = vpop.xlane.xlu1 %6110 }
0x12c4   : > { %6370 = vmatpush1.msra.mxu0 %v6114_v32 }
0x12c5   : > { %6371 = vmatprep.subr.mxu0 %v11410_v33 }
0x12c6   : > { %6372 = vmatpush1.msra.mxu0 %v6111_v37 }
0x12c7   : > { %6373 = vmatprep.subr.mxu0 %v11410_v33  ;;  %v6088_v20 = vpop.xlane.xlu1 %6087  ;;  %v6068_v48 = vpop.xlane.xlu0 %6067 }
0x12c8   : > { %6374 = vmatpush1.msra.mxu0 %v6091_v50 }
0x12c9   : > { %6375 = vmatprep.subr.mxu0 %v11410_v33 }
0x12ca   : > { %6376 = vmatpush1.msra.mxu0 %v6088_v20 }
0x12cb   : > { %6377 = vmatprep.subr.mxu0 %v11410_v33  ;;  %v6065_v23 = vpop.xlane.xlu1 %6064  ;;  %v6252_v36 = vpop.xlane.xlu0 %6251 }
0x12cc   : > { %6378 = vmatpush1.msra.mxu0 %v6068_v48 }
0x12cd   : > { %6379 = vmatprep.subr.mxu0 %v11410_v33 }
0x12ce   : > { %6380 = vmatpush1.msra.mxu0 %v6065_v23  ;;  %v6299_v23 = vld [vmem:[%s11064_s7 + $0x70] sm:$0xff] }
0x12cf   : > { %6409 = vmatprep.subr.mxu0 %v11410_v33  ;;  %v6249_v21 = vpop.xlane.xlu1 %6248 }
0x12d0   : > { %6410 = vmatpush2.msra.mxu0 %v6252_v36 }
0x12d1   : > { %6411 = vmatprep.subr.mxu0 %v11410_v33  ;;  %v6257_v33 = vld [vmem:[%s11063_s6 + $0x20] sm:$0xff] }
0x12d2   : > { %6412 = vmatpush2.msra.mxu0 %v6249_v21  ;;  %v6298_v21 = vld [vmem:[%s11064_s7 + $0x68] sm:$0xff] }
0x12d3   : > { %6414 = vmatmul.mubr.f32.vlgmr.msra.gmra.mxu0 %v6253_v45  ;;  %v6300_v45 = vld [vmem:[%s11064_s7 + $0x78] sm:$0xff] }
0x12d4   : > { %6907 = vmatprep.mubr.msk.f32.mxu0 %vm2203_vm5, %v6256_v55 }
0x12d7   : > { %6419 = vmatmul.mubr.f32.gmra.mxu0 %v6255_v42 }
0x12d8   : > { %6908 = vmatprep.mubr.msk.f32.mxu0 %vm2203_vm5, %v6258_v51 }
0x12db   : > { %6424 = vmatmul.mubr.f32.gmra.mxu0 %v6257_v33  ;;  %v6297_v33 = vld [vmem:[%s11064_s7 + $0x60] sm:$0xff] }
0x12dc   : > { %6909 = vmatprep.mubr.msk.f32.mxu0 %vm2203_vm5, %v6260_v43 }
0x12df   : > { %6429 = vmatmul.mubr.f32.gmra.mxu0 %v6259_v63 }
0x12e0   : > { %6910 = vmatprep.mubr.msk.f32.mxu0 %vm2203_vm5, %v6262_v0 }
0x12e3   : > { %6434 = vmatmul.mubr.f32.gmra.mxu0 %v6261_v18  ;;  %v6296_v18 = vld [vmem:[%s11064_s7 + $0x58] sm:$0xff] }
0x12e4   : > { %6911 = vmatprep.mubr.msk.f32.mxu0 %vm2203_vm5, %v6264_v13 }
0x12e7   : > { %6439 = vmatmul.mubr.f32.gmra.mxu0 %v6263_v52 }
0x12e8   : > { %6912 = vmatprep.mubr.msk.f32.mxu0 %vm2203_vm5, %v6266_v39  ;;  %v6295_v39 = vld [vmem:[%s11064_s7 + $0x50] sm:$0xff] }
0x12eb   : > { %6444 = vmatmul.mubr.f32.gmra.mxu0 %v6265_v4 }
0x12ec   : > { %6913 = vmatprep.mubr.msk.f32.mxu0 %vm2203_vm5, %v6268_v26 }
0x12ef   : > { %6449 = vmatmul.mubr.f32.gmra.mxu0 %v6267_v34  ;;  %v6294_v34 = vld [vmem:[%s11064_s7 + $0x48] sm:$0xff] }
0x12f0   : > { %6914 = vmatprep.mubr.msk.f32.mxu0 %vm2203_vm5, %v6270_v27 }
0x12f3   : > { %6454 = vmatmul.mubr.f32.gmra.mxu0 %v6269_v25 }
0x12f4   : > { %6915 = vmatprep.mubr.msk.f32.mxu0 %vm2203_vm5, %v6272_v53  ;;  %v6293_v53 = vld [vmem:[%s11064_s7 + $0x40] sm:$0xff] }
0x12f7   : > { %6459 = vmatmul.mubr.f32.gmra.mxu0 %v6271_v38 }
0x12f8   : > { %6916 = vmatprep.mubr.msk.f32.mxu0 %vm2203_vm5, %v6274_v19 }
0x12fb   : > { %6464 = vmatmul.mubr.f32.gmra.mxu0 %v6273_v29  ;;  %v6292_v29 = vld [vmem:[%s11064_s7 + $0x38] sm:$0xff] }
0x12fc   : > { %6917 = vmatprep.mubr.msk.f32.mxu0 %vm2203_vm5, %v6276_v49 }
0x12ff   : > { %6469 = vmatmul.mubr.f32.gmra.mxu0 %v6275_v35 }
0x1300   : > { %6918 = vmatprep.mubr.msk.f32.mxu0 %vm2203_vm5, %v6278_v6  ;;  %v6291_v6 = vld [vmem:[%s11064_s7 + $0x30] sm:$0xff] }
0x1303   : > { %6474 = vmatmul.mubr.f32.gmra.mxu0 %v6277_v17 }
0x1304   : > { %6919 = vmatprep.mubr.msk.f32.mxu0 %vm2203_vm5, %v6280_v59 }
0x1307   : > { %6479 = vmatmul.mubr.f32.gmra.mxu0 %v6279_v11  ;;  %v6290_v11 = vld [vmem:[%s11064_s7 + $0x28] sm:$0xff] }
0x1308   : > { %6920 = vmatprep.mubr.msk.f32.mxu0 %vm2203_vm5, %v6282_v3 }
0x130b   : > { %6484 = vmatmul.mubr.f32.gmra.mxu0 %v6281_v10 }
0x130c   : > { %6921 = vmatprep.mubr.msk.f32.mxu0 %vm2203_vm5, %v6284_v2  ;;  %v6289_v2 = vld [vmem:[%s11064_s7 + $0x20] sm:$0xff] }
0x130f   : > { %6489 = vmatmul.mubr.f32.gmra.mxu0 %v6283_v12 }
0x1393   : > { %v10975_v15 = vpop.f32.mrf.mxu0 }
0x1395   : > { %v6417_v60 = vpop.f32.mrf.mxu0 }
0x1396   : > { %v6288_v60 = vld [vmem:[%s11064_s7 + $0x18] sm:$0xff] }
0x1397   : > { %v10977_v40 = vpop.f32.mrf.mxu0 }
0x1399   : > { %v6422_v47 = vpop.f32.mrf.mxu0 }
0x139b   : > { %v10979_v31 = vpop.f32.mrf.mxu0 }
0x139d   : > { %v6427_v56 = vpop.f32.mrf.mxu0 }
0x139f   : > { %v10981_v22 = vpop.f32.mrf.mxu0 }
0x13a1   : > { %v6432_v14 = vpop.f32.mrf.mxu0 }
0x13a2   : > { %v6287_v14 = vld [vmem:[%s11064_s7 + $0x10] sm:$0xff] }
0x13a3   : > { %v10983_v7 = vpop.f32.mrf.mxu0 }
0x13a4   : > { %v6436_v47 = vadd.f32 %v10983_v7, %v6289_v2  ;;  %v6285_v7 = vld [vmem:[%s11064_s7] sm:$0xff] }
0x13a5   : > { %v6437_v9 = vpop.f32.mrf.mxu0 }
0x13a6   : > { %v6431_v9 = vadd.f32 %v10981_v22, %v6288_v60  ;;  %v6416_v22 = vadd.f32 %v10975_v15, %v6285_v7  ;;  %v6513_v15 = vld [vmem:[%s11066_s9 + $0x8] sm:$0x3] }
0x13a7   : > { %v10985_v46 = vpop.f32.mrf.mxu0 }
0x13a8   : > { %v6441_v12 = vadd.f32 %v10985_v46, %v6290_v11  ;;  %v6286_v46 = vld [vmem:[%s11064_s7 + $0x8] sm:$0xff] }
0x13a9   : > { %v6442_v57 = vpop.f32.mrf.mxu0 }
0x13aa   : > { %v6499_v57 = vmax.f32 %v6441_v12, 0.0 }
0x13ab   : > { %v6445_v8 = vpop.f32.mrf.mxu0 }
0x13ac   : > { %v6446_v3 = vadd.f32 %v6445_v8, %v6291_v6  ;;  %v6426_v8 = vadd.f32 %v10979_v31, %v6287_v14  ;;  %v6494_v31 = vmax.f32 %v6416_v22, 0.0 }
0x13ad   : > { %v6447_v44 = vpop.f32.mrf.mxu0 }
0x13ae   : > { %v6500_v56 = vmax.f32 %v6446_v3, 0.0  ;;  %v6498_v44 = vmax.f32 %v6436_v47, 0.0 }
0x13af   : > { %v6450_v24 = vpop.f32.mrf.mxu0 }
0x13b0   : > { %v6451_v17 = vadd.f32 %v6450_v24, %v6292_v29  ;;  %v6421_v24 = vadd.f32 %v10977_v40, %v6286_v46 }
0x13b1   : > { %v6452_v28 = vpop.f32.mrf.mxu0 }
0x13b2   : > { %v6501_v41 = vmax.f32 %v6451_v17, 0.0  ;;  %v6497_v28 = vmax.f32 %v6431_v9, 0.0 }
0x13b3   : > { %v6455_v62 = vpop.f32.mrf.mxu0 }
0x13b4   : > { %v6456_v49 = vadd.f32 %v6455_v62, %v6293_v53  ;;  %v6496_v62 = vmax.f32 %v6426_v8, 0.0 }
0x13b5   : > { %v6457_v58 = vpop.f32.mrf.mxu0 }
0x13b6   : > { %v6502_v10 = vmax.f32 %v6456_v49, 0.0  ;;  %v6495_v58 = vmax.f32 %v6421_v24, 0.0 }
0x13b7   : > { %v6460_v5 = vpop.f32.mrf.mxu0 }
0x13b8   : > { %v6461_v38 = vadd.f32 %v6460_v5, %v6294_v34  ;;  %v6511_v5 = vld [vmem:[%s11065_s8 + $0x8] sm:$0x3] }
0x13b9   : > { %v6462_v30 = vpop.f32.mrf.mxu0 }
0x13ba   : > { %v6503_v59 = vmax.f32 %v6461_v38, 0.0  ;;  %v6512_v30 = vld [vmem:[%s11066_s9] sm:$0xff] }
0x13bb   : > { %v6465_v1 = vpop.f32.mrf.mxu0 }
0x13bc   : > { %v6466_v27 = vadd.f32 %v6465_v1, %v6295_v39 }
0x13bd   : > { %v6467_v61 = vpop.f32.mrf.mxu0 }
0x13be   : > { %v6504_v35 = vmax.f32 %v6466_v27, 0.0 }
0x13bf   : > { %v6470_v54 = vpop.f32.mrf.mxu0 }
0x13c0   : > { %v6471_v4 = vadd.f32 %v6470_v54, %v6296_v18 }
0x13c1   : > { %v6472_v32 = vpop.f32.mrf.mxu0 }
0x13c2   : > { %v6505_v19 = vmax.f32 %v6471_v4, 0.0 }
0x13c3   : > { %v6475_v16 = vpop.f32.mrf.mxu0 }
0x13c4   : > { %v6476_v13 = vadd.f32 %v6475_v16, %v6297_v33 }
0x13c5   : > { %v6477_v50 = vpop.f32.mrf.mxu0 }
0x13c6   : > { %v6506_v25 = vmax.f32 %v6476_v13, 0.0 }
0x13c7   : > { %v6480_v37 = vpop.f32.mrf.mxu0 }
0x13c8   : > { %v6481_v63 = vadd.f32 %v6480_v37, %v6298_v21 }
0x13c9   : > { %v6482_v20 = vpop.f32.mrf.mxu0 }
0x13ca   : > { %v6507_v26 = vmax.f32 %v6481_v63, 0.0 }
0x13cb   : > { %v6485_v48 = vpop.f32.mrf.mxu0 }
0x13cc   : > { %v6486_v42 = vadd.f32 %v6485_v48, %v6299_v23 }
0x13cd   : > { %v6487_v36 = vpop.f32.mrf.mxu0 }
0x13ce   : > { %v6508_v52 = vmax.f32 %v6486_v42, 0.0 }
0x13cf   : > { %v6490_v55 = vpop.f32.mrf.mxu0 }
0x13d0   : > { %v6491_v51 = vadd.f32 %v6490_v55, %v6300_v45 }
0x13d1   : > { %v6492_v43 = vpop.f32.mrf.mxu0 }
0x13d2   : > { %v6509_v0 = vmax.f32 %v6491_v51, 0.0 }
0x13d4   : > { %6944 = vmatprep.subr.mxu1 %v6509_v0 }
0x13d5   : > { %6945 = vmatpush3.msra.mxu1 %v6509_v0 }
0x13d6   : > { %6946 = vmatprep.subr.mxu1 %v6508_v52 }
0x13d7   : > { %6947 = vmatpush3.msra.mxu1 %v6508_v52 }
0x13d8   : > { %6948 = vmatprep.subr.mxu1 %v6507_v26 }
0x13d9   : > { %6949 = vmatpush3.msra.mxu1 %v6507_v26 }
0x13da   : > { %6950 = vmatprep.subr.mxu1 %v6506_v25 }
0x13db   : > { %6951 = vmatpush3.msra.mxu1 %v6506_v25 }
0x13dc   : > { %6952 = vmatprep.subr.mxu1 %v6505_v19 }
0x13dd   : > { %6953 = vmatpush3.msra.mxu1 %v6505_v19 }
0x13de   : > { %6954 = vmatprep.subr.mxu1 %v6504_v35 }
0x13df   : > { %6955 = vmatpush3.msra.mxu1 %v6504_v35 }
0x13e0   : > { %6956 = vmatprep.subr.mxu1 %v6503_v59 }
0x13e1   : > { %6957 = vmatpush3.msra.mxu1 %v6503_v59 }
0x13e2   : > { %6958 = vmatprep.subr.mxu1 %v6502_v10 }
0x13e3   : > { %6959 = vmatpush3.msra.mxu1 %v6502_v10 }
0x13e4   : > { %6960 = vmatprep.subr.mxu1 %v6501_v41 }
0x13e5   : > { %6961 = vmatpush3.msra.mxu1 %v6501_v41 }
0x13e6   : > { %6962 = vmatprep.subr.mxu1 %v6500_v56 }
0x13e7   : > { %6963 = vmatpush3.msra.mxu1 %v6500_v56 }
0x13e8   : > { %6964 = vmatprep.subr.mxu1 %v6499_v57 }
0x13e9   : > { %6965 = vmatpush3.msra.mxu1 %v6499_v57 }
0x13ea   : > { %6966 = vmatprep.subr.mxu1 %v6498_v44 }
0x13eb   : > { %6967 = vmatpush3.msra.mxu1 %v6498_v44 }
0x13ec   : > { %6968 = vmatprep.subr.mxu1 %v6497_v28 }
0x13ed   : > { %6969 = vmatpush3.msra.mxu1 %v6497_v28 }
0x13ee   : > { %6970 = vmatprep.subr.mxu1 %v6496_v62 }
0x13ef   : > { %6971 = vmatpush3.msra.mxu1 %v6496_v62 }
0x13f0   : > { %6972 = vmatprep.subr.mxu1 %v6495_v58 }
0x13f1   : > { %6973 = vmatpush3.msra.mxu1 %v6495_v58 }
0x13f2   : > { %6974 = vmatprep.subr.mxu1 %v6494_v31 }
0x13f3   : > { %6975 = vmatpush3.msra.mxu1 %v6494_v31 }
0x13f4   : > { %6977 = vmatmul.mubr.f32.vlgmr.msra.gmra.mxu1 %v6511_v5 }
0x14b4   : > { %v6978_v40 = vpop.f32.mrf.mxu1 }
0x14b5   : > { %v6586_v1 = vadd.f32 %v6978_v40, %v6513_v15 }
0x14b6   : > { %v6580_v61 = vpop.f32.mrf.mxu1 }
0x14b7   : > { %6592 = vst.msk [vmem:[%s359_s26 + $0x8] sm:$0x3] %vm6591_vm0, %v6586_v1  ;;  %v6581_v54 = vadd.f32 %v6580_v61, %v6512_v30 }
0x14b9   : > { %6590 = vst.msk [vmem:[%s359_s26] sm:$0xff] %vm6589_vm1, %v6581_v54 }
0x14ba PF: > { %s20_s13 = sadd.s32 1, %s7602_s13  }
0x14bb   : > { %p17_p4 = scmp.ge.s32.totalorder %s20_s13, 4  }
0x14bd   :  { %19 = sbr.rel (!%p17_p4) target bundleno = 1 (0x1), region = 99 }

</bundles_post_ra>
